<compile_context>
chip_gen: v7x
topology: tpu7x:2x2x1
jax: 0.10.0
libtpu: 0.0.40
codegen_flags: <defaults>
</compile_context>

<pallas_src>
import math
from functools import partial

import jax
import jax.numpy as jnp
from jax import lax
from jax.experimental import pallas as pl
from jax.experimental.pallas import tpu as pltpu

PRIMITIVES = [
    'none', 'max_pool_3x3', 'avg_pool_3x3', 'skip_connect',
    'sep_conv_3x3', 'sep_conv_5x5', 'dil_conv_3x3', 'dil_conv_5x5',
]
N_OPS = len(PRIMITIVES)
BN_EPS = 1e-5
INV_BN = 1.0 / math.sqrt(1.0 + BN_EPS)   # eval-mode BN, running_mean=0, running_var=1
MMDT = jnp.bfloat16                       # matmul operand dtype (f32 accumulation kept)
VMEM_LIMIT = 32 * 1024 * 1024             # explicit scoped-VMEM cap, <= physical on all gens


# ---------------------------------------------------------------------------
# Small helpers
# ---------------------------------------------------------------------------

def _pick_div_tile(n, target):
    """Largest multiple-of-8 divisor of n that is <= target (else n itself)."""
    if n <= target or n % 8 != 0:
        return n
    t = (target // 8) * 8
    while t >= 8:
        if n % t == 0:
            return t
        t -= 8
    return n


def _pick_tile_m(m, target=512, min_tile=256):
    """M tile for megacore-parallel matmuls: prefer >=2 tiles of >= min_tile rows so both
    v7x TensorCores are fed and the input DMA can overlap; never below min_tile."""
    if m % 8 != 0:
        return m
    t = (min(target, m // 2) // 8) * 8
    while t >= min_tile:
        if m % t == 0:
            return t
        t -= 8
    if m <= target:
        return m
    t = (target // 8) * 8
    while t >= 8:
        if m % t == 0:
            return t
        t -= 8
    return m


def _nbytes(shape, dtype):
    n = 1
    for d in shape:
        n *= int(d)
    return n * jnp.dtype(dtype).itemsize


def _assert_vmem(blocks):
    """Double-buffered tile footprint must fit comfortably under the scoped VMEM budget."""
    total = sum(2 * _nbytes(s, d) for s, d in blocks)
    assert total < VMEM_LIMIT // 2, f"Pallas tile footprint {total}B exceeds VMEM budget"


# ---------------------------------------------------------------------------
# Pallas kernels
# ---------------------------------------------------------------------------

def _matmul_kernel(x_ref, w_ref, o_ref, *, relu_in, relu_out):
    """out = relu?( relu?(x) @ w ); bf16 cast happens in-kernel, f32 accumulation."""
    x = x_ref[...]
    if relu_in:
        x = jnp.maximum(x, 0.0)
    y = jnp.dot(x.astype(MMDT), w_ref[...], preferred_element_type=jnp.float32)
    if relu_out:
        y = jnp.maximum(y, 0.0)
    o_ref[...] = y.astype(o_ref.dtype)


def matmul_fused(x2d, w, *, relu_in=False, relu_out=False, out_dtype=jnp.float32):
    M, K = x2d.shape
    N = w.shape[1]
    TM = _pick_tile_m(M)
    _assert_vmem([((TM, K), x2d.dtype), ((K, N), w.dtype), ((TM, N), out_dtype)])
    return pl.pallas_call(
        partial(_matmul_kernel, relu_in=relu_in, relu_out=relu_out),
        out_shape=jax.ShapeDtypeStruct((M, N), out_dtype),
        grid=(M // TM,),
        in_specs=[pl.BlockSpec((TM, K), lambda i: (i, 0)),
                  pl.BlockSpec((K, N), lambda i: (0, 0))],
        out_specs=pl.BlockSpec((TM, N), lambda i: (i, 0)),
        compiler_params=pltpu.CompilerParams(
            dimension_semantics=("parallel",), vmem_limit_bytes=VMEM_LIMIT),
    )(x2d, w)


def _fr_kernel(x0_ref, x1_ref, w0_ref, w1_ref, o_ref):
    """FactorizedReduce: relu -> two stride-2 1x1 convs -> channel concat -> BN(scale folded)."""
    x0 = jnp.maximum(x0_ref[...], 0.0).astype(MMDT)
    x1 = jnp.maximum(x1_ref[...], 0.0).astype(MMDT)
    y0 = jnp.dot(x0, w0_ref[...], preferred_element_type=jnp.float32)
    y1 = jnp.dot(x1, w1_ref[...], preferred_element_type=jnp.float32)
    o_ref[...] = jnp.concatenate([y0, y1], axis=-1)


def factorized_reduce(x, w1, w2):
    """Both 1x1 convs are separate in-kernel dots (no HBM concat / block-diag zeros).
    Equivalent to the PyTorch reference for even spatial dims (all the reference supports)."""
    B, H, W, C = x.shape
    Ho, Wo = H // 2, W // 2
    M = B * Ho * Wo
    x0 = x[:, ::2, ::2, :].reshape(M, C)
    x1 = x[:, 1::2, 1::2, :].reshape(M, C)
    N = w1.shape[1] + w2.shape[1]
    TM = _pick_tile_m(M)
    _assert_vmem([((TM, C), x.dtype), ((TM, C), x.dtype),
                  (w1.shape, w1.dtype), (w2.shape, w2.dtype), ((TM, N), jnp.float32)])
    y = pl.pallas_call(
        _fr_kernel,
        out_shape=jax.ShapeDtypeStruct((M, N), jnp.float32),
        grid=(M // TM,),
        in_specs=[pl.BlockSpec((TM, C), lambda i: (i, 0)),
                  pl.BlockSpec((TM, C), lambda i: (i, 0)),
                  pl.BlockSpec(w1.shape, lambda i: (0, 0)),
                  pl.BlockSpec(w2.shape, lambda i: (0, 0))],
        out_specs=pl.BlockSpec((TM, N), lambda i: (i, 0)),
        compiler_params=pltpu.CompilerParams(
            dimension_semantics=("parallel",), vmem_limit_bytes=VMEM_LIMIT),
    )(x0, x1, w1, w2)
    return y.reshape(B, Ho, Wo, N)


def _dual_pw_kernel(x3_ref, x5_ref, w3_ref, w5_ref, y3_ref, y5_ref):
    """Middle pointwise convs of sep_conv_3x3 / sep_conv_5x5 with BN scale folded in and the
    trailing ReLU + bf16 cast fused (no separate XLA max / convert pass)."""
    y3 = jnp.dot(x3_ref[0], w3_ref[0], preferred_element_type=jnp.float32)
    y5 = jnp.dot(x5_ref[0], w5_ref[0], preferred_element_type=jnp.float32)
    y3_ref[0] = jnp.maximum(y3, 0.0).astype(y3_ref.dtype)
    y5_ref[0] = jnp.maximum(y5, 0.0).astype(y5_ref.dtype)


def dual_pointwise(x3, x5, w3, w5):
    """x3/x5: (E, M, C) bf16 per-edge activations; w3/w5: (E, C, C) bf16 per-edge weights.
    One pallas_call for all edges of the node (grid over edge x M-tile)."""
    E, M, C = x3.shape
    TM = _pick_div_tile(M, 512)
    x_spec = pl.BlockSpec((1, TM, C), lambda e, m: (e, m, 0))
    w_spec = pl.BlockSpec((1, C, C), lambda e, m: (e, 0, 0))
    _assert_vmem([((1, TM, C), MMDT)] * 6 + [((1, C, C), MMDT)] * 2)
    return pl.pallas_call(
        _dual_pw_kernel,
        out_shape=(jax.ShapeDtypeStruct((E, M, C), MMDT),
                   jax.ShapeDtypeStruct((E, M, C), MMDT)),
        grid=(E, M // TM),
        in_specs=[x_spec, x_spec, w_spec, w_spec],
        out_specs=[x_spec, x_spec],
        compiler_params=pltpu.CompilerParams(
            dimension_semantics=("parallel", "parallel"),
            vmem_limit_bytes=VMEM_LIMIT),
    )(x3, x5, w3, w5)


def _node_epilogue_kernel(probs_ref, w_ref, *refs, n_edges, nb):
    """Fused MixedOp combine + edge accumulation for one (batch, spatial-tile) grid point.

    For every edge e feeding this node:
      y_e = p[e,sep3]*z3@W0 + p[e,sep5]*z5@W1 + p[e,dil3]*zd3@W2 + p[e,dil5]*zd5@W3
            + p[e,max]*INV_BN*maxpool + p[e,avg]*INV_BN*avgpool + p[e,skip]*skip
    out = sum_e y_e   ('none' contributes zero and is skipped; probs are f32 scalars read
    from SMEM scalar prefetch and applied to the f32 dot results - no bf16 quantization of
    the architecture weights, no per-tile weight rescaling.)
    """
    in_refs = refs[:-1]
    o_ref = refs[-1]
    b = pl.program_id(0)
    acc = None
    for e in range(n_edges):
        z3, z5, zd3, zd5, avg, mxp, skp = in_refs[7 * e: 7 * e + 7]
        pb = e * nb + b
        y = probs_ref[pb, 4] * jnp.dot(z3[0], w_ref[e, 0],
                                       preferred_element_type=jnp.float32)
        y = y + probs_ref[pb, 5] * jnp.dot(z5[0], w_ref[e, 1],
                                           preferred_element_type=jnp.float32)
        y = y + probs_ref[pb, 6] * jnp.dot(zd3[0], w_ref[e, 2],
                                           preferred_element_type=jnp.float32)
        y = y + probs_ref[pb, 7] * jnp.dot(zd5[0], w_ref[e, 3],
                                           preferred_element_type=jnp.float32)
        y = y + (probs_ref[pb, 1] * INV_BN) * mxp[0]
        y = y + (probs_ref[pb, 2] * INV_BN) * avg[0]
        y = y + probs_ref[pb, 3] * skp[0]
        acc = y if acc is None else acc + y
    o_ref[0] = acc


def node_epilogue(probs_flat, w_stack, edge_tensors):
    E = w_stack.shape[0]
    C = w_stack.shape[-1]
    B, HWp, _ = edge_tensors[0].shape
    THW = _pick_div_tile(HWp, 512)
    T = HWp // THW
    edge_spec = pl.BlockSpec((1, THW, C), lambda b, t, p: (b, t, 0))
    in_specs = ([pl.BlockSpec(w_stack.shape, lambda b, t, p: (0, 0, 0, 0))]
                + [edge_spec] * (7 * E))
    _assert_vmem([(w_stack.shape, w_stack.dtype)]
                 + [((1, THW, C), t.dtype) for t in edge_tensors]
                 + [((1, THW, C), jnp.float32)])
    return pl.pallas_call(
        partial(_node_epilogue_kernel, n_edges=E, nb=B),
        out_shape=jax.ShapeDtypeStruct((B, HWp, C), jnp.float32),
        grid_spec=pltpu.PrefetchScalarGridSpec(
            num_scalar_prefetch=1,
            grid=(B, T),
            in_specs=in_specs,
            out_specs=pl.BlockSpec((1, THW, C), lambda b, t, p: (b, t, 0))),
        compiler_params=pltpu.CompilerParams(
            dimension_semantics=("parallel", "parallel"),
            vmem_limit_bytes=VMEM_LIMIT),
    )(probs_flat, w_stack, *edge_tensors)


def _gap_linear_kernel(x_ref, w_ref, b_ref, o_ref, acc_ref, *, inv_hw):
    """out = mean_{HW}(x) @ w + b, with H*W tiled as a reduction grid axis."""
    t = pl.program_id(0)

    @pl.when(t == 0)
    def _():
        acc_ref[...] = jnp.zeros_like(acc_ref)

    acc_ref[...] += jnp.sum(x_ref[...], axis=1)          # (B, C) partial spatial sum

    @pl.when(t == pl.num_programs(0) - 1)
    def _():
        pooled = acc_ref[...] * inv_hw
        o_ref[...] = jnp.dot(pooled, w_ref[...],
                             preferred_element_type=jnp.float32) + b_ref[...]


def gap_linear(x, w, b):
    B, H, W, C = x.shape
    N = w.shape[1]
    HW = H * W
    THW = _pick_div_tile(HW, 1024)
    _assert_vmem([((B, THW, C), x.dtype), ((C, N), w.dtype), ((1, N), b.dtype),
                  ((B, N), jnp.float32), ((B, C), jnp.float32)])
    return pl.pallas_call(
        partial(_gap_linear_kernel, inv_hw=1.0 / HW),
        out_shape=jax.ShapeDtypeStruct((B, N), jnp.float32),
        grid=(HW // THW,),
        in_specs=[pl.BlockSpec((B, THW, C), lambda t: (0, t, 0)),
                  pl.BlockSpec((C, N), lambda t: (0, 0)),
                  pl.BlockSpec((1, N), lambda t: (0, 0))],
        out_specs=pl.BlockSpec((B, N), lambda t: (0, 0)),
        scratch_shapes=[pltpu.VMEM((B, C), jnp.float32)],
        compiler_params=pltpu.CompilerParams(
            dimension_semantics=("arbitrary",), vmem_limit_bytes=VMEM_LIMIT),
    )(x.reshape(B, HW, C), w, b.reshape(1, N))


# ---------------------------------------------------------------------------
# Building-block ops (glue around the Pallas kernels)
# ---------------------------------------------------------------------------

def conv1x1_bn(x, w):
    """ReLU -> 1x1 conv -> BatchNorm(affine=False, eval); BN scale pre-folded into w."""
    B, H, W, C = x.shape
    y = matmul_fused(x.reshape(B * H * W, C), w, relu_in=True)
    return y.reshape(B, H, W, w.shape[1])


def depthwise_conv(x, w, stride, padding, dilation=1):
    # TODO(synk): depthwise / dilated convolutions stay on XLA's conv path.
    C = x.shape[-1]
    return lax.conv_general_dilated(
        x, w,
        window_strides=(stride, stride),
        padding=[(padding, padding), (padding, padding)],
        rhs_dilation=(dilation, dilation),
        dimension_numbers=('NHWC', 'HWIO', 'NHWC'),
        feature_group_count=C)


def avg_pool_3x3(x, stride):
    pads = [(0, 0), (1, 1), (1, 1), (0, 0)]
    sums = lax.reduce_window(x, 0.0, lax.add, (1, 3, 3, 1),
                             (1, stride, stride, 1), pads)
    ones = jnp.ones(x.shape[:3] + (1,), x.dtype)
    counts = lax.reduce_window(ones, 0.0, lax.add, (1, 3, 3, 1),
                               (1, stride, stride, 1), pads)
    return sums / counts            # count_include_pad=False


def max_pool_3x3(x, stride):
    pads = [(0, 0), (1, 1), (1, 1), (0, 0)]
    return lax.reduce_window(x, -jnp.inf, lax.max, (1, 3, 3, 1),
                             (1, stride, stride, 1), pads)


# ---------------------------------------------------------------------------
# MixedOp / node / Cell / Network forward
# ---------------------------------------------------------------------------

def topk_softmax(logits, top):
    B, n_op = logits.shape
    _, idx = lax.top_k(logits, top)
    mask = jnp.zeros((B, n_op), jnp.bool_).at[jnp.arange(B)[:, None], idx].set(True)
    return jax.nn.softmax(jnp.where(mask, logits, -jnp.inf), axis=-1)


def edge_pre(h, opp, stride):
    """Per-edge elementwise / depthwise glue feeding the fused node kernels."""
    avg = avg_pool_3x3(h, stride)
    mxp = max_pool_3x3(h, stride)
    skp = h if stride == 1 else factorized_reduce(h, opp['skip_w1'], opp['skip_w2'])
    xr = jnp.maximum(h, 0.0).astype(MMDT)               # shared ReLU input of conv prims
    d3 = depthwise_conv(xr, opp['sep3_dw1'], stride, 1)
    d5 = depthwise_conv(xr, opp['sep5_dw1'], stride, 2)
    zd3 = depthwise_conv(xr, opp['dil3_dw'], stride, 2, dilation=2)
    zd5 = depthwise_conv(xr, opp['dil5_dw'], stride, 4, dilation=2)
    return dict(d3=d3, d5=d5, zd3=zd3, zd5=zd5, avg=avg, mxp=mxp, skp=skp,
                w_pw1_3=opp['sep3_pw1'], w_pw1_5=opp['sep5_pw1'],
                dw2_3=opp['sep3_dw2'], dw2_5=opp['sep5_dw2'],
                pw2_stack=opp['pw2_stack'])


def node_forward(pres, probs_list):
    """New intermediate node = sum over edges of MixedOp(edge); one batched middle-pointwise
    kernel + one fused epilogue kernel with in-kernel edge accumulation."""
    E = len(pres)
    B, Ho, Wo, C = pres[0]['zd3'].shape
    HWp = Ho * Wo
    M = B * HWp

    d3 = jnp.stack([p['d3'].reshape(M, C) for p in pres], 0)
    d5 = jnp.stack([p['d5'].reshape(M, C) for p in pres], 0)
    w3 = jnp.stack([p['w_pw1_3'] for p in pres], 0)
    w5 = jnp.stack([p['w_pw1_5'] for p in pres], 0)
    y3, y5 = dual_pointwise(d3, d5, w3, w5)              # (E, M, C) bf16, ReLU fused

    edge_tensors = []
    for e, p in enumerate(pres):
        ym3 = y3[e].reshape(B, Ho, Wo, C)
        ym5 = y5[e].reshape(B, Ho, Wo, C)
        e3 = depthwise_conv(ym3, p['dw2_3'], 1, 1)       # second depthwise stage (XLA glue)
        e5 = depthwise_conv(ym5, p['dw2_5'], 1, 2)
        edge_tensors += [
            e3.reshape(B, HWp, C), e5.reshape(B, HWp, C),
            p['zd3'].reshape(B, HWp, C), p['zd5'].reshape(B, HWp, C),
            p['avg'].reshape(B, HWp, C), p['mxp'].reshape(B, HWp, C),
            p['skp'].reshape(B, HWp, C)]

    w_stack = jnp.stack([p['pw2_stack'] for p in pres], 0)          # (E, 4, C, C) bf16
    probs_flat = jnp.stack(probs_list, 0).reshape(E * B, N_OPS)      # (E*B, 8) f32
    out = node_epilogue(probs_flat, w_stack, edge_tensors)
    return out.reshape(B, Ho, Wo, C)


def cell_forward(s0, s1, cp, weights, ccfg, steps, multiplier, top):
    if ccfg['reduction_prev']:
        s0 = factorized_reduce(s0, cp['pre0']['w1'], cp['pre0']['w2'])
    else:
        s0 = conv1x1_bn(s0, cp['pre0']['w'])
    s1 = conv1x1_bn(s1, cp['pre1']['w'])

    states = [s0, s1]
    is_first = ccfg['is_first']
    collected = []
    offset = 0
    for _ in range(steps):
        pres, probs_list = [], []
        for j, h in enumerate(states):
            stride = 2 if ccfg['reduction'] and j < 2 else 1
            opp = cp['ops'][offset + j]
            if is_first:
                logits = gap_linear(h, opp['gate_w'], opp['gate_b'])   # Gate: GAP + Linear
                collected.append(lax.stop_gradient(logits))            # gate_value_cp
            else:
                logits = weights[offset + j]
            probs_list.append(topk_softmax(logits, top))
            pres.append(edge_pre(h, opp, stride))
        new_state = node_forward(pres, probs_list)
        offset += len(states)
        states.append(new_state)

    out_weights = collected if is_first else weights
    return jnp.concatenate(states[-multiplier:], axis=-1), out_weights


def stem_forward(x, p):
    # TODO(synk): the 3-input-channel 3x3 stem conv stays on XLA's conv path (Cin=3 is not
    #             an MXU-friendly contraction); BN(affine) scale folded into w at build.
    y = lax.conv_general_dilated(
        x, p['w'], window_strides=(1, 1), padding=[(1, 1), (1, 1)],
        dimension_numbers=('NHWC', 'HWIO', 'NHWC'))
    return y + p['beta']


def network_forward(params, x_nchw, cfgs):
    steps, multiplier, top = cfgs['steps'], cfgs['multiplier'], cfgs['top']
    x = jnp.transpose(x_nchw, (0, 2, 3, 1)).astype(jnp.float32)   # NCHW -> NHWC
    s0 = s1 = stem_forward(x, params['stem'])

    alphas_normal = None
    alphas_reduce = None
    for ci, ccfg in enumerate(cfgs['cells']):
        cp = params['cells'][ci]
        w_in = alphas_reduce if ccfg['reduction'] else alphas_normal
        state, weights = cell_forward(s0, s1, cp, w_in, ccfg, steps, multiplier, top)
        if ccfg['is_first']:
            if ccfg['reduction']:
                alphas_reduce = weights
            else:
                alphas_normal = weights
        s0, s1 = s1, state

    logits = gap_linear(s1, params['cls_w'], params['cls_b'])
    # is_alpha defaults to False in the reference -> alpha_loss_total / 2 == 0.0
    return logits, jnp.float32(0.0)


# ---------------------------------------------------------------------------
# Deterministic parameter construction (BN scale folded, bf16 matmul weights pre-cast)
# ---------------------------------------------------------------------------

class KeyGen:
    def __init__(self, seed=0):
        self.key = jax.random.PRNGKey(seed)
        self.i = 0

    def __call__(self):
        self.i += 1
        return jax.random.fold_in(self.key, self.i)


def rnorm(kg, shape, scale=0.1):
    return (scale * jax.random.normal(kg(), shape)).astype(jnp.float32)


def init_edge_params(kg, C, stride, is_first):
    def pw(shape):                      # pointwise conv with BN(affine=False) scale folded
        return (rnorm(kg, shape) * INV_BN).astype(MMDT)

    def dw(shape):                      # depthwise conv weight (bf16 activations)
        return rnorm(kg, shape).astype(MMDT)

    p = {
        'sep3_dw1': dw((3, 3, 1, C)), 'sep3_pw1': pw((C, C)), 'sep3_dw2': dw((3, 3, 1, C)),
        'sep5_dw1': dw((5, 5, 1, C)), 'sep5_pw1': pw((C, C)), 'sep5_dw2': dw((5, 5, 1, C)),
        'dil3_dw': dw((3, 3, 1, C)),
        'dil5_dw': dw((5, 5, 1, C)),
    }
    # final 1x1 convs of [sep3, sep5, dil3, dil5] stacked for the fused node epilogue
    p['pw2_stack'] = jnp.stack([pw((C, C)), pw((C, C)), pw((C, C)), pw((C, C))], 0)
    if stride == 2:
        p['skip_w1'] = pw((C, C // 2))
        p['skip_w2'] = pw((C, C // 2))
    if is_first:
        p['gate_w'] = rnorm(kg, (C, N_OPS))
        p['gate_b'] = rnorm(kg, (N_OPS,))
    return p


def build_network(C, num_classes, layers, top, steps, multiplier, stem_multiplier, seed=0):
    kg = KeyGen(seed)
    params = {}
    C_stem = stem_multiplier * C
    params['stem'] = {'w': rnorm(kg, (3, 3, 3, C_stem)) * INV_BN,   # gamma=1 at init
                      'beta': jnp.zeros((C_stem,), jnp.float32)}

    cells_cfg, cell_params = [], []
    C_pp, C_p, C_curr = C_stem, C_stem, C
    reduction_prev = False
    for i in range(layers):
        if i in [layers // 3, 2 * layers // 3]:
            C_curr *= 2
            reduction = True
        else:
            reduction = False
        is_first = i in [0, layers // 3]

        cp = {}
        if reduction_prev:
            cp['pre0'] = {'w1': (rnorm(kg, (C_pp, C_curr // 2)) * INV_BN).astype(MMDT),
                          'w2': (rnorm(kg, (C_pp, C_curr // 2)) * INV_BN).astype(MMDT)}
        else:
            cp['pre0'] = {'w': (rnorm(kg, (C_pp, C_curr)) * INV_BN).astype(MMDT)}
        cp['pre1'] = {'w': (rnorm(kg, (C_p, C_curr)) * INV_BN).astype(MMDT)}

        ops = []
        for st in range(steps):
            for j in range(2 + st):
                stride = 2 if reduction and j < 2 else 1
                ops.append(init_edge_params(kg, C_curr, stride, is_first))
        cp['ops'] = ops

        cell_params.append(cp)
        cells_cfg.append(dict(reduction=reduction, reduction_prev=reduction_prev,
                              is_first=is_first))
        reduction_prev = reduction
        C_pp, C_p = C_p, multiplier * C_curr

    params['cells'] = cell_params
    params['cls_w'] = rnorm(kg, (C_p, num_classes))
    params['cls_b'] = jnp.zeros((num_classes,), jnp.float32)
    cfgs = dict(cells=cells_cfg, steps=steps, multiplier=multiplier, top=top)
    return params, cfgs


# ---------------------------------------------------------------------------
# Main
# ---------------------------------------------------------------------------

if __name__ == "__main__":
    key = jax.random.PRNGKey(0)
    # small config: C=4, layers=2, steps=2, multiplier=2, top=2, num_classes=10
    params, cfgs = build_network(C=4, num_classes=10, layers=2, top=2,
                                 steps=2, multiplier=2, stem_multiplier=3, seed=0)
    x = jax.random.normal(key, (2, 3, 16, 16), jnp.float32)   # NCHW, like the PyTorch module

    fwd = jax.jit(lambda p, inp: network_forward(p, inp, cfgs))
    logits, alpha_loss = fwd(params, x)
    jax.block_until_ready(logits)
    assert logits.shape == (2, 10)
    assert jnp.all(jnp.isfinite(logits))
    assert float(alpha_loss) == 0.0
    print("KERNEL_OK")
</pallas_src>

<mosaic_0001>
module attributes {stable_mosaic.version = 11 : i64} {
  func.func @_fr_kernel(%arg0: i32, %arg1: memref<32x16xf32, #tpu.memory_space<vmem>>, %arg2: memref<32x16xf32, #tpu.memory_space<vmem>>, %arg3: memref<16x8xbf16, #tpu.memory_space<vmem>>, %arg4: memref<16x8xbf16, #tpu.memory_space<vmem>>, %arg5: memref<32x16xf32, #tpu.memory_space<vmem>>) attributes {dimension_semantics = [#tpu.dimension_semantics<parallel>], iteration_bounds = array<i64: 1>, scalar_prefetch = 0 : i64, scratch_operands = 0 : i64, tpu.core_type = #tpu.core_type<tc>, window_params = [{transform_indices = @transform_0, window_bounds = array<i64: 32, 16>}, {transform_indices = @transform_1, window_bounds = array<i64: 32, 16>}, {pipeline_mode = #tpu.pipeline_mode<synchronous>, transform_indices = @transform_2, window_bounds = array<i64: 16, 8>}, {pipeline_mode = #tpu.pipeline_mode<synchronous>, transform_indices = @transform_3, window_bounds = array<i64: 16, 8>}, {transform_indices = @transform_4, window_bounds = array<i64: 32, 16>}]} {
    %c0 = arith.constant 0 : index
    %c0_0 = arith.constant 0 : index
    %0 = vector.load %arg1[%c0, %c0_0] : memref<32x16xf32, #tpu.memory_space<vmem>>, vector<32x16xf32>
    %cst = arith.constant 0.000000e+00 : f32
    %1 = vector.broadcast %cst : f32 to vector<32x16xf32>
    %2 = arith.maximumf %0, %1 : vector<32x16xf32>
    %3 = arith.truncf %2 : vector<32x16xf32> to vector<32x16xbf16>
    %c0_1 = arith.constant 0 : index
    %c0_2 = arith.constant 0 : index
    %4 = vector.load %arg2[%c0_1, %c0_2] : memref<32x16xf32, #tpu.memory_space<vmem>>, vector<32x16xf32>
    %cst_3 = arith.constant 0.000000e+00 : f32
    %5 = vector.broadcast %cst_3 : f32 to vector<32x16xf32>
    %6 = arith.maximumf %4, %5 : vector<32x16xf32>
    %7 = arith.truncf %6 : vector<32x16xf32> to vector<32x16xbf16>
    %c0_4 = arith.constant 0 : index
    %c0_5 = arith.constant 0 : index
    %8 = vector.load %arg3[%c0_4, %c0_5] : memref<16x8xbf16, #tpu.memory_space<vmem>>, vector<16x8xbf16>
    %cst_6 = arith.constant dense<0.000000e+00> : vector<32x8xf32>
    %9 = tpu.matmul %3, %8, %cst_6 {dimension_numbers = #tpu.dot_dimension_numbers<[1], [0], [0], [1], [0, 0, 1, 1], [], []>} : vector<32x16xbf16>, vector<16x8xbf16>, vector<32x8xf32> -> vector<32x8xf32>
    %c0_7 = arith.constant 0 : index
    %c0_8 = arith.constant 0 : index
    %10 = vector.load %arg4[%c0_7, %c0_8] : memref<16x8xbf16, #tpu.memory_space<vmem>>, vector<16x8xbf16>
    %cst_9 = arith.constant dense<0.000000e+00> : vector<32x8xf32>
    %11 = tpu.matmul %7, %10, %cst_9 {dimension_numbers = #tpu.dot_dimension_numbers<[1], [0], [0], [1], [0, 0, 1, 1], [], []>} : vector<32x16xbf16>, vector<16x8xbf16>, vector<32x8xf32> -> vector<32x8xf32>
    %12 = tpu.concatenate %9, %11 in 1 : vector<32x8xf32>, vector<32x8xf32> -> vector<32x16xf32>
    %c0_10 = arith.constant 0 : index
    %c0_11 = arith.constant 0 : index
    %13 = vector.load %arg5[%c0_10, %c0_11] : memref<32x16xf32, #tpu.memory_space<vmem>>, vector<32x16xf32>
    tpu.vector_store %arg5[%c0_10, %c0_11], %12 {strides = array<i32>} : memref<32x16xf32, #tpu.memory_space<vmem>>, vector<32x16xf32>,
    return
  }
  func.func @transform_0(%arg0: i32) -> (i32, i32) {
    %c0_i32 = arith.constant 0 : i32
    %c0_i32_0 = arith.constant 0 : i32
    return %arg0, %c0_i32 : i32, i32
  }
  func.func @transform_1(%arg0: i32) -> (i32, i32) {
    %c0_i32 = arith.constant 0 : i32
    %c0_i32_0 = arith.constant 0 : i32
    return %arg0, %c0_i32 : i32, i32
  }
  func.func @transform_2(%arg0: i32) -> (i32, i32) {
    %c0_i32 = arith.constant 0 : i32
    %c0_i32_0 = arith.constant 0 : i32
    %c0_i32_1 = arith.constant 0 : i32
    return %c0_i32, %c0_i32_0 : i32, i32
  }
  func.func @transform_3(%arg0: i32) -> (i32, i32) {
    %c0_i32 = arith.constant 0 : i32
    %c0_i32_0 = arith.constant 0 : i32
    %c0_i32_1 = arith.constant 0 : i32
    return %c0_i32, %c0_i32_0 : i32, i32
  }
  func.func @transform_4(%arg0: i32) -> (i32, i32) {
    %c0_i32 = arith.constant 0 : i32
    %c0_i32_0 = arith.constant 0 : i32
    return %arg0, %c0_i32 : i32, i32
  }
}

module attributes {stable_mosaic.version = 11 : i64} {
  func.func @_fr_kernel(%arg0: i32, %arg1: memref<128x12xf32, #tpu.memory_space<vmem>>, %arg2: memref<128x12xf32, #tpu.memory_space<vmem>>, %arg3: memref<12x8xbf16, #tpu.memory_space<vmem>>, %arg4: memref<12x8xbf16, #tpu.memory_space<vmem>>, %arg5: memref<128x16xf32, #tpu.memory_space<vmem>>) attributes {dimension_semantics = [#tpu.dimension_semantics<parallel>], iteration_bounds = array<i64: 1>, scalar_prefetch = 0 : i64, scratch_operands = 0 : i64, tpu.core_type = #tpu.core_type<tc>, window_params = [{transform_indices = @transform_0, window_bounds = array<i64: 128, 12>}, {transform_indices = @transform_1, window_bounds = array<i64: 128, 12>}, {pipeline_mode = #tpu.pipeline_mode<synchronous>, transform_indices = @transform_2, window_bounds = array<i64: 12, 8>}, {pipeline_mode = #tpu.pipeline_mode<synchronous>, transform_indices = @transform_3, window_bounds = array<i64: 12, 8>}, {transform_indices = @transform_4, window_bounds = array<i64: 128, 16>}]} {
    %c0 = arith.constant 0 : index
    %c0_0 = arith.constant 0 : index
    %0 = vector.load %arg1[%c0, %c0_0] : memref<128x12xf32, #tpu.memory_space<vmem>>, vector<128x12xf32>
    %cst = arith.constant 0.000000e+00 : f32
    %1 = vector.broadcast %cst : f32 to vector<128x12xf32>
    %2 = arith.maximumf %0, %1 : vector<128x12xf32>
    %3 = arith.truncf %2 : vector<128x12xf32> to vector<128x12xbf16>
    %c0_1 = arith.constant 0 : index
    %c0_2 = arith.constant 0 : index
    %4 = vector.load %arg2[%c0_1, %c0_2] : memref<128x12xf32, #tpu.memory_space<vmem>>, vector<128x12xf32>
    %cst_3 = arith.constant 0.000000e+00 : f32
    %5 = vector.broadcast %cst_3 : f32 to vector<128x12xf32>
    %6 = arith.maximumf %4, %5 : vector<128x12xf32>
    %7 = arith.truncf %6 : vector<128x12xf32> to vector<128x12xbf16>
    %c0_4 = arith.constant 0 : index
    %c0_5 = arith.constant 0 : index
    %8 = vector.load %arg3[%c0_4, %c0_5] : memref<12x8xbf16, #tpu.memory_space<vmem>>, vector<12x8xbf16>
    %cst_6 = arith.constant dense<0.000000e+00> : vector<128x8xf32>
    %9 = tpu.matmul %3, %8, %cst_6 {dimension_numbers = #tpu.dot_dimension_numbers<[1], [0], [0], [1], [0, 0, 1, 1], [], []>} : vector<128x12xbf16>, vector<12x8xbf16>, vector<128x8xf32> -> vector<128x8xf32>
    %c0_7 = arith.constant 0 : index
    %c0_8 = arith.constant 0 : index
    %10 = vector.load %arg4[%c0_7, %c0_8] : memref<12x8xbf16, #tpu.memory_space<vmem>>, vector<12x8xbf16>
    %cst_9 = arith.constant dense<0.000000e+00> : vector<128x8xf32>
    %11 = tpu.matmul %7, %10, %cst_9 {dimension_numbers = #tpu.dot_dimension_numbers<[1], [0], [0], [1], [0, 0, 1, 1], [], []>} : vector<128x12xbf16>, vector<12x8xbf16>, vector<128x8xf32> -> vector<128x8xf32>
    %12 = tpu.concatenate %9, %11 in 1 : vector<128x8xf32>, vector<128x8xf32> -> vector<128x16xf32>
    %c0_10 = arith.constant 0 : index
    %c0_11 = arith.constant 0 : index
    %13 = vector.load %arg5[%c0_10, %c0_11] : memref<128x16xf32, #tpu.memory_space<vmem>>, vector<128x16xf32>
    tpu.vector_store %arg5[%c0_10, %c0_11], %12 {strides = array<i32>} : memref<128x16xf32, #tpu.memory_space<vmem>>, vector<128x16xf32>,
    return
  }
  func.func @transform_0(%arg0: i32) -> (i32, i32) {
    %c0_i32 = arith.constant 0 : i32
    %c0_i32_0 = arith.constant 0 : i32
    return %arg0, %c0_i32 : i32, i32
  }
  func.func @transform_1(%arg0: i32) -> (i32, i32) {
    %c0_i32 = arith.constant 0 : i32
    %c0_i32_0 = arith.constant 0 : i32
    return %arg0, %c0_i32 : i32, i32
  }
  func.func @transform_2(%arg0: i32) -> (i32, i32) {
    %c0_i32 = arith.constant 0 : i32
    %c0_i32_0 = arith.constant 0 : i32
    %c0_i32_1 = arith.constant 0 : i32
    return %c0_i32, %c0_i32_0 : i32, i32
  }
  func.func @transform_3(%arg0: i32) -> (i32, i32) {
    %c0_i32 = arith.constant 0 : i32
    %c0_i32_0 = arith.constant 0 : i32
    %c0_i32_1 = arith.constant 0 : i32
    return %c0_i32, %c0_i32_0 : i32, i32
  }
  func.func @transform_4(%arg0: i32) -> (i32, i32) {
    %c0_i32 = arith.constant 0 : i32
    %c0_i32_0 = arith.constant 0 : i32
    return %arg0, %c0_i32 : i32, i32
  }
}

module attributes {stable_mosaic.version = 11 : i64} {
  func.func @_gap_linear_kernel(%arg0: i32, %arg1: memref<2x256x8xf32, #tpu.memory_space<vmem>>, %arg2: memref<8x8xf32, #tpu.memory_space<vmem>>, %arg3: memref<1x8xf32, #tpu.memory_space<vmem>>, %arg4: memref<2x8xf32, #tpu.memory_space<vmem>>, %arg5: memref<2x8xf32, #tpu.memory_space<vmem>>) attributes {dimension_semantics = [#tpu.dimension_semantics<arbitrary>], iteration_bounds = array<i64: 1>, scalar_prefetch = 0 : i64, scratch_operands = 1 : i64, tpu.core_type = #tpu.core_type<tc>, window_params = [{transform_indices = @transform_0, window_bounds = array<i64: 2, 256, 8>}, {pipeline_mode = #tpu.pipeline_mode<synchronous>, transform_indices = @transform_1, window_bounds = array<i64: 8, 8>}, {pipeline_mode = #tpu.pipeline_mode<synchronous>, transform_indices = @transform_2, window_bounds = array<i64: 1, 8>}, {pipeline_mode = #tpu.pipeline_mode<synchronous>, transform_indices = @transform_3, window_bounds = array<i64: 2, 8>}]} {
    %c0_i32 = arith.constant 0 : i32
    %0 = arith.cmpi eq, %arg0, %c0_i32 : i32
    %1 = arith.extui %0 : i1 to i32
    %c0_i32_0 = arith.constant 0 : i32
    %2 = arith.cmpi ne, %1, %c0_i32_0 : i32
    scf.if %2 {
      %cst_9 = arith.constant 0.000000e+00 : f32
      %11 = vector.broadcast %cst_9 : f32 to vector<2x8xf32>
      %c0_10 = arith.constant 0 : index
      %c0_11 = arith.constant 0 : index
      %12 = vector.load %arg5[%c0_10, %c0_11] : memref<2x8xf32, #tpu.memory_space<vmem>>, vector<2x8xf32>
      tpu.vector_store %arg5[%c0_10, %c0_11], %11 {strides = array<i32>} : memref<2x8xf32, #tpu.memory_space<vmem>>, vector<2x8xf32>,
    } else {
    }
    %c0 = arith.constant 0 : index
    %c0_1 = arith.constant 0 : index
    %3 = vector.load %arg5[%c0, %c0_1] : memref<2x8xf32, #tpu.memory_space<vmem>>, vector<2x8xf32>
    %c0_2 = arith.constant 0 : index
    %c0_3 = arith.constant 0 : index
    %c0_4 = arith.constant 0 : index
    %4 = vector.load %arg1[%c0_2, %c0_3, %c0_4] : memref<2x256x8xf32, #tpu.memory_space<vmem>>, vector<2x256x8xf32>
    %cst = arith.constant dense<0.000000e+00> : vector<2x8xf32>
    %5 = vector.multi_reduction <add>, %4, %cst [1] : vector<2x256x8xf32> to vector<2x8xf32>
    %6 = arith.addf %3, %5 : vector<2x8xf32>
    %c0_5 = arith.constant 0 : index
    %c0_6 = arith.constant 0 : index
    %7 = vector.load %arg5[%c0_5, %c0_6] : memref<2x8xf32, #tpu.memory_space<vmem>>, vector<2x8xf32>
    tpu.vector_store %arg5[%c0_5, %c0_6], %6 {strides = array<i32>} : memref<2x8xf32, #tpu.memory_space<vmem>>, vector<2x8xf32>,
    %c0_i32_7 = arith.constant 0 : i32
    %8 = arith.cmpi eq, %arg0, %c0_i32_7 : i32
    %9 = arith.extui %8 : i1 to i32
    %c0_i32_8 = arith.constant 0 : i32
    %10 = arith.cmpi ne, %9, %c0_i32_8 : i32
    scf.if %10 {
      %c0_9 = arith.constant 0 : index
      %c0_10 = arith.constant 0 : index
      %11 = vector.load %arg5[%c0_9, %c0_10] : memref<2x8xf32, #tpu.memory_space<vmem>>, vector<2x8xf32>
      %cst_11 = arith.constant 3.906250e-03 : f32
      %12 = vector.broadcast %cst_11 : f32 to vector<2x8xf32>
      %13 = arith.mulf %11, %12 : vector<2x8xf32>
      %c0_12 = arith.constant 0 : index
      %c0_13 = arith.constant 0 : index
      %14 = vector.load %arg2[%c0_12, %c0_13] : memref<8x8xf32, #tpu.memory_space<vmem>>, vector<8x8xf32>
      %cst_14 = arith.constant dense<0.000000e+00> : vector<2x8xf32>
      %15 = tpu.matmul %13, %14, %cst_14 {dimension_numbers = #tpu.dot_dimension_numbers<[1], [0], [0], [1], [0, 0, 1, 1], [], []>} : vector<2x8xf32>, vector<8x8xf32>, vector<2x8xf32> -> vector<2x8xf32>
      %c0_15 = arith.constant 0 : index
      %c0_16 = arith.constant 0 : index
      %16 = vector.load %arg3[%c0_15, %c0_16] : memref<1x8xf32, #tpu.memory_space<vmem>>, vector<1x8xf32>
      %17 = vector.broadcast %16 : vector<1x8xf32> to vector<2x8xf32>
      %18 = arith.addf %15, %17 : vector<2x8xf32>
      %c0_17 = arith.constant 0 : index
      %c0_18 = arith.constant 0 : index
      %19 = vector.load %arg4[%c0_17, %c0_18] : memref<2x8xf32, #tpu.memory_space<vmem>>, vector<2x8xf32>
      tpu.vector_store %arg4[%c0_17, %c0_18], %18 {strides = array<i32>} : memref<2x8xf32, #tpu.memory_space<vmem>>, vector<2x8xf32>,
    } else {
    }
    return
  }
  func.func @transform_0(%arg0: i32) -> (i32, i32, i32) {
    %c0_i32 = arith.constant 0 : i32
    %c0_i32_0 = arith.constant 0 : i32
    %c0_i32_1 = arith.constant 0 : i32
    return %c0_i32, %arg0, %c0_i32_0 : i32, i32, i32
  }
  func.func @transform_1(%arg0: i32) -> (i32, i32) {
    %c0_i32 = arith.constant 0 : i32
    %c0_i32_0 = arith.constant 0 : i32
    %c0_i32_1 = arith.constant 0 : i32
    return %c0_i32, %c0_i32_0 : i32, i32
  }
  func.func @transform_2(%arg0: i32) -> (i32, i32) {
    %c0_i32 = arith.constant 0 : i32
    %c0_i32_0 = arith.constant 0 : i32
    %c0_i32_1 = arith.constant 0 : i32
    return %c0_i32, %c0_i32_0 : i32, i32
  }
  func.func @transform_3(%arg0: i32) -> (i32, i32) {
    %c0_i32 = arith.constant 0 : i32
    %c0_i32_0 = arith.constant 0 : i32
    %c0_i32_1 = arith.constant 0 : i32
    return %c0_i32, %c0_i32_0 : i32, i32
  }
}

module attributes {stable_mosaic.version = 11 : i64} {
  func.func @_matmul_kernel(%arg0: i32, %arg1: memref<256x12xf32, #tpu.memory_space<vmem>>, %arg2: memref<12x8xbf16, #tpu.memory_space<vmem>>, %arg3: memref<256x8xf32, #tpu.memory_space<vmem>>) attributes {dimension_semantics = [#tpu.dimension_semantics<parallel>], iteration_bounds = array<i64: 2>, scalar_prefetch = 0 : i64, scratch_operands = 0 : i64, tpu.core_type = #tpu.core_type<tc>, window_params = [{transform_indices = @transform_0, window_bounds = array<i64: 256, 12>}, {pipeline_mode = #tpu.pipeline_mode<synchronous>, transform_indices = @transform_1, window_bounds = array<i64: 12, 8>}, {transform_indices = @transform_2, window_bounds = array<i64: 256, 8>}]} {
    %c0 = arith.constant 0 : index
    %c0_0 = arith.constant 0 : index
    %0 = vector.load %arg1[%c0, %c0_0] : memref<256x12xf32, #tpu.memory_space<vmem>>, vector<256x12xf32>
    %cst = arith.constant 0.000000e+00 : f32
    %1 = vector.broadcast %cst : f32 to vector<256x12xf32>
    %2 = arith.maximumf %0, %1 : vector<256x12xf32>
    %3 = arith.truncf %2 : vector<256x12xf32> to vector<256x12xbf16>
    %c0_1 = arith.constant 0 : index
    %c0_2 = arith.constant 0 : index
    %4 = vector.load %arg2[%c0_1, %c0_2] : memref<12x8xbf16, #tpu.memory_space<vmem>>, vector<12x8xbf16>
    %cst_3 = arith.constant dense<0.000000e+00> : vector<256x8xf32>
    %5 = tpu.matmul %3, %4, %cst_3 {dimension_numbers = #tpu.dot_dimension_numbers<[1], [0], [0], [1], [0, 0, 1, 1], [], []>} : vector<256x12xbf16>, vector<12x8xbf16>, vector<256x8xf32> -> vector<256x8xf32>
    %c0_4 = arith.constant 0 : index
    %c0_5 = arith.constant 0 : index
    %6 = vector.load %arg3[%c0_4, %c0_5] : memref<256x8xf32, #tpu.memory_space<vmem>>, vector<256x8xf32>
    tpu.vector_store %arg3[%c0_4, %c0_5], %5 {strides = array<i32>} : memref<256x8xf32, #tpu.memory_space<vmem>>, vector<256x8xf32>,
    return
  }
  func.func @transform_0(%arg0: i32) -> (i32, i32) {
    %c0_i32 = arith.constant 0 : i32
    %c0_i32_0 = arith.constant 0 : i32
    return %arg0, %c0_i32 : i32, i32
  }
  func.func @transform_1(%arg0: i32) -> (i32, i32) {
    %c0_i32 = arith.constant 0 : i32
    %c0_i32_0 = arith.constant 0 : i32
    %c0_i32_1 = arith.constant 0 : i32
    return %c0_i32, %c0_i32_0 : i32, i32
  }
  func.func @transform_2(%arg0: i32) -> (i32, i32) {
    %c0_i32 = arith.constant 0 : i32
    %c0_i32_0 = arith.constant 0 : i32
    return %arg0, %c0_i32 : i32, i32
  }
}

module attributes {stable_mosaic.version = 11 : i64} {
  func.func @_fr_kernel(%arg0: i32, %arg1: memref<128x8xf32, #tpu.memory_space<vmem>>, %arg2: memref<128x8xf32, #tpu.memory_space<vmem>>, %arg3: memref<8x4xbf16, #tpu.memory_space<vmem>>, %arg4: memref<8x4xbf16, #tpu.memory_space<vmem>>, %arg5: memref<128x8xf32, #tpu.memory_space<vmem>>) attributes {dimension_semantics = [#tpu.dimension_semantics<parallel>], iteration_bounds = array<i64: 1>, scalar_prefetch = 0 : i64, scratch_operands = 0 : i64, tpu.core_type = #tpu.core_type<tc>, window_params = [{transform_indices = @transform_0, window_bounds = array<i64: 128, 8>}, {transform_indices = @transform_1, window_bounds = array<i64: 128, 8>}, {pipeline_mode = #tpu.pipeline_mode<synchronous>, transform_indices = @transform_2, window_bounds = array<i64: 8, 4>}, {pipeline_mode = #tpu.pipeline_mode<synchronous>, transform_indices = @transform_3, window_bounds = array<i64: 8, 4>}, {transform_indices = @transform_4, window_bounds = array<i64: 128, 8>}]} {
    %c0 = arith.constant 0 : index
    %c0_0 = arith.constant 0 : index
    %0 = vector.load %arg1[%c0, %c0_0] : memref<128x8xf32, #tpu.memory_space<vmem>>, vector<128x8xf32>
    %cst = arith.constant 0.000000e+00 : f32
    %1 = vector.broadcast %cst : f32 to vector<128x8xf32>
    %2 = arith.maximumf %0, %1 : vector<128x8xf32>
    %3 = arith.truncf %2 : vector<128x8xf32> to vector<128x8xbf16>
    %c0_1 = arith.constant 0 : index
    %c0_2 = arith.constant 0 : index
    %4 = vector.load %arg2[%c0_1, %c0_2] : memref<128x8xf32, #tpu.memory_space<vmem>>, vector<128x8xf32>
    %cst_3 = arith.constant 0.000000e+00 : f32
    %5 = vector.broadcast %cst_3 : f32 to vector<128x8xf32>
    %6 = arith.maximumf %4, %5 : vector<128x8xf32>
    %7 = arith.truncf %6 : vector<128x8xf32> to vector<128x8xbf16>
    %c0_4 = arith.constant 0 : index
    %c0_5 = arith.constant 0 : index
    %8 = vector.load %arg3[%c0_4, %c0_5] : memref<8x4xbf16, #tpu.memory_space<vmem>>, vector<8x4xbf16>
    %cst_6 = arith.constant dense<0.000000e+00> : vector<128x4xf32>
    %9 = tpu.matmul %3, %8, %cst_6 {dimension_numbers = #tpu.dot_dimension_numbers<[1], [0], [0], [1], [0, 0, 1, 1], [], []>} : vector<128x8xbf16>, vector<8x4xbf16>, vector<128x4xf32> -> vector<128x4xf32>
    %c0_7 = arith.constant 0 : index
    %c0_8 = arith.constant 0 : index
    %10 = vector.load %arg4[%c0_7, %c0_8] : memref<8x4xbf16, #tpu.memory_space<vmem>>, vector<8x4xbf16>
    %cst_9 = arith.constant dense<0.000000e+00> : vector<128x4xf32>
    %11 = tpu.matmul %7, %10, %cst_9 {dimension_numbers = #tpu.dot_dimension_numbers<[1], [0], [0], [1], [0, 0, 1, 1], [], []>} : vector<128x8xbf16>, vector<8x4xbf16>, vector<128x4xf32> -> vector<128x4xf32>
    %12 = tpu.concatenate %9, %11 in 1 : vector<128x4xf32>, vector<128x4xf32> -> vector<128x8xf32>
    %c0_10 = arith.constant 0 : index
    %c0_11 = arith.constant 0 : index
    %13 = vector.load %arg5[%c0_10, %c0_11] : memref<128x8xf32, #tpu.memory_space<vmem>>, vector<128x8xf32>
    tpu.vector_store %arg5[%c0_10, %c0_11], %12 {strides = array<i32>} : memref<128x8xf32, #tpu.memory_space<vmem>>, vector<128x8xf32>,
    return
  }
  func.func @transform_0(%arg0: i32) -> (i32, i32) {
    %c0_i32 = arith.constant 0 : i32
    %c0_i32_0 = arith.constant 0 : i32
    return %arg0, %c0_i32 : i32, i32
  }
  func.func @transform_1(%arg0: i32) -> (i32, i32) {
    %c0_i32 = arith.constant 0 : i32
    %c0_i32_0 = arith.constant 0 : i32
    return %arg0, %c0_i32 : i32, i32
  }
  func.func @transform_2(%arg0: i32) -> (i32, i32) {
    %c0_i32 = arith.constant 0 : i32
    %c0_i32_0 = arith.constant 0 : i32
    %c0_i32_1 = arith.constant 0 : i32
    return %c0_i32, %c0_i32_0 : i32, i32
  }
  func.func @transform_3(%arg0: i32) -> (i32, i32) {
    %c0_i32 = arith.constant 0 : i32
    %c0_i32_0 = arith.constant 0 : i32
    %c0_i32_1 = arith.constant 0 : i32
    return %c0_i32, %c0_i32_0 : i32, i32
  }
  func.func @transform_4(%arg0: i32) -> (i32, i32) {
    %c0_i32 = arith.constant 0 : i32
    %c0_i32_0 = arith.constant 0 : i32
    return %arg0, %c0_i32 : i32, i32
  }
}

module attributes {stable_mosaic.version = 11 : i64} {
  func.func @_dual_pw_kernel(%arg0: i32, %arg1: i32, %arg2: memref<1x128x8xbf16, #tpu.memory_space<vmem>>, %arg3: memref<1x128x8xbf16, #tpu.memory_space<vmem>>, %arg4: memref<1x8x8xbf16, #tpu.memory_space<vmem>>, %arg5: memref<1x8x8xbf16, #tpu.memory_space<vmem>>, %arg6: memref<1x128x8xbf16, #tpu.memory_space<vmem>>, %arg7: memref<1x128x8xbf16, #tpu.memory_space<vmem>>) attributes {dimension_semantics = [#tpu.dimension_semantics<parallel>, #tpu.dimension_semantics<parallel>], iteration_bounds = array<i64: 2, 1>, scalar_prefetch = 0 : i64, scratch_operands = 0 : i64, tpu.core_type = #tpu.core_type<tc>, window_params = [{transform_indices = @transform_0, window_bounds = array<i64: 1, 128, 8>}, {transform_indices = @transform_1, window_bounds = array<i64: 1, 128, 8>}, {transform_indices = @transform_2, window_bounds = array<i64: 1, 8, 8>}, {transform_indices = @transform_3, window_bounds = array<i64: 1, 8, 8>}, {transform_indices = @transform_4, window_bounds = array<i64: 1, 128, 8>}, {transform_indices = @transform_5, window_bounds = array<i64: 1, 128, 8>}]} {
    %c0 = arith.constant 0 : index
    %c0_0 = arith.constant 0 : index
    %c0_1 = arith.constant 0 : index
    %0 = vector.load %arg2[%c0, %c0_0, %c0_1] : memref<1x128x8xbf16, #tpu.memory_space<vmem>>, vector<1x128x8xbf16>
    %1 = vector.shape_cast %0 : vector<1x128x8xbf16> to vector<128x8xbf16>
    %c0_2 = arith.constant 0 : index
    %c0_3 = arith.constant 0 : index
    %c0_4 = arith.constant 0 : index
    %2 = vector.load %arg4[%c0_2, %c0_3, %c0_4] : memref<1x8x8xbf16, #tpu.memory_space<vmem>>, vector<1x8x8xbf16>
    %3 = vector.shape_cast %2 : vector<1x8x8xbf16> to vector<8x8xbf16>
    %cst = arith.constant dense<0.000000e+00> : vector<128x8xf32>
    %4 = tpu.matmul %1, %3, %cst {dimension_numbers = #tpu.dot_dimension_numbers<[1], [0], [0], [1], [0, 0, 1, 1], [], []>} : vector<128x8xbf16>, vector<8x8xbf16>, vector<128x8xf32> -> vector<128x8xf32>
    %c0_5 = arith.constant 0 : index
    %c0_6 = arith.constant 0 : index
    %c0_7 = arith.constant 0 : index
    %5 = vector.load %arg3[%c0_5, %c0_6, %c0_7] : memref<1x128x8xbf16, #tpu.memory_space<vmem>>, vector<1x128x8xbf16>
    %6 = vector.shape_cast %5 : vector<1x128x8xbf16> to vector<128x8xbf16>
    %c0_8 = arith.constant 0 : index
    %c0_9 = arith.constant 0 : index
    %c0_10 = arith.constant 0 : index
    %7 = vector.load %arg5[%c0_8, %c0_9, %c0_10] : memref<1x8x8xbf16, #tpu.memory_space<vmem>>, vector<1x8x8xbf16>
    %8 = vector.shape_cast %7 : vector<1x8x8xbf16> to vector<8x8xbf16>
    %cst_11 = arith.constant dense<0.000000e+00> : vector<128x8xf32>
    %9 = tpu.matmul %6, %8, %cst_11 {dimension_numbers = #tpu.dot_dimension_numbers<[1], [0], [0], [1], [0, 0, 1, 1], [], []>} : vector<128x8xbf16>, vector<8x8xbf16>, vector<128x8xf32> -> vector<128x8xf32>
    %cst_12 = arith.constant 0.000000e+00 : f32
    %10 = vector.broadcast %cst_12 : f32 to vector<128x8xf32>
    %11 = arith.maximumf %4, %10 : vector<128x8xf32>
    %12 = arith.truncf %11 : vector<128x8xf32> to vector<128x8xbf16>
    %c0_13 = arith.constant 0 : index
    %c0_14 = arith.constant 0 : index
    %c0_15 = arith.constant 0 : index
    %13 = vector.load %arg6[%c0_13, %c0_14, %c0_15] : memref<1x128x8xbf16, #tpu.memory_space<vmem>>, vector<1x128x8xbf16>
    %14 = vector.shape_cast %13 : vector<1x128x8xbf16> to vector<128x8xbf16>
    %15 = vector.shape_cast %12 : vector<128x8xbf16> to vector<1x128x8xbf16>
    tpu.vector_store %arg6[%c0_13, %c0_14, %c0_15], %15 {strides = array<i32>} : memref<1x128x8xbf16, #tpu.memory_space<vmem>>, vector<1x128x8xbf16>,
    %cst_16 = arith.constant 0.000000e+00 : f32
    %16 = vector.broadcast %cst_16 : f32 to vector<128x8xf32>
    %17 = arith.maximumf %9, %16 : vector<128x8xf32>
    %18 = arith.truncf %17 : vector<128x8xf32> to vector<128x8xbf16>
    %c0_17 = arith.constant 0 : index
    %c0_18 = arith.constant 0 : index
    %c0_19 = arith.constant 0 : index
    %19 = vector.load %arg7[%c0_17, %c0_18, %c0_19] : memref<1x128x8xbf16, #tpu.memory_space<vmem>>, vector<1x128x8xbf16>
    %20 = vector.shape_cast %19 : vector<1x128x8xbf16> to vector<128x8xbf16>
    %21 = vector.shape_cast %18 : vector<128x8xbf16> to vector<1x128x8xbf16>
    tpu.vector_store %arg7[%c0_17, %c0_18, %c0_19], %21 {strides = array<i32>} : memref<1x128x8xbf16, #tpu.memory_space<vmem>>, vector<1x128x8xbf16>,
    return
  }
  func.func @transform_0(%arg0: i32, %arg1: i32) -> (i32, i32, i32) {
    %c0_i32 = arith.constant 0 : i32
    %c0_i32_0 = arith.constant 0 : i32
    return %arg0, %arg1, %c0_i32 : i32, i32, i32
  }
  func.func @transform_1(%arg0: i32, %arg1: i32) -> (i32, i32, i32) {
    %c0_i32 = arith.constant 0 : i32
    %c0_i32_0 = arith.constant 0 : i32
    return %arg0, %arg1, %c0_i32 : i32, i32, i32
  }
  func.func @transform_2(%arg0: i32, %arg1: i32) -> (i32, i32, i32) {
    %c0_i32 = arith.constant 0 : i32
    %c0_i32_0 = arith.constant 0 : i32
    %c0_i32_1 = arith.constant 0 : i32
    return %arg0, %c0_i32, %c0_i32_0 : i32, i32, i32
  }
  func.func @transform_3(%arg0: i32, %arg1: i32) -> (i32, i32, i32) {
    %c0_i32 = arith.constant 0 : i32
    %c0_i32_0 = arith.constant 0 : i32
    %c0_i32_1 = arith.constant 0 : i32
    return %arg0, %c0_i32, %c0_i32_0 : i32, i32, i32
  }
  func.func @transform_4(%arg0: i32, %arg1: i32) -> (i32, i32, i32) {
    %c0_i32 = arith.constant 0 : i32
    %c0_i32_0 = arith.constant 0 : i32
    return %arg0, %arg1, %c0_i32 : i32, i32, i32
  }
  func.func @transform_5(%arg0: i32, %arg1: i32) -> (i32, i32, i32) {
    %c0_i32 = arith.constant 0 : i32
    %c0_i32_0 = arith.constant 0 : i32
    return %arg0, %arg1, %c0_i32 : i32, i32, i32
  }
}

module attributes {stable_mosaic.version = 11 : i64} {
  func.func @_node_epilogue_kernel(%arg0: i32, %arg1: i32, %arg2: memref<4x8xf32, #tpu.memory_space<smem>>, %arg3: memref<2x4x8x8xbf16, #tpu.memory_space<vmem>>, %arg4: memref<1x64x8xbf16, #tpu.memory_space<vmem>>, %arg5: memref<1x64x8xbf16, #tpu.memory_space<vmem>>, %arg6: memref<1x64x8xbf16, #tpu.memory_space<vmem>>, %arg7: memref<1x64x8xbf16, #tpu.memory_space<vmem>>, %arg8: memref<1x64x8xf32, #tpu.memory_space<vmem>>, %arg9: memref<1x64x8xf32, #tpu.memory_space<vmem>>, %arg10: memref<1x64x8xf32, #tpu.memory_space<vmem>>, %arg11: memref<1x64x8xbf16, #tpu.memory_space<vmem>>, %arg12: memref<1x64x8xbf16, #tpu.memory_space<vmem>>, %arg13: memref<1x64x8xbf16, #tpu.memory_space<vmem>>, %arg14: memref<1x64x8xbf16, #tpu.memory_space<vmem>>, %arg15: memref<1x64x8xf32, #tpu.memory_space<vmem>>, %arg16: memref<1x64x8xf32, #tpu.memory_space<vmem>>, %arg17: memref<1x64x8xf32, #tpu.memory_space<vmem>>, %arg18: memref<1x64x8xf32, #tpu.memory_space<vmem>>) attributes {dimension_semantics = [#tpu.dimension_semantics<parallel>, #tpu.dimension_semantics<parallel>], iteration_bounds = array<i64: 2, 1>, scalar_prefetch = 1 : i64, scratch_operands = 0 : i64, tpu.core_type = #tpu.core_type<tc>, window_params = [{pipeline_mode = #tpu.pipeline_mode<synchronous>, transform_indices = @transform_0, window_bounds = array<i64: 2, 4, 8, 8>}, {transform_indices = @transform_1, window_bounds = array<i64: 1, 64, 8>}, {transform_indices = @transform_2, window_bounds = array<i64: 1, 64, 8>}, {transform_indices = @transform_3, window_bounds = array<i64: 1, 64, 8>}, {transform_indices = @transform_4, window_bounds = array<i64: 1, 64, 8>}, {transform_indices = @transform_5, window_bounds = array<i64: 1, 64, 8>}, {transform_indices = @transform_6, window_bounds = array<i64: 1, 64, 8>}, {transform_indices = @transform_7, window_bounds = array<i64: 1, 64, 8>}, {transform_indices = @transform_8, window_bounds = array<i64: 1, 64, 8>}, {transform_indices = @transform_9, window_bounds = array<i64: 1, 64, 8>}, {transform_indices = @transform_10, window_bounds = array<i64: 1, 64, 8>}, {transform_indices = @transform_11, window_bounds = array<i64: 1, 64, 8>}, {transform_indices = @transform_12, window_bounds = array<i64: 1, 64, 8>}, {transform_indices = @transform_13, window_bounds = array<i64: 1, 64, 8>}, {transform_indices = @transform_14, window_bounds = array<i64: 1, 64, 8>}, {transform_indices = @transform_15, window_bounds = array<i64: 1, 64, 8>}]} {
    %c0_i32 = arith.constant 0 : i32
    %0 = arith.addi %c0_i32, %arg0 : i32
    %1 = arith.index_cast %0 : i32 to index
    %c4 = arith.constant 4 : index
    %2 = memref.load %arg2[%1, %c4] : memref<4x8xf32, #tpu.memory_space<smem>>
    %c0 = arith.constant 0 : index
    %c0_0 = arith.constant 0 : index
    %c0_1 = arith.constant 0 : index
    %3 = vector.load %arg4[%c0, %c0_0, %c0_1] : memref<1x64x8xbf16, #tpu.memory_space<vmem>>, vector<1x64x8xbf16>
    %4 = vector.shape_cast %3 : vector<1x64x8xbf16> to vector<64x8xbf16>
    %c0_2 = arith.constant 0 : index
    %c0_3 = arith.constant 0 : index
    %c0_4 = arith.constant 0 : index
    %c0_5 = arith.constant 0 : index
    %5 = vector.load %arg3[%c0_2, %c0_3, %c0_4, %c0_5] : memref<2x4x8x8xbf16, #tpu.memory_space<vmem>>, vector<1x1x8x8xbf16>
    %6 = vector.shape_cast %5 : vector<1x1x8x8xbf16> to vector<8x8xbf16>
    %cst = arith.constant dense<0.000000e+00> : vector<64x8xf32>
    %7 = tpu.matmul %4, %6, %cst {dimension_numbers = #tpu.dot_dimension_numbers<[1], [0], [0], [1], [0, 0, 1, 1], [], []>} : vector<64x8xbf16>, vector<8x8xbf16>, vector<64x8xf32> -> vector<64x8xf32>
    %8 = vector.broadcast %2 : f32 to vector<64x8xf32>
    %9 = arith.mulf %8, %7 : vector<64x8xf32>
    %10 = arith.index_cast %0 : i32 to index
    %c5 = arith.constant 5 : index
    %11 = memref.load %arg2[%10, %c5] : memref<4x8xf32, #tpu.memory_space<smem>>
    %c0_6 = arith.constant 0 : index
    %c0_7 = arith.constant 0 : index
    %c0_8 = arith.constant 0 : index
    %12 = vector.load %arg5[%c0_6, %c0_7, %c0_8] : memref<1x64x8xbf16, #tpu.memory_space<vmem>>, vector<1x64x8xbf16>
    %13 = vector.shape_cast %12 : vector<1x64x8xbf16> to vector<64x8xbf16>
    %c0_9 = arith.constant 0 : index
    %c1 = arith.constant 1 : index
    %c0_10 = arith.constant 0 : index
    %c0_11 = arith.constant 0 : index
    %14 = vector.load %arg3[%c0_9, %c1, %c0_10, %c0_11] : memref<2x4x8x8xbf16, #tpu.memory_space<vmem>>, vector<1x1x8x8xbf16>
    %15 = vector.shape_cast %14 : vector<1x1x8x8xbf16> to vector<8x8xbf16>
    %cst_12 = arith.constant dense<0.000000e+00> : vector<64x8xf32>
    %16 = tpu.matmul %13, %15, %cst_12 {dimension_numbers = #tpu.dot_dimension_numbers<[1], [0], [0], [1], [0, 0, 1, 1], [], []>} : vector<64x8xbf16>, vector<8x8xbf16>, vector<64x8xf32> -> vector<64x8xf32>
    %17 = vector.broadcast %11 : f32 to vector<64x8xf32>
    %18 = arith.mulf %17, %16 : vector<64x8xf32>
    %19 = arith.addf %9, %18 : vector<64x8xf32>
    %20 = arith.index_cast %0 : i32 to index
    %c6 = arith.constant 6 : index
    %21 = memref.load %arg2[%20, %c6] : memref<4x8xf32, #tpu.memory_space<smem>>
    %c0_13 = arith.constant 0 : index
    %c0_14 = arith.constant 0 : index
    %c0_15 = arith.constant 0 : index
    %22 = vector.load %arg6[%c0_13, %c0_14, %c0_15] : memref<1x64x8xbf16, #tpu.memory_space<vmem>>, vector<1x64x8xbf16>
    %23 = vector.shape_cast %22 : vector<1x64x8xbf16> to vector<64x8xbf16>
    %c0_16 = arith.constant 0 : index
    %c2 = arith.constant 2 : index
    %c0_17 = arith.constant 0 : index
    %c0_18 = arith.constant 0 : index
    %24 = vector.load %arg3[%c0_16, %c2, %c0_17, %c0_18] : memref<2x4x8x8xbf16, #tpu.memory_space<vmem>>, vector<1x1x8x8xbf16>
    %25 = vector.shape_cast %24 : vector<1x1x8x8xbf16> to vector<8x8xbf16>
    %cst_19 = arith.constant dense<0.000000e+00> : vector<64x8xf32>
    %26 = tpu.matmul %23, %25, %cst_19 {dimension_numbers = #tpu.dot_dimension_numbers<[1], [0], [0], [1], [0, 0, 1, 1], [], []>} : vector<64x8xbf16>, vector<8x8xbf16>, vector<64x8xf32> -> vector<64x8xf32>
    %27 = vector.broadcast %21 : f32 to vector<64x8xf32>
    %28 = arith.mulf %27, %26 : vector<64x8xf32>
    %29 = arith.addf %19, %28 : vector<64x8xf32>
    %30 = arith.index_cast %0 : i32 to index
    %c7 = arith.constant 7 : index
    %31 = memref.load %arg2[%30, %c7] : memref<4x8xf32, #tpu.memory_space<smem>>
    %c0_20 = arith.constant 0 : index
    %c0_21 = arith.constant 0 : index
    %c0_22 = arith.constant 0 : index
    %32 = vector.load %arg7[%c0_20, %c0_21, %c0_22] : memref<1x64x8xbf16, #tpu.memory_space<vmem>>, vector<1x64x8xbf16>
    %33 = vector.shape_cast %32 : vector<1x64x8xbf16> to vector<64x8xbf16>
    %c0_23 = arith.constant 0 : index
    %c3 = arith.constant 3 : index
    %c0_24 = arith.constant 0 : index
    %c0_25 = arith.constant 0 : index
    %34 = vector.load %arg3[%c0_23, %c3, %c0_24, %c0_25] : memref<2x4x8x8xbf16, #tpu.memory_space<vmem>>, vector<1x1x8x8xbf16>
    %35 = vector.shape_cast %34 : vector<1x1x8x8xbf16> to vector<8x8xbf16>
    %cst_26 = arith.constant dense<0.000000e+00> : vector<64x8xf32>
    %36 = tpu.matmul %33, %35, %cst_26 {dimension_numbers = #tpu.dot_dimension_numbers<[1], [0], [0], [1], [0, 0, 1, 1], [], []>} : vector<64x8xbf16>, vector<8x8xbf16>, vector<64x8xf32> -> vector<64x8xf32>
    %37 = vector.broadcast %31 : f32 to vector<64x8xf32>
    %38 = arith.mulf %37, %36 : vector<64x8xf32>
    %39 = arith.addf %29, %38 : vector<64x8xf32>
    %40 = arith.index_cast %0 : i32 to index
    %c1_27 = arith.constant 1 : index
    %41 = memref.load %arg2[%40, %c1_27] : memref<4x8xf32, #tpu.memory_space<smem>>
    %cst_28 = arith.constant 0.999994993 : f32
    %42 = arith.mulf %41, %cst_28 : f32
    %c0_29 = arith.constant 0 : index
    %c0_30 = arith.constant 0 : index
    %c0_31 = arith.constant 0 : index
    %43 = vector.load %arg9[%c0_29, %c0_30, %c0_31] : memref<1x64x8xf32, #tpu.memory_space<vmem>>, vector<1x64x8xf32>
    %44 = vector.shape_cast %43 : vector<1x64x8xf32> to vector<64x8xf32>
    %45 = vector.broadcast %42 : f32 to vector<64x8xf32>
    %46 = arith.mulf %45, %44 : vector<64x8xf32>
    %47 = arith.addf %39, %46 : vector<64x8xf32>
    %48 = arith.index_cast %0 : i32 to index
    %c2_32 = arith.constant 2 : index
    %49 = memref.load %arg2[%48, %c2_32] : memref<4x8xf32, #tpu.memory_space<smem>>
    %cst_33 = arith.constant 0.999994993 : f32
    %50 = arith.mulf %49, %cst_33 : f32
    %c0_34 = arith.constant 0 : index
    %c0_35 = arith.constant 0 : index
    %c0_36 = arith.constant 0 : index
    %51 = vector.load %arg8[%c0_34, %c0_35, %c0_36] : memref<1x64x8xf32, #tpu.memory_space<vmem>>, vector<1x64x8xf32>
    %52 = vector.shape_cast %51 : vector<1x64x8xf32> to vector<64x8xf32>
    %53 = vector.broadcast %50 : f32 to vector<64x8xf32>
    %54 = arith.mulf %53, %52 : vector<64x8xf32>
    %55 = arith.addf %47, %54 : vector<64x8xf32>
    %56 = arith.index_cast %0 : i32 to index
    %c3_37 = arith.constant 3 : index
    %57 = memref.load %arg2[%56, %c3_37] : memref<4x8xf32, #tpu.memory_space<smem>>
    %c0_38 = arith.constant 0 : index
    %c0_39 = arith.constant 0 : index
    %c0_40 = arith.constant 0 : index
    %58 = vector.load %arg10[%c0_38, %c0_39, %c0_40] : memref<1x64x8xf32, #tpu.memory_space<vmem>>, vector<1x64x8xf32>
    %59 = vector.shape_cast %58 : vector<1x64x8xf32> to vector<64x8xf32>
    %60 = vector.broadcast %57 : f32 to vector<64x8xf32>
    %61 = arith.mulf %60, %59 : vector<64x8xf32>
    %62 = arith.addf %55, %61 : vector<64x8xf32>
    %c2_i32 = arith.constant 2 : i32
    %63 = arith.addi %c2_i32, %arg0 : i32
    %64 = arith.index_cast %63 : i32 to index
    %c4_41 = arith.constant 4 : index
    %65 = memref.load %arg2[%64, %c4_41] : memref<4x8xf32, #tpu.memory_space<smem>>
    %c0_42 = arith.constant 0 : index
    %c0_43 = arith.constant 0 : index
    %c0_44 = arith.constant 0 : index
    %66 = vector.load %arg11[%c0_42, %c0_43, %c0_44] : memref<1x64x8xbf16, #tpu.memory_space<vmem>>, vector<1x64x8xbf16>
    %67 = vector.shape_cast %66 : vector<1x64x8xbf16> to vector<64x8xbf16>
    %c1_45 = arith.constant 1 : index
    %c0_46 = arith.constant 0 : index
    %c0_47 = arith.constant 0 : index
    %c0_48 = arith.constant 0 : index
    %68 = vector.load %arg3[%c1_45, %c0_46, %c0_47, %c0_48] : memref<2x4x8x8xbf16, #tpu.memory_space<vmem>>, vector<1x1x8x8xbf16>
    %69 = vector.shape_cast %68 : vector<1x1x8x8xbf16> to vector<8x8xbf16>
    %cst_49 = arith.constant dense<0.000000e+00> : vector<64x8xf32>
    %70 = tpu.matmul %67, %69, %cst_49 {dimension_numbers = #tpu.dot_dimension_numbers<[1], [0], [0], [1], [0, 0, 1, 1], [], []>} : vector<64x8xbf16>, vector<8x8xbf16>, vector<64x8xf32> -> vector<64x8xf32>
    %71 = vector.broadcast %65 : f32 to vector<64x8xf32>
    %72 = arith.mulf %71, %70 : vector<64x8xf32>
    %73 = arith.index_cast %63 : i32 to index
    %c5_50 = arith.constant 5 : index
    %74 = memref.load %arg2[%73, %c5_50] : memref<4x8xf32, #tpu.memory_space<smem>>
    %c0_51 = arith.constant 0 : index
    %c0_52 = arith.constant 0 : index
    %c0_53 = arith.constant 0 : index
    %75 = vector.load %arg12[%c0_51, %c0_52, %c0_53] : memref<1x64x8xbf16, #tpu.memory_space<vmem>>, vector<1x64x8xbf16>
    %76 = vector.shape_cast %75 : vector<1x64x8xbf16> to vector<64x8xbf16>
    %c1_54 = arith.constant 1 : index
    %c1_55 = arith.constant 1 : index
    %c0_56 = arith.constant 0 : index
    %c0_57 = arith.constant 0 : index
    %77 = vector.load %arg3[%c1_54, %c1_55, %c0_56, %c0_57] : memref<2x4x8x8xbf16, #tpu.memory_space<vmem>>, vector<1x1x8x8xbf16>
    %78 = vector.shape_cast %77 : vector<1x1x8x8xbf16> to vector<8x8xbf16>
    %cst_58 = arith.constant dense<0.000000e+00> : vector<64x8xf32>
    %79 = tpu.matmul %76, %78, %cst_58 {dimension_numbers = #tpu.dot_dimension_numbers<[1], [0], [0], [1], [0, 0, 1, 1], [], []>} : vector<64x8xbf16>, vector<8x8xbf16>, vector<64x8xf32> -> vector<64x8xf32>
    %80 = vector.broadcast %74 : f32 to vector<64x8xf32>
    %81 = arith.mulf %80, %79 : vector<64x8xf32>
    %82 = arith.addf %72, %81 : vector<64x8xf32>
    %83 = arith.index_cast %63 : i32 to index
    %c6_59 = arith.constant 6 : index
    %84 = memref.load %arg2[%83, %c6_59] : memref<4x8xf32, #tpu.memory_space<smem>>
    %c0_60 = arith.constant 0 : index
    %c0_61 = arith.constant 0 : index
    %c0_62 = arith.constant 0 : index
    %85 = vector.load %arg13[%c0_60, %c0_61, %c0_62] : memref<1x64x8xbf16, #tpu.memory_space<vmem>>, vector<1x64x8xbf16>
    %86 = vector.shape_cast %85 : vector<1x64x8xbf16> to vector<64x8xbf16>
    %c1_63 = arith.constant 1 : index
    %c2_64 = arith.constant 2 : index
    %c0_65 = arith.constant 0 : index
    %c0_66 = arith.constant 0 : index
    %87 = vector.load %arg3[%c1_63, %c2_64, %c0_65, %c0_66] : memref<2x4x8x8xbf16, #tpu.memory_space<vmem>>, vector<1x1x8x8xbf16>
    %88 = vector.shape_cast %87 : vector<1x1x8x8xbf16> to vector<8x8xbf16>
    %cst_67 = arith.constant dense<0.000000e+00> : vector<64x8xf32>
    %89 = tpu.matmul %86, %88, %cst_67 {dimension_numbers = #tpu.dot_dimension_numbers<[1], [0], [0], [1], [0, 0, 1, 1], [], []>} : vector<64x8xbf16>, vector<8x8xbf16>, vector<64x8xf32> -> vector<64x8xf32>
    %90 = vector.broadcast %84 : f32 to vector<64x8xf32>
    %91 = arith.mulf %90, %89 : vector<64x8xf32>
    %92 = arith.addf %82, %91 : vector<64x8xf32>
    %93 = arith.index_cast %63 : i32 to index
    %c7_68 = arith.constant 7 : index
    %94 = memref.load %arg2[%93, %c7_68] : memref<4x8xf32, #tpu.memory_space<smem>>
    %c0_69 = arith.constant 0 : index
    %c0_70 = arith.constant 0 : index
    %c0_71 = arith.constant 0 : index
    %95 = vector.load %arg14[%c0_69, %c0_70, %c0_71] : memref<1x64x8xbf16, #tpu.memory_space<vmem>>, vector<1x64x8xbf16>
    %96 = vector.shape_cast %95 : vector<1x64x8xbf16> to vector<64x8xbf16>
    %c1_72 = arith.constant 1 : index
    %c3_73 = arith.constant 3 : index
    %c0_74 = arith.constant 0 : index
    %c0_75 = arith.constant 0 : index
    %97 = vector.load %arg3[%c1_72, %c3_73, %c0_74, %c0_75] : memref<2x4x8x8xbf16, #tpu.memory_space<vmem>>, vector<1x1x8x8xbf16>
    %98 = vector.shape_cast %97 : vector<1x1x8x8xbf16> to vector<8x8xbf16>
    %cst_76 = arith.constant dense<0.000000e+00> : vector<64x8xf32>
    %99 = tpu.matmul %96, %98, %cst_76 {dimension_numbers = #tpu.dot_dimension_numbers<[1], [0], [0], [1], [0, 0, 1, 1], [], []>} : vector<64x8xbf16>, vector<8x8xbf16>, vector<64x8xf32> -> vector<64x8xf32>
    %100 = vector.broadcast %94 : f32 to vector<64x8xf32>
    %101 = arith.mulf %100, %99 : vector<64x8xf32>
    %102 = arith.addf %92, %101 : vector<64x8xf32>
    %103 = arith.index_cast %63 : i32 to index
    %c1_77 = arith.constant 1 : index
    %104 = memref.load %arg2[%103, %c1_77] : memref<4x8xf32, #tpu.memory_space<smem>>
    %cst_78 = arith.constant 0.999994993 : f32
    %105 = arith.mulf %104, %cst_78 : f32
    %c0_79 = arith.constant 0 : index
    %c0_80 = arith.constant 0 : index
    %c0_81 = arith.constant 0 : index
    %106 = vector.load %arg16[%c0_79, %c0_80, %c0_81] : memref<1x64x8xf32, #tpu.memory_space<vmem>>, vector<1x64x8xf32>
    %107 = vector.shape_cast %106 : vector<1x64x8xf32> to vector<64x8xf32>
    %108 = vector.broadcast %105 : f32 to vector<64x8xf32>
    %109 = arith.mulf %108, %107 : vector<64x8xf32>
    %110 = arith.addf %102, %109 : vector<64x8xf32>
    %111 = arith.index_cast %63 : i32 to index
    %c2_82 = arith.constant 2 : index
    %112 = memref.load %arg2[%111, %c2_82] : memref<4x8xf32, #tpu.memory_space<smem>>
    %cst_83 = arith.constant 0.999994993 : f32
    %113 = arith.mulf %112, %cst_83 : f32
    %c0_84 = arith.constant 0 : index
    %c0_85 = arith.constant 0 : index
    %c0_86 = arith.constant 0 : index
    %114 = vector.load %arg15[%c0_84, %c0_85, %c0_86] : memref<1x64x8xf32, #tpu.memory_space<vmem>>, vector<1x64x8xf32>
    %115 = vector.shape_cast %114 : vector<1x64x8xf32> to vector<64x8xf32>
    %116 = vector.broadcast %113 : f32 to vector<64x8xf32>
    %117 = arith.mulf %116, %115 : vector<64x8xf32>
    %118 = arith.addf %110, %117 : vector<64x8xf32>
    %119 = arith.index_cast %63 : i32 to index
    %c3_87 = arith.constant 3 : index
    %120 = memref.load %arg2[%119, %c3_87] : memref<4x8xf32, #tpu.memory_space<smem>>
    %c0_88 = arith.constant 0 : index
    %c0_89 = arith.constant 0 : index
    %c0_90 = arith.constant 0 : index
    %121 = vector.load %arg17[%c0_88, %c0_89, %c0_90] : memref<1x64x8xf32, #tpu.memory_space<vmem>>, vector<1x64x8xf32>
    %122 = vector.shape_cast %121 : vector<1x64x8xf32> to vector<64x8xf32>
    %123 = vector.broadcast %120 : f32 to vector<64x8xf32>
    %124 = arith.mulf %123, %122 : vector<64x8xf32>
    %125 = arith.addf %118, %124 : vector<64x8xf32>
    %126 = arith.addf %62, %125 : vector<64x8xf32>
    %c0_91 = arith.constant 0 : index
    %c0_92 = arith.constant 0 : index
    %c0_93 = arith.constant 0 : index
    %127 = vector.load %arg18[%c0_91, %c0_92, %c0_93] : memref<1x64x8xf32, #tpu.memory_space<vmem>>, vector<1x64x8xf32>
    %128 = vector.shape_cast %127 : vector<1x64x8xf32> to vector<64x8xf32>
    %129 = vector.shape_cast %126 : vector<64x8xf32> to vector<1x64x8xf32>
    tpu.vector_store %arg18[%c0_91, %c0_92, %c0_93], %129 {strides = array<i32>} : memref<1x64x8xf32, #tpu.memory_space<vmem>>, vector<1x64x8xf32>,
    return
  }
  func.func @transform_0(%arg0: i32, %arg1: i32, %arg2: memref<4x8xf32, #tpu.memory_space<smem>>) -> (i32, i32, i32, i32) {
    %c0_i32 = arith.constant 0 : i32
    %c0_i32_0 = arith.constant 0 : i32
    %c0_i32_1 = arith.constant 0 : i32
    %c0_i32_2 = arith.constant 0 : i32
    %c0_i32_3 = arith.constant 0 : i32
    return %c0_i32, %c0_i32_0, %c0_i32_1, %c0_i32_2 : i32, i32, i32, i32
  }
  func.func @transform_1(%arg0: i32, %arg1: i32, %arg2: memref<4x8xf32, #tpu.memory_space<smem>>) -> (i32, i32, i32) {
    %c0_i32 = arith.constant 0 : i32
    %c0_i32_0 = arith.constant 0 : i32
    return %arg0, %arg1, %c0_i32 : i32, i32, i32
  }
  func.func @transform_2(%arg0: i32, %arg1: i32, %arg2: memref<4x8xf32, #tpu.memory_space<smem>>) -> (i32, i32, i32) {
    %c0_i32 = arith.constant 0 : i32
    %c0_i32_0 = arith.constant 0 : i32
    return %arg0, %arg1, %c0_i32 : i32, i32, i32
  }
  func.func @transform_3(%arg0: i32, %arg1: i32, %arg2: memref<4x8xf32, #tpu.memory_space<smem>>) -> (i32, i32, i32) {
    %c0_i32 = arith.constant 0 : i32
    %c0_i32_0 = arith.constant 0 : i32
    return %arg0, %arg1, %c0_i32 : i32, i32, i32
  }
  func.func @transform_4(%arg0: i32, %arg1: i32, %arg2: memref<4x8xf32, #tpu.memory_space<smem>>) -> (i32, i32, i32) {
    %c0_i32 = arith.constant 0 : i32
    %c0_i32_0 = arith.constant 0 : i32
    return %arg0, %arg1, %c0_i32 : i32, i32, i32
  }
  func.func @transform_5(%arg0: i32, %arg1: i32, %arg2: memref<4x8xf32, #tpu.memory_space<smem>>) -> (i32, i32, i32) {
    %c0_i32 = arith.constant 0 : i32
    %c0_i32_0 = arith.constant 0 : i32
    return %arg0, %arg1, %c0_i32 : i32, i32, i32
  }
  func.func @transform_6(%arg0: i32, %arg1: i32, %arg2: memref<4x8xf32, #tpu.memory_space<smem>>) -> (i32, i32, i32) {
    %c0_i32 = arith.constant 0 : i32
    %c0_i32_0 = arith.constant 0 : i32
    return %arg0, %arg1, %c0_i32 : i32, i32, i32
  }
  func.func @transform_7(%arg0: i32, %arg1: i32, %arg2: memref<4x8xf32, #tpu.memory_space<smem>>) -> (i32, i32, i32) {
    %c0_i32 = arith.constant 0 : i32
    %c0_i32_0 = arith.constant 0 : i32
    return %arg0, %arg1, %c0_i32 : i32, i32, i32
  }
  func.func @transform_8(%arg0: i32, %arg1: i32, %arg2: memref<4x8xf32, #tpu.memory_space<smem>>) -> (i32, i32, i32) {
    %c0_i32 = arith.constant 0 : i32
    %c0_i32_0 = arith.constant 0 : i32
    return %arg0, %arg1, %c0_i32 : i32, i32, i32
  }
  func.func @transform_9(%arg0: i32, %arg1: i32, %arg2: memref<4x8xf32, #tpu.memory_space<smem>>) -> (i32, i32, i32) {
    %c0_i32 = arith.constant 0 : i32
    %c0_i32_0 = arith.constant 0 : i32
    return %arg0, %arg1, %c0_i32 : i32, i32, i32
  }
  func.func @transform_10(%arg0: i32, %arg1: i32, %arg2: memref<4x8xf32, #tpu.memory_space<smem>>) -> (i32, i32, i32) {
    %c0_i32 = arith.constant 0 : i32
    %c0_i32_0 = arith.constant 0 : i32
    return %arg0, %arg1, %c0_i32 : i32, i32, i32
  }
  func.func @transform_11(%arg0: i32, %arg1: i32, %arg2: memref<4x8xf32, #tpu.memory_space<smem>>) -> (i32, i32, i32) {
    %c0_i32 = arith.constant 0 : i32
    %c0_i32_0 = arith.constant 0 : i32
    return %arg0, %arg1, %c0_i32 : i32, i32, i32
  }
  func.func @transform_12(%arg0: i32, %arg1: i32, %arg2: memref<4x8xf32, #tpu.memory_space<smem>>) -> (i32, i32, i32) {
    %c0_i32 = arith.constant 0 : i32
    %c0_i32_0 = arith.constant 0 : i32
    return %arg0, %arg1, %c0_i32 : i32, i32, i32
  }
  func.func @transform_13(%arg0: i32, %arg1: i32, %arg2: memref<4x8xf32, #tpu.memory_space<smem>>) -> (i32, i32, i32) {
    %c0_i32 = arith.constant 0 : i32
    %c0_i32_0 = arith.constant 0 : i32
    return %arg0, %arg1, %c0_i32 : i32, i32, i32
  }
  func.func @transform_14(%arg0: i32, %arg1: i32, %arg2: memref<4x8xf32, #tpu.memory_space<smem>>) -> (i32, i32, i32) {
    %c0_i32 = arith.constant 0 : i32
    %c0_i32_0 = arith.constant 0 : i32
    return %arg0, %arg1, %c0_i32 : i32, i32, i32
  }
  func.func @transform_15(%arg0: i32, %arg1: i32, %arg2: memref<4x8xf32, #tpu.memory_space<smem>>) -> (i32, i32, i32) {
    %c0_i32 = arith.constant 0 : i32
    %c0_i32_0 = arith.constant 0 : i32
    return %arg0, %arg1, %c0_i32 : i32, i32, i32
  }
}

module attributes {stable_mosaic.version = 11 : i64} {
  func.func @_gap_linear_kernel(%arg0: i32, %arg1: memref<2x64x8xf32, #tpu.memory_space<vmem>>, %arg2: memref<8x8xf32, #tpu.memory_space<vmem>>, %arg3: memref<1x8xf32, #tpu.memory_space<vmem>>, %arg4: memref<2x8xf32, #tpu.memory_space<vmem>>, %arg5: memref<2x8xf32, #tpu.memory_space<vmem>>) attributes {dimension_semantics = [#tpu.dimension_semantics<arbitrary>], iteration_bounds = array<i64: 1>, scalar_prefetch = 0 : i64, scratch_operands = 1 : i64, tpu.core_type = #tpu.core_type<tc>, window_params = [{transform_indices = @transform_0, window_bounds = array<i64: 2, 64, 8>}, {pipeline_mode = #tpu.pipeline_mode<synchronous>, transform_indices = @transform_1, window_bounds = array<i64: 8, 8>}, {pipeline_mode = #tpu.pipeline_mode<synchronous>, transform_indices = @transform_2, window_bounds = array<i64: 1, 8>}, {pipeline_mode = #tpu.pipeline_mode<synchronous>, transform_indices = @transform_3, window_bounds = array<i64: 2, 8>}]} {
    %c0_i32 = arith.constant 0 : i32
    %0 = arith.cmpi eq, %arg0, %c0_i32 : i32
    %1 = arith.extui %0 : i1 to i32
    %c0_i32_0 = arith.constant 0 : i32
    %2 = arith.cmpi ne, %1, %c0_i32_0 : i32
    scf.if %2 {
      %cst_9 = arith.constant 0.000000e+00 : f32
      %11 = vector.broadcast %cst_9 : f32 to vector<2x8xf32>
      %c0_10 = arith.constant 0 : index
      %c0_11 = arith.constant 0 : index
      %12 = vector.load %arg5[%c0_10, %c0_11] : memref<2x8xf32, #tpu.memory_space<vmem>>, vector<2x8xf32>
      tpu.vector_store %arg5[%c0_10, %c0_11], %11 {strides = array<i32>} : memref<2x8xf32, #tpu.memory_space<vmem>>, vector<2x8xf32>,
    } else {
    }
    %c0 = arith.constant 0 : index
    %c0_1 = arith.constant 0 : index
    %3 = vector.load %arg5[%c0, %c0_1] : memref<2x8xf32, #tpu.memory_space<vmem>>, vector<2x8xf32>
    %c0_2 = arith.constant 0 : index
    %c0_3 = arith.constant 0 : index
    %c0_4 = arith.constant 0 : index
    %4 = vector.load %arg1[%c0_2, %c0_3, %c0_4] : memref<2x64x8xf32, #tpu.memory_space<vmem>>, vector<2x64x8xf32>
    %cst = arith.constant dense<0.000000e+00> : vector<2x8xf32>
    %5 = vector.multi_reduction <add>, %4, %cst [1] : vector<2x64x8xf32> to vector<2x8xf32>
    %6 = arith.addf %3, %5 : vector<2x8xf32>
    %c0_5 = arith.constant 0 : index
    %c0_6 = arith.constant 0 : index
    %7 = vector.load %arg5[%c0_5, %c0_6] : memref<2x8xf32, #tpu.memory_space<vmem>>, vector<2x8xf32>
    tpu.vector_store %arg5[%c0_5, %c0_6], %6 {strides = array<i32>} : memref<2x8xf32, #tpu.memory_space<vmem>>, vector<2x8xf32>,
    %c0_i32_7 = arith.constant 0 : i32
    %8 = arith.cmpi eq, %arg0, %c0_i32_7 : i32
    %9 = arith.extui %8 : i1 to i32
    %c0_i32_8 = arith.constant 0 : i32
    %10 = arith.cmpi ne, %9, %c0_i32_8 : i32
    scf.if %10 {
      %c0_9 = arith.constant 0 : index
      %c0_10 = arith.constant 0 : index
      %11 = vector.load %arg5[%c0_9, %c0_10] : memref<2x8xf32, #tpu.memory_space<vmem>>, vector<2x8xf32>
      %cst_11 = arith.constant 1.562500e-02 : f32
      %12 = vector.broadcast %cst_11 : f32 to vector<2x8xf32>
      %13 = arith.mulf %11, %12 : vector<2x8xf32>
      %c0_12 = arith.constant 0 : index
      %c0_13 = arith.constant 0 : index
      %14 = vector.load %arg2[%c0_12, %c0_13] : memref<8x8xf32, #tpu.memory_space<vmem>>, vector<8x8xf32>
      %cst_14 = arith.constant dense<0.000000e+00> : vector<2x8xf32>
      %15 = tpu.matmul %13, %14, %cst_14 {dimension_numbers = #tpu.dot_dimension_numbers<[1], [0], [0], [1], [0, 0, 1, 1], [], []>} : vector<2x8xf32>, vector<8x8xf32>, vector<2x8xf32> -> vector<2x8xf32>
      %c0_15 = arith.constant 0 : index
      %c0_16 = arith.constant 0 : index
      %16 = vector.load %arg3[%c0_15, %c0_16] : memref<1x8xf32, #tpu.memory_space<vmem>>, vector<1x8xf32>
      %17 = vector.broadcast %16 : vector<1x8xf32> to vector<2x8xf32>
      %18 = arith.addf %15, %17 : vector<2x8xf32>
      %c0_17 = arith.constant 0 : index
      %c0_18 = arith.constant 0 : index
      %19 = vector.load %arg4[%c0_17, %c0_18] : memref<2x8xf32, #tpu.memory_space<vmem>>, vector<2x8xf32>
      tpu.vector_store %arg4[%c0_17, %c0_18], %18 {strides = array<i32>} : memref<2x8xf32, #tpu.memory_space<vmem>>, vector<2x8xf32>,
    } else {
    }
    return
  }
  func.func @transform_0(%arg0: i32) -> (i32, i32, i32) {
    %c0_i32 = arith.constant 0 : i32
    %c0_i32_0 = arith.constant 0 : i32
    %c0_i32_1 = arith.constant 0 : i32
    return %c0_i32, %arg0, %c0_i32_0 : i32, i32, i32
  }
  func.func @transform_1(%arg0: i32) -> (i32, i32) {
    %c0_i32 = arith.constant 0 : i32
    %c0_i32_0 = arith.constant 0 : i32
    %c0_i32_1 = arith.constant 0 : i32
    return %c0_i32, %c0_i32_0 : i32, i32
  }
  func.func @transform_2(%arg0: i32) -> (i32, i32) {
    %c0_i32 = arith.constant 0 : i32
    %c0_i32_0 = arith.constant 0 : i32
    %c0_i32_1 = arith.constant 0 : i32
    return %c0_i32, %c0_i32_0 : i32, i32
  }
  func.func @transform_3(%arg0: i32) -> (i32, i32) {
    %c0_i32 = arith.constant 0 : i32
    %c0_i32_0 = arith.constant 0 : i32
    %c0_i32_1 = arith.constant 0 : i32
    return %c0_i32, %c0_i32_0 : i32, i32
  }
}

module attributes {stable_mosaic.version = 11 : i64} {
  func.func @_dual_pw_kernel(%arg0: i32, %arg1: i32, %arg2: memref<1x128x8xbf16, #tpu.memory_space<vmem>>, %arg3: memref<1x128x8xbf16, #tpu.memory_space<vmem>>, %arg4: memref<1x8x8xbf16, #tpu.memory_space<vmem>>, %arg5: memref<1x8x8xbf16, #tpu.memory_space<vmem>>, %arg6: memref<1x128x8xbf16, #tpu.memory_space<vmem>>, %arg7: memref<1x128x8xbf16, #tpu.memory_space<vmem>>) attributes {dimension_semantics = [#tpu.dimension_semantics<parallel>, #tpu.dimension_semantics<parallel>], iteration_bounds = array<i64: 3, 1>, scalar_prefetch = 0 : i64, scratch_operands = 0 : i64, tpu.core_type = #tpu.core_type<tc>, window_params = [{transform_indices = @transform_0, window_bounds = array<i64: 1, 128, 8>}, {transform_indices = @transform_1, window_bounds = array<i64: 1, 128, 8>}, {transform_indices = @transform_2, window_bounds = array<i64: 1, 8, 8>}, {transform_indices = @transform_3, window_bounds = array<i64: 1, 8, 8>}, {transform_indices = @transform_4, window_bounds = array<i64: 1, 128, 8>}, {transform_indices = @transform_5, window_bounds = array<i64: 1, 128, 8>}]} {
    %c0 = arith.constant 0 : index
    %c0_0 = arith.constant 0 : index
    %c0_1 = arith.constant 0 : index
    %0 = vector.load %arg2[%c0, %c0_0, %c0_1] : memref<1x128x8xbf16, #tpu.memory_space<vmem>>, vector<1x128x8xbf16>
    %1 = vector.shape_cast %0 : vector<1x128x8xbf16> to vector<128x8xbf16>
    %c0_2 = arith.constant 0 : index
    %c0_3 = arith.constant 0 : index
    %c0_4 = arith.constant 0 : index
    %2 = vector.load %arg4[%c0_2, %c0_3, %c0_4] : memref<1x8x8xbf16, #tpu.memory_space<vmem>>, vector<1x8x8xbf16>
    %3 = vector.shape_cast %2 : vector<1x8x8xbf16> to vector<8x8xbf16>
    %cst = arith.constant dense<0.000000e+00> : vector<128x8xf32>
    %4 = tpu.matmul %1, %3, %cst {dimension_numbers = #tpu.dot_dimension_numbers<[1], [0], [0], [1], [0, 0, 1, 1], [], []>} : vector<128x8xbf16>, vector<8x8xbf16>, vector<128x8xf32> -> vector<128x8xf32>
    %c0_5 = arith.constant 0 : index
    %c0_6 = arith.constant 0 : index
    %c0_7 = arith.constant 0 : index
    %5 = vector.load %arg3[%c0_5, %c0_6, %c0_7] : memref<1x128x8xbf16, #tpu.memory_space<vmem>>, vector<1x128x8xbf16>
    %6 = vector.shape_cast %5 : vector<1x128x8xbf16> to vector<128x8xbf16>
    %c0_8 = arith.constant 0 : index
    %c0_9 = arith.constant 0 : index
    %c0_10 = arith.constant 0 : index
    %7 = vector.load %arg5[%c0_8, %c0_9, %c0_10] : memref<1x8x8xbf16, #tpu.memory_space<vmem>>, vector<1x8x8xbf16>
    %8 = vector.shape_cast %7 : vector<1x8x8xbf16> to vector<8x8xbf16>
    %cst_11 = arith.constant dense<0.000000e+00> : vector<128x8xf32>
    %9 = tpu.matmul %6, %8, %cst_11 {dimension_numbers = #tpu.dot_dimension_numbers<[1], [0], [0], [1], [0, 0, 1, 1], [], []>} : vector<128x8xbf16>, vector<8x8xbf16>, vector<128x8xf32> -> vector<128x8xf32>
    %cst_12 = arith.constant 0.000000e+00 : f32
    %10 = vector.broadcast %cst_12 : f32 to vector<128x8xf32>
    %11 = arith.maximumf %4, %10 : vector<128x8xf32>
    %12 = arith.truncf %11 : vector<128x8xf32> to vector<128x8xbf16>
    %c0_13 = arith.constant 0 : index
    %c0_14 = arith.constant 0 : index
    %c0_15 = arith.constant 0 : index
    %13 = vector.load %arg6[%c0_13, %c0_14, %c0_15] : memref<1x128x8xbf16, #tpu.memory_space<vmem>>, vector<1x128x8xbf16>
    %14 = vector.shape_cast %13 : vector<1x128x8xbf16> to vector<128x8xbf16>
    %15 = vector.shape_cast %12 : vector<128x8xbf16> to vector<1x128x8xbf16>
    tpu.vector_store %arg6[%c0_13, %c0_14, %c0_15], %15 {strides = array<i32>} : memref<1x128x8xbf16, #tpu.memory_space<vmem>>, vector<1x128x8xbf16>,
    %cst_16 = arith.constant 0.000000e+00 : f32
    %16 = vector.broadcast %cst_16 : f32 to vector<128x8xf32>
    %17 = arith.maximumf %9, %16 : vector<128x8xf32>
    %18 = arith.truncf %17 : vector<128x8xf32> to vector<128x8xbf16>
    %c0_17 = arith.constant 0 : index
    %c0_18 = arith.constant 0 : index
    %c0_19 = arith.constant 0 : index
    %19 = vector.load %arg7[%c0_17, %c0_18, %c0_19] : memref<1x128x8xbf16, #tpu.memory_space<vmem>>, vector<1x128x8xbf16>
    %20 = vector.shape_cast %19 : vector<1x128x8xbf16> to vector<128x8xbf16>
    %21 = vector.shape_cast %18 : vector<128x8xbf16> to vector<1x128x8xbf16>
    tpu.vector_store %arg7[%c0_17, %c0_18, %c0_19], %21 {strides = array<i32>} : memref<1x128x8xbf16, #tpu.memory_space<vmem>>, vector<1x128x8xbf16>,
    return
  }
  func.func @transform_0(%arg0: i32, %arg1: i32) -> (i32, i32, i32) {
    %c0_i32 = arith.constant 0 : i32
    %c0_i32_0 = arith.constant 0 : i32
    return %arg0, %arg1, %c0_i32 : i32, i32, i32
  }
  func.func @transform_1(%arg0: i32, %arg1: i32) -> (i32, i32, i32) {
    %c0_i32 = arith.constant 0 : i32
    %c0_i32_0 = arith.constant 0 : i32
    return %arg0, %arg1, %c0_i32 : i32, i32, i32
  }
  func.func @transform_2(%arg0: i32, %arg1: i32) -> (i32, i32, i32) {
    %c0_i32 = arith.constant 0 : i32
    %c0_i32_0 = arith.constant 0 : i32
    %c0_i32_1 = arith.constant 0 : i32
    return %arg0, %c0_i32, %c0_i32_0 : i32, i32, i32
  }
  func.func @transform_3(%arg0: i32, %arg1: i32) -> (i32, i32, i32) {
    %c0_i32 = arith.constant 0 : i32
    %c0_i32_0 = arith.constant 0 : i32
    %c0_i32_1 = arith.constant 0 : i32
    return %arg0, %c0_i32, %c0_i32_0 : i32, i32, i32
  }
  func.func @transform_4(%arg0: i32, %arg1: i32) -> (i32, i32, i32) {
    %c0_i32 = arith.constant 0 : i32
    %c0_i32_0 = arith.constant 0 : i32
    return %arg0, %arg1, %c0_i32 : i32, i32, i32
  }
  func.func @transform_5(%arg0: i32, %arg1: i32) -> (i32, i32, i32) {
    %c0_i32 = arith.constant 0 : i32
    %c0_i32_0 = arith.constant 0 : i32
    return %arg0, %arg1, %c0_i32 : i32, i32, i32
  }
}

module attributes {stable_mosaic.version = 11 : i64} {
  func.func @_node_epilogue_kernel(%arg0: i32, %arg1: i32, %arg2: memref<6x8xf32, #tpu.memory_space<smem>>, %arg3: memref<3x4x8x8xbf16, #tpu.memory_space<vmem>>, %arg4: memref<1x64x8xbf16, #tpu.memory_space<vmem>>, %arg5: memref<1x64x8xbf16, #tpu.memory_space<vmem>>, %arg6: memref<1x64x8xbf16, #tpu.memory_space<vmem>>, %arg7: memref<1x64x8xbf16, #tpu.memory_space<vmem>>, %arg8: memref<1x64x8xf32, #tpu.memory_space<vmem>>, %arg9: memref<1x64x8xf32, #tpu.memory_space<vmem>>, %arg10: memref<1x64x8xf32, #tpu.memory_space<vmem>>, %arg11: memref<1x64x8xbf16, #tpu.memory_space<vmem>>, %arg12: memref<1x64x8xbf16, #tpu.memory_space<vmem>>, %arg13: memref<1x64x8xbf16, #tpu.memory_space<vmem>>, %arg14: memref<1x64x8xbf16, #tpu.memory_space<vmem>>, %arg15: memref<1x64x8xf32, #tpu.memory_space<vmem>>, %arg16: memref<1x64x8xf32, #tpu.memory_space<vmem>>, %arg17: memref<1x64x8xf32, #tpu.memory_space<vmem>>, %arg18: memref<1x64x8xbf16, #tpu.memory_space<vmem>>, %arg19: memref<1x64x8xbf16, #tpu.memory_space<vmem>>, %arg20: memref<1x64x8xbf16, #tpu.memory_space<vmem>>, %arg21: memref<1x64x8xbf16, #tpu.memory_space<vmem>>, %arg22: memref<1x64x8xf32, #tpu.memory_space<vmem>>, %arg23: memref<1x64x8xf32, #tpu.memory_space<vmem>>, %arg24: memref<1x64x8xf32, #tpu.memory_space<vmem>>, %arg25: memref<1x64x8xf32, #tpu.memory_space<vmem>>) attributes {dimension_semantics = [#tpu.dimension_semantics<parallel>, #tpu.dimension_semantics<parallel>], iteration_bounds = array<i64: 2, 1>, scalar_prefetch = 1 : i64, scratch_operands = 0 : i64, tpu.core_type = #tpu.core_type<tc>, window_params = [{pipeline_mode = #tpu.pipeline_mode<synchronous>, transform_indices = @transform_0, window_bounds = array<i64: 3, 4, 8, 8>}, {transform_indices = @transform_1, window_bounds = array<i64: 1, 64, 8>}, {transform_indices = @transform_2, window_bounds = array<i64: 1, 64, 8>}, {transform_indices = @transform_3, window_bounds = array<i64: 1, 64, 8>}, {transform_indices = @transform_4, window_bounds = array<i64: 1, 64, 8>}, {transform_indices = @transform_5, window_bounds = array<i64: 1, 64, 8>}, {transform_indices = @transform_6, window_bounds = array<i64: 1, 64, 8>}, {transform_indices = @transform_7, window_bounds = array<i64: 1, 64, 8>}, {transform_indices = @transform_8, window_bounds = array<i64: 1, 64, 8>}, {transform_indices = @transform_9, window_bounds = array<i64: 1, 64, 8>}, {transform_indices = @transform_10, window_bounds = array<i64: 1, 64, 8>}, {transform_indices = @transform_11, window_bounds = array<i64: 1, 64, 8>}, {transform_indices = @transform_12, window_bounds = array<i64: 1, 64, 8>}, {transform_indices = @transform_13, window_bounds = array<i64: 1, 64, 8>}, {transform_indices = @transform_14, window_bounds = array<i64: 1, 64, 8>}, {transform_indices = @transform_15, window_bounds = array<i64: 1, 64, 8>}, {transform_indices = @transform_16, window_bounds = array<i64: 1, 64, 8>}, {transform_indices = @transform_17, window_bounds = array<i64: 1, 64, 8>}, {transform_indices = @transform_18, window_bounds = array<i64: 1, 64, 8>}, {transform_indices = @transform_19, window_bounds = array<i64: 1, 64, 8>}, {transform_indices = @transform_20, window_bounds = array<i64: 1, 64, 8>}, {transform_indices = @transform_21, window_bounds = array<i64: 1, 64, 8>}, {transform_indices = @transform_22, window_bounds = array<i64: 1, 64, 8>}]} {
    %c0_i32 = arith.constant 0 : i32
    %0 = arith.addi %c0_i32, %arg0 : i32
    %1 = arith.index_cast %0 : i32 to index
    %c4 = arith.constant 4 : index
    %2 = memref.load %arg2[%1, %c4] : memref<6x8xf32, #tpu.memory_space<smem>>
    %c0 = arith.constant 0 : index
    %c0_0 = arith.constant 0 : index
    %c0_1 = arith.constant 0 : index
    %3 = vector.load %arg4[%c0, %c0_0, %c0_1] : memref<1x64x8xbf16, #tpu.memory_space<vmem>>, vector<1x64x8xbf16>
    %4 = vector.shape_cast %3 : vector<1x64x8xbf16> to vector<64x8xbf16>
    %c0_2 = arith.constant 0 : index
    %c0_3 = arith.constant 0 : index
    %c0_4 = arith.constant 0 : index
    %c0_5 = arith.constant 0 : index
    %5 = vector.load %arg3[%c0_2, %c0_3, %c0_4, %c0_5] : memref<3x4x8x8xbf16, #tpu.memory_space<vmem>>, vector<1x1x8x8xbf16>
    %6 = vector.shape_cast %5 : vector<1x1x8x8xbf16> to vector<8x8xbf16>
    %cst = arith.constant dense<0.000000e+00> : vector<64x8xf32>
    %7 = tpu.matmul %4, %6, %cst {dimension_numbers = #tpu.dot_dimension_numbers<[1], [0], [0], [1], [0, 0, 1, 1], [], []>} : vector<64x8xbf16>, vector<8x8xbf16>, vector<64x8xf32> -> vector<64x8xf32>
    %8 = vector.broadcast %2 : f32 to vector<64x8xf32>
    %9 = arith.mulf %8, %7 : vector<64x8xf32>
    %10 = arith.index_cast %0 : i32 to index
    %c5 = arith.constant 5 : index
    %11 = memref.load %arg2[%10, %c5] : memref<6x8xf32, #tpu.memory_space<smem>>
    %c0_6 = arith.constant 0 : index
    %c0_7 = arith.constant 0 : index
    %c0_8 = arith.constant 0 : index
    %12 = vector.load %arg5[%c0_6, %c0_7, %c0_8] : memref<1x64x8xbf16, #tpu.memory_space<vmem>>, vector<1x64x8xbf16>
    %13 = vector.shape_cast %12 : vector<1x64x8xbf16> to vector<64x8xbf16>
    %c0_9 = arith.constant 0 : index
    %c1 = arith.constant 1 : index
    %c0_10 = arith.constant 0 : index
    %c0_11 = arith.constant 0 : index
    %14 = vector.load %arg3[%c0_9, %c1, %c0_10, %c0_11] : memref<3x4x8x8xbf16, #tpu.memory_space<vmem>>, vector<1x1x8x8xbf16>
    %15 = vector.shape_cast %14 : vector<1x1x8x8xbf16> to vector<8x8xbf16>
    %cst_12 = arith.constant dense<0.000000e+00> : vector<64x8xf32>
    %16 = tpu.matmul %13, %15, %cst_12 {dimension_numbers = #tpu.dot_dimension_numbers<[1], [0], [0], [1], [0, 0, 1, 1], [], []>} : vector<64x8xbf16>, vector<8x8xbf16>, vector<64x8xf32> -> vector<64x8xf32>
    %17 = vector.broadcast %11 : f32 to vector<64x8xf32>
    %18 = arith.mulf %17, %16 : vector<64x8xf32>
    %19 = arith.addf %9, %18 : vector<64x8xf32>
    %20 = arith.index_cast %0 : i32 to index
    %c6 = arith.constant 6 : index
    %21 = memref.load %arg2[%20, %c6] : memref<6x8xf32, #tpu.memory_space<smem>>
    %c0_13 = arith.constant 0 : index
    %c0_14 = arith.constant 0 : index
    %c0_15 = arith.constant 0 : index
    %22 = vector.load %arg6[%c0_13, %c0_14, %c0_15] : memref<1x64x8xbf16, #tpu.memory_space<vmem>>, vector<1x64x8xbf16>
    %23 = vector.shape_cast %22 : vector<1x64x8xbf16> to vector<64x8xbf16>
    %c0_16 = arith.constant 0 : index
    %c2 = arith.constant 2 : index
    %c0_17 = arith.constant 0 : index
    %c0_18 = arith.constant 0 : index
    %24 = vector.load %arg3[%c0_16, %c2, %c0_17, %c0_18] : memref<3x4x8x8xbf16, #tpu.memory_space<vmem>>, vector<1x1x8x8xbf16>
    %25 = vector.shape_cast %24 : vector<1x1x8x8xbf16> to vector<8x8xbf16>
    %cst_19 = arith.constant dense<0.000000e+00> : vector<64x8xf32>
    %26 = tpu.matmul %23, %25, %cst_19 {dimension_numbers = #tpu.dot_dimension_numbers<[1], [0], [0], [1], [0, 0, 1, 1], [], []>} : vector<64x8xbf16>, vector<8x8xbf16>, vector<64x8xf32> -> vector<64x8xf32>
    %27 = vector.broadcast %21 : f32 to vector<64x8xf32>
    %28 = arith.mulf %27, %26 : vector<64x8xf32>
    %29 = arith.addf %19, %28 : vector<64x8xf32>
    %30 = arith.index_cast %0 : i32 to index
    %c7 = arith.constant 7 : index
    %31 = memref.load %arg2[%30, %c7] : memref<6x8xf32, #tpu.memory_space<smem>>
    %c0_20 = arith.constant 0 : index
    %c0_21 = arith.constant 0 : index
    %c0_22 = arith.constant 0 : index
    %32 = vector.load %arg7[%c0_20, %c0_21, %c0_22] : memref<1x64x8xbf16, #tpu.memory_space<vmem>>, vector<1x64x8xbf16>
    %33 = vector.shape_cast %32 : vector<1x64x8xbf16> to vector<64x8xbf16>
    %c0_23 = arith.constant 0 : index
    %c3 = arith.constant 3 : index
    %c0_24 = arith.constant 0 : index
    %c0_25 = arith.constant 0 : index
    %34 = vector.load %arg3[%c0_23, %c3, %c0_24, %c0_25] : memref<3x4x8x8xbf16, #tpu.memory_space<vmem>>, vector<1x1x8x8xbf16>
    %35 = vector.shape_cast %34 : vector<1x1x8x8xbf16> to vector<8x8xbf16>
    %cst_26 = arith.constant dense<0.000000e+00> : vector<64x8xf32>
    %36 = tpu.matmul %33, %35, %cst_26 {dimension_numbers = #tpu.dot_dimension_numbers<[1], [0], [0], [1], [0, 0, 1, 1], [], []>} : vector<64x8xbf16>, vector<8x8xbf16>, vector<64x8xf32> -> vector<64x8xf32>
    %37 = vector.broadcast %31 : f32 to vector<64x8xf32>
    %38 = arith.mulf %37, %36 : vector<64x8xf32>
    %39 = arith.addf %29, %38 : vector<64x8xf32>
    %40 = arith.index_cast %0 : i32 to index
    %c1_27 = arith.constant 1 : index
    %41 = memref.load %arg2[%40, %c1_27] : memref<6x8xf32, #tpu.memory_space<smem>>
    %cst_28 = arith.constant 0.999994993 : f32
    %42 = arith.mulf %41, %cst_28 : f32
    %c0_29 = arith.constant 0 : index
    %c0_30 = arith.constant 0 : index
    %c0_31 = arith.constant 0 : index
    %43 = vector.load %arg9[%c0_29, %c0_30, %c0_31] : memref<1x64x8xf32, #tpu.memory_space<vmem>>, vector<1x64x8xf32>
    %44 = vector.shape_cast %43 : vector<1x64x8xf32> to vector<64x8xf32>
    %45 = vector.broadcast %42 : f32 to vector<64x8xf32>
    %46 = arith.mulf %45, %44 : vector<64x8xf32>
    %47 = arith.addf %39, %46 : vector<64x8xf32>
    %48 = arith.index_cast %0 : i32 to index
    %c2_32 = arith.constant 2 : index
    %49 = memref.load %arg2[%48, %c2_32] : memref<6x8xf32, #tpu.memory_space<smem>>
    %cst_33 = arith.constant 0.999994993 : f32
    %50 = arith.mulf %49, %cst_33 : f32
    %c0_34 = arith.constant 0 : index
    %c0_35 = arith.constant 0 : index
    %c0_36 = arith.constant 0 : index
    %51 = vector.load %arg8[%c0_34, %c0_35, %c0_36] : memref<1x64x8xf32, #tpu.memory_space<vmem>>, vector<1x64x8xf32>
    %52 = vector.shape_cast %51 : vector<1x64x8xf32> to vector<64x8xf32>
    %53 = vector.broadcast %50 : f32 to vector<64x8xf32>
    %54 = arith.mulf %53, %52 : vector<64x8xf32>
    %55 = arith.addf %47, %54 : vector<64x8xf32>
    %56 = arith.index_cast %0 : i32 to index
    %c3_37 = arith.constant 3 : index
    %57 = memref.load %arg2[%56, %c3_37] : memref<6x8xf32, #tpu.memory_space<smem>>
    %c0_38 = arith.constant 0 : index
    %c0_39 = arith.constant 0 : index
    %c0_40 = arith.constant 0 : index
    %58 = vector.load %arg10[%c0_38, %c0_39, %c0_40] : memref<1x64x8xf32, #tpu.memory_space<vmem>>, vector<1x64x8xf32>
    %59 = vector.shape_cast %58 : vector<1x64x8xf32> to vector<64x8xf32>
    %60 = vector.broadcast %57 : f32 to vector<64x8xf32>
    %61 = arith.mulf %60, %59 : vector<64x8xf32>
    %62 = arith.addf %55, %61 : vector<64x8xf32>
    %c2_i32 = arith.constant 2 : i32
    %63 = arith.addi %c2_i32, %arg0 : i32
    %64 = arith.index_cast %63 : i32 to index
    %c4_41 = arith.constant 4 : index
    %65 = memref.load %arg2[%64, %c4_41] : memref<6x8xf32, #tpu.memory_space<smem>>
    %c0_42 = arith.constant 0 : index
    %c0_43 = arith.constant 0 : index
    %c0_44 = arith.constant 0 : index
    %66 = vector.load %arg11[%c0_42, %c0_43, %c0_44] : memref<1x64x8xbf16, #tpu.memory_space<vmem>>, vector<1x64x8xbf16>
    %67 = vector.shape_cast %66 : vector<1x64x8xbf16> to vector<64x8xbf16>
    %c1_45 = arith.constant 1 : index
    %c0_46 = arith.constant 0 : index
    %c0_47 = arith.constant 0 : index
    %c0_48 = arith.constant 0 : index
    %68 = vector.load %arg3[%c1_45, %c0_46, %c0_47, %c0_48] : memref<3x4x8x8xbf16, #tpu.memory_space<vmem>>, vector<1x1x8x8xbf16>
    %69 = vector.shape_cast %68 : vector<1x1x8x8xbf16> to vector<8x8xbf16>
    %cst_49 = arith.constant dense<0.000000e+00> : vector<64x8xf32>
    %70 = tpu.matmul %67, %69, %cst_49 {dimension_numbers = #tpu.dot_dimension_numbers<[1], [0], [0], [1], [0, 0, 1, 1], [], []>} : vector<64x8xbf16>, vector<8x8xbf16>, vector<64x8xf32> -> vector<64x8xf32>
    %71 = vector.broadcast %65 : f32 to vector<64x8xf32>
    %72 = arith.mulf %71, %70 : vector<64x8xf32>
    %73 = arith.index_cast %63 : i32 to index
    %c5_50 = arith.constant 5 : index
    %74 = memref.load %arg2[%73, %c5_50] : memref<6x8xf32, #tpu.memory_space<smem>>
    %c0_51 = arith.constant 0 : index
    %c0_52 = arith.constant 0 : index
    %c0_53 = arith.constant 0 : index
    %75 = vector.load %arg12[%c0_51, %c0_52, %c0_53] : memref<1x64x8xbf16, #tpu.memory_space<vmem>>, vector<1x64x8xbf16>
    %76 = vector.shape_cast %75 : vector<1x64x8xbf16> to vector<64x8xbf16>
    %c1_54 = arith.constant 1 : index
    %c1_55 = arith.constant 1 : index
    %c0_56 = arith.constant 0 : index
    %c0_57 = arith.constant 0 : index
    %77 = vector.load %arg3[%c1_54, %c1_55, %c0_56, %c0_57] : memref<3x4x8x8xbf16, #tpu.memory_space<vmem>>, vector<1x1x8x8xbf16>
    %78 = vector.shape_cast %77 : vector<1x1x8x8xbf16> to vector<8x8xbf16>
    %cst_58 = arith.constant dense<0.000000e+00> : vector<64x8xf32>
    %79 = tpu.matmul %76, %78, %cst_58 {dimension_numbers = #tpu.dot_dimension_numbers<[1], [0], [0], [1], [0, 0, 1, 1], [], []>} : vector<64x8xbf16>, vector<8x8xbf16>, vector<64x8xf32> -> vector<64x8xf32>
    %80 = vector.broadcast %74 : f32 to vector<64x8xf32>
    %81 = arith.mulf %80, %79 : vector<64x8xf32>
    %82 = arith.addf %72, %81 : vector<64x8xf32>
    %83 = arith.index_cast %63 : i32 to index
    %c6_59 = arith.constant 6 : index
    %84 = memref.load %arg2[%83, %c6_59] : memref<6x8xf32, #tpu.memory_space<smem>>
    %c0_60 = arith.constant 0 : index
    %c0_61 = arith.constant 0 : index
    %c0_62 = arith.constant 0 : index
    %85 = vector.load %arg13[%c0_60, %c0_61, %c0_62] : memref<1x64x8xbf16, #tpu.memory_space<vmem>>, vector<1x64x8xbf16>
    %86 = vector.shape_cast %85 : vector<1x64x8xbf16> to vector<64x8xbf16>
    %c1_63 = arith.constant 1 : index
    %c2_64 = arith.constant 2 : index
    %c0_65 = arith.constant 0 : index
    %c0_66 = arith.constant 0 : index
    %87 = vector.load %arg3[%c1_63, %c2_64, %c0_65, %c0_66] : memref<3x4x8x8xbf16, #tpu.memory_space<vmem>>, vector<1x1x8x8xbf16>
    %88 = vector.shape_cast %87 : vector<1x1x8x8xbf16> to vector<8x8xbf16>
    %cst_67 = arith.constant dense<0.000000e+00> : vector<64x8xf32>
    %89 = tpu.matmul %86, %88, %cst_67 {dimension_numbers = #tpu.dot_dimension_numbers<[1], [0], [0], [1], [0, 0, 1, 1], [], []>} : vector<64x8xbf16>, vector<8x8xbf16>, vector<64x8xf32> -> vector<64x8xf32>
    %90 = vector.broadcast %84 : f32 to vector<64x8xf32>
    %91 = arith.mulf %90, %89 : vector<64x8xf32>
    %92 = arith.addf %82, %91 : vector<64x8xf32>
    %93 = arith.index_cast %63 : i32 to index
    %c7_68 = arith.constant 7 : index
    %94 = memref.load %arg2[%93, %c7_68] : memref<6x8xf32, #tpu.memory_space<smem>>
    %c0_69 = arith.constant 0 : index
    %c0_70 = arith.constant 0 : index
    %c0_71 = arith.constant 0 : index
    %95 = vector.load %arg14[%c0_69, %c0_70, %c0_71] : memref<1x64x8xbf16, #tpu.memory_space<vmem>>, vector<1x64x8xbf16>
    %96 = vector.shape_cast %95 : vector<1x64x8xbf16> to vector<64x8xbf16>
    %c1_72 = arith.constant 1 : index
    %c3_73 = arith.constant 3 : index
    %c0_74 = arith.constant 0 : index
    %c0_75 = arith.constant 0 : index
    %97 = vector.load %arg3[%c1_72, %c3_73, %c0_74, %c0_75] : memref<3x4x8x8xbf16, #tpu.memory_space<vmem>>, vector<1x1x8x8xbf16>
    %98 = vector.shape_cast %97 : vector<1x1x8x8xbf16> to vector<8x8xbf16>
    %cst_76 = arith.constant dense<0.000000e+00> : vector<64x8xf32>
    %99 = tpu.matmul %96, %98, %cst_76 {dimension_numbers = #tpu.dot_dimension_numbers<[1], [0], [0], [1], [0, 0, 1, 1], [], []>} : vector<64x8xbf16>, vector<8x8xbf16>, vector<64x8xf32> -> vector<64x8xf32>
    %100 = vector.broadcast %94 : f32 to vector<64x8xf32>
    %101 = arith.mulf %100, %99 : vector<64x8xf32>
    %102 = arith.addf %92, %101 : vector<64x8xf32>
    %103 = arith.index_cast %63 : i32 to index
    %c1_77 = arith.constant 1 : index
    %104 = memref.load %arg2[%103, %c1_77] : memref<6x8xf32, #tpu.memory_space<smem>>
    %cst_78 = arith.constant 0.999994993 : f32
    %105 = arith.mulf %104, %cst_78 : f32
    %c0_79 = arith.constant 0 : index
    %c0_80 = arith.constant 0 : index
    %c0_81 = arith.constant 0 : index
    %106 = vector.load %arg16[%c0_79, %c0_80, %c0_81] : memref<1x64x8xf32, #tpu.memory_space<vmem>>, vector<1x64x8xf32>
    %107 = vector.shape_cast %106 : vector<1x64x8xf32> to vector<64x8xf32>
    %108 = vector.broadcast %105 : f32 to vector<64x8xf32>
    %109 = arith.mulf %108, %107 : vector<64x8xf32>
    %110 = arith.addf %102, %109 : vector<64x8xf32>
    %111 = arith.index_cast %63 : i32 to index
    %c2_82 = arith.constant 2 : index
    %112 = memref.load %arg2[%111, %c2_82] : memref<6x8xf32, #tpu.memory_space<smem>>
    %cst_83 = arith.constant 0.999994993 : f32
    %113 = arith.mulf %112, %cst_83 : f32
    %c0_84 = arith.constant 0 : index
    %c0_85 = arith.constant 0 : index
    %c0_86 = arith.constant 0 : index
    %114 = vector.load %arg15[%c0_84, %c0_85, %c0_86] : memref<1x64x8xf32, #tpu.memory_space<vmem>>, vector<1x64x8xf32>
    %115 = vector.shape_cast %114 : vector<1x64x8xf32> to vector<64x8xf32>
    %116 = vector.broadcast %113 : f32 to vector<64x8xf32>
    %117 = arith.mulf %116, %115 : vector<64x8xf32>
    %118 = arith.addf %110, %117 : vector<64x8xf32>
    %119 = arith.index_cast %63 : i32 to index
    %c3_87 = arith.constant 3 : index
    %120 = memref.load %arg2[%119, %c3_87] : memref<6x8xf32, #tpu.memory_space<smem>>
    %c0_88 = arith.constant 0 : index
    %c0_89 = arith.constant 0 : index
    %c0_90 = arith.constant 0 : index
    %121 = vector.load %arg17[%c0_88, %c0_89, %c0_90] : memref<1x64x8xf32, #tpu.memory_space<vmem>>, vector<1x64x8xf32>
    %122 = vector.shape_cast %121 : vector<1x64x8xf32> to vector<64x8xf32>
    %123 = vector.broadcast %120 : f32 to vector<64x8xf32>
    %124 = arith.mulf %123, %122 : vector<64x8xf32>
    %125 = arith.addf %118, %124 : vector<64x8xf32>
    %126 = arith.addf %62, %125 : vector<64x8xf32>
    %c4_i32 = arith.constant 4 : i32
    %127 = arith.addi %c4_i32, %arg0 : i32
    %128 = arith.index_cast %127 : i32 to index
    %c4_91 = arith.constant 4 : index
    %129 = memref.load %arg2[%128, %c4_91] : memref<6x8xf32, #tpu.memory_space<smem>>
    %c0_92 = arith.constant 0 : index
    %c0_93 = arith.constant 0 : index
    %c0_94 = arith.constant 0 : index
    %130 = vector.load %arg18[%c0_92, %c0_93, %c0_94] : memref<1x64x8xbf16, #tpu.memory_space<vmem>>, vector<1x64x8xbf16>
    %131 = vector.shape_cast %130 : vector<1x64x8xbf16> to vector<64x8xbf16>
    %c2_95 = arith.constant 2 : index
    %c0_96 = arith.constant 0 : index
    %c0_97 = arith.constant 0 : index
    %c0_98 = arith.constant 0 : index
    %132 = vector.load %arg3[%c2_95, %c0_96, %c0_97, %c0_98] : memref<3x4x8x8xbf16, #tpu.memory_space<vmem>>, vector<1x1x8x8xbf16>
    %133 = vector.shape_cast %132 : vector<1x1x8x8xbf16> to vector<8x8xbf16>
    %cst_99 = arith.constant dense<0.000000e+00> : vector<64x8xf32>
    %134 = tpu.matmul %131, %133, %cst_99 {dimension_numbers = #tpu.dot_dimension_numbers<[1], [0], [0], [1], [0, 0, 1, 1], [], []>} : vector<64x8xbf16>, vector<8x8xbf16>, vector<64x8xf32> -> vector<64x8xf32>
    %135 = vector.broadcast %129 : f32 to vector<64x8xf32>
    %136 = arith.mulf %135, %134 : vector<64x8xf32>
    %137 = arith.index_cast %127 : i32 to index
    %c5_100 = arith.constant 5 : index
    %138 = memref.load %arg2[%137, %c5_100] : memref<6x8xf32, #tpu.memory_space<smem>>
    %c0_101 = arith.constant 0 : index
    %c0_102 = arith.constant 0 : index
    %c0_103 = arith.constant 0 : index
    %139 = vector.load %arg19[%c0_101, %c0_102, %c0_103] : memref<1x64x8xbf16, #tpu.memory_space<vmem>>, vector<1x64x8xbf16>
    %140 = vector.shape_cast %139 : vector<1x64x8xbf16> to vector<64x8xbf16>
    %c2_104 = arith.constant 2 : index
    %c1_105 = arith.constant 1 : index
    %c0_106 = arith.constant 0 : index
    %c0_107 = arith.constant 0 : index
    %141 = vector.load %arg3[%c2_104, %c1_105, %c0_106, %c0_107] : memref<3x4x8x8xbf16, #tpu.memory_space<vmem>>, vector<1x1x8x8xbf16>
    %142 = vector.shape_cast %141 : vector<1x1x8x8xbf16> to vector<8x8xbf16>
    %cst_108 = arith.constant dense<0.000000e+00> : vector<64x8xf32>
    %143 = tpu.matmul %140, %142, %cst_108 {dimension_numbers = #tpu.dot_dimension_numbers<[1], [0], [0], [1], [0, 0, 1, 1], [], []>} : vector<64x8xbf16>, vector<8x8xbf16>, vector<64x8xf32> -> vector<64x8xf32>
    %144 = vector.broadcast %138 : f32 to vector<64x8xf32>
    %145 = arith.mulf %144, %143 : vector<64x8xf32>
    %146 = arith.addf %136, %145 : vector<64x8xf32>
    %147 = arith.index_cast %127 : i32 to index
    %c6_109 = arith.constant 6 : index
    %148 = memref.load %arg2[%147, %c6_109] : memref<6x8xf32, #tpu.memory_space<smem>>
    %c0_110 = arith.constant 0 : index
    %c0_111 = arith.constant 0 : index
    %c0_112 = arith.constant 0 : index
    %149 = vector.load %arg20[%c0_110, %c0_111, %c0_112] : memref<1x64x8xbf16, #tpu.memory_space<vmem>>, vector<1x64x8xbf16>
    %150 = vector.shape_cast %149 : vector<1x64x8xbf16> to vector<64x8xbf16>
    %c2_113 = arith.constant 2 : index
    %c2_114 = arith.constant 2 : index
    %c0_115 = arith.constant 0 : index
    %c0_116 = arith.constant 0 : index
    %151 = vector.load %arg3[%c2_113, %c2_114, %c0_115, %c0_116] : memref<3x4x8x8xbf16, #tpu.memory_space<vmem>>, vector<1x1x8x8xbf16>
    %152 = vector.shape_cast %151 : vector<1x1x8x8xbf16> to vector<8x8xbf16>
    %cst_117 = arith.constant dense<0.000000e+00> : vector<64x8xf32>
    %153 = tpu.matmul %150, %152, %cst_117 {dimension_numbers = #tpu.dot_dimension_numbers<[1], [0], [0], [1], [0, 0, 1, 1], [], []>} : vector<64x8xbf16>, vector<8x8xbf16>, vector<64x8xf32> -> vector<64x8xf32>
    %154 = vector.broadcast %148 : f32 to vector<64x8xf32>
    %155 = arith.mulf %154, %153 : vector<64x8xf32>
    %156 = arith.addf %146, %155 : vector<64x8xf32>
    %157 = arith.index_cast %127 : i32 to index
    %c7_118 = arith.constant 7 : index
    %158 = memref.load %arg2[%157, %c7_118] : memref<6x8xf32, #tpu.memory_space<smem>>
    %c0_119 = arith.constant 0 : index
    %c0_120 = arith.constant 0 : index
    %c0_121 = arith.constant 0 : index
    %159 = vector.load %arg21[%c0_119, %c0_120, %c0_121] : memref<1x64x8xbf16, #tpu.memory_space<vmem>>, vector<1x64x8xbf16>
    %160 = vector.shape_cast %159 : vector<1x64x8xbf16> to vector<64x8xbf16>
    %c2_122 = arith.constant 2 : index
    %c3_123 = arith.constant 3 : index
    %c0_124 = arith.constant 0 : index
    %c0_125 = arith.constant 0 : index
    %161 = vector.load %arg3[%c2_122, %c3_123, %c0_124, %c0_125] : memref<3x4x8x8xbf16, #tpu.memory_space<vmem>>, vector<1x1x8x8xbf16>
    %162 = vector.shape_cast %161 : vector<1x1x8x8xbf16> to vector<8x8xbf16>
    %cst_126 = arith.constant dense<0.000000e+00> : vector<64x8xf32>
    %163 = tpu.matmul %160, %162, %cst_126 {dimension_numbers = #tpu.dot_dimension_numbers<[1], [0], [0], [1], [0, 0, 1, 1], [], []>} : vector<64x8xbf16>, vector<8x8xbf16>, vector<64x8xf32> -> vector<64x8xf32>
    %164 = vector.broadcast %158 : f32 to vector<64x8xf32>
    %165 = arith.mulf %164, %163 : vector<64x8xf32>
    %166 = arith.addf %156, %165 : vector<64x8xf32>
    %167 = arith.index_cast %127 : i32 to index
    %c1_127 = arith.constant 1 : index
    %168 = memref.load %arg2[%167, %c1_127] : memref<6x8xf32, #tpu.memory_space<smem>>
    %cst_128 = arith.constant 0.999994993 : f32
    %169 = arith.mulf %168, %cst_128 : f32
    %c0_129 = arith.constant 0 : index
    %c0_130 = arith.constant 0 : index
    %c0_131 = arith.constant 0 : index
    %170 = vector.load %arg23[%c0_129, %c0_130, %c0_131] : memref<1x64x8xf32, #tpu.memory_space<vmem>>, vector<1x64x8xf32>
    %171 = vector.shape_cast %170 : vector<1x64x8xf32> to vector<64x8xf32>
    %172 = vector.broadcast %169 : f32 to vector<64x8xf32>
    %173 = arith.mulf %172, %171 : vector<64x8xf32>
    %174 = arith.addf %166, %173 : vector<64x8xf32>
    %175 = arith.index_cast %127 : i32 to index
    %c2_132 = arith.constant 2 : index
    %176 = memref.load %arg2[%175, %c2_132] : memref<6x8xf32, #tpu.memory_space<smem>>
    %cst_133 = arith.constant 0.999994993 : f32
    %177 = arith.mulf %176, %cst_133 : f32
    %c0_134 = arith.constant 0 : index
    %c0_135 = arith.constant 0 : index
    %c0_136 = arith.constant 0 : index
    %178 = vector.load %arg22[%c0_134, %c0_135, %c0_136] : memref<1x64x8xf32, #tpu.memory_space<vmem>>, vector<1x64x8xf32>
    %179 = vector.shape_cast %178 : vector<1x64x8xf32> to vector<64x8xf32>
    %180 = vector.broadcast %177 : f32 to vector<64x8xf32>
    %181 = arith.mulf %180, %179 : vector<64x8xf32>
    %182 = arith.addf %174, %181 : vector<64x8xf32>
    %183 = arith.index_cast %127 : i32 to index
    %c3_137 = arith.constant 3 : index
    %184 = memref.load %arg2[%183, %c3_137] : memref<6x8xf32, #tpu.memory_space<smem>>
    %c0_138 = arith.constant 0 : index
    %c0_139 = arith.constant 0 : index
    %c0_140 = arith.constant 0 : index
    %185 = vector.load %arg24[%c0_138, %c0_139, %c0_140] : memref<1x64x8xf32, #tpu.memory_space<vmem>>, vector<1x64x8xf32>
    %186 = vector.shape_cast %185 : vector<1x64x8xf32> to vector<64x8xf32>
    %187 = vector.broadcast %184 : f32 to vector<64x8xf32>
    %188 = arith.mulf %187, %186 : vector<64x8xf32>
    %189 = arith.addf %182, %188 : vector<64x8xf32>
    %190 = arith.addf %126, %189 : vector<64x8xf32>
    %c0_141 = arith.constant 0 : index
    %c0_142 = arith.constant 0 : index
    %c0_143 = arith.constant 0 : index
    %191 = vector.load %arg25[%c0_141, %c0_142, %c0_143] : memref<1x64x8xf32, #tpu.memory_space<vmem>>, vector<1x64x8xf32>
    %192 = vector.shape_cast %191 : vector<1x64x8xf32> to vector<64x8xf32>
    %193 = vector.shape_cast %190 : vector<64x8xf32> to vector<1x64x8xf32>
    tpu.vector_store %arg25[%c0_141, %c0_142, %c0_143], %193 {strides = array<i32>} : memref<1x64x8xf32, #tpu.memory_space<vmem>>, vector<1x64x8xf32>,
    return
  }
  func.func @transform_0(%arg0: i32, %arg1: i32, %arg2: memref<6x8xf32, #tpu.memory_space<smem>>) -> (i32, i32, i32, i32) {
    %c0_i32 = arith.constant 0 : i32
    %c0_i32_0 = arith.constant 0 : i32
    %c0_i32_1 = arith.constant 0 : i32
    %c0_i32_2 = arith.constant 0 : i32
    %c0_i32_3 = arith.constant 0 : i32
    return %c0_i32, %c0_i32_0, %c0_i32_1, %c0_i32_2 : i32, i32, i32, i32
  }
  func.func @transform_1(%arg0: i32, %arg1: i32, %arg2: memref<6x8xf32, #tpu.memory_space<smem>>) -> (i32, i32, i32) {
    %c0_i32 = arith.constant 0 : i32
    %c0_i32_0 = arith.constant 0 : i32
    return %arg0, %arg1, %c0_i32 : i32, i32, i32
  }
  func.func @transform_2(%arg0: i32, %arg1: i32, %arg2: memref<6x8xf32, #tpu.memory_space<smem>>) -> (i32, i32, i32) {
    %c0_i32 = arith.constant 0 : i32
    %c0_i32_0 = arith.constant 0 : i32
    return %arg0, %arg1, %c0_i32 : i32, i32, i32
  }
  func.func @transform_3(%arg0: i32, %arg1: i32, %arg2: memref<6x8xf32, #tpu.memory_space<smem>>) -> (i32, i32, i32) {
    %c0_i32 = arith.constant 0 : i32
    %c0_i32_0 = arith.constant 0 : i32
    return %arg0, %arg1, %c0_i32 : i32, i32, i32
  }
  func.func @transform_4(%arg0: i32, %arg1: i32, %arg2: memref<6x8xf32, #tpu.memory_space<smem>>) -> (i32, i32, i32) {
    %c0_i32 = arith.constant 0 : i32
    %c0_i32_0 = arith.constant 0 : i32
    return %arg0, %arg1, %c0_i32 : i32, i32, i32
  }
  func.func @transform_5(%arg0: i32, %arg1: i32, %arg2: memref<6x8xf32, #tpu.memory_space<smem>>) -> (i32, i32, i32) {
    %c0_i32 = arith.constant 0 : i32
    %c0_i32_0 = arith.constant 0 : i32
    return %arg0, %arg1, %c0_i32 : i32, i32, i32
  }
  func.func @transform_6(%arg0: i32, %arg1: i32, %arg2: memref<6x8xf32, #tpu.memory_space<smem>>) -> (i32, i32, i32) {
    %c0_i32 = arith.constant 0 : i32
    %c0_i32_0 = arith.constant 0 : i32
    return %arg0, %arg1, %c0_i32 : i32, i32, i32
  }
  func.func @transform_7(%arg0: i32, %arg1: i32, %arg2: memref<6x8xf32, #tpu.memory_space<smem>>) -> (i32, i32, i32) {
    %c0_i32 = arith.constant 0 : i32
    %c0_i32_0 = arith.constant 0 : i32
    return %arg0, %arg1, %c0_i32 : i32, i32, i32
  }
  func.func @transform_8(%arg0: i32, %arg1: i32, %arg2: memref<6x8xf32, #tpu.memory_space<smem>>) -> (i32, i32, i32) {
    %c0_i32 = arith.constant 0 : i32
    %c0_i32_0 = arith.constant 0 : i32
    return %arg0, %arg1, %c0_i32 : i32, i32, i32
  }
  func.func @transform_9(%arg0: i32, %arg1: i32, %arg2: memref<6x8xf32, #tpu.memory_space<smem>>) -> (i32, i32, i32) {
    %c0_i32 = arith.constant 0 : i32
    %c0_i32_0 = arith.constant 0 : i32
    return %arg0, %arg1, %c0_i32 : i32, i32, i32
  }
  func.func @transform_10(%arg0: i32, %arg1: i32, %arg2: memref<6x8xf32, #tpu.memory_space<smem>>) -> (i32, i32, i32) {
    %c0_i32 = arith.constant 0 : i32
    %c0_i32_0 = arith.constant 0 : i32
    return %arg0, %arg1, %c0_i32 : i32, i32, i32
  }
  func.func @transform_11(%arg0: i32, %arg1: i32, %arg2: memref<6x8xf32, #tpu.memory_space<smem>>) -> (i32, i32, i32) {
    %c0_i32 = arith.constant 0 : i32
    %c0_i32_0 = arith.constant 0 : i32
    return %arg0, %arg1, %c0_i32 : i32, i32, i32
  }
  func.func @transform_12(%arg0: i32, %arg1: i32, %arg2: memref<6x8xf32, #tpu.memory_space<smem>>) -> (i32, i32, i32) {
    %c0_i32 = arith.constant 0 : i32
    %c0_i32_0 = arith.constant 0 : i32
    return %arg0, %arg1, %c0_i32 : i32, i32, i32
  }
  func.func @transform_13(%arg0: i32, %arg1: i32, %arg2: memref<6x8xf32, #tpu.memory_space<smem>>) -> (i32, i32, i32) {
    %c0_i32 = arith.constant 0 : i32
    %c0_i32_0 = arith.constant 0 : i32
    return %arg0, %arg1, %c0_i32 : i32, i32, i32
  }
  func.func @transform_14(%arg0: i32, %arg1: i32, %arg2: memref<6x8xf32, #tpu.memory_space<smem>>) -> (i32, i32, i32) {
    %c0_i32 = arith.constant 0 : i32
    %c0_i32_0 = arith.constant 0 : i32
    return %arg0, %arg1, %c0_i32 : i32, i32, i32
  }
  func.func @transform_15(%arg0: i32, %arg1: i32, %arg2: memref<6x8xf32, #tpu.memory_space<smem>>) -> (i32, i32, i32) {
    %c0_i32 = arith.constant 0 : i32
    %c0_i32_0 = arith.constant 0 : i32
    return %arg0, %arg1, %c0_i32 : i32, i32, i32
  }
  func.func @transform_16(%arg0: i32, %arg1: i32, %arg2: memref<6x8xf32, #tpu.memory_space<smem>>) -> (i32, i32, i32) {
    %c0_i32 = arith.constant 0 : i32
    %c0_i32_0 = arith.constant 0 : i32
    return %arg0, %arg1, %c0_i32 : i32, i32, i32
  }
  func.func @transform_17(%arg0: i32, %arg1: i32, %arg2: memref<6x8xf32, #tpu.memory_space<smem>>) -> (i32, i32, i32) {
    %c0_i32 = arith.constant 0 : i32
    %c0_i32_0 = arith.constant 0 : i32
    return %arg0, %arg1, %c0_i32 : i32, i32, i32
  }
  func.func @transform_18(%arg0: i32, %arg1: i32, %arg2: memref<6x8xf32, #tpu.memory_space<smem>>) -> (i32, i32, i32) {
    %c0_i32 = arith.constant 0 : i32
    %c0_i32_0 = arith.constant 0 : i32
    return %arg0, %arg1, %c0_i32 : i32, i32, i32
  }
  func.func @transform_19(%arg0: i32, %arg1: i32, %arg2: memref<6x8xf32, #tpu.memory_space<smem>>) -> (i32, i32, i32) {
    %c0_i32 = arith.constant 0 : i32
    %c0_i32_0 = arith.constant 0 : i32
    return %arg0, %arg1, %c0_i32 : i32, i32, i32
  }
  func.func @transform_20(%arg0: i32, %arg1: i32, %arg2: memref<6x8xf32, #tpu.memory_space<smem>>) -> (i32, i32, i32) {
    %c0_i32 = arith.constant 0 : i32
    %c0_i32_0 = arith.constant 0 : i32
    return %arg0, %arg1, %c0_i32 : i32, i32, i32
  }
  func.func @transform_21(%arg0: i32, %arg1: i32, %arg2: memref<6x8xf32, #tpu.memory_space<smem>>) -> (i32, i32, i32) {
    %c0_i32 = arith.constant 0 : i32
    %c0_i32_0 = arith.constant 0 : i32
    return %arg0, %arg1, %c0_i32 : i32, i32, i32
  }
  func.func @transform_22(%arg0: i32, %arg1: i32, %arg2: memref<6x8xf32, #tpu.memory_space<smem>>) -> (i32, i32, i32) {
    %c0_i32 = arith.constant 0 : i32
    %c0_i32_0 = arith.constant 0 : i32
    return %arg0, %arg1, %c0_i32 : i32, i32, i32
  }
}

module attributes {stable_mosaic.version = 11 : i64} {
  func.func @_matmul_kernel(%arg0: i32, %arg1: memref<128x16xf32, #tpu.memory_space<vmem>>, %arg2: memref<16x16xbf16, #tpu.memory_space<vmem>>, %arg3: memref<128x16xf32, #tpu.memory_space<vmem>>) attributes {dimension_semantics = [#tpu.dimension_semantics<parallel>], iteration_bounds = array<i64: 1>, scalar_prefetch = 0 : i64, scratch_operands = 0 : i64, tpu.core_type = #tpu.core_type<tc>, window_params = [{transform_indices = @transform_0, window_bounds = array<i64: 128, 16>}, {pipeline_mode = #tpu.pipeline_mode<synchronous>, transform_indices = @transform_1, window_bounds = array<i64: 16, 16>}, {transform_indices = @transform_2, window_bounds = array<i64: 128, 16>}]} {
    %c0 = arith.constant 0 : index
    %c0_0 = arith.constant 0 : index
    %0 = vector.load %arg1[%c0, %c0_0] : memref<128x16xf32, #tpu.memory_space<vmem>>, vector<128x16xf32>
    %cst = arith.constant 0.000000e+00 : f32
    %1 = vector.broadcast %cst : f32 to vector<128x16xf32>
    %2 = arith.maximumf %0, %1 : vector<128x16xf32>
    %3 = arith.truncf %2 : vector<128x16xf32> to vector<128x16xbf16>
    %c0_1 = arith.constant 0 : index
    %c0_2 = arith.constant 0 : index
    %4 = vector.load %arg2[%c0_1, %c0_2] : memref<16x16xbf16, #tpu.memory_space<vmem>>, vector<16x16xbf16>
    %cst_3 = arith.constant dense<0.000000e+00> : vector<128x16xf32>
    %5 = tpu.matmul %3, %4, %cst_3 {dimension_numbers = #tpu.dot_dimension_numbers<[1], [0], [0], [1], [0, 0, 1, 1], [], []>} : vector<128x16xbf16>, vector<16x16xbf16>, vector<128x16xf32> -> vector<128x16xf32>
    %c0_4 = arith.constant 0 : index
    %c0_5 = arith.constant 0 : index
    %6 = vector.load %arg3[%c0_4, %c0_5] : memref<128x16xf32, #tpu.memory_space<vmem>>, vector<128x16xf32>
    tpu.vector_store %arg3[%c0_4, %c0_5], %5 {strides = array<i32>} : memref<128x16xf32, #tpu.memory_space<vmem>>, vector<128x16xf32>,
    return
  }
  func.func @transform_0(%arg0: i32) -> (i32, i32) {
    %c0_i32 = arith.constant 0 : i32
    %c0_i32_0 = arith.constant 0 : i32
    return %arg0, %c0_i32 : i32, i32
  }
  func.func @transform_1(%arg0: i32) -> (i32, i32) {
    %c0_i32 = arith.constant 0 : i32
    %c0_i32_0 = arith.constant 0 : i32
    %c0_i32_1 = arith.constant 0 : i32
    return %c0_i32, %c0_i32_0 : i32, i32
  }
  func.func @transform_2(%arg0: i32) -> (i32, i32) {
    %c0_i32 = arith.constant 0 : i32
    %c0_i32_0 = arith.constant 0 : i32
    return %arg0, %c0_i32 : i32, i32
  }
}

module attributes {stable_mosaic.version = 11 : i64} {
  func.func @_dual_pw_kernel(%arg0: i32, %arg1: i32, %arg2: memref<1x32x16xbf16, #tpu.memory_space<vmem>>, %arg3: memref<1x32x16xbf16, #tpu.memory_space<vmem>>, %arg4: memref<1x16x16xbf16, #tpu.memory_space<vmem>>, %arg5: memref<1x16x16xbf16, #tpu.memory_space<vmem>>, %arg6: memref<1x32x16xbf16, #tpu.memory_space<vmem>>, %arg7: memref<1x32x16xbf16, #tpu.memory_space<vmem>>) attributes {dimension_semantics = [#tpu.dimension_semantics<parallel>, #tpu.dimension_semantics<parallel>], iteration_bounds = array<i64: 2, 1>, scalar_prefetch = 0 : i64, scratch_operands = 0 : i64, tpu.core_type = #tpu.core_type<tc>, window_params = [{transform_indices = @transform_0, window_bounds = array<i64: 1, 32, 16>}, {transform_indices = @transform_1, window_bounds = array<i64: 1, 32, 16>}, {transform_indices = @transform_2, window_bounds = array<i64: 1, 16, 16>}, {transform_indices = @transform_3, window_bounds = array<i64: 1, 16, 16>}, {transform_indices = @transform_4, window_bounds = array<i64: 1, 32, 16>}, {transform_indices = @transform_5, window_bounds = array<i64: 1, 32, 16>}]} {
    %c0 = arith.constant 0 : index
    %c0_0 = arith.constant 0 : index
    %c0_1 = arith.constant 0 : index
    %0 = vector.load %arg2[%c0, %c0_0, %c0_1] : memref<1x32x16xbf16, #tpu.memory_space<vmem>>, vector<1x32x16xbf16>
    %1 = vector.shape_cast %0 : vector<1x32x16xbf16> to vector<32x16xbf16>
    %c0_2 = arith.constant 0 : index
    %c0_3 = arith.constant 0 : index
    %c0_4 = arith.constant 0 : index
    %2 = vector.load %arg4[%c0_2, %c0_3, %c0_4] : memref<1x16x16xbf16, #tpu.memory_space<vmem>>, vector<1x16x16xbf16>
    %3 = vector.shape_cast %2 : vector<1x16x16xbf16> to vector<16x16xbf16>
    %cst = arith.constant dense<0.000000e+00> : vector<32x16xf32>
    %4 = tpu.matmul %1, %3, %cst {dimension_numbers = #tpu.dot_dimension_numbers<[1], [0], [0], [1], [0, 0, 1, 1], [], []>} : vector<32x16xbf16>, vector<16x16xbf16>, vector<32x16xf32> -> vector<32x16xf32>
    %c0_5 = arith.constant 0 : index
    %c0_6 = arith.constant 0 : index
    %c0_7 = arith.constant 0 : index
    %5 = vector.load %arg3[%c0_5, %c0_6, %c0_7] : memref<1x32x16xbf16, #tpu.memory_space<vmem>>, vector<1x32x16xbf16>
    %6 = vector.shape_cast %5 : vector<1x32x16xbf16> to vector<32x16xbf16>
    %c0_8 = arith.constant 0 : index
    %c0_9 = arith.constant 0 : index
    %c0_10 = arith.constant 0 : index
    %7 = vector.load %arg5[%c0_8, %c0_9, %c0_10] : memref<1x16x16xbf16, #tpu.memory_space<vmem>>, vector<1x16x16xbf16>
    %8 = vector.shape_cast %7 : vector<1x16x16xbf16> to vector<16x16xbf16>
    %cst_11 = arith.constant dense<0.000000e+00> : vector<32x16xf32>
    %9 = tpu.matmul %6, %8, %cst_11 {dimension_numbers = #tpu.dot_dimension_numbers<[1], [0], [0], [1], [0, 0, 1, 1], [], []>} : vector<32x16xbf16>, vector<16x16xbf16>, vector<32x16xf32> -> vector<32x16xf32>
    %cst_12 = arith.constant 0.000000e+00 : f32
    %10 = vector.broadcast %cst_12 : f32 to vector<32x16xf32>
    %11 = arith.maximumf %4, %10 : vector<32x16xf32>
    %12 = arith.truncf %11 : vector<32x16xf32> to vector<32x16xbf16>
    %c0_13 = arith.constant 0 : index
    %c0_14 = arith.constant 0 : index
    %c0_15 = arith.constant 0 : index
    %13 = vector.load %arg6[%c0_13, %c0_14, %c0_15] : memref<1x32x16xbf16, #tpu.memory_space<vmem>>, vector<1x32x16xbf16>
    %14 = vector.shape_cast %13 : vector<1x32x16xbf16> to vector<32x16xbf16>
    %15 = vector.shape_cast %12 : vector<32x16xbf16> to vector<1x32x16xbf16>
    tpu.vector_store %arg6[%c0_13, %c0_14, %c0_15], %15 {strides = array<i32>} : memref<1x32x16xbf16, #tpu.memory_space<vmem>>, vector<1x32x16xbf16>,
    %cst_16 = arith.constant 0.000000e+00 : f32
    %16 = vector.broadcast %cst_16 : f32 to vector<32x16xf32>
    %17 = arith.maximumf %9, %16 : vector<32x16xf32>
    %18 = arith.truncf %17 : vector<32x16xf32> to vector<32x16xbf16>
    %c0_17 = arith.constant 0 : index
    %c0_18 = arith.constant 0 : index
    %c0_19 = arith.constant 0 : index
    %19 = vector.load %arg7[%c0_17, %c0_18, %c0_19] : memref<1x32x16xbf16, #tpu.memory_space<vmem>>, vector<1x32x16xbf16>
    %20 = vector.shape_cast %19 : vector<1x32x16xbf16> to vector<32x16xbf16>
    %21 = vector.shape_cast %18 : vector<32x16xbf16> to vector<1x32x16xbf16>
    tpu.vector_store %arg7[%c0_17, %c0_18, %c0_19], %21 {strides = array<i32>} : memref<1x32x16xbf16, #tpu.memory_space<vmem>>, vector<1x32x16xbf16>,
    return
  }
  func.func @transform_0(%arg0: i32, %arg1: i32) -> (i32, i32, i32) {
    %c0_i32 = arith.constant 0 : i32
    %c0_i32_0 = arith.constant 0 : i32
    return %arg0, %arg1, %c0_i32 : i32, i32, i32
  }
  func.func @transform_1(%arg0: i32, %arg1: i32) -> (i32, i32, i32) {
    %c0_i32 = arith.constant 0 : i32
    %c0_i32_0 = arith.constant 0 : i32
    return %arg0, %arg1, %c0_i32 : i32, i32, i32
  }
  func.func @transform_2(%arg0: i32, %arg1: i32) -> (i32, i32, i32) {
    %c0_i32 = arith.constant 0 : i32
    %c0_i32_0 = arith.constant 0 : i32
    %c0_i32_1 = arith.constant 0 : i32
    return %arg0, %c0_i32, %c0_i32_0 : i32, i32, i32
  }
  func.func @transform_3(%arg0: i32, %arg1: i32) -> (i32, i32, i32) {
    %c0_i32 = arith.constant 0 : i32
    %c0_i32_0 = arith.constant 0 : i32
    %c0_i32_1 = arith.constant 0 : i32
    return %arg0, %c0_i32, %c0_i32_0 : i32, i32, i32
  }
  func.func @transform_4(%arg0: i32, %arg1: i32) -> (i32, i32, i32) {
    %c0_i32 = arith.constant 0 : i32
    %c0_i32_0 = arith.constant 0 : i32
    return %arg0, %arg1, %c0_i32 : i32, i32, i32
  }
  func.func @transform_5(%arg0: i32, %arg1: i32) -> (i32, i32, i32) {
    %c0_i32 = arith.constant 0 : i32
    %c0_i32_0 = arith.constant 0 : i32
    return %arg0, %arg1, %c0_i32 : i32, i32, i32
  }
}

module attributes {stable_mosaic.version = 11 : i64} {
  func.func @_node_epilogue_kernel(%arg0: i32, %arg1: i32, %arg2: memref<4x8xf32, #tpu.memory_space<smem>>, %arg3: memref<2x4x16x16xbf16, #tpu.memory_space<vmem>>, %arg4: memref<1x16x16xbf16, #tpu.memory_space<vmem>>, %arg5: memref<1x16x16xbf16, #tpu.memory_space<vmem>>, %arg6: memref<1x16x16xbf16, #tpu.memory_space<vmem>>, %arg7: memref<1x16x16xbf16, #tpu.memory_space<vmem>>, %arg8: memref<1x16x16xf32, #tpu.memory_space<vmem>>, %arg9: memref<1x16x16xf32, #tpu.memory_space<vmem>>, %arg10: memref<1x16x16xf32, #tpu.memory_space<vmem>>, %arg11: memref<1x16x16xbf16, #tpu.memory_space<vmem>>, %arg12: memref<1x16x16xbf16, #tpu.memory_space<vmem>>, %arg13: memref<1x16x16xbf16, #tpu.memory_space<vmem>>, %arg14: memref<1x16x16xbf16, #tpu.memory_space<vmem>>, %arg15: memref<1x16x16xf32, #tpu.memory_space<vmem>>, %arg16: memref<1x16x16xf32, #tpu.memory_space<vmem>>, %arg17: memref<1x16x16xf32, #tpu.memory_space<vmem>>, %arg18: memref<1x16x16xf32, #tpu.memory_space<vmem>>) attributes {dimension_semantics = [#tpu.dimension_semantics<parallel>, #tpu.dimension_semantics<parallel>], iteration_bounds = array<i64: 2, 1>, scalar_prefetch = 1 : i64, scratch_operands = 0 : i64, tpu.core_type = #tpu.core_type<tc>, window_params = [{pipeline_mode = #tpu.pipeline_mode<synchronous>, transform_indices = @transform_0, window_bounds = array<i64: 2, 4, 16, 16>}, {transform_indices = @transform_1, window_bounds = array<i64: 1, 16, 16>}, {transform_indices = @transform_2, window_bounds = array<i64: 1, 16, 16>}, {transform_indices = @transform_3, window_bounds = array<i64: 1, 16, 16>}, {transform_indices = @transform_4, window_bounds = array<i64: 1, 16, 16>}, {transform_indices = @transform_5, window_bounds = array<i64: 1, 16, 16>}, {transform_indices = @transform_6, window_bounds = array<i64: 1, 16, 16>}, {transform_indices = @transform_7, window_bounds = array<i64: 1, 16, 16>}, {transform_indices = @transform_8, window_bounds = array<i64: 1, 16, 16>}, {transform_indices = @transform_9, window_bounds = array<i64: 1, 16, 16>}, {transform_indices = @transform_10, window_bounds = array<i64: 1, 16, 16>}, {transform_indices = @transform_11, window_bounds = array<i64: 1, 16, 16>}, {transform_indices = @transform_12, window_bounds = array<i64: 1, 16, 16>}, {transform_indices = @transform_13, window_bounds = array<i64: 1, 16, 16>}, {transform_indices = @transform_14, window_bounds = array<i64: 1, 16, 16>}, {transform_indices = @transform_15, window_bounds = array<i64: 1, 16, 16>}]} {
    %c0_i32 = arith.constant 0 : i32
    %0 = arith.addi %c0_i32, %arg0 : i32
    %1 = arith.index_cast %0 : i32 to index
    %c4 = arith.constant 4 : index
    %2 = memref.load %arg2[%1, %c4] : memref<4x8xf32, #tpu.memory_space<smem>>
    %c0 = arith.constant 0 : index
    %c0_0 = arith.constant 0 : index
    %c0_1 = arith.constant 0 : index
    %3 = vector.load %arg4[%c0, %c0_0, %c0_1] : memref<1x16x16xbf16, #tpu.memory_space<vmem>>, vector<1x16x16xbf16>
    %4 = vector.shape_cast %3 : vector<1x16x16xbf16> to vector<16x16xbf16>
    %c0_2 = arith.constant 0 : index
    %c0_3 = arith.constant 0 : index
    %c0_4 = arith.constant 0 : index
    %c0_5 = arith.constant 0 : index
    %5 = vector.load %arg3[%c0_2, %c0_3, %c0_4, %c0_5] : memref<2x4x16x16xbf16, #tpu.memory_space<vmem>>, vector<1x1x16x16xbf16>
    %6 = vector.shape_cast %5 : vector<1x1x16x16xbf16> to vector<16x16xbf16>
    %cst = arith.constant dense<0.000000e+00> : vector<16x16xf32>
    %7 = tpu.matmul %4, %6, %cst {dimension_numbers = #tpu.dot_dimension_numbers<[1], [0], [0], [1], [0, 0, 1, 1], [], []>} : vector<16x16xbf16>, vector<16x16xbf16>, vector<16x16xf32> -> vector<16x16xf32>
    %8 = vector.broadcast %2 : f32 to vector<16x16xf32>
    %9 = arith.mulf %8, %7 : vector<16x16xf32>
    %10 = arith.index_cast %0 : i32 to index
    %c5 = arith.constant 5 : index
    %11 = memref.load %arg2[%10, %c5] : memref<4x8xf32, #tpu.memory_space<smem>>
    %c0_6 = arith.constant 0 : index
    %c0_7 = arith.constant 0 : index
    %c0_8 = arith.constant 0 : index
    %12 = vector.load %arg5[%c0_6, %c0_7, %c0_8] : memref<1x16x16xbf16, #tpu.memory_space<vmem>>, vector<1x16x16xbf16>
    %13 = vector.shape_cast %12 : vector<1x16x16xbf16> to vector<16x16xbf16>
    %c0_9 = arith.constant 0 : index
    %c1 = arith.constant 1 : index
    %c0_10 = arith.constant 0 : index
    %c0_11 = arith.constant 0 : index
    %14 = vector.load %arg3[%c0_9, %c1, %c0_10, %c0_11] : memref<2x4x16x16xbf16, #tpu.memory_space<vmem>>, vector<1x1x16x16xbf16>
    %15 = vector.shape_cast %14 : vector<1x1x16x16xbf16> to vector<16x16xbf16>
    %cst_12 = arith.constant dense<0.000000e+00> : vector<16x16xf32>
    %16 = tpu.matmul %13, %15, %cst_12 {dimension_numbers = #tpu.dot_dimension_numbers<[1], [0], [0], [1], [0, 0, 1, 1], [], []>} : vector<16x16xbf16>, vector<16x16xbf16>, vector<16x16xf32> -> vector<16x16xf32>
    %17 = vector.broadcast %11 : f32 to vector<16x16xf32>
    %18 = arith.mulf %17, %16 : vector<16x16xf32>
    %19 = arith.addf %9, %18 : vector<16x16xf32>
    %20 = arith.index_cast %0 : i32 to index
    %c6 = arith.constant 6 : index
    %21 = memref.load %arg2[%20, %c6] : memref<4x8xf32, #tpu.memory_space<smem>>
    %c0_13 = arith.constant 0 : index
    %c0_14 = arith.constant 0 : index
    %c0_15 = arith.constant 0 : index
    %22 = vector.load %arg6[%c0_13, %c0_14, %c0_15] : memref<1x16x16xbf16, #tpu.memory_space<vmem>>, vector<1x16x16xbf16>
    %23 = vector.shape_cast %22 : vector<1x16x16xbf16> to vector<16x16xbf16>
    %c0_16 = arith.constant 0 : index
    %c2 = arith.constant 2 : index
    %c0_17 = arith.constant 0 : index
    %c0_18 = arith.constant 0 : index
    %24 = vector.load %arg3[%c0_16, %c2, %c0_17, %c0_18] : memref<2x4x16x16xbf16, #tpu.memory_space<vmem>>, vector<1x1x16x16xbf16>
    %25 = vector.shape_cast %24 : vector<1x1x16x16xbf16> to vector<16x16xbf16>
    %cst_19 = arith.constant dense<0.000000e+00> : vector<16x16xf32>
    %26 = tpu.matmul %23, %25, %cst_19 {dimension_numbers = #tpu.dot_dimension_numbers<[1], [0], [0], [1], [0, 0, 1, 1], [], []>} : vector<16x16xbf16>, vector<16x16xbf16>, vector<16x16xf32> -> vector<16x16xf32>
    %27 = vector.broadcast %21 : f32 to vector<16x16xf32>
    %28 = arith.mulf %27, %26 : vector<16x16xf32>
    %29 = arith.addf %19, %28 : vector<16x16xf32>
    %30 = arith.index_cast %0 : i32 to index
    %c7 = arith.constant 7 : index
    %31 = memref.load %arg2[%30, %c7] : memref<4x8xf32, #tpu.memory_space<smem>>
    %c0_20 = arith.constant 0 : index
    %c0_21 = arith.constant 0 : index
    %c0_22 = arith.constant 0 : index
    %32 = vector.load %arg7[%c0_20, %c0_21, %c0_22] : memref<1x16x16xbf16, #tpu.memory_space<vmem>>, vector<1x16x16xbf16>
    %33 = vector.shape_cast %32 : vector<1x16x16xbf16> to vector<16x16xbf16>
    %c0_23 = arith.constant 0 : index
    %c3 = arith.constant 3 : index
    %c0_24 = arith.constant 0 : index
    %c0_25 = arith.constant 0 : index
    %34 = vector.load %arg3[%c0_23, %c3, %c0_24, %c0_25] : memref<2x4x16x16xbf16, #tpu.memory_space<vmem>>, vector<1x1x16x16xbf16>
    %35 = vector.shape_cast %34 : vector<1x1x16x16xbf16> to vector<16x16xbf16>
    %cst_26 = arith.constant dense<0.000000e+00> : vector<16x16xf32>
    %36 = tpu.matmul %33, %35, %cst_26 {dimension_numbers = #tpu.dot_dimension_numbers<[1], [0], [0], [1], [0, 0, 1, 1], [], []>} : vector<16x16xbf16>, vector<16x16xbf16>, vector<16x16xf32> -> vector<16x16xf32>
    %37 = vector.broadcast %31 : f32 to vector<16x16xf32>
    %38 = arith.mulf %37, %36 : vector<16x16xf32>
    %39 = arith.addf %29, %38 : vector<16x16xf32>
    %40 = arith.index_cast %0 : i32 to index
    %c1_27 = arith.constant 1 : index
    %41 = memref.load %arg2[%40, %c1_27] : memref<4x8xf32, #tpu.memory_space<smem>>
    %cst_28 = arith.constant 0.999994993 : f32
    %42 = arith.mulf %41, %cst_28 : f32
    %c0_29 = arith.constant 0 : index
    %c0_30 = arith.constant 0 : index
    %c0_31 = arith.constant 0 : index
    %43 = vector.load %arg9[%c0_29, %c0_30, %c0_31] : memref<1x16x16xf32, #tpu.memory_space<vmem>>, vector<1x16x16xf32>
    %44 = vector.shape_cast %43 : vector<1x16x16xf32> to vector<16x16xf32>
    %45 = vector.broadcast %42 : f32 to vector<16x16xf32>
    %46 = arith.mulf %45, %44 : vector<16x16xf32>
    %47 = arith.addf %39, %46 : vector<16x16xf32>
    %48 = arith.index_cast %0 : i32 to index
    %c2_32 = arith.constant 2 : index
    %49 = memref.load %arg2[%48, %c2_32] : memref<4x8xf32, #tpu.memory_space<smem>>
    %cst_33 = arith.constant 0.999994993 : f32
    %50 = arith.mulf %49, %cst_33 : f32
    %c0_34 = arith.constant 0 : index
    %c0_35 = arith.constant 0 : index
    %c0_36 = arith.constant 0 : index
    %51 = vector.load %arg8[%c0_34, %c0_35, %c0_36] : memref<1x16x16xf32, #tpu.memory_space<vmem>>, vector<1x16x16xf32>
    %52 = vector.shape_cast %51 : vector<1x16x16xf32> to vector<16x16xf32>
    %53 = vector.broadcast %50 : f32 to vector<16x16xf32>
    %54 = arith.mulf %53, %52 : vector<16x16xf32>
    %55 = arith.addf %47, %54 : vector<16x16xf32>
    %56 = arith.index_cast %0 : i32 to index
    %c3_37 = arith.constant 3 : index
    %57 = memref.load %arg2[%56, %c3_37] : memref<4x8xf32, #tpu.memory_space<smem>>
    %c0_38 = arith.constant 0 : index
    %c0_39 = arith.constant 0 : index
    %c0_40 = arith.constant 0 : index
    %58 = vector.load %arg10[%c0_38, %c0_39, %c0_40] : memref<1x16x16xf32, #tpu.memory_space<vmem>>, vector<1x16x16xf32>
    %59 = vector.shape_cast %58 : vector<1x16x16xf32> to vector<16x16xf32>
    %60 = vector.broadcast %57 : f32 to vector<16x16xf32>
    %61 = arith.mulf %60, %59 : vector<16x16xf32>
    %62 = arith.addf %55, %61 : vector<16x16xf32>
    %c2_i32 = arith.constant 2 : i32
    %63 = arith.addi %c2_i32, %arg0 : i32
    %64 = arith.index_cast %63 : i32 to index
    %c4_41 = arith.constant 4 : index
    %65 = memref.load %arg2[%64, %c4_41] : memref<4x8xf32, #tpu.memory_space<smem>>
    %c0_42 = arith.constant 0 : index
    %c0_43 = arith.constant 0 : index
    %c0_44 = arith.constant 0 : index
    %66 = vector.load %arg11[%c0_42, %c0_43, %c0_44] : memref<1x16x16xbf16, #tpu.memory_space<vmem>>, vector<1x16x16xbf16>
    %67 = vector.shape_cast %66 : vector<1x16x16xbf16> to vector<16x16xbf16>
    %c1_45 = arith.constant 1 : index
    %c0_46 = arith.constant 0 : index
    %c0_47 = arith.constant 0 : index
    %c0_48 = arith.constant 0 : index
    %68 = vector.load %arg3[%c1_45, %c0_46, %c0_47, %c0_48] : memref<2x4x16x16xbf16, #tpu.memory_space<vmem>>, vector<1x1x16x16xbf16>
    %69 = vector.shape_cast %68 : vector<1x1x16x16xbf16> to vector<16x16xbf16>
    %cst_49 = arith.constant dense<0.000000e+00> : vector<16x16xf32>
    %70 = tpu.matmul %67, %69, %cst_49 {dimension_numbers = #tpu.dot_dimension_numbers<[1], [0], [0], [1], [0, 0, 1, 1], [], []>} : vector<16x16xbf16>, vector<16x16xbf16>, vector<16x16xf32> -> vector<16x16xf32>
    %71 = vector.broadcast %65 : f32 to vector<16x16xf32>
    %72 = arith.mulf %71, %70 : vector<16x16xf32>
    %73 = arith.index_cast %63 : i32 to index
    %c5_50 = arith.constant 5 : index
    %74 = memref.load %arg2[%73, %c5_50] : memref<4x8xf32, #tpu.memory_space<smem>>
    %c0_51 = arith.constant 0 : index
    %c0_52 = arith.constant 0 : index
    %c0_53 = arith.constant 0 : index
    %75 = vector.load %arg12[%c0_51, %c0_52, %c0_53] : memref<1x16x16xbf16, #tpu.memory_space<vmem>>, vector<1x16x16xbf16>
    %76 = vector.shape_cast %75 : vector<1x16x16xbf16> to vector<16x16xbf16>
    %c1_54 = arith.constant 1 : index
    %c1_55 = arith.constant 1 : index
    %c0_56 = arith.constant 0 : index
    %c0_57 = arith.constant 0 : index
    %77 = vector.load %arg3[%c1_54, %c1_55, %c0_56, %c0_57] : memref<2x4x16x16xbf16, #tpu.memory_space<vmem>>, vector<1x1x16x16xbf16>
    %78 = vector.shape_cast %77 : vector<1x1x16x16xbf16> to vector<16x16xbf16>
    %cst_58 = arith.constant dense<0.000000e+00> : vector<16x16xf32>
    %79 = tpu.matmul %76, %78, %cst_58 {dimension_numbers = #tpu.dot_dimension_numbers<[1], [0], [0], [1], [0, 0, 1, 1], [], []>} : vector<16x16xbf16>, vector<16x16xbf16>, vector<16x16xf32> -> vector<16x16xf32>
    %80 = vector.broadcast %74 : f32 to vector<16x16xf32>
    %81 = arith.mulf %80, %79 : vector<16x16xf32>
    %82 = arith.addf %72, %81 : vector<16x16xf32>
    %83 = arith.index_cast %63 : i32 to index
    %c6_59 = arith.constant 6 : index
    %84 = memref.load %arg2[%83, %c6_59] : memref<4x8xf32, #tpu.memory_space<smem>>
    %c0_60 = arith.constant 0 : index
    %c0_61 = arith.constant 0 : index
    %c0_62 = arith.constant 0 : index
    %85 = vector.load %arg13[%c0_60, %c0_61, %c0_62] : memref<1x16x16xbf16, #tpu.memory_space<vmem>>, vector<1x16x16xbf16>
    %86 = vector.shape_cast %85 : vector<1x16x16xbf16> to vector<16x16xbf16>
    %c1_63 = arith.constant 1 : index
    %c2_64 = arith.constant 2 : index
    %c0_65 = arith.constant 0 : index
    %c0_66 = arith.constant 0 : index
    %87 = vector.load %arg3[%c1_63, %c2_64, %c0_65, %c0_66] : memref<2x4x16x16xbf16, #tpu.memory_space<vmem>>, vector<1x1x16x16xbf16>
    %88 = vector.shape_cast %87 : vector<1x1x16x16xbf16> to vector<16x16xbf16>
    %cst_67 = arith.constant dense<0.000000e+00> : vector<16x16xf32>
    %89 = tpu.matmul %86, %88, %cst_67 {dimension_numbers = #tpu.dot_dimension_numbers<[1], [0], [0], [1], [0, 0, 1, 1], [], []>} : vector<16x16xbf16>, vector<16x16xbf16>, vector<16x16xf32> -> vector<16x16xf32>
    %90 = vector.broadcast %84 : f32 to vector<16x16xf32>
    %91 = arith.mulf %90, %89 : vector<16x16xf32>
    %92 = arith.addf %82, %91 : vector<16x16xf32>
    %93 = arith.index_cast %63 : i32 to index
    %c7_68 = arith.constant 7 : index
    %94 = memref.load %arg2[%93, %c7_68] : memref<4x8xf32, #tpu.memory_space<smem>>
    %c0_69 = arith.constant 0 : index
    %c0_70 = arith.constant 0 : index
    %c0_71 = arith.constant 0 : index
    %95 = vector.load %arg14[%c0_69, %c0_70, %c0_71] : memref<1x16x16xbf16, #tpu.memory_space<vmem>>, vector<1x16x16xbf16>
    %96 = vector.shape_cast %95 : vector<1x16x16xbf16> to vector<16x16xbf16>
    %c1_72 = arith.constant 1 : index
    %c3_73 = arith.constant 3 : index
    %c0_74 = arith.constant 0 : index
    %c0_75 = arith.constant 0 : index
    %97 = vector.load %arg3[%c1_72, %c3_73, %c0_74, %c0_75] : memref<2x4x16x16xbf16, #tpu.memory_space<vmem>>, vector<1x1x16x16xbf16>
    %98 = vector.shape_cast %97 : vector<1x1x16x16xbf16> to vector<16x16xbf16>
    %cst_76 = arith.constant dense<0.000000e+00> : vector<16x16xf32>
    %99 = tpu.matmul %96, %98, %cst_76 {dimension_numbers = #tpu.dot_dimension_numbers<[1], [0], [0], [1], [0, 0, 1, 1], [], []>} : vector<16x16xbf16>, vector<16x16xbf16>, vector<16x16xf32> -> vector<16x16xf32>
    %100 = vector.broadcast %94 : f32 to vector<16x16xf32>
    %101 = arith.mulf %100, %99 : vector<16x16xf32>
    %102 = arith.addf %92, %101 : vector<16x16xf32>
    %103 = arith.index_cast %63 : i32 to index
    %c1_77 = arith.constant 1 : index
    %104 = memref.load %arg2[%103, %c1_77] : memref<4x8xf32, #tpu.memory_space<smem>>
    %cst_78 = arith.constant 0.999994993 : f32
    %105 = arith.mulf %104, %cst_78 : f32
    %c0_79 = arith.constant 0 : index
    %c0_80 = arith.constant 0 : index
    %c0_81 = arith.constant 0 : index
    %106 = vector.load %arg16[%c0_79, %c0_80, %c0_81] : memref<1x16x16xf32, #tpu.memory_space<vmem>>, vector<1x16x16xf32>
    %107 = vector.shape_cast %106 : vector<1x16x16xf32> to vector<16x16xf32>
    %108 = vector.broadcast %105 : f32 to vector<16x16xf32>
    %109 = arith.mulf %108, %107 : vector<16x16xf32>
    %110 = arith.addf %102, %109 : vector<16x16xf32>
    %111 = arith.index_cast %63 : i32 to index
    %c2_82 = arith.constant 2 : index
    %112 = memref.load %arg2[%111, %c2_82] : memref<4x8xf32, #tpu.memory_space<smem>>
    %cst_83 = arith.constant 0.999994993 : f32
    %113 = arith.mulf %112, %cst_83 : f32
    %c0_84 = arith.constant 0 : index
    %c0_85 = arith.constant 0 : index
    %c0_86 = arith.constant 0 : index
    %114 = vector.load %arg15[%c0_84, %c0_85, %c0_86] : memref<1x16x16xf32, #tpu.memory_space<vmem>>, vector<1x16x16xf32>
    %115 = vector.shape_cast %114 : vector<1x16x16xf32> to vector<16x16xf32>
    %116 = vector.broadcast %113 : f32 to vector<16x16xf32>
    %117 = arith.mulf %116, %115 : vector<16x16xf32>
    %118 = arith.addf %110, %117 : vector<16x16xf32>
    %119 = arith.index_cast %63 : i32 to index
    %c3_87 = arith.constant 3 : index
    %120 = memref.load %arg2[%119, %c3_87] : memref<4x8xf32, #tpu.memory_space<smem>>
    %c0_88 = arith.constant 0 : index
    %c0_89 = arith.constant 0 : index
    %c0_90 = arith.constant 0 : index
    %121 = vector.load %arg17[%c0_88, %c0_89, %c0_90] : memref<1x16x16xf32, #tpu.memory_space<vmem>>, vector<1x16x16xf32>
    %122 = vector.shape_cast %121 : vector<1x16x16xf32> to vector<16x16xf32>
    %123 = vector.broadcast %120 : f32 to vector<16x16xf32>
    %124 = arith.mulf %123, %122 : vector<16x16xf32>
    %125 = arith.addf %118, %124 : vector<16x16xf32>
    %126 = arith.addf %62, %125 : vector<16x16xf32>
    %c0_91 = arith.constant 0 : index
    %c0_92 = arith.constant 0 : index
    %c0_93 = arith.constant 0 : index
    %127 = vector.load %arg18[%c0_91, %c0_92, %c0_93] : memref<1x16x16xf32, #tpu.memory_space<vmem>>, vector<1x16x16xf32>
    %128 = vector.shape_cast %127 : vector<1x16x16xf32> to vector<16x16xf32>
    %129 = vector.shape_cast %126 : vector<16x16xf32> to vector<1x16x16xf32>
    tpu.vector_store %arg18[%c0_91, %c0_92, %c0_93], %129 {strides = array<i32>} : memref<1x16x16xf32, #tpu.memory_space<vmem>>, vector<1x16x16xf32>,
    return
  }
  func.func @transform_0(%arg0: i32, %arg1: i32, %arg2: memref<4x8xf32, #tpu.memory_space<smem>>) -> (i32, i32, i32, i32) {
    %c0_i32 = arith.constant 0 : i32
    %c0_i32_0 = arith.constant 0 : i32
    %c0_i32_1 = arith.constant 0 : i32
    %c0_i32_2 = arith.constant 0 : i32
    %c0_i32_3 = arith.constant 0 : i32
    return %c0_i32, %c0_i32_0, %c0_i32_1, %c0_i32_2 : i32, i32, i32, i32
  }
  func.func @transform_1(%arg0: i32, %arg1: i32, %arg2: memref<4x8xf32, #tpu.memory_space<smem>>) -> (i32, i32, i32) {
    %c0_i32 = arith.constant 0 : i32
    %c0_i32_0 = arith.constant 0 : i32
    return %arg0, %arg1, %c0_i32 : i32, i32, i32
  }
  func.func @transform_2(%arg0: i32, %arg1: i32, %arg2: memref<4x8xf32, #tpu.memory_space<smem>>) -> (i32, i32, i32) {
    %c0_i32 = arith.constant 0 : i32
    %c0_i32_0 = arith.constant 0 : i32
    return %arg0, %arg1, %c0_i32 : i32, i32, i32
  }
  func.func @transform_3(%arg0: i32, %arg1: i32, %arg2: memref<4x8xf32, #tpu.memory_space<smem>>) -> (i32, i32, i32) {
    %c0_i32 = arith.constant 0 : i32
    %c0_i32_0 = arith.constant 0 : i32
    return %arg0, %arg1, %c0_i32 : i32, i32, i32
  }
  func.func @transform_4(%arg0: i32, %arg1: i32, %arg2: memref<4x8xf32, #tpu.memory_space<smem>>) -> (i32, i32, i32) {
    %c0_i32 = arith.constant 0 : i32
    %c0_i32_0 = arith.constant 0 : i32
    return %arg0, %arg1, %c0_i32 : i32, i32, i32
  }
  func.func @transform_5(%arg0: i32, %arg1: i32, %arg2: memref<4x8xf32, #tpu.memory_space<smem>>) -> (i32, i32, i32) {
    %c0_i32 = arith.constant 0 : i32
    %c0_i32_0 = arith.constant 0 : i32
    return %arg0, %arg1, %c0_i32 : i32, i32, i32
  }
  func.func @transform_6(%arg0: i32, %arg1: i32, %arg2: memref<4x8xf32, #tpu.memory_space<smem>>) -> (i32, i32, i32) {
    %c0_i32 = arith.constant 0 : i32
    %c0_i32_0 = arith.constant 0 : i32
    return %arg0, %arg1, %c0_i32 : i32, i32, i32
  }
  func.func @transform_7(%arg0: i32, %arg1: i32, %arg2: memref<4x8xf32, #tpu.memory_space<smem>>) -> (i32, i32, i32) {
    %c0_i32 = arith.constant 0 : i32
    %c0_i32_0 = arith.constant 0 : i32
    return %arg0, %arg1, %c0_i32 : i32, i32, i32
  }
  func.func @transform_8(%arg0: i32, %arg1: i32, %arg2: memref<4x8xf32, #tpu.memory_space<smem>>) -> (i32, i32, i32) {
    %c0_i32 = arith.constant 0 : i32
    %c0_i32_0 = arith.constant 0 : i32
    return %arg0, %arg1, %c0_i32 : i32, i32, i32
  }
  func.func @transform_9(%arg0: i32, %arg1: i32, %arg2: memref<4x8xf32, #tpu.memory_space<smem>>) -> (i32, i32, i32) {
    %c0_i32 = arith.constant 0 : i32
    %c0_i32_0 = arith.constant 0 : i32
    return %arg0, %arg1, %c0_i32 : i32, i32, i32
  }
  func.func @transform_10(%arg0: i32, %arg1: i32, %arg2: memref<4x8xf32, #tpu.memory_space<smem>>) -> (i32, i32, i32) {
    %c0_i32 = arith.constant 0 : i32
    %c0_i32_0 = arith.constant 0 : i32
    return %arg0, %arg1, %c0_i32 : i32, i32, i32
  }
  func.func @transform_11(%arg0: i32, %arg1: i32, %arg2: memref<4x8xf32, #tpu.memory_space<smem>>) -> (i32, i32, i32) {
    %c0_i32 = arith.constant 0 : i32
    %c0_i32_0 = arith.constant 0 : i32
    return %arg0, %arg1, %c0_i32 : i32, i32, i32
  }
  func.func @transform_12(%arg0: i32, %arg1: i32, %arg2: memref<4x8xf32, #tpu.memory_space<smem>>) -> (i32, i32, i32) {
    %c0_i32 = arith.constant 0 : i32
    %c0_i32_0 = arith.constant 0 : i32
    return %arg0, %arg1, %c0_i32 : i32, i32, i32
  }
  func.func @transform_13(%arg0: i32, %arg1: i32, %arg2: memref<4x8xf32, #tpu.memory_space<smem>>) -> (i32, i32, i32) {
    %c0_i32 = arith.constant 0 : i32
    %c0_i32_0 = arith.constant 0 : i32
    return %arg0, %arg1, %c0_i32 : i32, i32, i32
  }
  func.func @transform_14(%arg0: i32, %arg1: i32, %arg2: memref<4x8xf32, #tpu.memory_space<smem>>) -> (i32, i32, i32) {
    %c0_i32 = arith.constant 0 : i32
    %c0_i32_0 = arith.constant 0 : i32
    return %arg0, %arg1, %c0_i32 : i32, i32, i32
  }
  func.func @transform_15(%arg0: i32, %arg1: i32, %arg2: memref<4x8xf32, #tpu.memory_space<smem>>) -> (i32, i32, i32) {
    %c0_i32 = arith.constant 0 : i32
    %c0_i32_0 = arith.constant 0 : i32
    return %arg0, %arg1, %c0_i32 : i32, i32, i32
  }
}

module attributes {stable_mosaic.version = 11 : i64} {
  func.func @_dual_pw_kernel(%arg0: i32, %arg1: i32, %arg2: memref<1x32x16xbf16, #tpu.memory_space<vmem>>, %arg3: memref<1x32x16xbf16, #tpu.memory_space<vmem>>, %arg4: memref<1x16x16xbf16, #tpu.memory_space<vmem>>, %arg5: memref<1x16x16xbf16, #tpu.memory_space<vmem>>, %arg6: memref<1x32x16xbf16, #tpu.memory_space<vmem>>, %arg7: memref<1x32x16xbf16, #tpu.memory_space<vmem>>) attributes {dimension_semantics = [#tpu.dimension_semantics<parallel>, #tpu.dimension_semantics<parallel>], iteration_bounds = array<i64: 3, 1>, scalar_prefetch = 0 : i64, scratch_operands = 0 : i64, tpu.core_type = #tpu.core_type<tc>, window_params = [{transform_indices = @transform_0, window_bounds = array<i64: 1, 32, 16>}, {transform_indices = @transform_1, window_bounds = array<i64: 1, 32, 16>}, {transform_indices = @transform_2, window_bounds = array<i64: 1, 16, 16>}, {transform_indices = @transform_3, window_bounds = array<i64: 1, 16, 16>}, {transform_indices = @transform_4, window_bounds = array<i64: 1, 32, 16>}, {transform_indices = @transform_5, window_bounds = array<i64: 1, 32, 16>}]} {
    %c0 = arith.constant 0 : index
    %c0_0 = arith.constant 0 : index
    %c0_1 = arith.constant 0 : index
    %0 = vector.load %arg2[%c0, %c0_0, %c0_1] : memref<1x32x16xbf16, #tpu.memory_space<vmem>>, vector<1x32x16xbf16>
    %1 = vector.shape_cast %0 : vector<1x32x16xbf16> to vector<32x16xbf16>
    %c0_2 = arith.constant 0 : index
    %c0_3 = arith.constant 0 : index
    %c0_4 = arith.constant 0 : index
    %2 = vector.load %arg4[%c0_2, %c0_3, %c0_4] : memref<1x16x16xbf16, #tpu.memory_space<vmem>>, vector<1x16x16xbf16>
    %3 = vector.shape_cast %2 : vector<1x16x16xbf16> to vector<16x16xbf16>
    %cst = arith.constant dense<0.000000e+00> : vector<32x16xf32>
    %4 = tpu.matmul %1, %3, %cst {dimension_numbers = #tpu.dot_dimension_numbers<[1], [0], [0], [1], [0, 0, 1, 1], [], []>} : vector<32x16xbf16>, vector<16x16xbf16>, vector<32x16xf32> -> vector<32x16xf32>
    %c0_5 = arith.constant 0 : index
    %c0_6 = arith.constant 0 : index
    %c0_7 = arith.constant 0 : index
    %5 = vector.load %arg3[%c0_5, %c0_6, %c0_7] : memref<1x32x16xbf16, #tpu.memory_space<vmem>>, vector<1x32x16xbf16>
    %6 = vector.shape_cast %5 : vector<1x32x16xbf16> to vector<32x16xbf16>
    %c0_8 = arith.constant 0 : index
    %c0_9 = arith.constant 0 : index
    %c0_10 = arith.constant 0 : index
    %7 = vector.load %arg5[%c0_8, %c0_9, %c0_10] : memref<1x16x16xbf16, #tpu.memory_space<vmem>>, vector<1x16x16xbf16>
    %8 = vector.shape_cast %7 : vector<1x16x16xbf16> to vector<16x16xbf16>
    %cst_11 = arith.constant dense<0.000000e+00> : vector<32x16xf32>
    %9 = tpu.matmul %6, %8, %cst_11 {dimension_numbers = #tpu.dot_dimension_numbers<[1], [0], [0], [1], [0, 0, 1, 1], [], []>} : vector<32x16xbf16>, vector<16x16xbf16>, vector<32x16xf32> -> vector<32x16xf32>
    %cst_12 = arith.constant 0.000000e+00 : f32
    %10 = vector.broadcast %cst_12 : f32 to vector<32x16xf32>
    %11 = arith.maximumf %4, %10 : vector<32x16xf32>
    %12 = arith.truncf %11 : vector<32x16xf32> to vector<32x16xbf16>
    %c0_13 = arith.constant 0 : index
    %c0_14 = arith.constant 0 : index
    %c0_15 = arith.constant 0 : index
    %13 = vector.load %arg6[%c0_13, %c0_14, %c0_15] : memref<1x32x16xbf16, #tpu.memory_space<vmem>>, vector<1x32x16xbf16>
    %14 = vector.shape_cast %13 : vector<1x32x16xbf16> to vector<32x16xbf16>
    %15 = vector.shape_cast %12 : vector<32x16xbf16> to vector<1x32x16xbf16>
    tpu.vector_store %arg6[%c0_13, %c0_14, %c0_15], %15 {strides = array<i32>} : memref<1x32x16xbf16, #tpu.memory_space<vmem>>, vector<1x32x16xbf16>,
    %cst_16 = arith.constant 0.000000e+00 : f32
    %16 = vector.broadcast %cst_16 : f32 to vector<32x16xf32>
    %17 = arith.maximumf %9, %16 : vector<32x16xf32>
    %18 = arith.truncf %17 : vector<32x16xf32> to vector<32x16xbf16>
    %c0_17 = arith.constant 0 : index
    %c0_18 = arith.constant 0 : index
    %c0_19 = arith.constant 0 : index
    %19 = vector.load %arg7[%c0_17, %c0_18, %c0_19] : memref<1x32x16xbf16, #tpu.memory_space<vmem>>, vector<1x32x16xbf16>
    %20 = vector.shape_cast %19 : vector<1x32x16xbf16> to vector<32x16xbf16>
    %21 = vector.shape_cast %18 : vector<32x16xbf16> to vector<1x32x16xbf16>
    tpu.vector_store %arg7[%c0_17, %c0_18, %c0_19], %21 {strides = array<i32>} : memref<1x32x16xbf16, #tpu.memory_space<vmem>>, vector<1x32x16xbf16>,
    return
  }
  func.func @transform_0(%arg0: i32, %arg1: i32) -> (i32, i32, i32) {
    %c0_i32 = arith.constant 0 : i32
    %c0_i32_0 = arith.constant 0 : i32
    return %arg0, %arg1, %c0_i32 : i32, i32, i32
  }
  func.func @transform_1(%arg0: i32, %arg1: i32) -> (i32, i32, i32) {
    %c0_i32 = arith.constant 0 : i32
    %c0_i32_0 = arith.constant 0 : i32
    return %arg0, %arg1, %c0_i32 : i32, i32, i32
  }
  func.func @transform_2(%arg0: i32, %arg1: i32) -> (i32, i32, i32) {
    %c0_i32 = arith.constant 0 : i32
    %c0_i32_0 = arith.constant 0 : i32
    %c0_i32_1 = arith.constant 0 : i32
    return %arg0, %c0_i32, %c0_i32_0 : i32, i32, i32
  }
  func.func @transform_3(%arg0: i32, %arg1: i32) -> (i32, i32, i32) {
    %c0_i32 = arith.constant 0 : i32
    %c0_i32_0 = arith.constant 0 : i32
    %c0_i32_1 = arith.constant 0 : i32
    return %arg0, %c0_i32, %c0_i32_0 : i32, i32, i32
  }
  func.func @transform_4(%arg0: i32, %arg1: i32) -> (i32, i32, i32) {
    %c0_i32 = arith.constant 0 : i32
    %c0_i32_0 = arith.constant 0 : i32
    return %arg0, %arg1, %c0_i32 : i32, i32, i32
  }
  func.func @transform_5(%arg0: i32, %arg1: i32) -> (i32, i32, i32) {
    %c0_i32 = arith.constant 0 : i32
    %c0_i32_0 = arith.constant 0 : i32
    return %arg0, %arg1, %c0_i32 : i32, i32, i32
  }
}

module attributes {stable_mosaic.version = 11 : i64} {
  func.func @_gap_linear_kernel(%arg0: i32, %arg1: memref<2x16x32xf32, #tpu.memory_space<vmem>>, %arg2: memref<32x10xf32, #tpu.memory_space<vmem>>, %arg3: memref<1x10xf32, #tpu.memory_space<vmem>>, %arg4: memref<2x10xf32, #tpu.memory_space<vmem>>, %arg5: memref<2x32xf32, #tpu.memory_space<vmem>>) attributes {dimension_semantics = [#tpu.dimension_semantics<arbitrary>], iteration_bounds = array<i64: 1>, scalar_prefetch = 0 : i64, scratch_operands = 1 : i64, tpu.core_type = #tpu.core_type<tc>, window_params = [{transform_indices = @transform_0, window_bounds = array<i64: 2, 16, 32>}, {pipeline_mode = #tpu.pipeline_mode<synchronous>, transform_indices = @transform_1, window_bounds = array<i64: 32, 10>}, {pipeline_mode = #tpu.pipeline_mode<synchronous>, transform_indices = @transform_2, window_bounds = array<i64: 1, 10>}, {pipeline_mode = #tpu.pipeline_mode<synchronous>, transform_indices = @transform_3, window_bounds = array<i64: 2, 10>}]} {
    %c0_i32 = arith.constant 0 : i32
    %0 = arith.cmpi eq, %arg0, %c0_i32 : i32
    %1 = arith.extui %0 : i1 to i32
    %c0_i32_0 = arith.constant 0 : i32
    %2 = arith.cmpi ne, %1, %c0_i32_0 : i32
    scf.if %2 {
      %cst_9 = arith.constant 0.000000e+00 : f32
      %11 = vector.broadcast %cst_9 : f32 to vector<2x32xf32>
      %c0_10 = arith.constant 0 : index
      %c0_11 = arith.constant 0 : index
      %12 = vector.load %arg5[%c0_10, %c0_11] : memref<2x32xf32, #tpu.memory_space<vmem>>, vector<2x32xf32>
      tpu.vector_store %arg5[%c0_10, %c0_11], %11 {strides = array<i32>} : memref<2x32xf32, #tpu.memory_space<vmem>>, vector<2x32xf32>,
    } else {
    }
    %c0 = arith.constant 0 : index
    %c0_1 = arith.constant 0 : index
    %3 = vector.load %arg5[%c0, %c0_1] : memref<2x32xf32, #tpu.memory_space<vmem>>, vector<2x32xf32>
    %c0_2 = arith.constant 0 : index
    %c0_3 = arith.constant 0 : index
    %c0_4 = arith.constant 0 : index
    %4 = vector.load %arg1[%c0_2, %c0_3, %c0_4] : memref<2x16x32xf32, #tpu.memory_space<vmem>>, vector<2x16x32xf32>
    %cst = arith.constant dense<0.000000e+00> : vector<2x32xf32>
    %5 = vector.multi_reduction <add>, %4, %cst [1] : vector<2x16x32xf32> to vector<2x32xf32>
    %6 = arith.addf %3, %5 : vector<2x32xf32>
    %c0_5 = arith.constant 0 : index
    %c0_6 = arith.constant 0 : index
    %7 = vector.load %arg5[%c0_5, %c0_6] : memref<2x32xf32, #tpu.memory_space<vmem>>, vector<2x32xf32>
    tpu.vector_store %arg5[%c0_5, %c0_6], %6 {strides = array<i32>} : memref<2x32xf32, #tpu.memory_space<vmem>>, vector<2x32xf32>,
    %c0_i32_7 = arith.constant 0 : i32
    %8 = arith.cmpi eq, %arg0, %c0_i32_7 : i32
    %9 = arith.extui %8 : i1 to i32
    %c0_i32_8 = arith.constant 0 : i32
    %10 = arith.cmpi ne, %9, %c0_i32_8 : i32
    scf.if %10 {
      %c0_9 = arith.constant 0 : index
      %c0_10 = arith.constant 0 : index
      %11 = vector.load %arg5[%c0_9, %c0_10] : memref<2x32xf32, #tpu.memory_space<vmem>>, vector<2x32xf32>
      %cst_11 = arith.constant 6.250000e-02 : f32
      %12 = vector.broadcast %cst_11 : f32 to vector<2x32xf32>
      %13 = arith.mulf %11, %12 : vector<2x32xf32>
      %c0_12 = arith.constant 0 : index
      %c0_13 = arith.constant 0 : index
      %14 = vector.load %arg2[%c0_12, %c0_13] : memref<32x10xf32, #tpu.memory_space<vmem>>, vector<32x10xf32>
      %cst_14 = arith.constant dense<0.000000e+00> : vector<2x10xf32>
      %15 = tpu.matmul %13, %14, %cst_14 {dimension_numbers = #tpu.dot_dimension_numbers<[1], [0], [0], [1], [0, 0, 1, 1], [], []>} : vector<2x32xf32>, vector<32x10xf32>, vector<2x10xf32> -> vector<2x10xf32>
      %c0_15 = arith.constant 0 : index
      %c0_16 = arith.constant 0 : index
      %16 = vector.load %arg3[%c0_15, %c0_16] : memref<1x10xf32, #tpu.memory_space<vmem>>, vector<1x10xf32>
      %17 = vector.broadcast %16 : vector<1x10xf32> to vector<2x10xf32>
      %18 = arith.addf %15, %17 : vector<2x10xf32>
      %c0_17 = arith.constant 0 : index
      %c0_18 = arith.constant 0 : index
      %19 = vector.load %arg4[%c0_17, %c0_18] : memref<2x10xf32, #tpu.memory_space<vmem>>, vector<2x10xf32>
      tpu.vector_store %arg4[%c0_17, %c0_18], %18 {strides = array<i32>} : memref<2x10xf32, #tpu.memory_space<vmem>>, vector<2x10xf32>,
    } else {
    }
    return
  }
  func.func @transform_0(%arg0: i32) -> (i32, i32, i32) {
    %c0_i32 = arith.constant 0 : i32
    %c0_i32_0 = arith.constant 0 : i32
    %c0_i32_1 = arith.constant 0 : i32
    return %c0_i32, %arg0, %c0_i32_0 : i32, i32, i32
  }
  func.func @transform_1(%arg0: i32) -> (i32, i32) {
    %c0_i32 = arith.constant 0 : i32
    %c0_i32_0 = arith.constant 0 : i32
    %c0_i32_1 = arith.constant 0 : i32
    return %c0_i32, %c0_i32_0 : i32, i32
  }
  func.func @transform_2(%arg0: i32) -> (i32, i32) {
    %c0_i32 = arith.constant 0 : i32
    %c0_i32_0 = arith.constant 0 : i32
    %c0_i32_1 = arith.constant 0 : i32
    return %c0_i32, %c0_i32_0 : i32, i32
  }
  func.func @transform_3(%arg0: i32) -> (i32, i32) {
    %c0_i32 = arith.constant 0 : i32
    %c0_i32_0 = arith.constant 0 : i32
    %c0_i32_1 = arith.constant 0 : i32
    return %c0_i32, %c0_i32_0 : i32, i32
  }
}

module attributes {stable_mosaic.version = 11 : i64} {
  func.func @_node_epilogue_kernel(%arg0: i32, %arg1: i32, %arg2: memref<6x8xf32, #tpu.memory_space<smem>>, %arg3: memref<3x4x16x16xbf16, #tpu.memory_space<vmem>>, %arg4: memref<1x16x16xbf16, #tpu.memory_space<vmem>>, %arg5: memref<1x16x16xbf16, #tpu.memory_space<vmem>>, %arg6: memref<1x16x16xbf16, #tpu.memory_space<vmem>>, %arg7: memref<1x16x16xbf16, #tpu.memory_space<vmem>>, %arg8: memref<1x16x16xf32, #tpu.memory_space<vmem>>, %arg9: memref<1x16x16xf32, #tpu.memory_space<vmem>>, %arg10: memref<1x16x16xf32, #tpu.memory_space<vmem>>, %arg11: memref<1x16x16xbf16, #tpu.memory_space<vmem>>, %arg12: memref<1x16x16xbf16, #tpu.memory_space<vmem>>, %arg13: memref<1x16x16xbf16, #tpu.memory_space<vmem>>, %arg14: memref<1x16x16xbf16, #tpu.memory_space<vmem>>, %arg15: memref<1x16x16xf32, #tpu.memory_space<vmem>>, %arg16: memref<1x16x16xf32, #tpu.memory_space<vmem>>, %arg17: memref<1x16x16xf32, #tpu.memory_space<vmem>>, %arg18: memref<1x16x16xbf16, #tpu.memory_space<vmem>>, %arg19: memref<1x16x16xbf16, #tpu.memory_space<vmem>>, %arg20: memref<1x16x16xbf16, #tpu.memory_space<vmem>>, %arg21: memref<1x16x16xbf16, #tpu.memory_space<vmem>>, %arg22: memref<1x16x16xf32, #tpu.memory_space<vmem>>, %arg23: memref<1x16x16xf32, #tpu.memory_space<vmem>>, %arg24: memref<1x16x16xf32, #tpu.memory_space<vmem>>, %arg25: memref<1x16x16xf32, #tpu.memory_space<vmem>>) attributes {dimension_semantics = [#tpu.dimension_semantics<parallel>, #tpu.dimension_semantics<parallel>], iteration_bounds = array<i64: 2, 1>, scalar_prefetch = 1 : i64, scratch_operands = 0 : i64, tpu.core_type = #tpu.core_type<tc>, window_params = [{pipeline_mode = #tpu.pipeline_mode<synchronous>, transform_indices = @transform_0, window_bounds = array<i64: 3, 4, 16, 16>}, {transform_indices = @transform_1, window_bounds = array<i64: 1, 16, 16>}, {transform_indices = @transform_2, window_bounds = array<i64: 1, 16, 16>}, {transform_indices = @transform_3, window_bounds = array<i64: 1, 16, 16>}, {transform_indices = @transform_4, window_bounds = array<i64: 1, 16, 16>}, {transform_indices = @transform_5, window_bounds = array<i64: 1, 16, 16>}, {transform_indices = @transform_6, window_bounds = array<i64: 1, 16, 16>}, {transform_indices = @transform_7, window_bounds = array<i64: 1, 16, 16>}, {transform_indices = @transform_8, window_bounds = array<i64: 1, 16, 16>}, {transform_indices = @transform_9, window_bounds = array<i64: 1, 16, 16>}, {transform_indices = @transform_10, window_bounds = array<i64: 1, 16, 16>}, {transform_indices = @transform_11, window_bounds = array<i64: 1, 16, 16>}, {transform_indices = @transform_12, window_bounds = array<i64: 1, 16, 16>}, {transform_indices = @transform_13, window_bounds = array<i64: 1, 16, 16>}, {transform_indices = @transform_14, window_bounds = array<i64: 1, 16, 16>}, {transform_indices = @transform_15, window_bounds = array<i64: 1, 16, 16>}, {transform_indices = @transform_16, window_bounds = array<i64: 1, 16, 16>}, {transform_indices = @transform_17, window_bounds = array<i64: 1, 16, 16>}, {transform_indices = @transform_18, window_bounds = array<i64: 1, 16, 16>}, {transform_indices = @transform_19, window_bounds = array<i64: 1, 16, 16>}, {transform_indices = @transform_20, window_bounds = array<i64: 1, 16, 16>}, {transform_indices = @transform_21, window_bounds = array<i64: 1, 16, 16>}, {transform_indices = @transform_22, window_bounds = array<i64: 1, 16, 16>}]} {
    %c0_i32 = arith.constant 0 : i32
    %0 = arith.addi %c0_i32, %arg0 : i32
    %1 = arith.index_cast %0 : i32 to index
    %c4 = arith.constant 4 : index
    %2 = memref.load %arg2[%1, %c4] : memref<6x8xf32, #tpu.memory_space<smem>>
    %c0 = arith.constant 0 : index
    %c0_0 = arith.constant 0 : index
    %c0_1 = arith.constant 0 : index
    %3 = vector.load %arg4[%c0, %c0_0, %c0_1] : memref<1x16x16xbf16, #tpu.memory_space<vmem>>, vector<1x16x16xbf16>
    %4 = vector.shape_cast %3 : vector<1x16x16xbf16> to vector<16x16xbf16>
    %c0_2 = arith.constant 0 : index
    %c0_3 = arith.constant 0 : index
    %c0_4 = arith.constant 0 : index
    %c0_5 = arith.constant 0 : index
    %5 = vector.load %arg3[%c0_2, %c0_3, %c0_4, %c0_5] : memref<3x4x16x16xbf16, #tpu.memory_space<vmem>>, vector<1x1x16x16xbf16>
    %6 = vector.shape_cast %5 : vector<1x1x16x16xbf16> to vector<16x16xbf16>
    %cst = arith.constant dense<0.000000e+00> : vector<16x16xf32>
    %7 = tpu.matmul %4, %6, %cst {dimension_numbers = #tpu.dot_dimension_numbers<[1], [0], [0], [1], [0, 0, 1, 1], [], []>} : vector<16x16xbf16>, vector<16x16xbf16>, vector<16x16xf32> -> vector<16x16xf32>
    %8 = vector.broadcast %2 : f32 to vector<16x16xf32>
    %9 = arith.mulf %8, %7 : vector<16x16xf32>
    %10 = arith.index_cast %0 : i32 to index
    %c5 = arith.constant 5 : index
    %11 = memref.load %arg2[%10, %c5] : memref<6x8xf32, #tpu.memory_space<smem>>
    %c0_6 = arith.constant 0 : index
    %c0_7 = arith.constant 0 : index
    %c0_8 = arith.constant 0 : index
    %12 = vector.load %arg5[%c0_6, %c0_7, %c0_8] : memref<1x16x16xbf16, #tpu.memory_space<vmem>>, vector<1x16x16xbf16>
    %13 = vector.shape_cast %12 : vector<1x16x16xbf16> to vector<16x16xbf16>
    %c0_9 = arith.constant 0 : index
    %c1 = arith.constant 1 : index
    %c0_10 = arith.constant 0 : index
    %c0_11 = arith.constant 0 : index
    %14 = vector.load %arg3[%c0_9, %c1, %c0_10, %c0_11] : memref<3x4x16x16xbf16, #tpu.memory_space<vmem>>, vector<1x1x16x16xbf16>
    %15 = vector.shape_cast %14 : vector<1x1x16x16xbf16> to vector<16x16xbf16>
    %cst_12 = arith.constant dense<0.000000e+00> : vector<16x16xf32>
    %16 = tpu.matmul %13, %15, %cst_12 {dimension_numbers = #tpu.dot_dimension_numbers<[1], [0], [0], [1], [0, 0, 1, 1], [], []>} : vector<16x16xbf16>, vector<16x16xbf16>, vector<16x16xf32> -> vector<16x16xf32>
    %17 = vector.broadcast %11 : f32 to vector<16x16xf32>
    %18 = arith.mulf %17, %16 : vector<16x16xf32>
    %19 = arith.addf %9, %18 : vector<16x16xf32>
    %20 = arith.index_cast %0 : i32 to index
    %c6 = arith.constant 6 : index
    %21 = memref.load %arg2[%20, %c6] : memref<6x8xf32, #tpu.memory_space<smem>>
    %c0_13 = arith.constant 0 : index
    %c0_14 = arith.constant 0 : index
    %c0_15 = arith.constant 0 : index
    %22 = vector.load %arg6[%c0_13, %c0_14, %c0_15] : memref<1x16x16xbf16, #tpu.memory_space<vmem>>, vector<1x16x16xbf16>
    %23 = vector.shape_cast %22 : vector<1x16x16xbf16> to vector<16x16xbf16>
    %c0_16 = arith.constant 0 : index
    %c2 = arith.constant 2 : index
    %c0_17 = arith.constant 0 : index
    %c0_18 = arith.constant 0 : index
    %24 = vector.load %arg3[%c0_16, %c2, %c0_17, %c0_18] : memref<3x4x16x16xbf16, #tpu.memory_space<vmem>>, vector<1x1x16x16xbf16>
    %25 = vector.shape_cast %24 : vector<1x1x16x16xbf16> to vector<16x16xbf16>
    %cst_19 = arith.constant dense<0.000000e+00> : vector<16x16xf32>
    %26 = tpu.matmul %23, %25, %cst_19 {dimension_numbers = #tpu.dot_dimension_numbers<[1], [0], [0], [1], [0, 0, 1, 1], [], []>} : vector<16x16xbf16>, vector<16x16xbf16>, vector<16x16xf32> -> vector<16x16xf32>
    %27 = vector.broadcast %21 : f32 to vector<16x16xf32>
    %28 = arith.mulf %27, %26 : vector<16x16xf32>
    %29 = arith.addf %19, %28 : vector<16x16xf32>
    %30 = arith.index_cast %0 : i32 to index
    %c7 = arith.constant 7 : index
    %31 = memref.load %arg2[%30, %c7] : memref<6x8xf32, #tpu.memory_space<smem>>
    %c0_20 = arith.constant 0 : index
    %c0_21 = arith.constant 0 : index
    %c0_22 = arith.constant 0 : index
    %32 = vector.load %arg7[%c0_20, %c0_21, %c0_22] : memref<1x16x16xbf16, #tpu.memory_space<vmem>>, vector<1x16x16xbf16>
    %33 = vector.shape_cast %32 : vector<1x16x16xbf16> to vector<16x16xbf16>
    %c0_23 = arith.constant 0 : index
    %c3 = arith.constant 3 : index
    %c0_24 = arith.constant 0 : index
    %c0_25 = arith.constant 0 : index
    %34 = vector.load %arg3[%c0_23, %c3, %c0_24, %c0_25] : memref<3x4x16x16xbf16, #tpu.memory_space<vmem>>, vector<1x1x16x16xbf16>
    %35 = vector.shape_cast %34 : vector<1x1x16x16xbf16> to vector<16x16xbf16>
    %cst_26 = arith.constant dense<0.000000e+00> : vector<16x16xf32>
    %36 = tpu.matmul %33, %35, %cst_26 {dimension_numbers = #tpu.dot_dimension_numbers<[1], [0], [0], [1], [0, 0, 1, 1], [], []>} : vector<16x16xbf16>, vector<16x16xbf16>, vector<16x16xf32> -> vector<16x16xf32>
    %37 = vector.broadcast %31 : f32 to vector<16x16xf32>
    %38 = arith.mulf %37, %36 : vector<16x16xf32>
    %39 = arith.addf %29, %38 : vector<16x16xf32>
    %40 = arith.index_cast %0 : i32 to index
    %c1_27 = arith.constant 1 : index
    %41 = memref.load %arg2[%40, %c1_27] : memref<6x8xf32, #tpu.memory_space<smem>>
    %cst_28 = arith.constant 0.999994993 : f32
    %42 = arith.mulf %41, %cst_28 : f32
    %c0_29 = arith.constant 0 : index
    %c0_30 = arith.constant 0 : index
    %c0_31 = arith.constant 0 : index
    %43 = vector.load %arg9[%c0_29, %c0_30, %c0_31] : memref<1x16x16xf32, #tpu.memory_space<vmem>>, vector<1x16x16xf32>
    %44 = vector.shape_cast %43 : vector<1x16x16xf32> to vector<16x16xf32>
    %45 = vector.broadcast %42 : f32 to vector<16x16xf32>
    %46 = arith.mulf %45, %44 : vector<16x16xf32>
    %47 = arith.addf %39, %46 : vector<16x16xf32>
    %48 = arith.index_cast %0 : i32 to index
    %c2_32 = arith.constant 2 : index
    %49 = memref.load %arg2[%48, %c2_32] : memref<6x8xf32, #tpu.memory_space<smem>>
    %cst_33 = arith.constant 0.999994993 : f32
    %50 = arith.mulf %49, %cst_33 : f32
    %c0_34 = arith.constant 0 : index
    %c0_35 = arith.constant 0 : index
    %c0_36 = arith.constant 0 : index
    %51 = vector.load %arg8[%c0_34, %c0_35, %c0_36] : memref<1x16x16xf32, #tpu.memory_space<vmem>>, vector<1x16x16xf32>
    %52 = vector.shape_cast %51 : vector<1x16x16xf32> to vector<16x16xf32>
    %53 = vector.broadcast %50 : f32 to vector<16x16xf32>
    %54 = arith.mulf %53, %52 : vector<16x16xf32>
    %55 = arith.addf %47, %54 : vector<16x16xf32>
    %56 = arith.index_cast %0 : i32 to index
    %c3_37 = arith.constant 3 : index
    %57 = memref.load %arg2[%56, %c3_37] : memref<6x8xf32, #tpu.memory_space<smem>>
    %c0_38 = arith.constant 0 : index
    %c0_39 = arith.constant 0 : index
    %c0_40 = arith.constant 0 : index
    %58 = vector.load %arg10[%c0_38, %c0_39, %c0_40] : memref<1x16x16xf32, #tpu.memory_space<vmem>>, vector<1x16x16xf32>
    %59 = vector.shape_cast %58 : vector<1x16x16xf32> to vector<16x16xf32>
    %60 = vector.broadcast %57 : f32 to vector<16x16xf32>
    %61 = arith.mulf %60, %59 : vector<16x16xf32>
    %62 = arith.addf %55, %61 : vector<16x16xf32>
    %c2_i32 = arith.constant 2 : i32
    %63 = arith.addi %c2_i32, %arg0 : i32
    %64 = arith.index_cast %63 : i32 to index
    %c4_41 = arith.constant 4 : index
    %65 = memref.load %arg2[%64, %c4_41] : memref<6x8xf32, #tpu.memory_space<smem>>
    %c0_42 = arith.constant 0 : index
    %c0_43 = arith.constant 0 : index
    %c0_44 = arith.constant 0 : index
    %66 = vector.load %arg11[%c0_42, %c0_43, %c0_44] : memref<1x16x16xbf16, #tpu.memory_space<vmem>>, vector<1x16x16xbf16>
    %67 = vector.shape_cast %66 : vector<1x16x16xbf16> to vector<16x16xbf16>
    %c1_45 = arith.constant 1 : index
    %c0_46 = arith.constant 0 : index
    %c0_47 = arith.constant 0 : index
    %c0_48 = arith.constant 0 : index
    %68 = vector.load %arg3[%c1_45, %c0_46, %c0_47, %c0_48] : memref<3x4x16x16xbf16, #tpu.memory_space<vmem>>, vector<1x1x16x16xbf16>
    %69 = vector.shape_cast %68 : vector<1x1x16x16xbf16> to vector<16x16xbf16>
    %cst_49 = arith.constant dense<0.000000e+00> : vector<16x16xf32>
    %70 = tpu.matmul %67, %69, %cst_49 {dimension_numbers = #tpu.dot_dimension_numbers<[1], [0], [0], [1], [0, 0, 1, 1], [], []>} : vector<16x16xbf16>, vector<16x16xbf16>, vector<16x16xf32> -> vector<16x16xf32>
    %71 = vector.broadcast %65 : f32 to vector<16x16xf32>
    %72 = arith.mulf %71, %70 : vector<16x16xf32>
    %73 = arith.index_cast %63 : i32 to index
    %c5_50 = arith.constant 5 : index
    %74 = memref.load %arg2[%73, %c5_50] : memref<6x8xf32, #tpu.memory_space<smem>>
    %c0_51 = arith.constant 0 : index
    %c0_52 = arith.constant 0 : index
    %c0_53 = arith.constant 0 : index
    %75 = vector.load %arg12[%c0_51, %c0_52, %c0_53] : memref<1x16x16xbf16, #tpu.memory_space<vmem>>, vector<1x16x16xbf16>
    %76 = vector.shape_cast %75 : vector<1x16x16xbf16> to vector<16x16xbf16>
    %c1_54 = arith.constant 1 : index
    %c1_55 = arith.constant 1 : index
    %c0_56 = arith.constant 0 : index
    %c0_57 = arith.constant 0 : index
    %77 = vector.load %arg3[%c1_54, %c1_55, %c0_56, %c0_57] : memref<3x4x16x16xbf16, #tpu.memory_space<vmem>>, vector<1x1x16x16xbf16>
    %78 = vector.shape_cast %77 : vector<1x1x16x16xbf16> to vector<16x16xbf16>
    %cst_58 = arith.constant dense<0.000000e+00> : vector<16x16xf32>
    %79 = tpu.matmul %76, %78, %cst_58 {dimension_numbers = #tpu.dot_dimension_numbers<[1], [0], [0], [1], [0, 0, 1, 1], [], []>} : vector<16x16xbf16>, vector<16x16xbf16>, vector<16x16xf32> -> vector<16x16xf32>
    %80 = vector.broadcast %74 : f32 to vector<16x16xf32>
    %81 = arith.mulf %80, %79 : vector<16x16xf32>
    %82 = arith.addf %72, %81 : vector<16x16xf32>
    %83 = arith.index_cast %63 : i32 to index
    %c6_59 = arith.constant 6 : index
    %84 = memref.load %arg2[%83, %c6_59] : memref<6x8xf32, #tpu.memory_space<smem>>
    %c0_60 = arith.constant 0 : index
    %c0_61 = arith.constant 0 : index
    %c0_62 = arith.constant 0 : index
    %85 = vector.load %arg13[%c0_60, %c0_61, %c0_62] : memref<1x16x16xbf16, #tpu.memory_space<vmem>>, vector<1x16x16xbf16>
    %86 = vector.shape_cast %85 : vector<1x16x16xbf16> to vector<16x16xbf16>
    %c1_63 = arith.constant 1 : index
    %c2_64 = arith.constant 2 : index
    %c0_65 = arith.constant 0 : index
    %c0_66 = arith.constant 0 : index
    %87 = vector.load %arg3[%c1_63, %c2_64, %c0_65, %c0_66] : memref<3x4x16x16xbf16, #tpu.memory_space<vmem>>, vector<1x1x16x16xbf16>
    %88 = vector.shape_cast %87 : vector<1x1x16x16xbf16> to vector<16x16xbf16>
    %cst_67 = arith.constant dense<0.000000e+00> : vector<16x16xf32>
    %89 = tpu.matmul %86, %88, %cst_67 {dimension_numbers = #tpu.dot_dimension_numbers<[1], [0], [0], [1], [0, 0, 1, 1], [], []>} : vector<16x16xbf16>, vector<16x16xbf16>, vector<16x16xf32> -> vector<16x16xf32>
    %90 = vector.broadcast %84 : f32 to vector<16x16xf32>
    %91 = arith.mulf %90, %89 : vector<16x16xf32>
    %92 = arith.addf %82, %91 : vector<16x16xf32>
    %93 = arith.index_cast %63 : i32 to index
    %c7_68 = arith.constant 7 : index
    %94 = memref.load %arg2[%93, %c7_68] : memref<6x8xf32, #tpu.memory_space<smem>>
    %c0_69 = arith.constant 0 : index
    %c0_70 = arith.constant 0 : index
    %c0_71 = arith.constant 0 : index
    %95 = vector.load %arg14[%c0_69, %c0_70, %c0_71] : memref<1x16x16xbf16, #tpu.memory_space<vmem>>, vector<1x16x16xbf16>
    %96 = vector.shape_cast %95 : vector<1x16x16xbf16> to vector<16x16xbf16>
    %c1_72 = arith.constant 1 : index
    %c3_73 = arith.constant 3 : index
    %c0_74 = arith.constant 0 : index
    %c0_75 = arith.constant 0 : index
    %97 = vector.load %arg3[%c1_72, %c3_73, %c0_74, %c0_75] : memref<3x4x16x16xbf16, #tpu.memory_space<vmem>>, vector<1x1x16x16xbf16>
    %98 = vector.shape_cast %97 : vector<1x1x16x16xbf16> to vector<16x16xbf16>
    %cst_76 = arith.constant dense<0.000000e+00> : vector<16x16xf32>
    %99 = tpu.matmul %96, %98, %cst_76 {dimension_numbers = #tpu.dot_dimension_numbers<[1], [0], [0], [1], [0, 0, 1, 1], [], []>} : vector<16x16xbf16>, vector<16x16xbf16>, vector<16x16xf32> -> vector<16x16xf32>
    %100 = vector.broadcast %94 : f32 to vector<16x16xf32>
    %101 = arith.mulf %100, %99 : vector<16x16xf32>
    %102 = arith.addf %92, %101 : vector<16x16xf32>
    %103 = arith.index_cast %63 : i32 to index
    %c1_77 = arith.constant 1 : index
    %104 = memref.load %arg2[%103, %c1_77] : memref<6x8xf32, #tpu.memory_space<smem>>
    %cst_78 = arith.constant 0.999994993 : f32
    %105 = arith.mulf %104, %cst_78 : f32
    %c0_79 = arith.constant 0 : index
    %c0_80 = arith.constant 0 : index
    %c0_81 = arith.constant 0 : index
    %106 = vector.load %arg16[%c0_79, %c0_80, %c0_81] : memref<1x16x16xf32, #tpu.memory_space<vmem>>, vector<1x16x16xf32>
    %107 = vector.shape_cast %106 : vector<1x16x16xf32> to vector<16x16xf32>
    %108 = vector.broadcast %105 : f32 to vector<16x16xf32>
    %109 = arith.mulf %108, %107 : vector<16x16xf32>
    %110 = arith.addf %102, %109 : vector<16x16xf32>
    %111 = arith.index_cast %63 : i32 to index
    %c2_82 = arith.constant 2 : index
    %112 = memref.load %arg2[%111, %c2_82] : memref<6x8xf32, #tpu.memory_space<smem>>
    %cst_83 = arith.constant 0.999994993 : f32
    %113 = arith.mulf %112, %cst_83 : f32
    %c0_84 = arith.constant 0 : index
    %c0_85 = arith.constant 0 : index
    %c0_86 = arith.constant 0 : index
    %114 = vector.load %arg15[%c0_84, %c0_85, %c0_86] : memref<1x16x16xf32, #tpu.memory_space<vmem>>, vector<1x16x16xf32>
    %115 = vector.shape_cast %114 : vector<1x16x16xf32> to vector<16x16xf32>
    %116 = vector.broadcast %113 : f32 to vector<16x16xf32>
    %117 = arith.mulf %116, %115 : vector<16x16xf32>
    %118 = arith.addf %110, %117 : vector<16x16xf32>
    %119 = arith.index_cast %63 : i32 to index
    %c3_87 = arith.constant 3 : index
    %120 = memref.load %arg2[%119, %c3_87] : memref<6x8xf32, #tpu.memory_space<smem>>
    %c0_88 = arith.constant 0 : index
    %c0_89 = arith.constant 0 : index
    %c0_90 = arith.constant 0 : index
    %121 = vector.load %arg17[%c0_88, %c0_89, %c0_90] : memref<1x16x16xf32, #tpu.memory_space<vmem>>, vector<1x16x16xf32>
    %122 = vector.shape_cast %121 : vector<1x16x16xf32> to vector<16x16xf32>
    %123 = vector.broadcast %120 : f32 to vector<16x16xf32>
    %124 = arith.mulf %123, %122 : vector<16x16xf32>
    %125 = arith.addf %118, %124 : vector<16x16xf32>
    %126 = arith.addf %62, %125 : vector<16x16xf32>
    %c4_i32 = arith.constant 4 : i32
    %127 = arith.addi %c4_i32, %arg0 : i32
    %128 = arith.index_cast %127 : i32 to index
    %c4_91 = arith.constant 4 : index
    %129 = memref.load %arg2[%128, %c4_91] : memref<6x8xf32, #tpu.memory_space<smem>>
    %c0_92 = arith.constant 0 : index
    %c0_93 = arith.constant 0 : index
    %c0_94 = arith.constant 0 : index
    %130 = vector.load %arg18[%c0_92, %c0_93, %c0_94] : memref<1x16x16xbf16, #tpu.memory_space<vmem>>, vector<1x16x16xbf16>
    %131 = vector.shape_cast %130 : vector<1x16x16xbf16> to vector<16x16xbf16>
    %c2_95 = arith.constant 2 : index
    %c0_96 = arith.constant 0 : index
    %c0_97 = arith.constant 0 : index
    %c0_98 = arith.constant 0 : index
    %132 = vector.load %arg3[%c2_95, %c0_96, %c0_97, %c0_98] : memref<3x4x16x16xbf16, #tpu.memory_space<vmem>>, vector<1x1x16x16xbf16>
    %133 = vector.shape_cast %132 : vector<1x1x16x16xbf16> to vector<16x16xbf16>
    %cst_99 = arith.constant dense<0.000000e+00> : vector<16x16xf32>
    %134 = tpu.matmul %131, %133, %cst_99 {dimension_numbers = #tpu.dot_dimension_numbers<[1], [0], [0], [1], [0, 0, 1, 1], [], []>} : vector<16x16xbf16>, vector<16x16xbf16>, vector<16x16xf32> -> vector<16x16xf32>
    %135 = vector.broadcast %129 : f32 to vector<16x16xf32>
    %136 = arith.mulf %135, %134 : vector<16x16xf32>
    %137 = arith.index_cast %127 : i32 to index
    %c5_100 = arith.constant 5 : index
    %138 = memref.load %arg2[%137, %c5_100] : memref<6x8xf32, #tpu.memory_space<smem>>
    %c0_101 = arith.constant 0 : index
    %c0_102 = arith.constant 0 : index
    %c0_103 = arith.constant 0 : index
    %139 = vector.load %arg19[%c0_101, %c0_102, %c0_103] : memref<1x16x16xbf16, #tpu.memory_space<vmem>>, vector<1x16x16xbf16>
    %140 = vector.shape_cast %139 : vector<1x16x16xbf16> to vector<16x16xbf16>
    %c2_104 = arith.constant 2 : index
    %c1_105 = arith.constant 1 : index
    %c0_106 = arith.constant 0 : index
    %c0_107 = arith.constant 0 : index
    %141 = vector.load %arg3[%c2_104, %c1_105, %c0_106, %c0_107] : memref<3x4x16x16xbf16, #tpu.memory_space<vmem>>, vector<1x1x16x16xbf16>
    %142 = vector.shape_cast %141 : vector<1x1x16x16xbf16> to vector<16x16xbf16>
    %cst_108 = arith.constant dense<0.000000e+00> : vector<16x16xf32>
    %143 = tpu.matmul %140, %142, %cst_108 {dimension_numbers = #tpu.dot_dimension_numbers<[1], [0], [0], [1], [0, 0, 1, 1], [], []>} : vector<16x16xbf16>, vector<16x16xbf16>, vector<16x16xf32> -> vector<16x16xf32>
    %144 = vector.broadcast %138 : f32 to vector<16x16xf32>
    %145 = arith.mulf %144, %143 : vector<16x16xf32>
    %146 = arith.addf %136, %145 : vector<16x16xf32>
    %147 = arith.index_cast %127 : i32 to index
    %c6_109 = arith.constant 6 : index
    %148 = memref.load %arg2[%147, %c6_109] : memref<6x8xf32, #tpu.memory_space<smem>>
    %c0_110 = arith.constant 0 : index
    %c0_111 = arith.constant 0 : index
    %c0_112 = arith.constant 0 : index
    %149 = vector.load %arg20[%c0_110, %c0_111, %c0_112] : memref<1x16x16xbf16, #tpu.memory_space<vmem>>, vector<1x16x16xbf16>
    %150 = vector.shape_cast %149 : vector<1x16x16xbf16> to vector<16x16xbf16>
    %c2_113 = arith.constant 2 : index
    %c2_114 = arith.constant 2 : index
    %c0_115 = arith.constant 0 : index
    %c0_116 = arith.constant 0 : index
    %151 = vector.load %arg3[%c2_113, %c2_114, %c0_115, %c0_116] : memref<3x4x16x16xbf16, #tpu.memory_space<vmem>>, vector<1x1x16x16xbf16>
    %152 = vector.shape_cast %151 : vector<1x1x16x16xbf16> to vector<16x16xbf16>
    %cst_117 = arith.constant dense<0.000000e+00> : vector<16x16xf32>
    %153 = tpu.matmul %150, %152, %cst_117 {dimension_numbers = #tpu.dot_dimension_numbers<[1], [0], [0], [1], [0, 0, 1, 1], [], []>} : vector<16x16xbf16>, vector<16x16xbf16>, vector<16x16xf32> -> vector<16x16xf32>
    %154 = vector.broadcast %148 : f32 to vector<16x16xf32>
    %155 = arith.mulf %154, %153 : vector<16x16xf32>
    %156 = arith.addf %146, %155 : vector<16x16xf32>
    %157 = arith.index_cast %127 : i32 to index
    %c7_118 = arith.constant 7 : index
    %158 = memref.load %arg2[%157, %c7_118] : memref<6x8xf32, #tpu.memory_space<smem>>
    %c0_119 = arith.constant 0 : index
    %c0_120 = arith.constant 0 : index
    %c0_121 = arith.constant 0 : index
    %159 = vector.load %arg21[%c0_119, %c0_120, %c0_121] : memref<1x16x16xbf16, #tpu.memory_space<vmem>>, vector<1x16x16xbf16>
    %160 = vector.shape_cast %159 : vector<1x16x16xbf16> to vector<16x16xbf16>
    %c2_122 = arith.constant 2 : index
    %c3_123 = arith.constant 3 : index
    %c0_124 = arith.constant 0 : index
    %c0_125 = arith.constant 0 : index
    %161 = vector.load %arg3[%c2_122, %c3_123, %c0_124, %c0_125] : memref<3x4x16x16xbf16, #tpu.memory_space<vmem>>, vector<1x1x16x16xbf16>
    %162 = vector.shape_cast %161 : vector<1x1x16x16xbf16> to vector<16x16xbf16>
    %cst_126 = arith.constant dense<0.000000e+00> : vector<16x16xf32>
    %163 = tpu.matmul %160, %162, %cst_126 {dimension_numbers = #tpu.dot_dimension_numbers<[1], [0], [0], [1], [0, 0, 1, 1], [], []>} : vector<16x16xbf16>, vector<16x16xbf16>, vector<16x16xf32> -> vector<16x16xf32>
    %164 = vector.broadcast %158 : f32 to vector<16x16xf32>
    %165 = arith.mulf %164, %163 : vector<16x16xf32>
    %166 = arith.addf %156, %165 : vector<16x16xf32>
    %167 = arith.index_cast %127 : i32 to index
    %c1_127 = arith.constant 1 : index
    %168 = memref.load %arg2[%167, %c1_127] : memref<6x8xf32, #tpu.memory_space<smem>>
    %cst_128 = arith.constant 0.999994993 : f32
    %169 = arith.mulf %168, %cst_128 : f32
    %c0_129 = arith.constant 0 : index
    %c0_130 = arith.constant 0 : index
    %c0_131 = arith.constant 0 : index
    %170 = vector.load %arg23[%c0_129, %c0_130, %c0_131] : memref<1x16x16xf32, #tpu.memory_space<vmem>>, vector<1x16x16xf32>
    %171 = vector.shape_cast %170 : vector<1x16x16xf32> to vector<16x16xf32>
    %172 = vector.broadcast %169 : f32 to vector<16x16xf32>
    %173 = arith.mulf %172, %171 : vector<16x16xf32>
    %174 = arith.addf %166, %173 : vector<16x16xf32>
    %175 = arith.index_cast %127 : i32 to index
    %c2_132 = arith.constant 2 : index
    %176 = memref.load %arg2[%175, %c2_132] : memref<6x8xf32, #tpu.memory_space<smem>>
    %cst_133 = arith.constant 0.999994993 : f32
    %177 = arith.mulf %176, %cst_133 : f32
    %c0_134 = arith.constant 0 : index
    %c0_135 = arith.constant 0 : index
    %c0_136 = arith.constant 0 : index
    %178 = vector.load %arg22[%c0_134, %c0_135, %c0_136] : memref<1x16x16xf32, #tpu.memory_space<vmem>>, vector<1x16x16xf32>
    %179 = vector.shape_cast %178 : vector<1x16x16xf32> to vector<16x16xf32>
    %180 = vector.broadcast %177 : f32 to vector<16x16xf32>
    %181 = arith.mulf %180, %179 : vector<16x16xf32>
    %182 = arith.addf %174, %181 : vector<16x16xf32>
    %183 = arith.index_cast %127 : i32 to index
    %c3_137 = arith.constant 3 : index
    %184 = memref.load %arg2[%183, %c3_137] : memref<6x8xf32, #tpu.memory_space<smem>>
    %c0_138 = arith.constant 0 : index
    %c0_139 = arith.constant 0 : index
    %c0_140 = arith.constant 0 : index
    %185 = vector.load %arg24[%c0_138, %c0_139, %c0_140] : memref<1x16x16xf32, #tpu.memory_space<vmem>>, vector<1x16x16xf32>
    %186 = vector.shape_cast %185 : vector<1x16x16xf32> to vector<16x16xf32>
    %187 = vector.broadcast %184 : f32 to vector<16x16xf32>
    %188 = arith.mulf %187, %186 : vector<16x16xf32>
    %189 = arith.addf %182, %188 : vector<16x16xf32>
    %190 = arith.addf %126, %189 : vector<16x16xf32>
    %c0_141 = arith.constant 0 : index
    %c0_142 = arith.constant 0 : index
    %c0_143 = arith.constant 0 : index
    %191 = vector.load %arg25[%c0_141, %c0_142, %c0_143] : memref<1x16x16xf32, #tpu.memory_space<vmem>>, vector<1x16x16xf32>
    %192 = vector.shape_cast %191 : vector<1x16x16xf32> to vector<16x16xf32>
    %193 = vector.shape_cast %190 : vector<16x16xf32> to vector<1x16x16xf32>
    tpu.vector_store %arg25[%c0_141, %c0_142, %c0_143], %193 {strides = array<i32>} : memref<1x16x16xf32, #tpu.memory_space<vmem>>, vector<1x16x16xf32>,
    return
  }
  func.func @transform_0(%arg0: i32, %arg1: i32, %arg2: memref<6x8xf32, #tpu.memory_space<smem>>) -> (i32, i32, i32, i32) {
    %c0_i32 = arith.constant 0 : i32
    %c0_i32_0 = arith.constant 0 : i32
    %c0_i32_1 = arith.constant 0 : i32
    %c0_i32_2 = arith.constant 0 : i32
    %c0_i32_3 = arith.constant 0 : i32
    return %c0_i32, %c0_i32_0, %c0_i32_1, %c0_i32_2 : i32, i32, i32, i32
  }
  func.func @transform_1(%arg0: i32, %arg1: i32, %arg2: memref<6x8xf32, #tpu.memory_space<smem>>) -> (i32, i32, i32) {
    %c0_i32 = arith.constant 0 : i32
    %c0_i32_0 = arith.constant 0 : i32
    return %arg0, %arg1, %c0_i32 : i32, i32, i32
  }
  func.func @transform_2(%arg0: i32, %arg1: i32, %arg2: memref<6x8xf32, #tpu.memory_space<smem>>) -> (i32, i32, i32) {
    %c0_i32 = arith.constant 0 : i32
    %c0_i32_0 = arith.constant 0 : i32
    return %arg0, %arg1, %c0_i32 : i32, i32, i32
  }
  func.func @transform_3(%arg0: i32, %arg1: i32, %arg2: memref<6x8xf32, #tpu.memory_space<smem>>) -> (i32, i32, i32) {
    %c0_i32 = arith.constant 0 : i32
    %c0_i32_0 = arith.constant 0 : i32
    return %arg0, %arg1, %c0_i32 : i32, i32, i32
  }
  func.func @transform_4(%arg0: i32, %arg1: i32, %arg2: memref<6x8xf32, #tpu.memory_space<smem>>) -> (i32, i32, i32) {
    %c0_i32 = arith.constant 0 : i32
    %c0_i32_0 = arith.constant 0 : i32
    return %arg0, %arg1, %c0_i32 : i32, i32, i32
  }
  func.func @transform_5(%arg0: i32, %arg1: i32, %arg2: memref<6x8xf32, #tpu.memory_space<smem>>) -> (i32, i32, i32) {
    %c0_i32 = arith.constant 0 : i32
    %c0_i32_0 = arith.constant 0 : i32
    return %arg0, %arg1, %c0_i32 : i32, i32, i32
  }
  func.func @transform_6(%arg0: i32, %arg1: i32, %arg2: memref<6x8xf32, #tpu.memory_space<smem>>) -> (i32, i32, i32) {
    %c0_i32 = arith.constant 0 : i32
    %c0_i32_0 = arith.constant 0 : i32
    return %arg0, %arg1, %c0_i32 : i32, i32, i32
  }
  func.func @transform_7(%arg0: i32, %arg1: i32, %arg2: memref<6x8xf32, #tpu.memory_space<smem>>) -> (i32, i32, i32) {
    %c0_i32 = arith.constant 0 : i32
    %c0_i32_0 = arith.constant 0 : i32
    return %arg0, %arg1, %c0_i32 : i32, i32, i32
  }
  func.func @transform_8(%arg0: i32, %arg1: i32, %arg2: memref<6x8xf32, #tpu.memory_space<smem>>) -> (i32, i32, i32) {
    %c0_i32 = arith.constant 0 : i32
    %c0_i32_0 = arith.constant 0 : i32
    return %arg0, %arg1, %c0_i32 : i32, i32, i32
  }
  func.func @transform_9(%arg0: i32, %arg1: i32, %arg2: memref<6x8xf32, #tpu.memory_space<smem>>) -> (i32, i32, i32) {
    %c0_i32 = arith.constant 0 : i32
    %c0_i32_0 = arith.constant 0 : i32
    return %arg0, %arg1, %c0_i32 : i32, i32, i32
  }
  func.func @transform_10(%arg0: i32, %arg1: i32, %arg2: memref<6x8xf32, #tpu.memory_space<smem>>) -> (i32, i32, i32) {
    %c0_i32 = arith.constant 0 : i32
    %c0_i32_0 = arith.constant 0 : i32
    return %arg0, %arg1, %c0_i32 : i32, i32, i32
  }
  func.func @transform_11(%arg0: i32, %arg1: i32, %arg2: memref<6x8xf32, #tpu.memory_space<smem>>) -> (i32, i32, i32) {
    %c0_i32 = arith.constant 0 : i32
    %c0_i32_0 = arith.constant 0 : i32
    return %arg0, %arg1, %c0_i32 : i32, i32, i32
  }
  func.func @transform_12(%arg0: i32, %arg1: i32, %arg2: memref<6x8xf32, #tpu.memory_space<smem>>) -> (i32, i32, i32) {
    %c0_i32 = arith.constant 0 : i32
    %c0_i32_0 = arith.constant 0 : i32
    return %arg0, %arg1, %c0_i32 : i32, i32, i32
  }
  func.func @transform_13(%arg0: i32, %arg1: i32, %arg2: memref<6x8xf32, #tpu.memory_space<smem>>) -> (i32, i32, i32) {
    %c0_i32 = arith.constant 0 : i32
    %c0_i32_0 = arith.constant 0 : i32
    return %arg0, %arg1, %c0_i32 : i32, i32, i32
  }
  func.func @transform_14(%arg0: i32, %arg1: i32, %arg2: memref<6x8xf32, #tpu.memory_space<smem>>) -> (i32, i32, i32) {
    %c0_i32 = arith.constant 0 : i32
    %c0_i32_0 = arith.constant 0 : i32
    return %arg0, %arg1, %c0_i32 : i32, i32, i32
  }
  func.func @transform_15(%arg0: i32, %arg1: i32, %arg2: memref<6x8xf32, #tpu.memory_space<smem>>) -> (i32, i32, i32) {
    %c0_i32 = arith.constant 0 : i32
    %c0_i32_0 = arith.constant 0 : i32
    return %arg0, %arg1, %c0_i32 : i32, i32, i32
  }
  func.func @transform_16(%arg0: i32, %arg1: i32, %arg2: memref<6x8xf32, #tpu.memory_space<smem>>) -> (i32, i32, i32) {
    %c0_i32 = arith.constant 0 : i32
    %c0_i32_0 = arith.constant 0 : i32
    return %arg0, %arg1, %c0_i32 : i32, i32, i32
  }
  func.func @transform_17(%arg0: i32, %arg1: i32, %arg2: memref<6x8xf32, #tpu.memory_space<smem>>) -> (i32, i32, i32) {
    %c0_i32 = arith.constant 0 : i32
    %c0_i32_0 = arith.constant 0 : i32
    return %arg0, %arg1, %c0_i32 : i32, i32, i32
  }
  func.func @transform_18(%arg0: i32, %arg1: i32, %arg2: memref<6x8xf32, #tpu.memory_space<smem>>) -> (i32, i32, i32) {
    %c0_i32 = arith.constant 0 : i32
    %c0_i32_0 = arith.constant 0 : i32
    return %arg0, %arg1, %c0_i32 : i32, i32, i32
  }
  func.func @transform_19(%arg0: i32, %arg1: i32, %arg2: memref<6x8xf32, #tpu.memory_space<smem>>) -> (i32, i32, i32) {
    %c0_i32 = arith.constant 0 : i32
    %c0_i32_0 = arith.constant 0 : i32
    return %arg0, %arg1, %c0_i32 : i32, i32, i32
  }
  func.func @transform_20(%arg0: i32, %arg1: i32, %arg2: memref<6x8xf32, #tpu.memory_space<smem>>) -> (i32, i32, i32) {
    %c0_i32 = arith.constant 0 : i32
    %c0_i32_0 = arith.constant 0 : i32
    return %arg0, %arg1, %c0_i32 : i32, i32, i32
  }
  func.func @transform_21(%arg0: i32, %arg1: i32, %arg2: memref<6x8xf32, #tpu.memory_space<smem>>) -> (i32, i32, i32) {
    %c0_i32 = arith.constant 0 : i32
    %c0_i32_0 = arith.constant 0 : i32
    return %arg0, %arg1, %c0_i32 : i32, i32, i32
  }
  func.func @transform_22(%arg0: i32, %arg1: i32, %arg2: memref<6x8xf32, #tpu.memory_space<smem>>) -> (i32, i32, i32) {
    %c0_i32 = arith.constant 0 : i32
    %c0_i32_0 = arith.constant 0 : i32
    return %arg0, %arg1, %c0_i32 : i32, i32, i32
  }
}

</mosaic_0001>

<bundles_post_ra>
// kernel: _lambda_.47
= control target key start
LH: loop header
LB: loop body
LE: loop exit
PB: predicated region body
PF: predicated region fallthrough
CT: control target
= control target key end

     0   :  { %vm46_vm0 = vcmask 130048   ;;  %vm181_vm1 = vcmask 64512   ;;  %s297_s3 = inlined_call_operand.vmem [shape: bf16[16,8], index: 3, kind: input, shape index: {}]   ;;  %s298_s1 = inlined_call_operand.vmem [shape: f32[32,16], index: 1, kind: input, shape index: {}]   ;;  %s299_s2 = inlined_call_operand.vmem [shape: bf16[16,8], index: 2, kind: input, shape index: {}]   ;;  %s300_s0 = inlined_call_operand.vmem [shape: f32[32,16], index: 0, kind: input, shape index: {}]   ;;  %s301_s4 = inlined_call_operand.vmem [shape: f32[32,16], index: 4, kind: output, shape index: {}]  }
   0x1   :  { %v219_v0 = vld [vmem:[%s297_s3] sm:$0xff]   ;;  %v29_v2 = vld [vmem:[%s298_s1 + $0x8] sm:$0xff]  ;;  %v30_v3 = vld [vmem:[%s298_s1 + $0x10] sm:$0xff] }
   0x2   :  { %v28_v1 = vld [vmem:[%s298_s1] sm:$0xff]  ;;  %212 = vmatprep.subr.bf16.mxu1 %v219_v0  ;;  %v33_v5 = vmax.f32 %v29_v2, 0.0  ;;  %v31_v6 = vld [vmem:[%s298_s1 + $0x18] sm:$0xff]  ;;  %v34_v7 = vmax.f32 %v30_v3, 0.0  ;;  %v19_v12 = vld [vmem:[%s300_s0 + $0x8] sm:$0xff] }
   0x3   :  { %v32_v4 = vmax.f32 %v28_v1, 0.0  ;;  %213 = vmatpush3.bf16.msra.mxu1 %v219_v0  ;;  %v35_v8 = vmax.f32 %v31_v6, 0.0  ;;  %v220_v9 = vld [vmem:[%s299_s2] sm:$0xff]   ;;  %v20_v14 = vld [vmem:[%s300_s0 + $0x10] sm:$0xff]  ;;  %v21_v15 = vld [vmem:[%s300_s0 + $0x18] sm:$0xff]  ;;  %v23_v17 = vmax.f32 %v19_v12, 0.0 }
   0x4   :  { %v18_v10 = vld [vmem:[%s300_s0] sm:$0xff]  ;;  %206 = vmatprep.subr.bf16.mxu0 %v220_v9  ;;  %v24_v18 = vmax.f32 %v20_v14, 0.0  ;;  %v25_v19 = vmax.f32 %v21_v15, 0.0  ;;  %s221_s2 = smov 8  }
   0x5   :  { %v36_v11 = vpack.c.bf16 %v33_v5, %v32_v4  ;;  %v22_v13 = vmax.f32 %v18_v10, 0.0  ;;  %v37_v16 = vpack.c.bf16 %v35_v8, %v34_v7  ;;  %207 = vmatpush3.bf16.msra.mxu0 %v220_v9 }
   0x6   :  { %v27_v21 = vpack.c.bf16 %v25_v19, %v24_v18 }
   0x7   :  { %214 = vmatprep.mubr.msk.bf16.mxu1 %vm46_vm0, %v36_v11  ;;  %v26_v20 = vpack.c.bf16 %v23_v17, %v22_v13 }
   0x8   :  { %215 = vmatmul.mubr.msk.bf16.vlgmr.msra.gmra.mrb[0].mxu1 %vm46_vm0, %v37_v16 }
   0x9   :  { %208 = vmatprep.mubr.msk.bf16.mxu0 %vm46_vm0, %v26_v20 }
   0xa   :  { %209 = vmatmul.mubr.msk.bf16.vlgmr.msra.gmra.mrb[0].mxu0 %vm46_vm0, %v27_v21 }
  0xdb   :  { %v216_v22 = vpop.f32.mrb[0].mxu1 }
  0xdc   :  { %173 = vrot.lane.b32.xlu1 %v216_v22, %s221_s2  ;;  %v150_v23 = vpop.f32.mrb[1].mxu1 }
  0xdd   :  { %169 = vrot.lane.b32.xlu0 %v150_v23, %s221_s2  ;;  %v217_v24 = vpop.f32.mrb[2].mxu1  ;;  %v210_v26 = vpop.f32.mrb[0].mxu0 }
  0xde   :  { %v153_v25 = vpop.f32.mrb[3].mxu1  ;;  %v87_v27 = vpop.f32.mrb[1].mxu0 }
  0xdf   :  { %v211_v28 = vpop.f32.mrb[2].mxu0 }
  0xe0   :  { %175 = vrot.lane.b32.xlu1 %v217_v24, %s221_s2  ;;  %v90_v29 = vpop.f32.mrb[3].mxu0 }
  0xe1   :  { %171 = vrot.lane.b32.xlu0 %v153_v25, %s221_s2 }
 0x14e   :  { %v174_v30 = vpop.permute.xlu1 %173 }
 0x14f   :  { %v184_v31 = vsel %vm181_vm1, %v210_v26, %v174_v30  ;;  %v170_v32 = vpop.permute.xlu0 %169 }
 0x150   :  { %188 = vst.msk [vmem:[%s301_s4 + $0x10] sm:$0xff] %vm46_vm0, %v184_v31  ;;  %v182_v33 = vsel %vm181_vm1, %v87_v27, %v170_v32 }
 0x151   :  { %186 = vst.msk [vmem:[%s301_s4] sm:$0xff] %vm46_vm0, %v182_v33 }
 0x152   :  { %v176_v34 = vpop.permute.xlu1 %175 }
 0x153   :  { %v185_v35 = vsel %vm181_vm1, %v211_v28, %v176_v34  ;;  %v172_v36 = vpop.permute.xlu0 %171 }
 0x154   :  { %189 = vst.msk [vmem:[%s301_s4 + $0x18] sm:$0xff] %vm46_vm0, %v185_v35  ;;  %v183_v37 = vsel %vm181_vm1, %v90_v29, %v172_v36 }
 0x155   :  { %187 = vst.msk [vmem:[%s301_s4 + $0x8] sm:$0xff] %vm46_vm0, %v183_v37 }

// kernel: _lambda_.41
= control target key start
LH: loop header
LB: loop body
LE: loop exit
PB: predicated region body
PF: predicated region fallthrough
CT: control target
= control target key end

     0   :  { %vm130_vm0 = vcmask 1045504   ;;  %vm105_vm1 = vcmask 97280   ;;  %s541_s25 = smov 8   ;;  %vm426_vm2 = vcmask 64512   ;;  %vm443_vm3 = vcmask 130048   ;;  %s785_s3 = inlined_call_operand.vmem [shape: bf16[12,8], index: 3, kind: input, shape index: {}]   ;;  %s786_s1 = inlined_call_operand.vmem [shape: f32[128,12], index: 1, kind: input, shape index: {}]   ;;  %s787_s0 = inlined_call_operand.vmem [shape: f32[128,12], index: 0, kind: input, shape index: {}]   ;;  %s788_s2 = inlined_call_operand.vmem [shape: bf16[12,8], index: 2, kind: input, shape index: {}]   ;;  %s789_s4 = inlined_call_operand.vmem [shape: f32[128,16], index: 4, kind: output, shape index: {}]  }
   0x1   :  { %v539_v0 = vld [vmem:[%s785_s3] sm:$0x3f]   ;;  %v59_v2 = vld [vmem:[%s786_s1 + $0x8] sm:$0xff]  ;;  %v60_v3 = vld [vmem:[%s786_s1 + $0x10] sm:$0xff] }
   0x2   :  { %v58_v1 = vld [vmem:[%s786_s1] sm:$0xff]  ;;  %537 = vmatprep.subr.msk.bf16.mxu1 %vm130_vm0, %v539_v0  ;;  %v263_v4 = vsel %vm130_vm0, %v539_v0, 0  ;;  %v75_v6 = vmax.f32 %v59_v2, 0.0  ;;  %v61_v7 = vld [vmem:[%s786_s1 + $0x18] sm:$0xff]  ;;  %v76_v8 = vmax.f32 %v60_v3, 0.0  ;;  %v63_v11 = vld [vmem:[%s786_s1 + $0x28] sm:$0xff] }
   0x3   :  { %v74_v5 = vmax.f32 %v58_v1, 0.0  ;;  %v62_v9 = vld [vmem:[%s786_s1 + $0x20] sm:$0xff]  ;;  %519 = vmatpush3.bf16.msra.mxu1 %v263_v4  ;;  %v77_v10 = vmax.f32 %v61_v7, 0.0  ;;  %v79_v14 = vmax.f32 %v63_v11, 0.0  ;;  %v64_v15 = vld [vmem:[%s786_s1 + $0x30] sm:$0xff]  ;;  %v65_v16 = vld [vmem:[%s786_s1 + $0x38] sm:$0xff] }
   0x4   :  { %v78_v12 = vmax.f32 %v62_v9, 0.0  ;;  %v66_v17 = vld [vmem:[%s786_s1 + $0x40] sm:$0xff]  ;;  %v67_v19 = vld [vmem:[%s786_s1 + $0x48] sm:$0xff]  ;;  %v80_v21 = vmax.f32 %v64_v15, 0.0  ;;  %v81_v22 = vmax.f32 %v65_v16, 0.0  ;;  %v20_v29 = vld [vmem:[%s787_s0 + $0x10] sm:$0xff] }
   0x5   :  { %v90_v13 = vpack.c.bf16 %v75_v6, %v74_v5  ;;  %v91_v18 = vpack.c.bf16 %v77_v10, %v76_v8  ;;  %v82_v23 = vmax.f32 %v66_v17, 0.0  ;;  %v18_v24 = vld [vmem:[%s787_s0] sm:$0xff]  ;;  %v83_v25 = vmax.f32 %v67_v19, 0.0  ;;  %v19_v27 = vld [vmem:[%s787_s0 + $0x8] sm:$0xff]  ;;  %v21_v31 = vld [vmem:[%s787_s0 + $0x18] sm:$0xff] }
   0x6   :  { %v92_v20 = vpack.c.bf16 %v79_v14, %v78_v12  ;;  %v540_v26 = vld [vmem:[%s788_s2] sm:$0x3f]   ;;  %v34_v28 = vmax.f32 %v18_v24, 0.0  ;;  %v35_v30 = vmax.f32 %v19_v27, 0.0  ;;  %v36_v32 = vmax.f32 %v20_v29, 0.0  ;;  %v23_v34 = vld [vmem:[%s787_s0 + $0x28] sm:$0xff] }
   0x7   :  { %520 = vmatprep.mubr.msk.bf16.mxu1 %vm105_vm1, %v90_v13  ;;  %v22_v33 = vld [vmem:[%s787_s0 + $0x20] sm:$0xff]  ;;  %536 = vmatprep.subr.msk.bf16.mxu0 %vm130_vm0, %v540_v26  ;;  %v132_v35 = vsel %vm130_vm0, %v540_v26, 0  ;;  %v37_v36 = vmax.f32 %v21_v31, 0.0  ;;  %v39_v38 = vmax.f32 %v23_v34, 0.0  ;;  %v93_v39 = vpack.c.bf16 %v81_v22, %v80_v21  ;;  %v68_v40 = vld [vmem:[%s786_s1 + $0x50] sm:$0xff]  ;;  %v25_v43 = vld [vmem:[%s787_s0 + $0x38] sm:$0xff] }
   0x8   :  { %521 = vmatmul.mubr.msk.bf16.vlgmr.msra.gmra.mrb[0].mxu1 %vm105_vm1, %v91_v18  ;;  %v38_v37 = vmax.f32 %v22_v33, 0.0  ;;  %501 = vmatpush3.bf16.msra.mxu0 %v132_v35  ;;  %v50_v41 = vpack.c.bf16 %v35_v30, %v34_v28  ;;  %v24_v42 = vld [vmem:[%s787_s0 + $0x30] sm:$0xff]  ;;  %v94_v44 = vpack.c.bf16 %v83_v25, %v82_v23  ;;  %v69_v45 = vld [vmem:[%s786_s1 + $0x58] sm:$0xff]  ;;  %v26_v48 = vld [vmem:[%s787_s0 + $0x40] sm:$0xff]  ;;  %v41_v53 = vmax.f32 %v25_v43, 0.0 }
   0x9   :  { %524 = vmatprep.mubr.msk.bf16.mxu1 %vm105_vm1, %v92_v20  ;;  %v51_v46 = vpack.c.bf16 %v37_v36, %v36_v32  ;;  %v27_v49 = vld [vmem:[%s787_s0 + $0x48] sm:$0xff]  ;;  %v70_v50 = vld [vmem:[%s786_s1 + $0x60] sm:$0xff]  ;;  %v40_v52 = vmax.f32 %v24_v42, 0.0  ;;  %v84_v54 = vmax.f32 %v68_v40, 0.0  ;;  %v85_v55 = vmax.f32 %v69_v45, 0.0  ;;  %v72_v62 = vld [vmem:[%s786_s1 + $0x70] sm:$0xff] }
   0xa   :  { %v52_v47 = vpack.c.bf16 %v39_v38, %v38_v37  ;;  %v71_v51 = vld [vmem:[%s786_s1 + $0x68] sm:$0xff]  ;;  %502 = vmatprep.mubr.msk.bf16.mxu0 %vm105_vm1, %v50_v41  ;;  %v42_v56 = vmax.f32 %v26_v48, 0.0  ;;  %v43_v57 = vmax.f32 %v27_v49, 0.0  ;;  %v86_v58 = vmax.f32 %v70_v50, 0.0  ;;  %v28_v0 = vld [vmem:[%s787_s0 + $0x50] sm:$0xff]  ;;  %v29_v1 = vld [vmem:[%s787_s0 + $0x58] sm:$0xff] }
   0xb   :  { %503 = vmatmul.mubr.msk.bf16.vlgmr.msra.gmra.mrb[0].mxu0 %vm105_vm1, %v51_v46  ;;  %v87_v59 = vmax.f32 %v71_v51, 0.0  ;;  %v53_v60 = vpack.c.bf16 %v41_v53, %v40_v52  ;;  %v95_v61 = vpack.c.bf16 %v85_v55, %v84_v54  ;;  %v73_v3 = vld [vmem:[%s786_s1 + $0x78] sm:$0xff]  ;;  %v30_v4 = vld [vmem:[%s787_s0 + $0x60] sm:$0xff]  ;;  %v31_v5 = vld [vmem:[%s787_s0 + $0x68] sm:$0xff]  ;;  %v44_v6 = vmax.f32 %v28_v0, 0.0 }
   0xc   :  { %506 = vmatprep.mubr.msk.bf16.mxu0 %vm105_vm1, %v52_v47  ;;  %v54_v63 = vpack.c.bf16 %v43_v57, %v42_v56  ;;  %v45_v7 = vmax.f32 %v29_v1, 0.0  ;;  %v88_v8 = vmax.f32 %v72_v62, 0.0  ;;  %v89_v9 = vmax.f32 %v73_v3, 0.0  ;;  %v32_v15 = vld [vmem:[%s787_s0 + $0x70] sm:$0xff]  ;;  %v33_v16 = vld [vmem:[%s787_s0 + $0x78] sm:$0xff] }
   0xd   :  { %v96_v2 = vpack.c.bf16 %v87_v59, %v86_v58  ;;  %v46_v10 = vmax.f32 %v30_v4, 0.0  ;;  %v47_v11 = vmax.f32 %v31_v5, 0.0  ;;  %v48_v17 = vmax.f32 %v32_v15, 0.0 }
   0xe   :  { %v55_v12 = vpack.c.bf16 %v45_v7, %v44_v6  ;;  %v97_v13 = vpack.c.bf16 %v89_v9, %v88_v8  ;;  %v49_v18 = vmax.f32 %v33_v16, 0.0 }
   0xf   :  { %v56_v14 = vpack.c.bf16 %v47_v11, %v46_v10 }
  0x10   :  { %525 = vmatmul.mubr.msk.bf16.gmra.mrb[4].mxu1 %vm105_vm1, %v93_v39  ;;  %v57_v19 = vpack.c.bf16 %v49_v18, %v48_v17 }
  0x11   :  { %528 = vmatprep.mubr.msk.bf16.mxu1 %vm105_vm1, %v94_v44 }
  0x13   :  { %507 = vmatmul.mubr.msk.bf16.gmra.mrb[4].mxu0 %vm105_vm1, %v53_v60 }
  0x14   :  { %510 = vmatprep.mubr.msk.bf16.mxu0 %vm105_vm1, %v54_v63 }
  0x18   :  { %529 = vmatmul.mubr.msk.bf16.gmra.mrb[8].mxu1 %vm105_vm1, %v95_v61 }
  0x19   :  { %532 = vmatprep.mubr.msk.bf16.mxu1 %vm105_vm1, %v96_v2 }
  0x1b   :  { %511 = vmatmul.mubr.msk.bf16.gmra.mrb[8].mxu0 %vm105_vm1, %v55_v12 }
  0x1c   :  { %514 = vmatprep.mubr.msk.bf16.mxu0 %vm105_vm1, %v56_v14 }
  0x20   :  { %533 = vmatmul.mubr.msk.bf16.gmra.mrb[12].mxu1 %vm105_vm1, %v97_v13 }
  0x23   :  { %515 = vmatmul.mubr.msk.bf16.gmra.mrb[12].mxu0 %vm105_vm1, %v57_v19 }
  0xdb   :  { %v522_v20 = vpop.f32.mrb[0].mxu1 }
  0xdc   :  { %382 = vrot.lane.b32.xlu1 %v522_v20, %s541_s25  ;;  %v299_v21 = vpop.f32.mrb[1].mxu1 }
  0xdd   :  { %378 = vrot.lane.b32.xlu0 %v299_v21, %s541_s25  ;;  %v523_v22 = vpop.f32.mrb[2].mxu1 }
  0xde   :  { %v302_v23 = vpop.f32.mrb[3].mxu1  ;;  %v504_v24 = vpop.f32.mrb[0].mxu0 }
  0xdf   :  { %v168_v26 = vpop.f32.mrb[1].mxu0 }
  0xe0   :  { %384 = vrot.lane.b32.xlu1 %v523_v22, %s541_s25  ;;  %v505_v28 = vpop.f32.mrb[2].mxu0 }
  0xe1   :  { %380 = vrot.lane.b32.xlu0 %v302_v23, %s541_s25  ;;  %v171_v30 = vpop.f32.mrb[3].mxu0 }
  0xe3   :  { %v526_v25 = vpop.f32.mrb[4].mxu1 }
  0xe4   :  { %v315_v27 = vpop.f32.mrb[5].mxu1 }
  0xe5   :  { %390 = vrot.lane.b32.xlu0 %v526_v25, %s541_s25  ;;  %v527_v29 = vpop.f32.mrb[6].mxu1 }
  0xe6   :  { %392 = vrot.lane.b32.xlu1 %v527_v29, %s541_s25  ;;  %v318_v31 = vpop.f32.mrb[7].mxu1  ;;  %v508_v32 = vpop.f32.mrb[4].mxu0 }
  0xe7   :  { %v184_v34 = vpop.f32.mrb[5].mxu0 }
  0xe8   :  { %v509_v36 = vpop.f32.mrb[6].mxu0 }
  0xe9   :  { %386 = vrot.lane.b32.xlu0 %v315_v27, %s541_s25  ;;  %v187_v38 = vpop.f32.mrb[7].mxu0 }
  0xea   :  { %388 = vrot.lane.b32.xlu1 %v318_v31, %s541_s25 }
  0xeb   :  { %v530_v33 = vpop.f32.mrb[8].mxu1 }
  0xec   :  { %v331_v35 = vpop.f32.mrb[9].mxu1 }
  0xed   :  { %398 = vrot.lane.b32.xlu0 %v530_v33, %s541_s25  ;;  %v531_v37 = vpop.f32.mrb[10].mxu1 }
  0xee   :  { %400 = vrot.lane.b32.xlu1 %v531_v37, %s541_s25  ;;  %v334_v39 = vpop.f32.mrb[11].mxu1  ;;  %v512_v40 = vpop.f32.mrb[8].mxu0 }
  0xef   :  { %v200_v42 = vpop.f32.mrb[9].mxu0 }
  0xf0   :  { %v513_v44 = vpop.f32.mrb[10].mxu0 }
  0xf1   :  { %394 = vrot.lane.b32.xlu0 %v331_v35, %s541_s25  ;;  %v203_v46 = vpop.f32.mrb[11].mxu0 }
  0xf2   :  { %396 = vrot.lane.b32.xlu1 %v334_v39, %s541_s25 }
  0xf3   :  { %v534_v41 = vpop.f32.mrb[12].mxu1 }
  0xf4   :  { %v347_v43 = vpop.f32.mrb[13].mxu1 }
  0xf5   :  { %402 = vrot.lane.b32.xlu0 %v347_v43, %s541_s25  ;;  %v535_v45 = vpop.f32.mrb[14].mxu1 }
  0xf6   :  { %v350_v47 = vpop.f32.mrb[15].mxu1  ;;  %v516_v48 = vpop.f32.mrb[12].mxu0 }
  0xf7   :  { %404 = vrot.lane.b32.xlu1 %v350_v47, %s541_s25  ;;  %v216_v49 = vpop.f32.mrb[13].mxu0 }
  0xf8   :  { %v517_v50 = vpop.f32.mrb[14].mxu0 }
  0xf9   :  { %406 = vrot.lane.b32.xlu0 %v534_v41, %s541_s25  ;;  %v219_v51 = vpop.f32.mrb[15].mxu0 }
  0xfb   :  { %408 = vrot.lane.b32.xlu1 %v535_v45, %s541_s25 }
 0x14e   :  { %v383_v52 = vpop.permute.xlu1 %382 }
 0x14f   :  { %v429_v53 = vsel %vm426_vm2, %v504_v24, %v383_v52  ;;  %v379_v54 = vpop.permute.xlu0 %378 }
 0x150   :  { %446 = vst.msk [vmem:[%s789_s4 + $0x10] sm:$0xff] %vm443_vm3, %v429_v53  ;;  %v427_v55 = vsel %vm426_vm2, %v168_v26, %v379_v54 }
 0x151   :  { %444 = vst.msk [vmem:[%s789_s4] sm:$0xff] %vm443_vm3, %v427_v55 }
 0x152   :  { %v385_v56 = vpop.permute.xlu1 %384 }
 0x153   :  { %v430_v57 = vsel %vm426_vm2, %v505_v28, %v385_v56  ;;  %v381_v58 = vpop.permute.xlu0 %380 }
 0x154   :  { %447 = vst.msk [vmem:[%s789_s4 + $0x18] sm:$0xff] %vm443_vm3, %v430_v57  ;;  %v428_v59 = vsel %vm426_vm2, %v171_v30, %v381_v58 }
 0x155   :  { %445 = vst.msk [vmem:[%s789_s4 + $0x8] sm:$0xff] %vm443_vm3, %v428_v59 }
 0x157   :  { %v391_v60 = vpop.permute.xlu0 %390 }
 0x158   :  { %v433_v61 = vsel %vm426_vm2, %v508_v32, %v391_v60  ;;  %v393_v62 = vpop.permute.xlu1 %392 }
 0x159   :  { %450 = vst.msk [vmem:[%s789_s4 + $0x30] sm:$0xff] %vm443_vm3, %v433_v61  ;;  %v434_v63 = vsel %vm426_vm2, %v509_v36, %v393_v62 }
 0x15a   :  { %451 = vst.msk [vmem:[%s789_s4 + $0x38] sm:$0xff] %vm443_vm3, %v434_v63 }
 0x15b   :  { %v387_v0 = vpop.permute.xlu0 %386 }
 0x15c   :  { %v431_v1 = vsel %vm426_vm2, %v184_v34, %v387_v0  ;;  %v389_v2 = vpop.permute.xlu1 %388 }
 0x15d   :  { %448 = vst.msk [vmem:[%s789_s4 + $0x20] sm:$0xff] %vm443_vm3, %v431_v1  ;;  %v432_v3 = vsel %vm426_vm2, %v187_v38, %v389_v2 }
 0x15e   :  { %449 = vst.msk [vmem:[%s789_s4 + $0x28] sm:$0xff] %vm443_vm3, %v432_v3 }
 0x15f   :  { %v399_v4 = vpop.permute.xlu0 %398 }
 0x160   :  { %v437_v5 = vsel %vm426_vm2, %v512_v40, %v399_v4  ;;  %v401_v6 = vpop.permute.xlu1 %400 }
 0x161   :  { %454 = vst.msk [vmem:[%s789_s4 + $0x50] sm:$0xff] %vm443_vm3, %v437_v5  ;;  %v438_v7 = vsel %vm426_vm2, %v513_v44, %v401_v6 }
 0x162   :  { %455 = vst.msk [vmem:[%s789_s4 + $0x58] sm:$0xff] %vm443_vm3, %v438_v7 }
 0x163   :  { %v395_v8 = vpop.permute.xlu0 %394 }
 0x164   :  { %v435_v9 = vsel %vm426_vm2, %v200_v42, %v395_v8  ;;  %v397_v10 = vpop.permute.xlu1 %396 }
 0x165   :  { %452 = vst.msk [vmem:[%s789_s4 + $0x40] sm:$0xff] %vm443_vm3, %v435_v9  ;;  %v436_v11 = vsel %vm426_vm2, %v203_v46, %v397_v10 }
 0x166   :  { %453 = vst.msk [vmem:[%s789_s4 + $0x48] sm:$0xff] %vm443_vm3, %v436_v11 }
 0x167   :  { %v403_v12 = vpop.permute.xlu0 %402 }
 0x168   :  { %v439_v13 = vsel %vm426_vm2, %v216_v49, %v403_v12 }
 0x169   :  { %456 = vst.msk [vmem:[%s789_s4 + $0x60] sm:$0xff] %vm443_vm3, %v439_v13  ;;  %v405_v14 = vpop.permute.xlu1 %404 }
 0x16a   :  { %v440_v15 = vsel %vm426_vm2, %v219_v51, %v405_v14 }
 0x16b   :  { %457 = vst.msk [vmem:[%s789_s4 + $0x68] sm:$0xff] %vm443_vm3, %v440_v15  ;;  %v407_v16 = vpop.permute.xlu0 %406 }
 0x16c   :  { %v441_v17 = vsel %vm426_vm2, %v516_v48, %v407_v16 }
 0x16d   :  { %458 = vst.msk [vmem:[%s789_s4 + $0x70] sm:$0xff] %vm443_vm3, %v441_v17  ;;  %v409_v18 = vpop.permute.xlu1 %408 }
 0x16e   :  { %v442_v19 = vsel %vm426_vm2, %v517_v50, %v409_v18 }
 0x16f   :  { %459 = vst.msk [vmem:[%s789_s4 + $0x78] sm:$0xff] %vm443_vm3, %v442_v19 }

// kernel: _lambda_.36
= control target key start
LH: loop header
LB: loop body
LE: loop exit
PB: predicated region body
PF: predicated region fallthrough
CT: control target
= control target key end

     0   :  { %vm18_vm0 = vcmask 58368   ;;  %vm85_vm1 = vcmask 64512   ;;  %v334_v0 = vmov 0.0   ;;  %vm335_vm2 = vmmov 0   ;;  %s625_s0 = inlined_call_operand.vmem [shape: f32[2,256,8], index: 0, kind: input, shape index: {}]   ;;  %s626_s1 = inlined_call_operand.vmem [shape: f32[8,8], index: 1, kind: input, shape index: {}]   ;;  %s627_s2 = inlined_call_operand.vmem [shape: f32[1,8], index: 2, kind: input, shape index: {}]   ;;  %s628_s3 = inlined_call_operand.vmem [shape: f32[2,8], index: 3, kind: output, shape index: {}]  }
   0x1   :  { %19 = vst.msk [vmem:[#allocation2] sm:$0x3] %vm18_vm0, %v334_v0  ;;  %v21_v1 = vld [vmem:[%s625_s0] sm:$0xff]  ;;  %v22_v2 = vld [vmem:[%s625_s0 + $0x8] sm:$0xff]  ;;  %v23_v3 = vld [vmem:[%s625_s0 + $0x10] sm:$0xff]  ;;  %327 = vmatprep.subr.mxu0 %v334_v0  ;;  %329 = vmatprep.mubr.msk.f32.mxu0 %vm335_vm2, %v334_v0  ;;  %vm226_vm3 = vcmask 1041409  }
   0x2   :  { %v24_v4 = vld [vmem:[%s625_s0 + $0x18] sm:$0xff]  ;;  %v86_v5 = vsel %vm85_vm1, %v21_v1, 0.0  ;;  %v87_v6 = vsel %vm85_vm1, %v22_v2, 0.0  ;;  %v89_v7 = vsel %vm85_vm1, %v23_v3, 0.0  ;;  %v25_v8 = vld [vmem:[%s625_s0 + $0x20] sm:$0xff]  ;;  %v26_v11 = vld [vmem:[%s625_s0 + $0x28] sm:$0xff] }
   0x3   :  { %v88_v9 = vadd.f32 %v87_v6, %v86_v5  ;;  %v91_v10 = vsel %vm85_vm1, %v24_v4, 0.0  ;;  %v93_v13 = vsel %vm85_vm1, %v25_v8, 0.0  ;;  %v27_v14 = vld [vmem:[%s625_s0 + $0x30] sm:$0xff]  ;;  %v95_v16 = vsel %vm85_vm1, %v26_v11, 0.0  ;;  %v28_v17 = vld [vmem:[%s625_s0 + $0x38] sm:$0xff]  ;;  %v29_v20 = vld [vmem:[%s625_s0 + $0x40] sm:$0xff] }
   0x4   :  { %v97_v19 = vsel %vm85_vm1, %v27_v14, 0.0  ;;  %v53_v22 = vld [vmem:[%s625_s0 + $0x100] sm:$0xff]  ;;  %v54_v23 = vld [vmem:[%s625_s0 + $0x108] sm:$0xff]  ;;  %v55_v24 = vld [vmem:[%s625_s0 + $0x110] sm:$0xff]  ;;  %v99_v25 = vsel %vm85_vm1, %v28_v17, 0.0  ;;  %v101_v33 = vsel %vm85_vm1, %v29_v20, 0.0 }
   0x5   :  { %v90_v12 = vadd.f32 %v89_v7, %v88_v9  ;;  %v30_v26 = vld [vmem:[%s625_s0 + $0x48] sm:$0xff]  ;;  %v56_v27 = vld [vmem:[%s625_s0 + $0x118] sm:$0xff]  ;;  %v155_v29 = vsel %vm85_vm1, %v53_v22, 0.0  ;;  %v156_v30 = vsel %vm85_vm1, %v54_v23, 0.0  ;;  %v158_v31 = vsel %vm85_vm1, %v55_v24, 0.0  ;;  %v57_v32 = vld [vmem:[%s625_s0 + $0x120] sm:$0xff] }
   0x6   :  { %v157_v34 = vadd.f32 %v156_v30, %v155_v29  ;;  %v31_v35 = vld [vmem:[%s625_s0 + $0x50] sm:$0xff]  ;;  %v160_v37 = vsel %vm85_vm1, %v56_v27, 0.0  ;;  %v58_v38 = vld [vmem:[%s625_s0 + $0x128] sm:$0xff]  ;;  %v103_v39 = vsel %vm85_vm1, %v30_v26, 0.0  ;;  %v32_v41 = vld [vmem:[%s625_s0 + $0x58] sm:$0xff]  ;;  %v162_v43 = vsel %vm85_vm1, %v57_v32, 0.0 }
   0x7   :  { %v92_v15 = vadd.f32 %v91_v10, %v90_v12  ;;  %v59_v44 = vld [vmem:[%s625_s0 + $0x130] sm:$0xff]  ;;  %v105_v45 = vsel %vm85_vm1, %v31_v35, 0.0  ;;  %v33_v47 = vld [vmem:[%s625_s0 + $0x60] sm:$0xff]  ;;  %v164_v49 = vsel %vm85_vm1, %v58_v38, 0.0  ;;  %v60_v50 = vld [vmem:[%s625_s0 + $0x138] sm:$0xff]  ;;  %v107_v51 = vsel %vm85_vm1, %v32_v41, 0.0 }
   0x8   :  { %v159_v40 = vadd.f32 %v158_v31, %v157_v34  ;;  %v34_v53 = vld [vmem:[%s625_s0 + $0x68] sm:$0xff]  ;;  %v166_v55 = vsel %vm85_vm1, %v59_v44, 0.0  ;;  %v61_v56 = vld [vmem:[%s625_s0 + $0x140] sm:$0xff]  ;;  %v109_v57 = vsel %vm85_vm1, %v33_v47, 0.0  ;;  %v35_v60 = vld [vmem:[%s625_s0 + $0x70] sm:$0xff]  ;;  %v168_v62 = vsel %vm85_vm1, %v60_v50, 0.0 }
   0x9   :  { %v94_v18 = vadd.f32 %v93_v13, %v92_v15  ;;  %v237_v59 = vld [vmem:[%s626_s1] sm:$0xff]  ;;  %v62_v63 = vld [vmem:[%s625_s0 + $0x148] sm:$0xff]  ;;  %v111_v0 = vsel %vm85_vm1, %v34_v53, 0.0  ;;  %v36_v2 = vld [vmem:[%s625_s0 + $0x78] sm:$0xff]  ;;  %v170_v4 = vsel %vm85_vm1, %v61_v56, 0.0  ;;  %v113_v6 = vsel %vm85_vm1, %v35_v60, 0.0 }
   0xa   :  { %v161_v46 = vadd.f32 %v160_v37, %v159_v40  ;;  %328 = vmatpush3.msra.mxu0 %v237_v59  ;;  %v63_v5 = vld [vmem:[%s625_s0 + $0x150] sm:$0xff]  ;;  %v37_v8 = vld [vmem:[%s625_s0 + $0x80] sm:$0xff]  ;;  %v172_v10 = vsel %vm85_vm1, %v62_v63, 0.0  ;;  %v64_v11 = vld [vmem:[%s625_s0 + $0x158] sm:$0xff]  ;;  %v115_v12 = vsel %vm85_vm1, %v36_v2, 0.0 }
   0xb   :  { %v96_v21 = vadd.f32 %v95_v16, %v94_v18  ;;  %v38_v14 = vld [vmem:[%s625_s0 + $0x88] sm:$0xff]  ;;  %v174_v16 = vsel %vm85_vm1, %v63_v5, 0.0  ;;  %v65_v17 = vld [vmem:[%s625_s0 + $0x160] sm:$0xff]  ;;  %v117_v18 = vsel %vm85_vm1, %v37_v8, 0.0  ;;  %v39_v20 = vld [vmem:[%s625_s0 + $0x90] sm:$0xff]  ;;  %v176_v22 = vsel %vm85_vm1, %v64_v11, 0.0 }
   0xc   :  { %v163_v52 = vadd.f32 %v162_v43, %v161_v46  ;;  %v66_v23 = vld [vmem:[%s625_s0 + $0x168] sm:$0xff]  ;;  %v119_v24 = vsel %vm85_vm1, %v38_v14, 0.0  ;;  %v40_v26 = vld [vmem:[%s625_s0 + $0x98] sm:$0xff]  ;;  %v67_v29 = vld [vmem:[%s625_s0 + $0x170] sm:$0xff]  ;;  %v121_v30 = vsel %vm85_vm1, %v39_v20, 0.0 }
   0xd   :  { %v98_v28 = vadd.f32 %v97_v19, %v96_v21  ;;  %v41_v32 = vld [vmem:[%s625_s0 + $0xa0] sm:$0xff]  ;;  %v180_v34 = vsel %vm85_vm1, %v66_v23, 0.0  ;;  %v68_v35 = vld [vmem:[%s625_s0 + $0x178] sm:$0xff]  ;;  %v42_v38 = vld [vmem:[%s625_s0 + $0xa8] sm:$0xff]  ;;  %v182_v40 = vsel %vm85_vm1, %v67_v29, 0.0 }
   0xe   :  { %v165_v58 = vadd.f32 %v164_v49, %v163_v52  ;;  %v69_v41 = vld [vmem:[%s625_s0 + $0x180] sm:$0xff]  ;;  %v43_v44 = vld [vmem:[%s625_s0 + $0xb0] sm:$0xff]  ;;  %v184_v46 = vsel %vm85_vm1, %v68_v35, 0.0  ;;  %v70_v47 = vld [vmem:[%s625_s0 + $0x188] sm:$0xff] }
   0xf   :  { %v100_v36 = vadd.f32 %v99_v25, %v98_v28  ;;  %v178_v28 = vsel %vm85_vm1, %v65_v17, 0.0  ;;  %v44_v50 = vld [vmem:[%s625_s0 + $0xb8] sm:$0xff]  ;;  %v186_v52 = vsel %vm85_vm1, %v69_v41, 0.0  ;;  %v71_v53 = vld [vmem:[%s625_s0 + $0x190] sm:$0xff]  ;;  %v45_v56 = vld [vmem:[%s625_s0 + $0xc0] sm:$0xff] }
  0x10   :  { %v167_v1 = vadd.f32 %v166_v55, %v165_v58  ;;  %v188_v58 = vsel %vm85_vm1, %v70_v47, 0.0  ;;  %v72_v59 = vld [vmem:[%s625_s0 + $0x198] sm:$0xff]  ;;  %v131_v60 = vsel %vm85_vm1, %v44_v50, 0.0  ;;  %v133_v2 = vsel %vm85_vm1, %v45_v56, 0.0  ;;  %v81_v47 = vld [vmem:[%s625_s0 + $0x1e0] sm:$0xff] }
  0x11   :  { %v102_v42 = vadd.f32 %v101_v33, %v100_v36  ;;  %v123_v36 = vsel %vm85_vm1, %v40_v26, 0.0 }
  0x12   :  { %v169_v7 = vadd.f32 %v168_v62, %v167_v1  ;;  %v46_v62 = vld [vmem:[%s625_s0 + $0xc8] sm:$0xff]  ;;  %v73_v1 = vld [vmem:[%s625_s0 + $0x1a0] sm:$0xff] }
  0x13   :  { %v104_v48 = vadd.f32 %v103_v39, %v102_v42  ;;  %v125_v42 = vsel %vm85_vm1, %v41_v32, 0.0  ;;  %v135_v8 = vsel %vm85_vm1, %v46_v62, 0.0 }
  0x14   :  { %v171_v13 = vadd.f32 %v170_v4, %v169_v7  ;;  %v47_v4 = vld [vmem:[%s625_s0 + $0xd0] sm:$0xff]  ;;  %v74_v7 = vld [vmem:[%s625_s0 + $0x1a8] sm:$0xff] }
  0x15   :  { %v106_v54 = vadd.f32 %v105_v45, %v104_v48  ;;  %v127_v48 = vsel %vm85_vm1, %v42_v38, 0.0  ;;  %v137_v14 = vsel %vm85_vm1, %v47_v4, 0.0 }
  0x16   :  { %v173_v19 = vadd.f32 %v172_v10, %v171_v13  ;;  %v48_v10 = vld [vmem:[%s625_s0 + $0xd8] sm:$0xff]  ;;  %v75_v13 = vld [vmem:[%s625_s0 + $0x1b0] sm:$0xff] }
  0x17   :  { %v108_v61 = vadd.f32 %v107_v51, %v106_v54  ;;  %v129_v54 = vsel %vm85_vm1, %v43_v44, 0.0  ;;  %v139_v20 = vsel %vm85_vm1, %v48_v10, 0.0 }
  0x18   :  { %v175_v25 = vadd.f32 %v174_v16, %v173_v19  ;;  %v49_v16 = vld [vmem:[%s625_s0 + $0xe0] sm:$0xff]  ;;  %v76_v19 = vld [vmem:[%s625_s0 + $0x1b8] sm:$0xff] }
  0x19   :  { %v110_v3 = vadd.f32 %v109_v57, %v108_v61  ;;  %v141_v26 = vsel %vm85_vm1, %v49_v16, 0.0 }
  0x1a   :  { %v177_v31 = vadd.f32 %v176_v22, %v175_v25  ;;  %v50_v22 = vld [vmem:[%s625_s0 + $0xe8] sm:$0xff]  ;;  %v77_v25 = vld [vmem:[%s625_s0 + $0x1c0] sm:$0xff] }
  0x1b   :  { %v112_v9 = vadd.f32 %v111_v0, %v110_v3  ;;  %v190_v0 = vsel %vm85_vm1, %v71_v53, 0.0  ;;  %v143_v32 = vsel %vm85_vm1, %v50_v22, 0.0 }
  0x1c   :  { %v179_v37 = vadd.f32 %v178_v28, %v177_v31  ;;  %v51_v28 = vld [vmem:[%s625_s0 + $0xf0] sm:$0xff]  ;;  %v78_v31 = vld [vmem:[%s625_s0 + $0x1c8] sm:$0xff] }
  0x1d   :  { %v114_v15 = vadd.f32 %v113_v6, %v112_v9  ;;  %v192_v6 = vsel %vm85_vm1, %v72_v59, 0.0  ;;  %v145_v38 = vsel %vm85_vm1, %v51_v28, 0.0  ;;  %v204_v41 = vsel %vm85_vm1, %v78_v31, 0.0 }
  0x1e   :  { %v181_v43 = vadd.f32 %v180_v34, %v179_v37  ;;  %v52_v34 = vld [vmem:[%s625_s0 + $0xf8] sm:$0xff]  ;;  %v79_v37 = vld [vmem:[%s625_s0 + $0x1d0] sm:$0xff] }
  0x1f   :  { %v116_v21 = vadd.f32 %v115_v12, %v114_v15  ;;  %v194_v12 = vsel %vm85_vm1, %v73_v1, 0.0 }
  0x20   :  { %v183_v49 = vadd.f32 %v182_v40, %v181_v43  ;;  %v147_v43 = vsel %vm85_vm1, %v52_v34, 0.0 }
  0x21   :  { %v118_v27 = vadd.f32 %v117_v18, %v116_v21  ;;  %v196_v18 = vsel %vm85_vm1, %v74_v7, 0.0 }
  0x22   :  { %v185_v55 = vadd.f32 %v184_v46, %v183_v49  ;;  %v206_v46 = vsel %vm85_vm1, %v79_v37, 0.0 }
  0x23   :  { %v120_v33 = vadd.f32 %v119_v24, %v118_v27  ;;  %v198_v24 = vsel %vm85_vm1, %v75_v13, 0.0 }
  0x24   :  { %v187_v61 = vadd.f32 %v186_v52, %v185_v55  ;;  %v83_v55 = vld [vmem:[%s625_s0 + $0x1f0] sm:$0xff] }
  0x25   :  { %v122_v39 = vadd.f32 %v121_v30, %v120_v33  ;;  %v200_v30 = vsel %vm85_vm1, %v76_v19, 0.0 }
  0x26   :  { %v189_v3 = vadd.f32 %v188_v58, %v187_v61  ;;  %v84_v58 = vld [vmem:[%s625_s0 + $0x1f8] sm:$0xff]  ;;  %v214_v61 = vsel %vm85_vm1, %v83_v55, 0.0 }
  0x27   :  { %v124_v45 = vadd.f32 %v123_v36, %v122_v39  ;;  %v202_v36 = vsel %vm85_vm1, %v77_v25, 0.0 }
  0x28   :  { %v191_v9 = vadd.f32 %v190_v0, %v189_v3 }
  0x29   :  { %v126_v51 = vadd.f32 %v125_v42, %v124_v45  ;;  %v80_v42 = vld [vmem:[%s625_s0 + $0x1d8] sm:$0xff] }
  0x2a   :  { %v193_v15 = vadd.f32 %v192_v6, %v191_v9  ;;  %v208_v50 = vsel %vm85_vm1, %v80_v42, 0.0 }
  0x2b   :  { %v128_v57 = vadd.f32 %v127_v48, %v126_v51  ;;  %v82_v51 = vld [vmem:[%s625_s0 + $0x1e8] sm:$0xff] }
  0x2c   :  { %v195_v21 = vadd.f32 %v194_v12, %v193_v15 }
  0x2d   :  { %v130_v63 = vadd.f32 %v129_v54, %v128_v57  ;;  %v210_v54 = vsel %vm85_vm1, %v81_v47, 0.0  ;;  %v212_v57 = vsel %vm85_vm1, %v82_v51, 0.0 }
  0x2e   :  { %v197_v27 = vadd.f32 %v196_v18, %v195_v21 }
  0x2f   :  { %v132_v5 = vadd.f32 %v131_v60, %v130_v63  ;;  %v216_v63 = vsel %vm85_vm1, %v84_v58, 0.0 }
  0x30   :  { %v199_v33 = vadd.f32 %v198_v24, %v197_v27 }
  0x31   :  { %v134_v11 = vadd.f32 %v133_v2, %v132_v5 }
  0x32   :  { %v201_v39 = vadd.f32 %v200_v30, %v199_v33 }
  0x33   :  { %v136_v17 = vadd.f32 %v135_v8, %v134_v11  ;;  %v20_v11 = vld [vmem:[#allocation2] sm:$0x3] }
  0x34   :  { %v203_v44 = vadd.f32 %v202_v36, %v201_v39 }
  0x35   :  { %v138_v23 = vadd.f32 %v137_v14, %v136_v17  ;;  %v323_v17 = vld [vmem:[%s627_s2] ss:$0 sm:$0xff] }
  0x36   :  { %v205_v48 = vadd.f32 %v204_v41, %v203_v44 }
  0x37   :  { %v140_v29 = vadd.f32 %v139_v20, %v138_v23 }
  0x38   :  { %v207_v52 = vadd.f32 %v206_v46, %v205_v48 }
  0x39   :  { %v142_v35 = vadd.f32 %v141_v26, %v140_v29 }
  0x3a   :  { %v209_v56 = vadd.f32 %v208_v50, %v207_v52 }
  0x3b   :  { %v144_v40 = vadd.f32 %v143_v32, %v142_v35 }
  0x3c   :  { %v211_v60 = vadd.f32 %v210_v54, %v209_v56 }
  0x3d   :  { %v146_v45 = vadd.f32 %v145_v38, %v144_v40 }
  0x3e   :  { %v213_v62 = vadd.f32 %v212_v57, %v211_v60 }
  0x3f   :  { %v148_v49 = vadd.f32 %v147_v43, %v146_v45 }
  0x40   :  { %v215_v1 = vadd.f32 %v214_v61, %v213_v62 }
  0x41   :  { %v149_v53 = vrot.slane %v148_v49, 4 }
  0x42   :  { %v217_v2 = vadd.f32 %v216_v63, %v215_v1 }
  0x43   :  { %v150_v59 = vadd.f32 %v149_v53, %v148_v49 }
  0x44   :  { %v218_v4 = vrot.slane %v217_v2, 4 }
  0x45   :  { %v151_v0 = vrot.slane %v150_v59, 2 }
  0x46   :  { %v219_v5 = vadd.f32 %v218_v4, %v217_v2 }
  0x47   :  { %v152_v3 = vadd.f32 %v151_v0, %v150_v59 }
  0x48   :  { %v220_v7 = vrot.slane %v219_v5, 2 }
  0x49   :  { %v153_v6 = vrot.slane %v152_v3, 1 }
  0x4a   :  { %v221_v8 = vadd.f32 %v220_v7, %v219_v5 }
  0x4b   :  { %v154_v9 = vadd.f32 %v153_v6, %v152_v3 }
  0x4c   :  { %v222_v10 = vrot.slane %v221_v8, 1 }
  0x4e   :  { %v223_v12 = vadd.f32 %v222_v10, %v221_v8 }
  0x50   :  { %v227_v13 = vsel %vm226_vm3, %v223_v12, %v154_v9 }
  0x51   :  { %v229_v14 = vadd.f32 %v227_v13, %v20_v11 }
  0x53   :  { %231 = vst.msk [vmem:[#allocation2] sm:$0x3] %vm18_vm0, %v229_v14 }
  0x5a   :  { %v235_v15 = vld [vmem:[#allocation2] sm:$0x3] }
  0x5b   :  { %v236_v16 = vmul.f32 0.00390625, %v235_v15 }
  0x5d   :  { %330 = vmatmul.mubr.msk.f32.vlgmr.msra.gmra.mrb[0].mxu0 %vm85_vm1, %v236_v16 }
 0x130   :  { %v314_v18 = vpop.f32.mrb[0].mxu0 }
 0x131   :  { %v315_v19 = vadd.f32 %v323_v17, %v314_v18  ;;  %v331_v20 = vpop.f32.mrb[1].mxu0 }
 0x133   :  { %318 = vst.msk [vmem:[%s628_s3] sm:$0x3] %vm18_vm0, %v315_v19 }

// kernel: _lambda_.27
= control target key start
LH: loop header
LB: loop body
LE: loop exit
PB: predicated region body
PF: predicated region fallthrough
CT: control target
= control target key end

     0   :  { %s653_s9 = smov 0   ;;  %s796_s0 = inlined_call_operand.vmem [shape: f32[512,12], index: 0, kind: input, shape index: {}]   ;;  %s797_s1 = inlined_call_operand.vmem [shape: bf16[12,8], index: 1, kind: input, shape index: {}]   ;;  %s798_s2 = inlined_call_operand.vmem [shape: f32[512,8], index: 2, kind: output, shape index: {}]  }
   0x1 LB: > { %s538_s10 = sadd.s32 4294967295, %s636_s9   ;;  %p542_p0 = scmp.ge.s32.totalorder %s636_s9, 1  ;;  %s636_s9 = sphi %s653_s9, %s12_s9  }
   0x2   : > { %p113_p1 = scmp.lt.s32.totalorder %s636_s9, 3 }
   0x4   : > { %p114_p2 = pnand %p542_p0, %p113_p1 }
   0x5   : > { %v629_v0 = vld [vmem:[%s797_s1] sm:$0x3f] (!%p114_p2)   ;;  %vm284_vm0 = vcmask (!%p114_p2), 1045504   ;;  %s543_s13 = sshll.u32 (!%p114_p2), %s538_s10, 5  ;;  %vm235_vm1 = vcmask (!%p114_p2), 97280   ;;  %vm449_vm2 = vcmask (!%p114_p2), 64512  }
   0x6   : > { %117 = sbr.rel (%p114_p2) target bundleno = 263 (0x107), region = 28  ;;  %619 = vmatprep.subr.msk.bf16.mxu0 (!%p114_p2), %vm284_vm0, %v629_v0  ;;  %620 = vmatprep.subr.msk.bf16.mxu1 (!%p114_p2), %vm284_vm0, %v629_v0  ;;  %v286_v1 = vsel (!%p114_p2), %vm284_vm0, %v629_v0, 0  ;;  %p136_p3 = scmp.lt.s32.totalorder (!%p114_p2), %s543_s13, 63 }
   0x7   : > { %584 = vmatpush3.bf16.msra.mxu0 (!%p114_p2), %v286_v1  ;;  %618 = vmatpush3.bf16.msra.mxu1 (!%p114_p2), %v286_v1 }
   0xd   : > { %s800_s13 = smov (!%p136_p3, %s543_s13), 63 }
   0xe   : > { %s544_s14 = sshll.u32 %s800_s13, 3 }
   0xf   : > { %s672_s17 = scalar_lea.vmem %s796_s0, %s544_s14  ;;  %s727_s20 = scalar_lea.vmem %s798_s2, %s544_s14 }
  0x10   : > { %v148_v2 = vld [vmem:[%s672_s17] sm:$0xff]  ;;  %v149_v3 = vld [vmem:[%s672_s17 + $0x8] sm:$0xff]  ;;  %v150_v9 = vld [vmem:[%s672_s17 + $0x10] sm:$0xff] }
  0x11   : > { %v164_v4 = vld [vmem:[%s672_s17 + $0x80] sm:$0xff]  ;;  %v180_v5 = vmax.f32 %v148_v2, 0.0  ;;  %v181_v6 = vmax.f32 %v149_v3, 0.0  ;;  %v165_v7 = vld [vmem:[%s672_s17 + $0x88] sm:$0xff]  ;;  %v151_v10 = vld [vmem:[%s672_s17 + $0x18] sm:$0xff]  ;;  %v182_v12 = vmax.f32 %v150_v9, 0.0 }
  0x12   : > { %v196_v8 = vmax.f32 %v164_v4, 0.0  ;;  %v197_v11 = vmax.f32 %v165_v7, 0.0  ;;  %v183_v13 = vmax.f32 %v151_v10, 0.0  ;;  %v166_v14 = vld [vmem:[%s672_s17 + $0x90] sm:$0xff]  ;;  %v167_v15 = vld [vmem:[%s672_s17 + $0x98] sm:$0xff]  ;;  %v152_v16 = vld [vmem:[%s672_s17 + $0x20] sm:$0xff] }
  0x13   : > { %v212_v17 = vpack.c.bf16 %v181_v6, %v180_v5  ;;  %v198_v18 = vmax.f32 %v166_v14, 0.0  ;;  %v199_v19 = vmax.f32 %v167_v15, 0.0  ;;  %v153_v20 = vld [vmem:[%s672_s17 + $0x28] sm:$0xff]  ;;  %v184_v21 = vmax.f32 %v152_v16, 0.0  ;;  %v168_v22 = vld [vmem:[%s672_s17 + $0xa0] sm:$0xff]  ;;  %v154_v28 = vld [vmem:[%s672_s17 + $0x30] sm:$0xff] }
  0x14   : > { %v169_v23 = vld [vmem:[%s672_s17 + $0xa8] sm:$0xff]  ;;  %v220_v24 = vpack.c.bf16 %v197_v11, %v196_v8  ;;  %v213_v25 = vpack.c.bf16 %v183_v13, %v182_v12  ;;  %v185_v26 = vmax.f32 %v153_v20, 0.0  ;;  %v200_v27 = vmax.f32 %v168_v22, 0.0  ;;  %v155_v29 = vld [vmem:[%s672_s17 + $0x38] sm:$0xff]  ;;  %v170_v30 = vld [vmem:[%s672_s17 + $0xb0] sm:$0xff] }
  0x15   : > { %585 = vmatprep.mubr.msk.bf16.mxu0 %vm235_vm1, %v212_v17  ;;  %v221_v31 = vpack.c.bf16 %v199_v19, %v198_v18  ;;  %v201_v32 = vmax.f32 %v169_v23, 0.0  ;;  %v171_v33 = vld [vmem:[%s672_s17 + $0xb8] sm:$0xff]  ;;  %v156_v34 = vld [vmem:[%s672_s17 + $0x40] sm:$0xff]  ;;  %v157_v35 = vld [vmem:[%s672_s17 + $0x48] sm:$0xff]  ;;  %v186_v37 = vmax.f32 %v154_v28, 0.0  ;;  %v187_v38 = vmax.f32 %v155_v29, 0.0 }
  0x16   : > { %601 = vmatprep.mubr.msk.bf16.mxu1 %vm235_vm1, %v220_v24  ;;  %586 = vmatmul.mubr.msk.bf16.vlgmr.msra.gmra.mrb[0].mxu0 %vm235_vm1, %v213_v25  ;;  %v214_v36 = vpack.c.bf16 %v185_v26, %v184_v21  ;;  %v202_v39 = vmax.f32 %v170_v30, 0.0  ;;  %v172_v40 = vld [vmem:[%s672_s17 + $0xc0] sm:$0xff]  ;;  %v173_v41 = vld [vmem:[%s672_s17 + $0xc8] sm:$0xff]  ;;  %v203_v43 = vmax.f32 %v171_v33, 0.0  ;;  %v188_v44 = vmax.f32 %v156_v34, 0.0  ;;  %v158_v51 = vld [vmem:[%s672_s17 + $0x50] sm:$0xff] }
  0x17   : > { %602 = vmatmul.mubr.msk.bf16.vlgmr.msra.gmra.mrb[0].mxu1 %vm235_vm1, %v221_v31  ;;  %v222_v42 = vpack.c.bf16 %v201_v32, %v200_v27  ;;  %v189_v45 = vmax.f32 %v157_v35, 0.0  ;;  %v204_v46 = vmax.f32 %v172_v40, 0.0  ;;  %v205_v47 = vmax.f32 %v173_v41, 0.0  ;;  %v159_v52 = vld [vmem:[%s672_s17 + $0x58] sm:$0xff]  ;;  %v174_v53 = vld [vmem:[%s672_s17 + $0xd0] sm:$0xff]  ;;  %v160_v56 = vld [vmem:[%s672_s17 + $0x60] sm:$0xff] }
  0x18   : > { %589 = vmatprep.mubr.msk.bf16.mxu0 %vm235_vm1, %v214_v36  ;;  %v215_v48 = vpack.c.bf16 %v187_v38, %v186_v37  ;;  %v223_v49 = vpack.c.bf16 %v203_v43, %v202_v39  ;;  %v175_v55 = vld [vmem:[%s672_s17 + $0xd8] sm:$0xff]  ;;  %v161_v57 = vld [vmem:[%s672_s17 + $0x68] sm:$0xff]  ;;  %v176_v58 = vld [vmem:[%s672_s17 + $0xe0] sm:$0xff]  ;;  %v190_v60 = vmax.f32 %v158_v51, 0.0  ;;  %v191_v61 = vmax.f32 %v159_v52, 0.0 }
  0x19   : > { %605 = vmatprep.mubr.msk.bf16.mxu1 %vm235_vm1, %v222_v42  ;;  %v216_v50 = vpack.c.bf16 %v189_v45, %v188_v44  ;;  %v224_v54 = vpack.c.bf16 %v205_v47, %v204_v46  ;;  %v177_v59 = vld [vmem:[%s672_s17 + $0xe8] sm:$0xff]  ;;  %v206_v62 = vmax.f32 %v174_v53, 0.0  ;;  %v207_v63 = vmax.f32 %v175_v55, 0.0  ;;  %v162_v7 = vld [vmem:[%s672_s17 + $0x70] sm:$0xff]  ;;  %v163_v8 = vld [vmem:[%s672_s17 + $0x78] sm:$0xff] }
  0x1a   : > { %v192_v0 = vmax.f32 %v160_v56, 0.0  ;;  %v193_v1 = vmax.f32 %v161_v57, 0.0  ;;  %v208_v2 = vmax.f32 %v176_v58, 0.0  ;;  %v209_v3 = vmax.f32 %v177_v59, 0.0  ;;  %v178_v10 = vld [vmem:[%s672_s17 + $0xf0] sm:$0xff]  ;;  %v179_v11 = vld [vmem:[%s672_s17 + $0xf8] sm:$0xff] }
  0x1b   : > { %v217_v4 = vpack.c.bf16 %v191_v61, %v190_v60  ;;  %v225_v5 = vpack.c.bf16 %v207_v63, %v206_v62  ;;  %v194_v12 = vmax.f32 %v162_v7, 0.0  ;;  %v195_v13 = vmax.f32 %v163_v8, 0.0 }
  0x1c   : > { %v218_v6 = vpack.c.bf16 %v193_v1, %v192_v0  ;;  %v226_v9 = vpack.c.bf16 %v209_v3, %v208_v2  ;;  %v210_v14 = vmax.f32 %v178_v10, 0.0  ;;  %v211_v15 = vmax.f32 %v179_v11, 0.0 }
  0x1d   : > { %v219_v16 = vpack.c.bf16 %v195_v13, %v194_v12 }
  0x1e   : > { %590 = vmatmul.mubr.msk.bf16.gmra.mrb[4].mxu0 %vm235_vm1, %v215_v48  ;;  %v227_v17 = vpack.c.bf16 %v211_v15, %v210_v14 }
  0x1f   : > { %606 = vmatmul.mubr.msk.bf16.gmra.mrb[4].mxu1 %vm235_vm1, %v223_v49  ;;  %593 = vmatprep.mubr.msk.bf16.mxu0 %vm235_vm1, %v216_v50 }
  0x20   : > { %609 = vmatprep.mubr.msk.bf16.mxu1 %vm235_vm1, %v224_v54 }
  0x26   : > { %594 = vmatmul.mubr.msk.bf16.gmra.mrb[8].mxu0 %vm235_vm1, %v217_v4 }
  0x27   : > { %610 = vmatmul.mubr.msk.bf16.gmra.mrb[8].mxu1 %vm235_vm1, %v225_v5  ;;  %597 = vmatprep.mubr.msk.bf16.mxu0 %vm235_vm1, %v218_v6 }
  0x28   : > { %613 = vmatprep.mubr.msk.bf16.mxu1 %vm235_vm1, %v226_v9 }
  0x2e   : > { %598 = vmatmul.mubr.msk.bf16.gmra.mrb[12].mxu0 %vm235_vm1, %v219_v16 }
  0x2f   : > { %614 = vmatmul.mubr.msk.bf16.gmra.mrb[12].mxu1 %vm235_vm1, %v227_v17 }
  0xe9   : > { %v587_v18 = vpop.f32.mrb[0].mxu0 }
  0xea   : > { %452 = vst.msk [vmem:[%s727_s20 + $0x10] sm:$0xff] %vm449_vm2, %v587_v18  ;;  %v603_v19 = vpop.f32.mrb[0].mxu1  ;;  %v322_v20 = vpop.f32.mrb[1].mxu0 }
  0xeb   : > { %468 = vst.msk [vmem:[%s727_s20 + $0x90] sm:$0xff] %vm449_vm2, %v603_v19  ;;  %450 = vst.msk [vmem:[%s727_s20] sm:$0xff] %vm449_vm2, %v322_v20  ;;  %v386_v21 = vpop.f32.mrb[1].mxu1  ;;  %v588_v22 = vpop.f32.mrb[2].mxu0 }
  0xec   : > { %466 = vst.msk [vmem:[%s727_s20 + $0x80] sm:$0xff] %vm449_vm2, %v386_v21  ;;  %453 = vst.msk [vmem:[%s727_s20 + $0x18] sm:$0xff] %vm449_vm2, %v588_v22  ;;  %v604_v23 = vpop.f32.mrb[2].mxu1  ;;  %v325_v24 = vpop.f32.mrb[3].mxu0 }
  0xed   : > { %469 = vst.msk [vmem:[%s727_s20 + $0x98] sm:$0xff] %vm449_vm2, %v604_v23  ;;  %451 = vst.msk [vmem:[%s727_s20 + $0x8] sm:$0xff] %vm449_vm2, %v325_v24  ;;  %v389_v25 = vpop.f32.mrb[3].mxu1 }
  0xee   : > { %467 = vst.msk [vmem:[%s727_s20 + $0x88] sm:$0xff] %vm449_vm2, %v389_v25 }
  0xf1   : > { %v591_v26 = vpop.f32.mrb[4].mxu0 }
  0xf2   : > { %456 = vst.msk [vmem:[%s727_s20 + $0x30] sm:$0xff] %vm449_vm2, %v591_v26  ;;  %v607_v27 = vpop.f32.mrb[4].mxu1  ;;  %v338_v28 = vpop.f32.mrb[5].mxu0 }
  0xf3   : > { %472 = vst.msk [vmem:[%s727_s20 + $0xb0] sm:$0xff] %vm449_vm2, %v607_v27  ;;  %454 = vst.msk [vmem:[%s727_s20 + $0x20] sm:$0xff] %vm449_vm2, %v338_v28  ;;  %v402_v29 = vpop.f32.mrb[5].mxu1  ;;  %v592_v30 = vpop.f32.mrb[6].mxu0 }
  0xf4   : > { %470 = vst.msk [vmem:[%s727_s20 + $0xa0] sm:$0xff] %vm449_vm2, %v402_v29  ;;  %457 = vst.msk [vmem:[%s727_s20 + $0x38] sm:$0xff] %vm449_vm2, %v592_v30  ;;  %v608_v31 = vpop.f32.mrb[6].mxu1  ;;  %v341_v32 = vpop.f32.mrb[7].mxu0 }
  0xf5   : > { %473 = vst.msk [vmem:[%s727_s20 + $0xb8] sm:$0xff] %vm449_vm2, %v608_v31  ;;  %455 = vst.msk [vmem:[%s727_s20 + $0x28] sm:$0xff] %vm449_vm2, %v341_v32  ;;  %v405_v33 = vpop.f32.mrb[7].mxu1 }
  0xf6   : > { %471 = vst.msk [vmem:[%s727_s20 + $0xa8] sm:$0xff] %vm449_vm2, %v405_v33 }
  0xf9   : > { %v595_v34 = vpop.f32.mrb[8].mxu0 }
  0xfa   : > { %460 = vst.msk [vmem:[%s727_s20 + $0x50] sm:$0xff] %vm449_vm2, %v595_v34  ;;  %v611_v35 = vpop.f32.mrb[8].mxu1  ;;  %v354_v36 = vpop.f32.mrb[9].mxu0 }
  0xfb   : > { %476 = vst.msk [vmem:[%s727_s20 + $0xd0] sm:$0xff] %vm449_vm2, %v611_v35  ;;  %458 = vst.msk [vmem:[%s727_s20 + $0x40] sm:$0xff] %vm449_vm2, %v354_v36  ;;  %v418_v37 = vpop.f32.mrb[9].mxu1  ;;  %v596_v38 = vpop.f32.mrb[10].mxu0 }
  0xfc   : > { %474 = vst.msk [vmem:[%s727_s20 + $0xc0] sm:$0xff] %vm449_vm2, %v418_v37  ;;  %461 = vst.msk [vmem:[%s727_s20 + $0x58] sm:$0xff] %vm449_vm2, %v596_v38  ;;  %v612_v39 = vpop.f32.mrb[10].mxu1  ;;  %v357_v40 = vpop.f32.mrb[11].mxu0 }
  0xfd   : > { %477 = vst.msk [vmem:[%s727_s20 + $0xd8] sm:$0xff] %vm449_vm2, %v612_v39  ;;  %459 = vst.msk [vmem:[%s727_s20 + $0x48] sm:$0xff] %vm449_vm2, %v357_v40  ;;  %v421_v41 = vpop.f32.mrb[11].mxu1 }
  0xfe   : > { %475 = vst.msk [vmem:[%s727_s20 + $0xc8] sm:$0xff] %vm449_vm2, %v421_v41 }
 0x101   : > { %v599_v42 = vpop.f32.mrb[12].mxu0 }
 0x102   : > { %464 = vst.msk [vmem:[%s727_s20 + $0x70] sm:$0xff] %vm449_vm2, %v599_v42  ;;  %v615_v43 = vpop.f32.mrb[12].mxu1  ;;  %v370_v44 = vpop.f32.mrb[13].mxu0 }
 0x103   : > { %480 = vst.msk [vmem:[%s727_s20 + $0xf0] sm:$0xff] %vm449_vm2, %v615_v43  ;;  %462 = vst.msk [vmem:[%s727_s20 + $0x60] sm:$0xff] %vm449_vm2, %v370_v44  ;;  %v434_v45 = vpop.f32.mrb[13].mxu1  ;;  %v600_v46 = vpop.f32.mrb[14].mxu0 }
 0x104   : > { %478 = vst.msk [vmem:[%s727_s20 + $0xe0] sm:$0xff] %vm449_vm2, %v434_v45  ;;  %465 = vst.msk [vmem:[%s727_s20 + $0x78] sm:$0xff] %vm449_vm2, %v600_v46  ;;  %v616_v47 = vpop.f32.mrb[14].mxu1  ;;  %v373_v48 = vpop.f32.mrb[15].mxu0 }
 0x105   : > { %481 = vst.msk [vmem:[%s727_s20 + $0xf8] sm:$0xff] %vm449_vm2, %v616_v47  ;;  %463 = vst.msk [vmem:[%s727_s20 + $0x68] sm:$0xff] %vm449_vm2, %v373_v48  ;;  %v437_v49 = vpop.f32.mrb[15].mxu1 }
 0x106   : > { %479 = vst.msk [vmem:[%s727_s20 + $0xe8] sm:$0xff] %vm449_vm2, %v437_v49 }
 0x107 PF: > { %s12_s9 = sadd.s32 1, %s636_s9  }
 0x108   : > { %p9_p4 = scmp.ge.s32.totalorder %s12_s9, 4  }
 0x10a   :  { %11 = sbr.rel (!%p9_p4) target bundleno = 1 (0x1), region = 58 }

// kernel: _lambda_.37
= control target key start
LH: loop header
LB: loop body
LE: loop exit
PB: predicated region body
PF: predicated region fallthrough
CT: control target
= control target key end

     0   :  { %vm124_vm0 = vcmask 1043456   ;;  %vm99_vm1 = vcmask 64512   ;;  %s524_s25 = smov 4   ;;  %vm414_vm2 = vcmask 31744   ;;  %s768_s3 = inlined_call_operand.vmem [shape: bf16[8,4], index: 3, kind: input, shape index: {}]   ;;  %s769_s1 = inlined_call_operand.vmem [shape: f32[128,8], index: 1, kind: input, shape index: {}]   ;;  %s770_s2 = inlined_call_operand.vmem [shape: bf16[8,4], index: 2, kind: input, shape index: {}]   ;;  %s771_s0 = inlined_call_operand.vmem [shape: f32[128,8], index: 0, kind: input, shape index: {}]   ;;  %s772_s4 = inlined_call_operand.vmem [shape: f32[128,8], index: 4, kind: output, shape index: {}]  }
   0x1   :  { %v225_v0 = vld [vmem:[%s768_s3] sm:$0xf]  ;;  %v59_v2 = vld [vmem:[%s769_s1 + $0x8] sm:$0xff]  ;;  %v60_v6 = vld [vmem:[%s769_s1 + $0x10] sm:$0xff] }
   0x2   :  { %v58_v1 = vld [vmem:[%s769_s1] sm:$0xff]  ;;  %522 = vmatprep.subr.msk.bf16.mxu1 %vm124_vm0, %v225_v0  ;;  %v251_v3 = vsel %vm124_vm0, %v225_v0, 0  ;;  %v75_v5 = vmax.f32 %v59_v2, 0.0  ;;  %v61_v7 = vld [vmem:[%s769_s1 + $0x18] sm:$0xff]  ;;  %v76_v9 = vmax.f32 %v60_v6, 0.0  ;;  %v63_v11 = vld [vmem:[%s769_s1 + $0x28] sm:$0xff] }
   0x3   :  { %v74_v4 = vmax.f32 %v58_v1, 0.0  ;;  %v62_v8 = vld [vmem:[%s769_s1 + $0x20] sm:$0xff]  ;;  %504 = vmatpush3.bf16.msra.mxu1 %v251_v3  ;;  %v77_v10 = vmax.f32 %v61_v7, 0.0  ;;  %v64_v13 = vld [vmem:[%s769_s1 + $0x30] sm:$0xff]  ;;  %v79_v15 = vmax.f32 %v63_v11, 0.0  ;;  %v65_v16 = vld [vmem:[%s769_s1 + $0x38] sm:$0xff] }
   0x4   :  { %v78_v12 = vmax.f32 %v62_v8, 0.0  ;;  %v66_v17 = vld [vmem:[%s769_s1 + $0x40] sm:$0xff]  ;;  %v67_v18 = vld [vmem:[%s769_s1 + $0x48] sm:$0xff]  ;;  %v80_v21 = vmax.f32 %v64_v13, 0.0  ;;  %v81_v23 = vmax.f32 %v65_v16, 0.0  ;;  %v20_v28 = vld [vmem:[%s771_s0 + $0x10] sm:$0xff] }
   0x5   :  { %v90_v14 = vpack.c.bf16 %v75_v5, %v74_v4  ;;  %v91_v19 = vpack.c.bf16 %v77_v10, %v76_v9  ;;  %v98_v22 = vld [vmem:[%s770_s2] sm:$0xf]  ;;  %v82_v24 = vmax.f32 %v66_v17, 0.0  ;;  %v83_v25 = vmax.f32 %v67_v18, 0.0  ;;  %v19_v27 = vld [vmem:[%s771_s0 + $0x8] sm:$0xff]  ;;  %v21_v32 = vld [vmem:[%s771_s0 + $0x18] sm:$0xff] }
   0x6   :  { %v92_v20 = vpack.c.bf16 %v79_v15, %v78_v12  ;;  %521 = vmatprep.subr.msk.bf16.mxu0 %vm124_vm0, %v98_v22  ;;  %v18_v26 = vld [vmem:[%s771_s0] sm:$0xff]  ;;  %v126_v29 = vsel %vm124_vm0, %v98_v22, 0  ;;  %v35_v31 = vmax.f32 %v19_v27, 0.0  ;;  %v23_v34 = vld [vmem:[%s771_s0 + $0x28] sm:$0xff]  ;;  %v36_v35 = vmax.f32 %v20_v28, 0.0  ;;  %v24_v40 = vld [vmem:[%s771_s0 + $0x30] sm:$0xff] }
   0x7   :  { %505 = vmatprep.mubr.msk.bf16.mxu1 %vm99_vm1, %v90_v14  ;;  %v34_v30 = vmax.f32 %v18_v26, 0.0  ;;  %v22_v33 = vld [vmem:[%s771_s0 + $0x20] sm:$0xff]  ;;  %486 = vmatpush3.bf16.msra.mxu0 %v126_v29  ;;  %v37_v36 = vmax.f32 %v21_v32, 0.0  ;;  %v39_v39 = vmax.f32 %v23_v34, 0.0  ;;  %v25_v41 = vld [vmem:[%s771_s0 + $0x38] sm:$0xff]  ;;  %v93_v42 = vpack.c.bf16 %v81_v23, %v80_v21  ;;  %v27_v45 = vld [vmem:[%s771_s0 + $0x48] sm:$0xff] }
   0x8   :  { %506 = vmatmul.mubr.msk.bf16.vlgmr.msra.gmra.mrb[0].mxu1 %vm99_vm1, %v91_v19  ;;  %v38_v38 = vmax.f32 %v22_v33, 0.0  ;;  %v26_v44 = vld [vmem:[%s771_s0 + $0x40] sm:$0xff]  ;;  %v94_v46 = vpack.c.bf16 %v83_v25, %v82_v24  ;;  %v68_v47 = vld [vmem:[%s769_s1 + $0x50] sm:$0xff]  ;;  %v69_v48 = vld [vmem:[%s769_s1 + $0x58] sm:$0xff]  ;;  %v40_v52 = vmax.f32 %v24_v40, 0.0  ;;  %v41_v53 = vmax.f32 %v25_v41, 0.0 }
   0x9   :  { %509 = vmatprep.mubr.msk.bf16.mxu1 %vm99_vm1, %v92_v20  ;;  %v50_v37 = vpack.c.bf16 %v35_v31, %v34_v30  ;;  %v51_v43 = vpack.c.bf16 %v37_v36, %v36_v35  ;;  %v70_v50 = vld [vmem:[%s769_s1 + $0x60] sm:$0xff]  ;;  %v71_v51 = vld [vmem:[%s769_s1 + $0x68] sm:$0xff]  ;;  %v42_v54 = vmax.f32 %v26_v44, 0.0  ;;  %v43_v55 = vmax.f32 %v27_v45, 0.0  ;;  %v28_v62 = vld [vmem:[%s771_s0 + $0x50] sm:$0xff] }
   0xa   :  { %v52_v49 = vpack.c.bf16 %v39_v39, %v38_v38  ;;  %v84_v56 = vmax.f32 %v68_v47, 0.0  ;;  %v85_v57 = vmax.f32 %v69_v48, 0.0  ;;  %v86_v58 = vmax.f32 %v70_v50, 0.0  ;;  %v29_v63 = vld [vmem:[%s771_s0 + $0x58] sm:$0xff]  ;;  %v30_v1 = vld [vmem:[%s771_s0 + $0x60] sm:$0xff]  ;;  %v31_v2 = vld [vmem:[%s771_s0 + $0x68] sm:$0xff] }
   0xb   :  { %487 = vmatprep.mubr.msk.bf16.mxu0 %vm99_vm1, %v50_v37  ;;  %v87_v59 = vmax.f32 %v71_v51, 0.0  ;;  %v53_v60 = vpack.c.bf16 %v41_v53, %v40_v52  ;;  %v54_v61 = vpack.c.bf16 %v43_v55, %v42_v54  ;;  %v72_v4 = vld [vmem:[%s769_s1 + $0x70] sm:$0xff]  ;;  %v73_v5 = vld [vmem:[%s769_s1 + $0x78] sm:$0xff]  ;;  %v44_v6 = vmax.f32 %v28_v62, 0.0 }
   0xc   :  { %488 = vmatmul.mubr.msk.bf16.vlgmr.msra.gmra.mrb[0].mxu0 %vm99_vm1, %v51_v43  ;;  %v95_v0 = vpack.c.bf16 %v85_v57, %v84_v56  ;;  %v45_v7 = vmax.f32 %v29_v63, 0.0  ;;  %v46_v8 = vmax.f32 %v30_v1, 0.0  ;;  %v47_v9 = vmax.f32 %v31_v2, 0.0  ;;  %v32_v14 = vld [vmem:[%s771_s0 + $0x70] sm:$0xff]  ;;  %v33_v15 = vld [vmem:[%s771_s0 + $0x78] sm:$0xff] }
   0xd   :  { %491 = vmatprep.mubr.msk.bf16.mxu0 %vm99_vm1, %v52_v49  ;;  %v96_v3 = vpack.c.bf16 %v87_v59, %v86_v58  ;;  %v88_v10 = vmax.f32 %v72_v4, 0.0  ;;  %v89_v11 = vmax.f32 %v73_v5, 0.0  ;;  %v48_v17 = vmax.f32 %v32_v14, 0.0 }
   0xe   :  { %v55_v12 = vpack.c.bf16 %v45_v7, %v44_v6  ;;  %v56_v13 = vpack.c.bf16 %v47_v9, %v46_v8  ;;  %v49_v18 = vmax.f32 %v33_v15, 0.0 }
   0xf   :  { %v97_v16 = vpack.c.bf16 %v89_v11, %v88_v10 }
  0x10   :  { %510 = vmatmul.mubr.msk.bf16.gmra.mrb[4].mxu1 %vm99_vm1, %v93_v42  ;;  %v57_v19 = vpack.c.bf16 %v49_v18, %v48_v17 }
  0x11   :  { %513 = vmatprep.mubr.msk.bf16.mxu1 %vm99_vm1, %v94_v46 }
  0x14   :  { %492 = vmatmul.mubr.msk.bf16.gmra.mrb[4].mxu0 %vm99_vm1, %v53_v60 }
  0x15   :  { %495 = vmatprep.mubr.msk.bf16.mxu0 %vm99_vm1, %v54_v61 }
  0x18   :  { %514 = vmatmul.mubr.msk.bf16.gmra.mrb[8].mxu1 %vm99_vm1, %v95_v0 }
  0x19   :  { %517 = vmatprep.mubr.msk.bf16.mxu1 %vm99_vm1, %v96_v3 }
  0x1c   :  { %496 = vmatmul.mubr.msk.bf16.gmra.mrb[8].mxu0 %vm99_vm1, %v55_v12 }
  0x1d   :  { %499 = vmatprep.mubr.msk.bf16.mxu0 %vm99_vm1, %v56_v13 }
  0x20   :  { %518 = vmatmul.mubr.msk.bf16.gmra.mrb[12].mxu1 %vm99_vm1, %v97_v16 }
  0x24   :  { %500 = vmatmul.mubr.msk.bf16.gmra.mrb[12].mxu0 %vm99_vm1, %v57_v19 }
  0xdb   :  { %v507_v20 = vpop.f32.mrb[0].mxu1 }
  0xdc   :  { %370 = vrot.lane.b32.xlu1 %v507_v20, %s524_s25  ;;  %v287_v21 = vpop.f32.mrb[1].mxu1 }
  0xdd   :  { %366 = vrot.lane.b32.xlu0 %v287_v21, %s524_s25  ;;  %v508_v22 = vpop.f32.mrb[2].mxu1 }
  0xde   :  { %v290_v23 = vpop.f32.mrb[3].mxu1 }
  0xdf   :  { %v489_v24 = vpop.f32.mrb[0].mxu0 }
  0xe0   :  { %372 = vrot.lane.b32.xlu1 %v508_v22, %s524_s25  ;;  %v162_v25 = vpop.f32.mrb[1].mxu0 }
  0xe1   :  { %368 = vrot.lane.b32.xlu0 %v290_v23, %s524_s25  ;;  %v490_v27 = vpop.f32.mrb[2].mxu0 }
  0xe2   :  { %v165_v29 = vpop.f32.mrb[3].mxu0 }
  0xe3   :  { %v511_v26 = vpop.f32.mrb[4].mxu1 }
  0xe4   :  { %v303_v28 = vpop.f32.mrb[5].mxu1 }
  0xe5   :  { %378 = vrot.lane.b32.xlu0 %v511_v26, %s524_s25  ;;  %v512_v30 = vpop.f32.mrb[6].mxu1 }
  0xe6   :  { %380 = vrot.lane.b32.xlu1 %v512_v30, %s524_s25  ;;  %v306_v31 = vpop.f32.mrb[7].mxu1 }
  0xe7   :  { %v493_v32 = vpop.f32.mrb[4].mxu0 }
  0xe8   :  { %v178_v33 = vpop.f32.mrb[5].mxu0 }
  0xe9   :  { %374 = vrot.lane.b32.xlu0 %v303_v28, %s524_s25  ;;  %v494_v35 = vpop.f32.mrb[6].mxu0 }
  0xea   :  { %376 = vrot.lane.b32.xlu1 %v306_v31, %s524_s25  ;;  %v181_v37 = vpop.f32.mrb[7].mxu0 }
  0xeb   :  { %v515_v34 = vpop.f32.mrb[8].mxu1 }
  0xec   :  { %v319_v36 = vpop.f32.mrb[9].mxu1 }
  0xed   :  { %386 = vrot.lane.b32.xlu0 %v515_v34, %s524_s25  ;;  %v516_v38 = vpop.f32.mrb[10].mxu1 }
  0xee   :  { %388 = vrot.lane.b32.xlu1 %v516_v38, %s524_s25  ;;  %v322_v39 = vpop.f32.mrb[11].mxu1 }
  0xef   :  { %v497_v40 = vpop.f32.mrb[8].mxu0 }
  0xf0   :  { %v194_v41 = vpop.f32.mrb[9].mxu0 }
  0xf1   :  { %382 = vrot.lane.b32.xlu0 %v319_v36, %s524_s25  ;;  %v498_v43 = vpop.f32.mrb[10].mxu0 }
  0xf2   :  { %384 = vrot.lane.b32.xlu1 %v322_v39, %s524_s25  ;;  %v197_v45 = vpop.f32.mrb[11].mxu0 }
  0xf3   :  { %v519_v42 = vpop.f32.mrb[12].mxu1 }
  0xf4   :  { %v335_v44 = vpop.f32.mrb[13].mxu1 }
  0xf5   :  { %390 = vrot.lane.b32.xlu0 %v335_v44, %s524_s25  ;;  %v520_v46 = vpop.f32.mrb[14].mxu1 }
  0xf6   :  { %v338_v47 = vpop.f32.mrb[15].mxu1 }
  0xf7   :  { %392 = vrot.lane.b32.xlu1 %v338_v47, %s524_s25  ;;  %v501_v48 = vpop.f32.mrb[12].mxu0 }
  0xf8   :  { %v210_v49 = vpop.f32.mrb[13].mxu0 }
  0xf9   :  { %394 = vrot.lane.b32.xlu0 %v519_v42, %s524_s25  ;;  %v502_v50 = vpop.f32.mrb[14].mxu0 }
  0xfa   :  { %v213_v51 = vpop.f32.mrb[15].mxu0 }
  0xfb   :  { %396 = vrot.lane.b32.xlu1 %v520_v46, %s524_s25 }
 0x14e   :  { %v371_v52 = vpop.permute.xlu1 %370 }
 0x14f   :  { %v417_v53 = vsel %vm414_vm2, %v489_v24, %v371_v52  ;;  %v367_v54 = vpop.permute.xlu0 %366 }
 0x150   :  { %433 = vst.msk [vmem:[%s772_s4 + $0x10] sm:$0xff] %vm99_vm1, %v417_v53  ;;  %v415_v55 = vsel %vm414_vm2, %v162_v25, %v367_v54 }
 0x151   :  { %431 = vst.msk [vmem:[%s772_s4] sm:$0xff] %vm99_vm1, %v415_v55 }
 0x152   :  { %v373_v56 = vpop.permute.xlu1 %372 }
 0x153   :  { %v418_v57 = vsel %vm414_vm2, %v490_v27, %v373_v56  ;;  %v369_v58 = vpop.permute.xlu0 %368 }
 0x154   :  { %434 = vst.msk [vmem:[%s772_s4 + $0x18] sm:$0xff] %vm99_vm1, %v418_v57  ;;  %v416_v59 = vsel %vm414_vm2, %v165_v29, %v369_v58 }
 0x155   :  { %432 = vst.msk [vmem:[%s772_s4 + $0x8] sm:$0xff] %vm99_vm1, %v416_v59 }
 0x157   :  { %v379_v60 = vpop.permute.xlu0 %378 }
 0x158   :  { %v421_v61 = vsel %vm414_vm2, %v493_v32, %v379_v60  ;;  %v381_v62 = vpop.permute.xlu1 %380 }
 0x159   :  { %437 = vst.msk [vmem:[%s772_s4 + $0x30] sm:$0xff] %vm99_vm1, %v421_v61  ;;  %v422_v63 = vsel %vm414_vm2, %v494_v35, %v381_v62 }
 0x15a   :  { %438 = vst.msk [vmem:[%s772_s4 + $0x38] sm:$0xff] %vm99_vm1, %v422_v63 }
 0x15b   :  { %v375_v0 = vpop.permute.xlu0 %374 }
 0x15c   :  { %v419_v1 = vsel %vm414_vm2, %v178_v33, %v375_v0  ;;  %v377_v2 = vpop.permute.xlu1 %376 }
 0x15d   :  { %435 = vst.msk [vmem:[%s772_s4 + $0x20] sm:$0xff] %vm99_vm1, %v419_v1  ;;  %v420_v3 = vsel %vm414_vm2, %v181_v37, %v377_v2 }
 0x15e   :  { %436 = vst.msk [vmem:[%s772_s4 + $0x28] sm:$0xff] %vm99_vm1, %v420_v3 }
 0x15f   :  { %v387_v4 = vpop.permute.xlu0 %386 }
 0x160   :  { %v425_v5 = vsel %vm414_vm2, %v497_v40, %v387_v4  ;;  %v389_v6 = vpop.permute.xlu1 %388 }
 0x161   :  { %441 = vst.msk [vmem:[%s772_s4 + $0x50] sm:$0xff] %vm99_vm1, %v425_v5  ;;  %v426_v7 = vsel %vm414_vm2, %v498_v43, %v389_v6 }
 0x162   :  { %442 = vst.msk [vmem:[%s772_s4 + $0x58] sm:$0xff] %vm99_vm1, %v426_v7 }
 0x163   :  { %v383_v8 = vpop.permute.xlu0 %382 }
 0x164   :  { %v423_v9 = vsel %vm414_vm2, %v194_v41, %v383_v8  ;;  %v385_v10 = vpop.permute.xlu1 %384 }
 0x165   :  { %439 = vst.msk [vmem:[%s772_s4 + $0x40] sm:$0xff] %vm99_vm1, %v423_v9  ;;  %v424_v11 = vsel %vm414_vm2, %v197_v45, %v385_v10 }
 0x166   :  { %440 = vst.msk [vmem:[%s772_s4 + $0x48] sm:$0xff] %vm99_vm1, %v424_v11 }
 0x167   :  { %v391_v12 = vpop.permute.xlu0 %390 }
 0x168   :  { %v427_v13 = vsel %vm414_vm2, %v210_v49, %v391_v12 }
 0x169   :  { %443 = vst.msk [vmem:[%s772_s4 + $0x60] sm:$0xff] %vm99_vm1, %v427_v13  ;;  %v393_v14 = vpop.permute.xlu1 %392 }
 0x16a   :  { %v428_v15 = vsel %vm414_vm2, %v213_v51, %v393_v14 }
 0x16b   :  { %444 = vst.msk [vmem:[%s772_s4 + $0x68] sm:$0xff] %vm99_vm1, %v428_v15  ;;  %v395_v16 = vpop.permute.xlu0 %394 }
 0x16c   :  { %v429_v17 = vsel %vm414_vm2, %v501_v48, %v395_v16 }
 0x16d   :  { %445 = vst.msk [vmem:[%s772_s4 + $0x70] sm:$0xff] %vm99_vm1, %v429_v17  ;;  %v397_v18 = vpop.permute.xlu1 %396 }
 0x16e   :  { %v430_v19 = vsel %vm414_vm2, %v502_v50, %v397_v18 }
 0x16f   :  { %446 = vst.msk [vmem:[%s772_s4 + $0x78] sm:$0xff] %vm99_vm1, %v430_v19 }

// kernel: _lambda_.32
= control target key start
LH: loop header
LB: loop body
LE: loop exit
PB: predicated region body
PF: predicated region fallthrough
CT: control target
= control target key end

     0   :  { %s1362_s18 = smov 0   ;;  %s1364_s19 = smov 0   ;;  %s1517_s0 = inlined_call_operand.vmem [shape: bf16[2,128,8], index: 0, kind: input, shape index: {}]   ;;  %s1518_s1 = inlined_call_operand.vmem [shape: bf16[2,128,8], index: 1, kind: input, shape index: {}]   ;;  %s1519_s2 = inlined_call_operand.vmem [shape: bf16[2,8,8], index: 2, kind: input, shape index: {}]   ;;  %s1520_s3 = inlined_call_operand.vmem [shape: bf16[2,8,8], index: 3, kind: input, shape index: {}]   ;;  %s1521_s4 = inlined_call_operand.vmem [shape: bf16[2,128,8], index: 4, kind: output, shape index: {0}]   ;;  %s1522_s5 = inlined_call_operand.vmem [shape: bf16[2,128,8], index: 5, kind: output, shape index: {1}]  }
   0x1   :  { %s1366_s20 = smov 0  }
   0x2 LB: > { %s28_s21 = sadd.s32 1, %s1326_s19  ;;  %p1099_p0 = scmp.ge.s32.totalorder %s1330_s20, 1  ;;  %s1330_s20 = sphi %s1366_s20, %s16_s20   ;;  %s1326_s19 = sphi %s1364_s19, %s1524_s19   ;;  %s1322_s18 = sphi %s1362_s18, %s1523_s18  }
   0x3   : > { %p30_p1 = scmp.ge.s32.totalorder %s28_s21, 2  ;;  %p248_p2 = scmp.lt.s32.totalorder %s1330_s20, 3 }
   0x5   : > { %s1526_s21 = smov (%p30_p1, %s28_s21), 0  ;;  %p249_p3 = pnand %p1099_p0, %p248_p2 }
   0x6   : > { %p311_p4 = scmp.lt.s32.totalorder (!%p249_p3), %s1322_s18, 1  ;;  %vm441_vm0 = vcmask (!%p249_p3), 1043456   ;;  %vm416_vm1 = vcmask (!%p249_p3), 64512   ;;  %vm803_vm2 = vcmask (!%p249_p3), 60416  }
   0x7   : > { %252 = sbr.rel (%p249_p3) target bundleno = 268 (0x10c), region = 36 }
   0xe   : > { %s1528_s18 = smov (!%p311_p4, %s1322_s18), 1 }
   0xf   : > { %s1380_s22 = sshll.u32 %s1528_s18, 6  ;;  %s1104_s23 = sshll.u32 %s1528_s18, 2 }
  0x10   : > { %s1386_s26 = scalar_lea.vmem %s1517_s0, %s1380_s22  ;;  %s1392_s29 = scalar_lea.vmem %s1518_s1, %s1380_s22 }
  0x11   : > { %s333_s7 = scalar_lea.vmem %s1519_s2, %s1104_s23  ;;  %v1292_v0 = vld [vmem:[%s1386_s26] sm:$0xff]   ;;  %s337_s10 = scalar_lea.vmem %s1520_s3, %s1104_s23  ;;  %v1294_v6 = vld [vmem:[%s1386_s26 + $0x8] sm:$0xff]   ;;  %v1296_v8 = vld [vmem:[%s1386_s26 + $0x10] sm:$0xff]  }
  0x12   : > { %v375_v1 = vld [vmem:[%s333_s7] sm:$0xf]  ;;  %1232 = vmatprep.mubr.msk.bf16.mxu0 %vm416_vm1, %v1292_v0  ;;  %v1295_v7 = vld [vmem:[%s1392_s29 + $0x8] sm:$0xff]   ;;  %v1297_v9 = vld [vmem:[%s1392_s29 + $0x10] sm:$0xff]   ;;  %s1436_s13 = scalar_lea.vmem %s1521_s4, %s1380_s22  ;;  %s1442_s16 = scalar_lea.vmem %s1522_s5, %s1380_s22 }
  0x13   : > { %1266 = vmatprep.subr.msk.bf16.mxu0 %vm441_vm0, %v375_v1  ;;  %v558_v2 = vld [vmem:[%s337_s10] sm:$0xf]  ;;  %v443_v3 = vsel %vm441_vm0, %v375_v1, 0  ;;  %v1298_v10 = vld [vmem:[%s1386_s26 + $0x18] sm:$0xff]   ;;  %v1302_v14 = vld [vmem:[%s1386_s26 + $0x28] sm:$0xff]  }
  0x14   : > { %v1293_v4 = vld [vmem:[%s1392_s29] sm:$0xff]   ;;  %1267 = vmatprep.subr.msk.bf16.mxu1 %vm441_vm0, %v558_v2  ;;  %1231 = vmatpush3.bf16.msra.mxu0 %v443_v3  ;;  %v624_v5 = vsel %vm441_vm0, %v558_v2, 0  ;;  %v1299_v11 = vld [vmem:[%s1392_s29 + $0x18] sm:$0xff]   ;;  %v1303_v15 = vld [vmem:[%s1392_s29 + $0x28] sm:$0xff]  }
  0x15   : > { %1249 = vmatpush3.bf16.msra.mxu1 %v624_v5  ;;  %1250 = vmatprep.mubr.msk.bf16.mxu1 %vm416_vm1, %v1293_v4  ;;  %v1300_v12 = vld [vmem:[%s1386_s26 + $0x20] sm:$0xff]   ;;  %v1304_v16 = vld [vmem:[%s1386_s26 + $0x30] sm:$0xff]   ;;  %v1306_v18 = vld [vmem:[%s1386_s26 + $0x38] sm:$0xff]  }
  0x16   : > { %v1301_v13 = vld [vmem:[%s1392_s29 + $0x20] sm:$0xff]   ;;  %v1305_v17 = vld [vmem:[%s1392_s29 + $0x30] sm:$0xff]   ;;  %v1307_v19 = vld [vmem:[%s1392_s29 + $0x38] sm:$0xff]  }
  0x17   : > { %1233 = vmatmul.mubr.msk.bf16.vlgmr.msra.gmra.mrb[0].mxu0 %vm416_vm1, %v1294_v6 }
  0x18   : > { %1251 = vmatmul.mubr.msk.bf16.vlgmr.msra.gmra.mrb[0].mxu1 %vm416_vm1, %v1295_v7  ;;  %1236 = vmatprep.mubr.msk.bf16.mxu0 %vm416_vm1, %v1296_v8 }
  0x19   : > { %1254 = vmatprep.mubr.msk.bf16.mxu1 %vm416_vm1, %v1297_v9 }
  0x1f   : > { %1237 = vmatmul.mubr.msk.bf16.gmra.mrb[4].mxu0 %vm416_vm1, %v1298_v10 }
  0x20   : > { %1255 = vmatmul.mubr.msk.bf16.gmra.mrb[4].mxu1 %vm416_vm1, %v1299_v11  ;;  %1240 = vmatprep.mubr.msk.bf16.mxu0 %vm416_vm1, %v1300_v12 }
  0x21   : > { %1258 = vmatprep.mubr.msk.bf16.mxu1 %vm416_vm1, %v1301_v13 }
  0x27   : > { %1241 = vmatmul.mubr.msk.bf16.gmra.mrb[8].mxu0 %vm416_vm1, %v1302_v14 }
  0x28   : > { %1259 = vmatmul.mubr.msk.bf16.gmra.mrb[8].mxu1 %vm416_vm1, %v1303_v15  ;;  %1244 = vmatprep.mubr.msk.bf16.mxu0 %vm416_vm1, %v1304_v16 }
  0x29   : > { %1262 = vmatprep.mubr.msk.bf16.mxu1 %vm416_vm1, %v1305_v17 }
  0x2f   : > { %1245 = vmatmul.mubr.msk.bf16.gmra.mrb[12].mxu0 %vm416_vm1, %v1306_v18 }
  0x30   : > { %1263 = vmatmul.mubr.msk.bf16.gmra.mrb[12].mxu1 %vm416_vm1, %v1307_v19 }
  0xea   : > { %v1234_v20 = vpop.f32.mrb[0].mxu0 }
  0xeb   : > { %v725_v21 = vmax.f32 %v1234_v20, 0.0  ;;  %v1252_v22 = vpop.f32.mrb[0].mxu1  ;;  %v479_v23 = vpop.f32.mrb[1].mxu0 }
  0xec   : > { %v822_v24 = vmax.f32 %v1252_v22, 0.0  ;;  %v723_v25 = vmax.f32 %v479_v23, 0.0  ;;  %v660_v26 = vpop.f32.mrb[1].mxu1  ;;  %v1235_v27 = vpop.f32.mrb[2].mxu0 }
  0xed   : > { %v1182_v28 = vpack.c.bf16 %v725_v21, %v725_v21  ;;  %v820_v29 = vmax.f32 %v660_v26, 0.0  ;;  %v726_v30 = vmax.f32 %v1235_v27, 0.0  ;;  %v1253_v31 = vpop.f32.mrb[2].mxu1  ;;  %v482_v32 = vpop.f32.mrb[3].mxu0 }
  0xee   : > { %v1198_v33 = vpack.c.bf16 %v822_v24, %v822_v24  ;;  %v1180_v34 = vpack.c.bf16 %v723_v25, %v723_v25  ;;  %v823_v35 = vmax.f32 %v1253_v31, 0.0  ;;  %v724_v36 = vmax.f32 %v482_v32, 0.0  ;;  %v663_v37 = vpop.f32.mrb[3].mxu1 }
  0xef   : > { %806 = vst.msk [vmem:[%s1436_s13 + $0x8] sm:$0xf] %vm803_vm2, %v1182_v28  ;;  %v1196_v38 = vpack.c.bf16 %v820_v29, %v820_v29  ;;  %v1183_v39 = vpack.c.bf16 %v726_v30, %v726_v30  ;;  %v821_v40 = vmax.f32 %v663_v37, 0.0 }
  0xf0   : > { %902 = vst.msk [vmem:[%s1442_s16 + $0x8] sm:$0xf] %vm803_vm2, %v1198_v33  ;;  %804 = vst.msk [vmem:[%s1436_s13] sm:$0xf] %vm803_vm2, %v1180_v34  ;;  %v1199_v41 = vpack.c.bf16 %v823_v35, %v823_v35  ;;  %v1181_v42 = vpack.c.bf16 %v724_v36, %v724_v36 }
  0xf1   : > { %900 = vst.msk [vmem:[%s1442_s16] sm:$0xf] %vm803_vm2, %v1196_v38  ;;  %807 = vst.msk [vmem:[%s1436_s13 + $0xc] sm:$0xf] %vm803_vm2, %v1183_v39  ;;  %v1197_v43 = vpack.c.bf16 %v821_v40, %v821_v40 }
  0xf2   : > { %903 = vst.msk [vmem:[%s1442_s16 + $0xc] sm:$0xf] %vm803_vm2, %v1199_v41  ;;  %805 = vst.msk [vmem:[%s1436_s13 + $0x4] sm:$0xf] %vm803_vm2, %v1181_v42  ;;  %v1238_v44 = vpop.f32.mrb[4].mxu0 }
  0xf3   : > { %901 = vst.msk [vmem:[%s1442_s16 + $0x4] sm:$0xf] %vm803_vm2, %v1197_v43  ;;  %v729_v45 = vmax.f32 %v1238_v44, 0.0  ;;  %v1256_v46 = vpop.f32.mrb[4].mxu1  ;;  %v495_v47 = vpop.f32.mrb[5].mxu0 }
  0xf4   : > { %v826_v48 = vmax.f32 %v1256_v46, 0.0  ;;  %v727_v49 = vmax.f32 %v495_v47, 0.0  ;;  %v676_v50 = vpop.f32.mrb[5].mxu1  ;;  %v1239_v51 = vpop.f32.mrb[6].mxu0 }
  0xf5   : > { %v1186_v52 = vpack.c.bf16 %v729_v45, %v729_v45  ;;  %v824_v53 = vmax.f32 %v676_v50, 0.0  ;;  %v730_v54 = vmax.f32 %v1239_v51, 0.0  ;;  %v1257_v55 = vpop.f32.mrb[6].mxu1  ;;  %v498_v56 = vpop.f32.mrb[7].mxu0 }
  0xf6   : > { %v1202_v57 = vpack.c.bf16 %v826_v48, %v826_v48  ;;  %v1184_v58 = vpack.c.bf16 %v727_v49, %v727_v49  ;;  %v827_v59 = vmax.f32 %v1257_v55, 0.0  ;;  %v728_v60 = vmax.f32 %v498_v56, 0.0  ;;  %v679_v61 = vpop.f32.mrb[7].mxu1 }
  0xf7   : > { %810 = vst.msk [vmem:[%s1436_s13 + $0x18] sm:$0xf] %vm803_vm2, %v1186_v52  ;;  %v1200_v62 = vpack.c.bf16 %v824_v53, %v824_v53  ;;  %v1187_v63 = vpack.c.bf16 %v730_v54, %v730_v54  ;;  %v825_v0 = vmax.f32 %v679_v61, 0.0 }
  0xf8   : > { %906 = vst.msk [vmem:[%s1442_s16 + $0x18] sm:$0xf] %vm803_vm2, %v1202_v57  ;;  %808 = vst.msk [vmem:[%s1436_s13 + $0x10] sm:$0xf] %vm803_vm2, %v1184_v58  ;;  %v1203_v1 = vpack.c.bf16 %v827_v59, %v827_v59  ;;  %v1185_v2 = vpack.c.bf16 %v728_v60, %v728_v60 }
  0xf9   : > { %904 = vst.msk [vmem:[%s1442_s16 + $0x10] sm:$0xf] %vm803_vm2, %v1200_v62  ;;  %811 = vst.msk [vmem:[%s1436_s13 + $0x1c] sm:$0xf] %vm803_vm2, %v1187_v63  ;;  %v1201_v3 = vpack.c.bf16 %v825_v0, %v825_v0 }
  0xfa   : > { %907 = vst.msk [vmem:[%s1442_s16 + $0x1c] sm:$0xf] %vm803_vm2, %v1203_v1  ;;  %809 = vst.msk [vmem:[%s1436_s13 + $0x14] sm:$0xf] %vm803_vm2, %v1185_v2  ;;  %v1242_v4 = vpop.f32.mrb[8].mxu0 }
  0xfb   : > { %905 = vst.msk [vmem:[%s1442_s16 + $0x14] sm:$0xf] %vm803_vm2, %v1201_v3  ;;  %v733_v5 = vmax.f32 %v1242_v4, 0.0  ;;  %v1260_v6 = vpop.f32.mrb[8].mxu1  ;;  %v511_v7 = vpop.f32.mrb[9].mxu0 }
  0xfc   : > { %v830_v8 = vmax.f32 %v1260_v6, 0.0  ;;  %v731_v9 = vmax.f32 %v511_v7, 0.0  ;;  %v692_v10 = vpop.f32.mrb[9].mxu1  ;;  %v1243_v11 = vpop.f32.mrb[10].mxu0 }
  0xfd   : > { %v1190_v12 = vpack.c.bf16 %v733_v5, %v733_v5  ;;  %v828_v13 = vmax.f32 %v692_v10, 0.0  ;;  %v734_v14 = vmax.f32 %v1243_v11, 0.0  ;;  %v1261_v15 = vpop.f32.mrb[10].mxu1  ;;  %v514_v16 = vpop.f32.mrb[11].mxu0 }
  0xfe   : > { %v1206_v17 = vpack.c.bf16 %v830_v8, %v830_v8  ;;  %v1188_v18 = vpack.c.bf16 %v731_v9, %v731_v9  ;;  %v831_v19 = vmax.f32 %v1261_v15, 0.0  ;;  %v732_v20 = vmax.f32 %v514_v16, 0.0  ;;  %v695_v21 = vpop.f32.mrb[11].mxu1 }
  0xff   : > { %814 = vst.msk [vmem:[%s1436_s13 + $0x28] sm:$0xf] %vm803_vm2, %v1190_v12  ;;  %v1204_v22 = vpack.c.bf16 %v828_v13, %v828_v13  ;;  %v1191_v23 = vpack.c.bf16 %v734_v14, %v734_v14  ;;  %v829_v24 = vmax.f32 %v695_v21, 0.0 }
 0x100   : > { %910 = vst.msk [vmem:[%s1442_s16 + $0x28] sm:$0xf] %vm803_vm2, %v1206_v17  ;;  %812 = vst.msk [vmem:[%s1436_s13 + $0x20] sm:$0xf] %vm803_vm2, %v1188_v18  ;;  %v1207_v25 = vpack.c.bf16 %v831_v19, %v831_v19  ;;  %v1189_v26 = vpack.c.bf16 %v732_v20, %v732_v20 }
 0x101   : > { %908 = vst.msk [vmem:[%s1442_s16 + $0x20] sm:$0xf] %vm803_vm2, %v1204_v22  ;;  %815 = vst.msk [vmem:[%s1436_s13 + $0x2c] sm:$0xf] %vm803_vm2, %v1191_v23  ;;  %v1205_v27 = vpack.c.bf16 %v829_v24, %v829_v24 }
 0x102   : > { %911 = vst.msk [vmem:[%s1442_s16 + $0x2c] sm:$0xf] %vm803_vm2, %v1207_v25  ;;  %813 = vst.msk [vmem:[%s1436_s13 + $0x24] sm:$0xf] %vm803_vm2, %v1189_v26  ;;  %v1246_v28 = vpop.f32.mrb[12].mxu0 }
 0x103   : > { %909 = vst.msk [vmem:[%s1442_s16 + $0x24] sm:$0xf] %vm803_vm2, %v1205_v27  ;;  %v737_v29 = vmax.f32 %v1246_v28, 0.0  ;;  %v1264_v30 = vpop.f32.mrb[12].mxu1  ;;  %v527_v31 = vpop.f32.mrb[13].mxu0 }
 0x104   : > { %v834_v32 = vmax.f32 %v1264_v30, 0.0  ;;  %v735_v33 = vmax.f32 %v527_v31, 0.0  ;;  %v708_v34 = vpop.f32.mrb[13].mxu1  ;;  %v1247_v35 = vpop.f32.mrb[14].mxu0 }
 0x105   : > { %v1194_v36 = vpack.c.bf16 %v737_v29, %v737_v29  ;;  %v832_v37 = vmax.f32 %v708_v34, 0.0  ;;  %v738_v38 = vmax.f32 %v1247_v35, 0.0  ;;  %v1265_v39 = vpop.f32.mrb[14].mxu1  ;;  %v530_v40 = vpop.f32.mrb[15].mxu0 }
 0x106   : > { %v1210_v41 = vpack.c.bf16 %v834_v32, %v834_v32  ;;  %v1192_v42 = vpack.c.bf16 %v735_v33, %v735_v33  ;;  %v835_v43 = vmax.f32 %v1265_v39, 0.0  ;;  %v736_v44 = vmax.f32 %v530_v40, 0.0  ;;  %v711_v45 = vpop.f32.mrb[15].mxu1 }
 0x107   : > { %818 = vst.msk [vmem:[%s1436_s13 + $0x38] sm:$0xf] %vm803_vm2, %v1194_v36  ;;  %v1208_v46 = vpack.c.bf16 %v832_v37, %v832_v37  ;;  %v1195_v47 = vpack.c.bf16 %v738_v38, %v738_v38  ;;  %v833_v48 = vmax.f32 %v711_v45, 0.0 }
 0x108   : > { %914 = vst.msk [vmem:[%s1442_s16 + $0x38] sm:$0xf] %vm803_vm2, %v1210_v41  ;;  %816 = vst.msk [vmem:[%s1436_s13 + $0x30] sm:$0xf] %vm803_vm2, %v1192_v42  ;;  %v1211_v49 = vpack.c.bf16 %v835_v43, %v835_v43  ;;  %v1193_v50 = vpack.c.bf16 %v736_v44, %v736_v44 }
 0x109   : > { %912 = vst.msk [vmem:[%s1442_s16 + $0x30] sm:$0xf] %vm803_vm2, %v1208_v46  ;;  %819 = vst.msk [vmem:[%s1436_s13 + $0x3c] sm:$0xf] %vm803_vm2, %v1195_v47  ;;  %v1209_v51 = vpack.c.bf16 %v833_v48, %v833_v48 }
 0x10a   : > { %915 = vst.msk [vmem:[%s1442_s16 + $0x3c] sm:$0xf] %vm803_vm2, %v1211_v49  ;;  %817 = vst.msk [vmem:[%s1436_s13 + $0x34] sm:$0xf] %vm803_vm2, %v1193_v50 }
 0x10b   : > { %913 = vst.msk [vmem:[%s1442_s16 + $0x34] sm:$0xf] %vm803_vm2, %v1209_v51 }
 0x10c PF: > { %s16_s20 = sadd.s32 1, %s1330_s20   ;;  %s1523_s18 = smov %s1326_s19 }
 0x10d   : > { %p13_p5 = scmp.ge.s32.totalorder %s16_s20, 4   ;;  %s1524_s19 = smov %s1526_s21 }
 0x10f   :  { %15 = sbr.rel (!%p13_p5) target bundleno = 2 (0x2), region = 87 }

// kernel: _lambda_.38
= control target key start
LH: loop header
LB: loop body
LE: loop exit
PB: predicated region body
PF: predicated region fallthrough
CT: control target
= control target key end

     0   :  { %vm18_vm0 = vcmask 58368   ;;  %vm37_vm1 = vcmask 64512   ;;  %v190_v0 = vmov 0.0   ;;  %vm191_vm2 = vmmov 0   ;;  %s289_s0 = inlined_call_operand.vmem [shape: f32[2,64,8], index: 0, kind: input, shape index: {}]   ;;  %s290_s1 = inlined_call_operand.vmem [shape: f32[8,8], index: 1, kind: input, shape index: {}]   ;;  %s291_s2 = inlined_call_operand.vmem [shape: f32[1,8], index: 2, kind: input, shape index: {}]   ;;  %s292_s3 = inlined_call_operand.vmem [shape: f32[2,8], index: 3, kind: output, shape index: {}]  }
   0x1   :  { %19 = vst.msk [vmem:[#allocation2] sm:$0x3] %vm18_vm0, %v190_v0  ;;  %v21_v1 = vld [vmem:[%s289_s0] sm:$0xff]  ;;  %v22_v2 = vld [vmem:[%s289_s0 + $0x8] sm:$0xff]  ;;  %v23_v3 = vld [vmem:[%s289_s0 + $0x10] sm:$0xff]  ;;  %183 = vmatprep.subr.mxu0 %v190_v0  ;;  %185 = vmatprep.mubr.msk.f32.mxu0 %vm191_vm2, %v190_v0  ;;  %vm82_vm3 = vcmask 1041409  }
   0x2   :  { %v24_v4 = vld [vmem:[%s289_s0 + $0x18] sm:$0xff]  ;;  %v38_v5 = vsel %vm37_vm1, %v21_v1, 0.0  ;;  %v39_v6 = vsel %vm37_vm1, %v22_v2, 0.0  ;;  %v41_v7 = vsel %vm37_vm1, %v23_v3, 0.0  ;;  %v25_v8 = vld [vmem:[%s289_s0 + $0x20] sm:$0xff]  ;;  %v30_v11 = vld [vmem:[%s289_s0 + $0x48] sm:$0xff] }
   0x3   :  { %v29_v9 = vld [vmem:[%s289_s0 + $0x40] sm:$0xff]  ;;  %v40_v10 = vadd.f32 %v39_v6, %v38_v5  ;;  %v31_v12 = vld [vmem:[%s289_s0 + $0x50] sm:$0xff]  ;;  %v32_v13 = vld [vmem:[%s289_s0 + $0x58] sm:$0xff]  ;;  %v43_v14 = vsel %vm37_vm1, %v24_v4, 0.0  ;;  %v60_v18 = vsel %vm37_vm1, %v30_v11, 0.0  ;;  %v45_v21 = vsel %vm37_vm1, %v25_v8, 0.0 }
   0x4   :  { %v59_v15 = vsel %vm37_vm1, %v29_v9, 0.0  ;;  %v26_v16 = vld [vmem:[%s289_s0 + $0x28] sm:$0xff]  ;;  %v62_v19 = vsel %vm37_vm1, %v31_v12, 0.0  ;;  %v33_v20 = vld [vmem:[%s289_s0 + $0x60] sm:$0xff]  ;;  %v27_v24 = vld [vmem:[%s289_s0 + $0x30] sm:$0xff]  ;;  %v64_v26 = vsel %vm37_vm1, %v32_v13, 0.0 }
   0x5   :  { %v42_v17 = vadd.f32 %v41_v7, %v40_v10  ;;  %v61_v22 = vadd.f32 %v60_v18, %v59_v15  ;;  %v93_v23 = vld [vmem:[%s290_s1] sm:$0xff]  ;;  %v34_v27 = vld [vmem:[%s289_s0 + $0x68] sm:$0xff]  ;;  %v47_v28 = vsel %vm37_vm1, %v26_v16, 0.0  ;;  %v28_v30 = vld [vmem:[%s289_s0 + $0x38] sm:$0xff]  ;;  %v66_v32 = vsel %vm37_vm1, %v33_v20, 0.0 }
   0x6   :  { %184 = vmatpush3.msra.mxu0 %v93_v23  ;;  %v35_v33 = vld [vmem:[%s289_s0 + $0x70] sm:$0xff]  ;;  %v49_v34 = vsel %vm37_vm1, %v27_v24, 0.0  ;;  %v68_v37 = vsel %vm37_vm1, %v34_v27, 0.0  ;;  %v36_v38 = vld [vmem:[%s289_s0 + $0x78] sm:$0xff]  ;;  %v51_v39 = vsel %vm37_vm1, %v28_v30, 0.0 }
   0x7   :  { %v44_v25 = vadd.f32 %v43_v14, %v42_v17  ;;  %v63_v29 = vadd.f32 %v62_v19, %v61_v22  ;;  %v70_v42 = vsel %vm37_vm1, %v35_v33, 0.0  ;;  %v72_v45 = vsel %vm37_vm1, %v36_v38, 0.0  ;;  %v179_v1 = vld [vmem:[%s291_s2] ss:$0 sm:$0xff] }
   0x8   :  { %v20_v59 = vld [vmem:[#allocation2] sm:$0x3] }
   0x9   :  { %v46_v31 = vadd.f32 %v45_v21, %v44_v25  ;;  %v65_v35 = vadd.f32 %v64_v26, %v63_v29 }
   0xb   :  { %v48_v36 = vadd.f32 %v47_v28, %v46_v31  ;;  %v67_v40 = vadd.f32 %v66_v32, %v65_v35 }
   0xd   :  { %v50_v41 = vadd.f32 %v49_v34, %v48_v36  ;;  %v69_v43 = vadd.f32 %v68_v37, %v67_v40 }
   0xf   :  { %v52_v44 = vadd.f32 %v51_v39, %v50_v41  ;;  %v71_v46 = vadd.f32 %v70_v42, %v69_v43 }
  0x11   :  { %v53_v47 = vrot.slane %v52_v44, 4  ;;  %v73_v48 = vadd.f32 %v72_v45, %v71_v46 }
  0x13   :  { %v54_v49 = vadd.f32 %v53_v47, %v52_v44  ;;  %v74_v50 = vrot.slane %v73_v48, 4 }
  0x15   :  { %v55_v51 = vrot.slane %v54_v49, 2  ;;  %v75_v52 = vadd.f32 %v74_v50, %v73_v48 }
  0x17   :  { %v56_v53 = vadd.f32 %v55_v51, %v54_v49  ;;  %v76_v54 = vrot.slane %v75_v52, 2 }
  0x19   :  { %v57_v55 = vrot.slane %v56_v53, 1  ;;  %v77_v56 = vadd.f32 %v76_v54, %v75_v52 }
  0x1b   :  { %v58_v57 = vadd.f32 %v57_v55, %v56_v53  ;;  %v78_v58 = vrot.slane %v77_v56, 1 }
  0x1d   :  { %v79_v60 = vadd.f32 %v78_v58, %v77_v56 }
  0x1f   :  { %v83_v61 = vsel %vm82_vm3, %v79_v60, %v58_v57 }
  0x20   :  { %v85_v62 = vadd.f32 %v83_v61, %v20_v59 }
  0x22   :  { %87 = vst.msk [vmem:[#allocation2] sm:$0x3] %vm18_vm0, %v85_v62 }
  0x29   :  { %v91_v63 = vld [vmem:[#allocation2] sm:$0x3] }
  0x2a   :  { %v92_v0 = vmul.f32 0.015625, %v91_v63 }
  0x2c   :  { %186 = vmatmul.mubr.msk.f32.vlgmr.msra.gmra.mrb[0].mxu0 %vm37_vm1, %v92_v0 }
  0xff   :  { %v170_v2 = vpop.f32.mrb[0].mxu0 }
 0x100   :  { %v171_v3 = vadd.f32 %v179_v1, %v170_v2  ;;  %v187_v4 = vpop.f32.mrb[1].mxu0 }
 0x102   :  { %174 = vst.msk [vmem:[%s292_s3] sm:$0x3] %vm18_vm0, %v171_v3 }

// kernel: _lambda_.33
= control target key start
LH: loop header
LB: loop body
LE: loop exit
PB: predicated region body
PF: predicated region fallthrough
CT: control target
= control target key end

     0   :  { %s3615_s0 = inlined_call_operand.vmem [shape: f32[4,8], index: 0, kind: input, shape index: {}]   ;;  %s3616_s1 = inlined_call_operand.vmem [shape: bf16[2,4,8,8], index: 1, kind: input, shape index: {}]   ;;  %s3617_s2 = inlined_call_operand.vmem [shape: bf16[2,64,8], index: 2, kind: input, shape index: {}]   ;;  %s3618_s3 = inlined_call_operand.vmem [shape: bf16[2,64,8], index: 3, kind: input, shape index: {}]   ;;  %s3619_s4 = inlined_call_operand.vmem [shape: bf16[2,64,8], index: 4, kind: input, shape index: {}]   ;;  %s3620_s5 = inlined_call_operand.vmem [shape: bf16[2,64,8], index: 5, kind: input, shape index: {}]   ;;  %s3621_s6 = inlined_call_operand.vmem [shape: f32[2,64,8], index: 6, kind: input, shape index: {}]   ;;  %s3622_s7 = inlined_call_operand.vmem [shape: f32[2,64,8], index: 7, kind: input, shape index: {}]   ;;  %s3623_s8 = inlined_call_operand.vmem [shape: f32[2,64,8], index: 8, kind: input, shape index: {}]   ;;  %s3624_s9 = inlined_call_operand.vmem [shape: bf16[2,64,8], index: 9, kind: input, shape index: {}]   ;;  %s3625_s10 = inlined_call_operand.vmem [shape: bf16[2,64,8], index: 10, kind: input, shape index: {}]   ;;  %s3626_s11 = inlined_call_operand.vmem [shape: bf16[2,64,8], index: 11, kind: input, shape index: {}]   ;;  %s3627_s12 = inlined_call_operand.vmem [shape: bf16[2,64,8], index: 12, kind: input, shape index: {}]   ;;  %s3628_s13 = inlined_call_operand.vmem [shape: f32[2,64,8], index: 13, kind: input, shape index: {}]   ;;  %s3629_s14 = inlined_call_operand.vmem [shape: f32[2,64,8], index: 14, kind: input, shape index: {}]   ;;  %s3630_s15 = inlined_call_operand.vmem [shape: f32[2,64,8], index: 15, kind: input, shape index: {}]   ;;  %s3631_s16 = inlined_call_operand.vmem [shape: f32[2,64,8], index: 16, kind: output, shape index: {}]  }
   0x1   :  { %3634 = sst [smem:[#allocation17_spill]] %s3615_s0 }
   0x2   :  { %3635 = sst [smem:[#allocation18_spill]] %s3616_s1  ;;  %s3638_s23 = sld [smem:[#allocation17_spill]] }
   0x3   :  { %3636 = sst [smem:[#allocation19_spill]] %s3617_s2 }
   0x4   :  { %3637 = sst [smem:[#allocation20_spill]] %s3623_s8 }
   0x8   :  { %s21_s8 = sshll.u32 %s3638_s23, 4  ;;  %s22_s8 = int_to_ptr.vmem [resolvable:$true] %s21_s8 }
   0x9   :  { %s2845_s24 = scalar_lea.vmem %s22_s8, 64  ;;  %p2850_p1 = scmp.lt.s32.totalorder %s22_s8, %s22_s8 }
   0xa   :  { %p2846_p0 = scmp.ne.s32.totalorder %s22_s8, %s2845_s24  ;;  %p2851_p2 = scmp.lt.s32.totalorder %s2845_s24, %s2845_s24 }
   0xc   :  { %p2852_p3 = por %p2851_p2, %p2850_p1 }
   0xe   :  { %p2853_p4 = pnand %p2852_p3, %p2846_p0 }
  0x10   :  { %2856 = shalt.err (!%p2853_p4)  }
  0x11   :  { %s2883_s25 = smov [#allocation3]  }
  0x12   :  { %24 = dma.vmem_to_smem %s22_s8, 64, %s2883_s25, [#allocation2] }
  0x13   :  { %2869 = dma.done.wait [#allocation2], 64 }
  0x14   :  { %2870 = vsyncadd [#allocation2], 4294967232 }
  0x15   :  { %26 = sfence }
  0x16   :  { %s2972_s26 = smov 0   ;;  %s2974_s27 = smov 0  }
  0x17   :  { %s2976_s28 = smov 0  }
  0x18 LB: > { %s44_s8 = sadd.s32 1, %s2877_s27  ;;  %p2537_p5 = scmp.ge.s32.totalorder %s2881_s28, 1  ;;  %s2881_s28 = sphi %s2976_s28, %s32_s28   ;;  %s2877_s27 = sphi %s2974_s27, %s3667_s27   ;;  %s2873_s26 = sphi %s2972_s26, %s3666_s26  }
  0x19   : > { %p46_p6 = scmp.ge.s32.totalorder %s44_s8, 2  ;;  %p686_p7 = scmp.lt.s32.totalorder %s2881_s28, 3 }
  0x1b   : > { %s3669_s8 = smov (%p46_p6, %s44_s8), 0  ;;  %p687_p8 = pnand %p2537_p5, %p686_p7 }
  0x1d   : > { %690 = sbr.rel (%p687_p8) target bundleno = 336 (0x150), region = 80 }
  0x24   : > { %s3639_s1 = sld [smem:[#allocation18_spill]]  ;;  %vm1055_vm0 = vcmask 1043456   ;;  %p860_p9 = scmp.lt.s32.totalorder %s2873_s26, 1  ;;  %vm1042_vm1 = vcmask 64512  }
  0x25   : > { %s3640_s2 = sld [smem:[#allocation19_spill]] }
  0x26   : > { %s3007_s20 = scalar_select %p860_p9, %s2873_s26, 1 }
  0x28   : > { %s3015_s23 = sshll.u32 %s3007_s20, 5 }
  0x29   : > { %s877_s17 = scalar_lea.vmem %s3618_s3, %s3015_s23  ;;  %s887_s30 = scalar_lea.vmem %s3619_s4, %s3015_s23 }
  0x2a   : > { %v1021_v0 = vld [vmem:[%s3639_s1] sm:$0xf]  ;;  %v2577_v1 = vld [vmem:[%s3639_s1 + $0x4] sm:$0xf]  ;;  %v2586_v4 = vld [vmem:[%s3639_s1 + $0x8] sm:$0xf]  ;;  %s3047_s19 = scalar_lea.vmem %s3620_s5, %s3015_s23  ;;  %s3060_s22 = scalar_lea.vmem %s3624_s9, %s3015_s23 }
  0x2b   : > { %2780 = vmatprep.subr.msk.bf16.mxu0 %vm1055_vm0, %v1021_v0  ;;  %v1057_v2 = vsel %vm1055_vm0, %v1021_v0, 0  ;;  %2781 = vmatprep.subr.msk.bf16.mxu1 %vm1055_vm0, %v2577_v1  ;;  %v1178_v3 = vsel %vm1055_vm0, %v2577_v1, 0  ;;  %v2595_v5 = vld [vmem:[%s3639_s1 + $0xc] sm:$0xf]  ;;  %s867_s29 = scalar_lea.vmem %s3640_s2, %s3015_s23  ;;  %v2814_v7 = vld [vmem:[%s877_s17] sm:$0xff]   ;;  %v1307_v9 = vsel %vm1055_vm0, %v2586_v4, 0  ;;  %s3066_s25 = scalar_lea.vmem %s3625_s10, %s3015_s23 }
  0x2c   : > { %2701 = vmatpush3.bf16.msra.mxu0 %v1057_v2  ;;  %2711 = vmatpush3.bf16.msra.mxu1 %v1178_v3  ;;  %v2813_v6 = vld [vmem:[%s867_s29] sm:$0xff]   ;;  %v2815_v8 = vld [vmem:[%s867_s29 + $0x8] sm:$0xff]   ;;  %v2605_v10 = vld [vmem:[%s3639_s1 + $0x10] sm:$0xf]  ;;  %v1436_v12 = vsel %vm1055_vm0, %v2595_v5, 0  ;;  %s3087_s0 = scalar_lea.vmem %s3626_s11, %s3015_s23  ;;  %s3095_s21 = scalar_lea.vmem %s3627_s12, %s3015_s23 }
  0x2d   : > { %2782 = vmatprep.subr.msk.bf16.mxu0 %vm1055_vm0, %v2586_v4  ;;  %2783 = vmatprep.subr.msk.bf16.mxu1 %vm1055_vm0, %v2595_v5  ;;  %v2816_v11 = vld [vmem:[%s877_s17 + $0x8] sm:$0xff]   ;;  %v2614_v13 = vld [vmem:[%s3639_s1 + $0x14] sm:$0xf]  ;;  %v2819_v16 = vld [vmem:[%s867_s29 + $0x18] sm:$0xff]   ;;  %v1650_v22 = vsel %vm1055_vm0, %v2605_v10, 0  ;;  %s3134_s23 = sshll.u32 %s2873_s26, 7 }
  0x2e   : > { %2702 = vmatprep.mubr.msk.bf16.mxu0 %vm1042_vm1, %v2813_v6  ;;  %2712 = vmatprep.mubr.msk.bf16.mxu1 %vm1042_vm1, %v2814_v7  ;;  %v2817_v14 = vld [vmem:[%s867_s29 + $0x10] sm:$0xff]   ;;  %v2820_v17 = vld [vmem:[%s877_s17 + $0x18] sm:$0xff]   ;;  %v2821_v18 = vld [vmem:[%s887_s30] sm:$0xff]   ;;  %v1771_v24 = vsel %vm1055_vm0, %v2614_v13, 0  ;;  %s1262_s26 = sadd.s32 6, %s3134_s23  ;;  %s1391_s24 = sadd.s32 7, %s3134_s23 }
  0x2f   : > { %2703 = vmatmul.mubr.msk.bf16.vlgmr.msra.gmra.mrb[0].mxu0 %vm1042_vm1, %v2815_v8  ;;  %2713 = vmatmul.mubr.msk.bf16.vlgmr.msra.gmra.mrb[0].mxu1 %vm1042_vm1, %v2816_v11  ;;  %v2818_v15 = vld [vmem:[%s877_s17 + $0x10] sm:$0xff]   ;;  %v2822_v19 = vld [vmem:[%s3047_s19] sm:$0xff]   ;;  %v2823_v20 = vld [vmem:[%s887_s30 + $0x8] sm:$0xff]   ;;  %s1263_s17 = sld [smem:[#allocation3 + %s1262_s26]]  ;;  %s1520_s18 = sadd.s32 1, %s3134_s23 }
  0x30   : > { %2721 = vmatpush3.bf16.msra.mxu0 %v1307_v9  ;;  %2731 = vmatpush3.bf16.msra.mxu1 %v1436_v12  ;;  %v2824_v21 = vld [vmem:[%s3047_s19 + $0x8] sm:$0xff]   ;;  %v2825_v23 = vld [vmem:[%s887_s30 + $0x10] sm:$0xff]   ;;  %v2623_v26 = vld [vmem:[%s3639_s1 + $0x18] sm:$0xf]  ;;  %s1548_s29 = sadd.s32 2, %s3134_s23  ;;  %s1576_s26 = sadd.s32 3, %s3134_s23 }
  0x31   : > { %2706 = vmatprep.mubr.msk.bf16.mxu0 %vm1042_vm1, %v2817_v14  ;;  %2716 = vmatprep.mubr.msk.bf16.mxu1 %vm1042_vm1, %v2818_v15  ;;  %v2826_v25 = vld [vmem:[%s3047_s19 + $0x10] sm:$0xff]   ;;  %v2632_v27 = vld [vmem:[%s3639_s1 + $0x1c] sm:$0xf]  ;;  %v2829_v30 = vld [vmem:[%s3060_s22] sm:$0xff]   ;;  %v1900_v34 = vsel %vm1055_vm0, %v2623_v26, 0 }
  0x32   : > { %2784 = vmatprep.subr.msk.bf16.mxu0 %vm1055_vm0, %v2605_v10  ;;  %2785 = vmatprep.subr.msk.bf16.mxu1 %vm1055_vm0, %v2614_v13  ;;  %v2827_v28 = vld [vmem:[%s887_s30 + $0x18] sm:$0xff]   ;;  %v2830_v31 = vld [vmem:[%s3066_s25] sm:$0xff]   ;;  %v2831_v32 = vld [vmem:[%s3060_s22 + $0x8] sm:$0xff]   ;;  %v2029_v36 = vsel %vm1055_vm0, %v2632_v27, 0  ;;  %s1011_s30 = sadd.s32 4, %s3134_s23 }
  0x33   : > { %v2828_v29 = vld [vmem:[%s3047_s19 + $0x18] sm:$0xff]   ;;  %v2832_v33 = vld [vmem:[%s3066_s25 + $0x8] sm:$0xff]   ;;  %v2833_v35 = vld [vmem:[%s3060_s22 + $0x10] sm:$0xff]   ;;  %s1133_s19 = sadd.s32 5, %s3134_s23 }
  0x34   : > { %v2834_v37 = vld [vmem:[%s3066_s25 + $0x10] sm:$0xff]   ;;  %v2835_v38 = vld [vmem:[%s3060_s22 + $0x18] sm:$0xff]   ;;  %v2837_v40 = vld [vmem:[%s3087_s0] sm:$0xff]   ;;  %s1012_s22 = sld [smem:[#allocation3 + %s1011_s30]] }
  0x35   : > { %v2836_v39 = vld [vmem:[%s3066_s25 + $0x18] sm:$0xff]   ;;  %v2838_v41 = vld [vmem:[%s3095_s21] sm:$0xff]   ;;  %v2839_v42 = vld [vmem:[%s3087_s0 + $0x8] sm:$0xff]   ;;  %s1134_s25 = sld [smem:[#allocation3 + %s1133_s19]]  ;;  %s3159_s19 = sshll.u32 %s3007_s20, 6 }
  0x36   : > { %v2840_v43 = vld [vmem:[%s3095_s21 + $0x8] sm:$0xff]   ;;  %v2841_v44 = vld [vmem:[%s3087_s0 + $0x10] sm:$0xff]   ;;  %v2843_v46 = vld [vmem:[%s3087_s0 + $0x18] sm:$0xff]   ;;  %s1392_s0 = sld [smem:[#allocation3 + %s1391_s24]]  ;;  %s3185_s20 = scalar_lea.vmem %s3621_s6, %s3159_s19 }
  0x37   : > { %2707 = vmatmul.mubr.msk.bf16.gmra.mrb[4].mxu0 %vm1042_vm1, %v2819_v16  ;;  %2717 = vmatmul.mubr.msk.bf16.gmra.mrb[4].mxu1 %vm1042_vm1, %v2820_v17  ;;  %v2842_v45 = vld [vmem:[%s3095_s21 + $0x10] sm:$0xff]   ;;  %v2844_v47 = vld [vmem:[%s3095_s21 + $0x18] sm:$0xff]   ;;  %s3142_s21 = sld [smem:[#allocation3 + %s1520_s18]] }
  0x38   : > { %2722 = vmatprep.mubr.msk.bf16.mxu0 %vm1042_vm1, %v2821_v18  ;;  %2732 = vmatprep.mubr.msk.bf16.mxu1 %vm1042_vm1, %v2822_v19  ;;  %s3146_s30 = sld [smem:[#allocation3 + %s1548_s29]] }
  0x39   : > { %s3189_s24 = sld [smem:[#allocation3 + %s1576_s26]] }
  0x3a   : > { %v1124_v48 = vstv %s1012_s22  ;;  %s3162_s22 = sadd.s32 256, %s3134_s23 }
  0x3b   : > { %v1245_v49 = vstv %s1134_s25  ;;  %s1726_s18 = sadd.s32 5, %s3162_s22  ;;  %s2113_s29 = sadd.s32 1, %s3162_s22 }
  0x3c   : > { %s3203_s26 = sld [smem:[#allocation3 + %s1726_s18]]  ;;  %s1855_s1 = sadd.s32 6, %s3162_s22 }
  0x3d   : > { %s1522_s25 = smul.f32 0.999995, %s3142_s21  ;;  %s2141_s21 = sadd.s32 2, %s3162_s22 }
  0x3e   : > { %s1550_s23 = smul.f32 0.999995, %s3146_s30  ;;  %s3641_s18 = sld [smem:[#allocation20_spill]] }
  0x3f   : > { %2723 = vmatmul.mubr.msk.bf16.vlgmr.msra.gmra.mrb[8].mxu0 %vm1042_vm1, %v2823_v20  ;;  %2733 = vmatmul.mubr.msk.bf16.vlgmr.msra.gmra.mrb[8].mxu1 %vm1042_vm1, %v2824_v21 }
  0x40   : > { %2741 = vmatpush3.bf16.msra.mxu0 %v1650_v22  ;;  %2751 = vmatpush3.bf16.msra.mxu1 %v1771_v24 }
  0x41   : > { %2726 = vmatprep.mubr.msk.bf16.mxu0 %vm1042_vm1, %v2825_v23  ;;  %2736 = vmatprep.mubr.msk.bf16.mxu1 %vm1042_vm1, %v2826_v25  ;;  %v3152_v25 = vstv %s1263_s17  ;;  %s3173_s17 = scalar_lea.vmem %s3622_s7, %s3159_s19 }
  0x42   : > { %2786 = vmatprep.subr.msk.bf16.mxu0 %vm1055_vm0, %v2623_v26  ;;  %2787 = vmatprep.subr.msk.bf16.mxu1 %vm1055_vm0, %v2632_v27  ;;  %v3156_v27 = vstv %s1392_s0  ;;  %s1605_s0 = sadd.s32 4, %s3162_s22 }
  0x43   : > { %s3195_s30 = sld [smem:[#allocation3 + %s1605_s0]] }
  0x44   : > { %s3221_s2 = scalar_lea.vmem %s3641_s18, %s3159_s19  ;;  %s3378_s18 = scalar_lea.vmem %s3630_s15, %s3159_s19 }
  0x47   : > { %2727 = vmatmul.mubr.msk.bf16.gmra.mrb[12].mxu0 %vm1042_vm1, %v2827_v28  ;;  %2737 = vmatmul.mubr.msk.bf16.gmra.mrb[12].mxu1 %vm1042_vm1, %v2828_v29 }
  0x48   : > { %2742 = vmatprep.mubr.msk.bf16.mxu0 %vm1042_vm1, %v2829_v30  ;;  %2752 = vmatprep.mubr.msk.bf16.mxu1 %vm1042_vm1, %v2830_v31 }
  0x4f   : > { %2743 = vmatmul.mubr.msk.bf16.vlgmr.msra.gmra.mrb[16].mxu0 %vm1042_vm1, %v2831_v32  ;;  %2753 = vmatmul.mubr.msk.bf16.vlgmr.msra.gmra.mrb[16].mxu1 %vm1042_vm1, %v2832_v33 }
  0x50   : > { %2761 = vmatpush3.bf16.msra.mxu0 %v1900_v34  ;;  %2771 = vmatpush3.bf16.msra.mxu1 %v2029_v36 }
  0x51   : > { %2746 = vmatprep.mubr.msk.bf16.mxu0 %vm1042_vm1, %v2833_v35  ;;  %2756 = vmatprep.mubr.msk.bf16.mxu1 %vm1042_vm1, %v2834_v37 }
  0x57   : > { %2747 = vmatmul.mubr.msk.bf16.gmra.mrb[20].mxu0 %vm1042_vm1, %v2835_v38  ;;  %2757 = vmatmul.mubr.msk.bf16.gmra.mrb[20].mxu1 %vm1042_vm1, %v2836_v39 }
  0x58   : > { %2762 = vmatprep.mubr.msk.bf16.mxu0 %vm1042_vm1, %v2837_v40  ;;  %2772 = vmatprep.mubr.msk.bf16.mxu1 %vm1042_vm1, %v2838_v41 }
  0x5f   : > { %2763 = vmatmul.mubr.msk.bf16.vlgmr.msra.gmra.mrb[24].mxu0 %vm1042_vm1, %v2839_v42  ;;  %2773 = vmatmul.mubr.msk.bf16.vlgmr.msra.gmra.mrb[24].mxu1 %vm1042_vm1, %v2840_v43 }
  0x60   : > { %2766 = vmatprep.mubr.msk.bf16.mxu0 %vm1042_vm1, %v2841_v44  ;;  %2776 = vmatprep.mubr.msk.bf16.mxu1 %vm1042_vm1, %v2842_v45 }
  0x67   : > { %2767 = vmatmul.mubr.msk.bf16.gmra.mrb[28].mxu0 %vm1042_vm1, %v2843_v46  ;;  %2777 = vmatmul.mubr.msk.bf16.gmra.mrb[28].mxu1 %vm1042_vm1, %v2844_v47 }
 0x102   : > { %v2704_v50 = vpop.f32.mrb[0].mxu0  ;;  %v2714_v52 = vpop.f32.mrb[0].mxu1 }
 0x103   : > { %v1127_v51 = vmul.f32 %v2704_v50, %v1124_v48  ;;  %v1093_v53 = vpop.f32.mrb[1].mxu0  ;;  %v1248_v54 = vmul.f32 %v2714_v52, %v1245_v49  ;;  %v1214_v56 = vpop.f32.mrb[1].mxu1  ;;  %v1525_v50 = vld [vmem:[%s3173_s17 + $0x10] sm:$0xff] }
 0x104   : > { %v1125_v55 = vmul.f32 %v1124_v48, %v1093_v53  ;;  %v2705_v57 = vpop.f32.mrb[2].mxu0  ;;  %v1246_v58 = vmul.f32 %v1245_v49, %v1214_v56  ;;  %v2715_v60 = vpop.f32.mrb[2].mxu1  ;;  %v1553_v53 = vld [vmem:[%s3185_s20 + $0x10] sm:$0xff] }
 0x105   : > { %v1128_v59 = vmul.f32 %v2705_v57, %v1124_v48  ;;  %v1096_v61 = vpop.f32.mrb[3].mxu0  ;;  %v1256_v62 = vadd.f32 %v1248_v54, %v1127_v51  ;;  %v1249_v63 = vmul.f32 %v2715_v60, %v1245_v49  ;;  %v1217_v1 = vpop.f32.mrb[3].mxu1  ;;  %v3199_v51 = vstv %s1522_s25  ;;  %s3215_s25 = sld [smem:[#allocation3 + %s2113_s29]]  ;;  %s1984_s29 = sadd.s32 7, %s3162_s22 }
 0x106   : > { %v1126_v0 = vmul.f32 %v1124_v48, %v1096_v61  ;;  %v1254_v2 = vadd.f32 %v1246_v58, %v1125_v55  ;;  %v1247_v3 = vmul.f32 %v1245_v49, %v1217_v1  ;;  %v3207_v54 = vstv %s1550_s23  ;;  %v1523_v55 = vld [vmem:[%s3173_s17] sm:$0xff]  ;;  %s3229_s23 = sld [smem:[#allocation3 + %s2141_s21]] }
 0x107   : > { %v1257_v4 = vadd.f32 %v1249_v63, %v1128_v59  ;;  %v1551_v58 = vld [vmem:[%s3185_s20] sm:$0xff]  ;;  %v1526_v59 = vld [vmem:[%s3173_s17 + $0x18] sm:$0xff]  ;;  %v3224_v63 = vmul.f32 %v3199_v51, %v1525_v50 }
 0x108   : > { %v1255_v5 = vadd.f32 %v1247_v3, %v1126_v0  ;;  %v1524_v0 = vld [vmem:[%s3173_s17 + $0x8] sm:$0xff] }
 0x10a   : > { %v2708_v6 = vpop.f32.mrb[4].mxu0  ;;  %v2718_v8 = vpop.f32.mrb[4].mxu1 }
 0x10b   : > { %v1131_v7 = vmul.f32 %v2708_v6, %v1124_v48  ;;  %v1109_v9 = vpop.f32.mrb[5].mxu0  ;;  %v1252_v10 = vmul.f32 %v2718_v8, %v1245_v49  ;;  %v1230_v12 = vpop.f32.mrb[5].mxu1  ;;  %v3235_v6 = vmul.f32 %v3199_v51, %v1523_v55 }
 0x10c   : > { %v1129_v11 = vmul.f32 %v1124_v48, %v1109_v9  ;;  %v2709_v13 = vpop.f32.mrb[6].mxu0  ;;  %v1250_v14 = vmul.f32 %v1245_v49, %v1230_v12  ;;  %v2719_v16 = vpop.f32.mrb[6].mxu1  ;;  %v3243_v12 = vmul.f32 %v3199_v51, %v1526_v59 }
 0x10d   : > { %v1132_v15 = vmul.f32 %v2709_v13, %v1124_v48  ;;  %v1112_v17 = vpop.f32.mrb[7].mxu0  ;;  %v3144_v18 = vadd.f32 %v1252_v10, %v1131_v7  ;;  %v1253_v19 = vmul.f32 %v2719_v16, %v1245_v49  ;;  %v1233_v21 = vpop.f32.mrb[7].mxu1  ;;  %v1554_v13 = vld [vmem:[%s3185_s20 + $0x18] sm:$0xff] }
 0x10e   : > { %v1130_v20 = vmul.f32 %v1124_v48, %v1112_v17  ;;  %v3148_v22 = vadd.f32 %v1250_v14, %v1129_v11  ;;  %v1251_v23 = vmul.f32 %v1245_v49, %v1233_v21  ;;  %v3240_v11 = vmul.f32 %v3207_v54, %v1551_v58  ;;  %v1580_v17 = vld [vmem:[%s3221_s2 + $0x10] sm:$0xff]  ;;  %v1552_v21 = vld [vmem:[%s3185_s20 + $0x8] sm:$0xff] }
 0x10f   : > { %v3150_v24 = vadd.f32 %v1253_v19, %v1132_v15  ;;  %v1578_v19 = vld [vmem:[%s3221_s2] sm:$0xff] }
 0x110   : > { %v3154_v26 = vadd.f32 %v1251_v23, %v1130_v20  ;;  %v3254_v20 = vmul.f32 %v3199_v51, %v1524_v0 }
 0x112   : > { %v2724_v28 = vpop.f32.mrb[8].mxu0  ;;  %v2734_v30 = vpop.f32.mrb[8].mxu1 }
 0x113   : > { %v1377_v29 = vmul.f32 %v2724_v28, %v3152_v25  ;;  %v1343_v31 = vpop.f32.mrb[9].mxu0  ;;  %v1506_v32 = vmul.f32 %v2734_v30, %v3156_v27  ;;  %v1472_v34 = vpop.f32.mrb[9].mxu1  ;;  %v1581_v28 = vld [vmem:[%s3221_s2 + $0x18] sm:$0xff] }
 0x114   : > { %v1375_v33 = vmul.f32 %v3152_v25, %v1343_v31  ;;  %v2725_v35 = vpop.f32.mrb[10].mxu0  ;;  %v1504_v37 = vmul.f32 %v3156_v27, %v1472_v34  ;;  %v2735_v39 = vpop.f32.mrb[10].mxu1  ;;  %v3273_v34 = vmul.f32 %v3207_v54, %v1554_v13 }
 0x115   : > { %v1385_v36 = vadd.f32 %v1377_v29, %v1256_v62  ;;  %v1378_v38 = vmul.f32 %v2725_v35, %v3152_v25  ;;  %v1346_v40 = vpop.f32.mrb[11].mxu0  ;;  %v1475_v43 = vpop.f32.mrb[11].mxu1  ;;  %v1507_v46 = vmul.f32 %v2735_v39, %v3156_v27  ;;  %v1579_v29 = vld [vmem:[%s3221_s2 + $0x8] sm:$0xff]  ;;  %v1527_v35 = vld [vmem:[%s3173_s17 + $0x20] sm:$0xff] }
 0x116   : > { %v1383_v41 = vadd.f32 %v1375_v33, %v1254_v2  ;;  %v1376_v42 = vmul.f32 %v3152_v25, %v1346_v40  ;;  %v1505_v49 = vmul.f32 %v3156_v27, %v1475_v43  ;;  %v3269_v33 = vstv %s3195_s30  ;;  %s3298_s30 = sld [smem:[#allocation3 + %s1984_s29]]  ;;  %s2143_s29 = smul.f32 0.999995, %s3229_s23 }
 0x117   : > { %v3187_v44 = vadd.f32 %v1506_v32, %v1385_v36  ;;  %v1386_v45 = vadd.f32 %v1378_v38, %v1257_v4  ;;  %v3280_v38 = vstv %s3203_s26  ;;  %v3289_v40 = vmul.f32 %v3207_v54, %v1552_v21  ;;  %s2115_s26 = smul.f32 0.999995, %s3215_s25  ;;  %s3342_s23 = scalar_lea.vmem %s3628_s13, %s3159_s19 }
 0x118   : > { %v3192_v47 = vadd.f32 %v1504_v37, %v1383_v41  ;;  %v1384_v48 = vadd.f32 %v1376_v42, %v1255_v5  ;;  %v3232_v5 = vmul.f32 %v3207_v54, %v1553_v53  ;;  %v1557_v41 = vld [vmem:[%s3185_s20 + $0x30] sm:$0xff]  ;;  %v1555_v42 = vld [vmem:[%s3185_s20 + $0x20] sm:$0xff]  ;;  %v3317_v58 = vmul.f32 %v3199_v51, %v1527_v35 }
 0x119   : > { %v3201_v52 = vadd.f32 %v1507_v46, %v1386_v45  ;;  %v1530_v45 = vld [vmem:[%s3173_s17 + $0x38] sm:$0xff]  ;;  %v3329_v0 = vmul.f32 %v3207_v54, %v1557_v41  ;;  %v2146_v41 = vld [vmem:[%s3342_s23 + $0x10] sm:$0xff] }
 0x11a   : > { %v3210_v56 = vadd.f32 %v1505_v49, %v1384_v48  ;;  %v2728_v57 = vpop.f32.mrb[12].mxu0  ;;  %v2738_v61 = vpop.f32.mrb[12].mxu1  ;;  %v1584_v48 = vld [vmem:[%s3221_s2 + $0x30] sm:$0xff]  ;;  %v3348_v13 = vmul.f32 %v3199_v51, %v1530_v45 }
 0x11b   : > { %v1381_v60 = vmul.f32 %v2728_v57, %v3152_v25  ;;  %v1359_v62 = vpop.f32.mrb[13].mxu0  ;;  %v1510_v1 = vmul.f32 %v2738_v61, %v3156_v27  ;;  %v1488_v3 = vpop.f32.mrb[13].mxu1 }
 0x11c   : > { %v1379_v2 = vmul.f32 %v3152_v25, %v1359_v62  ;;  %v2729_v4 = vpop.f32.mrb[14].mxu0  ;;  %v1508_v8 = vmul.f32 %v3156_v27, %v1488_v3  ;;  %v2739_v9 = vpop.f32.mrb[14].mxu1  ;;  %v1528_v3 = vld [vmem:[%s3173_s17 + $0x28] sm:$0xff] }
 0x11d   : > { %v1389_v7 = vadd.f32 %v1381_v60, %v3144_v18  ;;  %v1362_v10 = vpop.f32.mrb[15].mxu0  ;;  %v1382_v15 = vmul.f32 %v2729_v4, %v3152_v25  ;;  %v1491_v16 = vpop.f32.mrb[15].mxu1  ;;  %v3250_v18 = vstv %s3189_s24  ;;  %v1511_v32 = vmul.f32 %v2739_v9, %v3156_v27  ;;  %s2169_s24 = sadd.s32 3, %s3162_s22  ;;  %s3296_s22 = sld [smem:[#allocation3 + %s1855_s1]] }
 0x11e   : > { %v1387_v14 = vadd.f32 %v1379_v2, %v3148_v22  ;;  %3642 = vst [vmem:[#allocation5_spill] sm:$0xff] %v3250_v18  ;;  %v1380_v22 = vmul.f32 %v3152_v25, %v1362_v10  ;;  %v1529_v25 = vld [vmem:[%s3173_s17 + $0x30] sm:$0xff]  ;;  %v1509_v37 = vmul.f32 %v3156_v27, %v1491_v16  ;;  %v3286_v39 = vmul.f32 %v3250_v18, %v1578_v19  ;;  %s3311_s21 = sld [smem:[#allocation3 + %s2169_s24]]  ;;  %s3325_s1 = scalar_lea.vmem %s3629_s14, %s3159_s19  ;;  %v1582_v2 = vld [vmem:[%s3221_s2 + $0x20] sm:$0xff]  ;;  %v1556_v16 = vld [vmem:[%s3185_s20 + $0x28] sm:$0xff] }
 0x11f   : > { %v3257_v23 = vadd.f32 %v1510_v1, %v1389_v7  ;;  %v1390_v31 = vadd.f32 %v1382_v15, %v3150_v24  ;;  %v3283_v24 = vmul.f32 %v3250_v18, %v1580_v17  ;;  %v3301_v27 = vmul.f32 %v3250_v18, %v1581_v28  ;;  %v1585_v15 = vld [vmem:[%s3221_s2 + $0x38] sm:$0xff] }
 0x120   : > { %v3264_v30 = vadd.f32 %v1508_v8, %v1387_v14  ;;  %v1388_v36 = vadd.f32 %v1380_v22, %v3154_v26  ;;  %v3304_v46 = vmul.f32 %v3250_v18, %v1579_v29  ;;  %v3314_v57 = vmul.f32 %v3199_v51, %v1529_v25  ;;  %v1558_v14 = vld [vmem:[%s3185_s20 + $0x38] sm:$0xff]  ;;  %v2116_v25 = vld [vmem:[%s3325_s1] sm:$0xff] }
 0x121   : > { %v3293_v43 = vadd.f32 %v1511_v32, %v1390_v31  ;;  %v3332_v1 = vmul.f32 %v3207_v54, %v1555_v42  ;;  %v3345_v10 = vmul.f32 %v3250_v18, %v1584_v48  ;;  %v2118_v31 = vld [vmem:[%s3325_s1 + $0x10] sm:$0xff]  ;;  %v3363_v32 = vstv %s2115_s26  ;;  %v2119_v45 = vld [vmem:[%s3325_s1 + $0x18] sm:$0xff] }
 0x122   : > { %v2744_v26 = vpop.f32.mrb[16].mxu0  ;;  %v3307_v49 = vadd.f32 %v1509_v37, %v1388_v36  ;;  %v2754_v53 = vpop.f32.mrb[16].mxu1  ;;  %v3367_v35 = vmul.f32 %v3250_v18, %v1582_v2  ;;  %v3370_v36 = vmul.f32 %v3199_v51, %v1528_v3  ;;  %v3381_v42 = vstv %s2143_s29  ;;  %v2147_v3 = vld [vmem:[%s3342_s23 + $0x18] sm:$0xff] }
 0x123   : > { %v1720_v50 = vmul.f32 %v2744_v26, %v3269_v33  ;;  %v1686_v55 = vpop.f32.mrb[17].mxu0  ;;  %v1841_v59 = vmul.f32 %v2754_v53, %v3280_v38  ;;  %v1807_v61 = vpop.f32.mrb[17].mxu1  ;;  %3644 = vst [vmem:[#allocation7_spill] sm:$0xff] %v3332_v1  ;;  %3645 = vst [vmem:[#allocation8_spill] sm:$0xff] %v3345_v10  ;;  %v3385_v26 = vmul.f32 %v3207_v54, %v1558_v14  ;;  %v2144_v53 = vld [vmem:[%s3342_s23] sm:$0xff]  ;;  %v2173_v14 = vld [vmem:[%s3378_s18 + $0x10] sm:$0xff] }
 0x124   : > { %3643 = vst [vmem:[#allocation6_spill] sm:$0xff] %v3307_v49  ;;  %v1718_v60 = vmul.f32 %v3269_v33, %v1686_v55  ;;  %v2745_v62 = vpop.f32.mrb[18].mxu0  ;;  %v1839_v4 = vmul.f32 %v3280_v38, %v1807_v61  ;;  %v2755_v8 = vpop.f32.mrb[18].mxu1  ;;  %3646 = vst [vmem:[#allocation9_spill] sm:$0xff] %v3367_v35  ;;  %v3388_v48 = vmul.f32 %v3250_v18, %v1585_v15  ;;  %v2117_v55 = vld [vmem:[%s3325_s1 + $0x8] sm:$0xff]  ;;  %v3401_v61 = vstv %s3298_s30  ;;  %v2122_v10 = vld [vmem:[%s3325_s1 + $0x30] sm:$0xff]  ;;  %s3551_s30 = scalar_lea.vmem %s3631_s16, %s3159_s19 }
 0x125   : > { %v1721_v7 = vmul.f32 %v2745_v62, %v3269_v33  ;;  %v1689_v9 = vpop.f32.mrb[19].mxu0  ;;  %v3353_v17 = vadd.f32 %v1841_v59, %v1720_v50  ;;  %v1842_v19 = vmul.f32 %v2755_v8, %v3280_v38  ;;  %v1810_v21 = vpop.f32.mrb[19].mxu1  ;;  %3647 = vst [vmem:[#allocation10_spill] sm:$0xff] %v3370_v36  ;;  %3648 = vst [vmem:[#allocation11_spill] sm:$0xff] %v3381_v42  ;;  %v3417_v15 = vstv %s3311_s21 }
 0x126   : > { %v3356_v22 = vadd.f32 %v1839_v4, %v1718_v60  ;;  %v1719_v28 = vmul.f32 %v3269_v33, %v1689_v9  ;;  %v1840_v29 = vmul.f32 %v3280_v38, %v1810_v21  ;;  %3649 = vst [vmem:[#allocation12_spill] sm:$0xff] %v3385_v26  ;;  %3650 = vst [vmem:[#allocation13_spill] sm:$0xff] %v3388_v48  ;;  %v3398_v60 = vstv %s3296_s22  ;;  %v2120_v26 = vld [vmem:[%s3325_s1 + $0x20] sm:$0xff] }
 0x127   : > { %v3372_v37 = vadd.f32 %v1842_v19, %v1721_v7  ;;  %v3391_v51 = vmul.f32 %v3207_v54, %v1556_v16  ;;  %v3404_v62 = vmul.f32 %v3363_v32, %v2118_v31  ;;  %v3407_v2 = vmul.f32 %v3363_v32, %v2116_v25  ;;  %v2145_v54 = vld [vmem:[%s3342_s23 + $0x8] sm:$0xff]  ;;  %v2171_v25 = vld [vmem:[%s3378_s18] sm:$0xff] }
 0x128   : > { %v3393_v50 = vadd.f32 %v1840_v29, %v1719_v28  ;;  %v3413_v9 = vmul.f32 %v3381_v42, %v2146_v41  ;;  %v3420_v16 = vmul.f32 %v3363_v32, %v2119_v45  ;;  %v3425_v31 = vmul.f32 %v3381_v42, %v2144_v53 }
 0x129   : > { %3651 = vst [vmem:[#allocation14_spill] sm:$0xff] %v3391_v51  ;;  %v3429_v41 = vmul.f32 %v3363_v32, %v2117_v55  ;;  %v2174_v51 = vld [vmem:[%s3378_s18 + $0x18] sm:$0xff]  ;;  %v3438_v53 = vmul.f32 %v3381_v42, %v2145_v54  ;;  %v1542_v36 = vadd.f32 %v3224_v63, %v3187_v44  ;;  %v1543_v49 = vadd.f32 %v3243_v12, %v3201_v52  ;;  %v2177_v63 = vld [vmem:[%s3378_s18 + $0x30] sm:$0xff] }
 0x12a   : > { %v2748_v59 = vpop.f32.mrb[20].mxu0  ;;  %v2758_v7 = vpop.f32.mrb[20].mxu1  ;;  %v3468_v44 = vmul.f32 %v3417_v15, %v2174_v51  ;;  %v3486_v12 = vmul.f32 %v3363_v32, %v2120_v26  ;;  %v2121_v26 = vld [vmem:[%s3325_s1 + $0x28] sm:$0xff] }
 0x12b   : > { %v1724_v4 = vmul.f32 %v2748_v59, %v3269_v33  ;;  %v1702_v8 = vpop.f32.mrb[21].mxu0  ;;  %v1845_v19 = vmul.f32 %v2758_v7, %v3280_v38  ;;  %v1823_v28 = vpop.f32.mrb[21].mxu1 }
 0x12c   : > { %v1722_v21 = vmul.f32 %v3269_v33, %v1702_v8  ;;  %v2749_v29 = vpop.f32.mrb[22].mxu0  ;;  %v1843_v59 = vmul.f32 %v3280_v38, %v1823_v28  ;;  %v2759_v48 = vpop.f32.mrb[22].mxu1  ;;  %v3434_v8 = vmul.f32 %v3381_v42, %v2147_v3  ;;  %v2172_v3 = vld [vmem:[%s3378_s18 + $0x8] sm:$0xff] }
 0x12d   : > { %v1725_v45 = vmul.f32 %v2749_v29, %v3269_v33  ;;  %v1705_v7 = vpop.f32.mrb[23].mxu0  ;;  %v3440_v18 = vadd.f32 %v1845_v19, %v1724_v4  ;;  %v1846_v55 = vmul.f32 %v2759_v48, %v3280_v38  ;;  %v1826_v35 = vpop.f32.mrb[23].mxu1  ;;  %v3445_v29 = vmul.f32 %v3417_v15, %v2173_v14  ;;  %v2148_v19 = vld [vmem:[%s3342_s23 + $0x20] sm:$0xff] }
 0x12e   : > { %v1723_v28 = vmul.f32 %v3269_v33, %v1705_v7  ;;  %v3452_v54 = vadd.f32 %v1843_v59, %v1722_v21  ;;  %v1844_v4 = vmul.f32 %v3280_v38, %v1826_v35  ;;  %v3456_v48 = vmul.f32 %v3417_v15, %v2171_v25  ;;  %v2150_v33 = vld [vmem:[%s3342_s23 + $0x30] sm:$0xff]  ;;  %v2123_v7 = vld [vmem:[%s3325_s1 + $0x38] sm:$0xff] }
 0x12f   : > { %v1540_v14 = vadd.f32 %v3235_v6, %v3192_v47  ;;  %v3465_v1 = vadd.f32 %v1846_v55, %v1725_v45  ;;  %v2151_v38 = vld [vmem:[%s3342_s23 + $0x38] sm:$0xff]  ;;  %v1541_v35 = vadd.f32 %v3254_v20, %v3210_v56  ;;  %v3477_v25 = vmul.f32 %v3417_v15, %v2172_v3 }
 0x130   : > { %v3474_v21 = vadd.f32 %v1844_v4, %v1723_v28  ;;  %v3480_v47 = vmul.f32 %v3363_v32, %v2122_v10  ;;  %v3483_v6 = vmul.f32 %v3381_v42, %v2150_v33  ;;  %v3489_v51 = vmul.f32 %v3381_v42, %v2148_v19  ;;  %v2175_v28 = vld [vmem:[%s3378_s18 + $0x20] sm:$0xff] }
 0x131   : > { %v3492_v56 = vmul.f32 %v3363_v32, %v2123_v7  ;;  %v1570_v20 = vadd.f32 %v3232_v5, %v1542_v36  ;;  %v3497_v55 = vmul.f32 %v3417_v15, %v2177_v63  ;;  %v3501_v3 = vmul.f32 %v3381_v42, %v2151_v38 }
 0x132   : > { %v2764_v52 = vpop.f32.mrb[24].mxu0  ;;  %v2774_v45 = vpop.f32.mrb[24].mxu1  ;;  %v1568_v4 = vadd.f32 %v3240_v11, %v1540_v14  ;;  %v1571_v33 = vadd.f32 %v3273_v34, %v1543_v49  ;;  %v3515_v14 = vmul.f32 %v3417_v15, %v2175_v28 }
 0x133   : > { %v1970_v59 = vmul.f32 %v2764_v52, %v3398_v60  ;;  %v1936_v10 = vpop.f32.mrb[25].mxu0  ;;  %3652 = vst [vmem:[#allocation15_spill] sm:$0xff] %v3497_v55  ;;  %3653 = vst [vmem:[#allocation16_spill] sm:$0xff] %v3501_v3  ;;  %v2099_v19 = vmul.f32 %v2774_v45, %v3401_v61  ;;  %v2065_v36 = vpop.f32.mrb[25].mxu1  ;;  %v1569_v52 = vadd.f32 %v3289_v40, %v1541_v35 }
 0x134   : > { %v1968_v5 = vmul.f32 %v3398_v60, %v1936_v10  ;;  %v2765_v7 = vpop.f32.mrb[26].mxu0  ;;  %v2097_v55 = vmul.f32 %v3401_v61, %v2065_v36  ;;  %v2775_v3 = vpop.f32.mrb[26].mxu1  ;;  %v3518_v45 = vmul.f32 %v3363_v32, %v2121_v26  ;;  %v1597_v40 = vadd.f32 %v3283_v24, %v1570_v20 }
 0x135   : > { %v1978_v63 = vadd.f32 %v1970_v59, %v3353_v17  ;;  %v1971_v38 = vmul.f32 %v2765_v7, %v3398_v60  ;;  %v1939_v42 = vpop.f32.mrb[27].mxu0  ;;  %v2068_v49 = vpop.f32.mrb[27].mxu1  ;;  %v2100_v59 = vmul.f32 %v2775_v3, %v3401_v61  ;;  %v1595_v10 = vadd.f32 %v3286_v39, %v1568_v4 }
 0x136   : > { %v1976_v11 = vadd.f32 %v1968_v5, %v3356_v22  ;;  %v1969_v34 = vmul.f32 %v3398_v60, %v1939_v42  ;;  %v2098_v42 = vmul.f32 %v3401_v61, %v2068_v49  ;;  %v1598_v28 = vadd.f32 %v3301_v27, %v1571_v33 }
 0x137   : > { %v2107_v17 = vadd.f32 %v2099_v19, %v1978_v63  ;;  %v1979_v35 = vadd.f32 %v1971_v38, %v3372_v37  ;;  %v1596_v5 = vadd.f32 %v3304_v46, %v1569_v52  ;;  %v1546_v24 = vadd.f32 %v3314_v57, %v3257_v23 }
 0x138   : > { %v2105_v36 = vadd.f32 %v2097_v55, %v1976_v11  ;;  %v1977_v22 = vadd.f32 %v1969_v34, %v3393_v50  ;;  %v1544_v37 = vadd.f32 %v3317_v58, %v3264_v30  ;;  %v1547_v50 = vadd.f32 %v3348_v13, %v3293_v43 }
 0x139   : > { %v2135_v32 = vadd.f32 %v3404_v62, %v2107_v17  ;;  %v2108_v26 = vadd.f32 %v2100_v59, %v1979_v35  ;;  %v3654_v59 = vld [vmem:[#allocation7_spill] sm:$0xff] }
 0x13a   : > { %v2133_v39 = vadd.f32 %v3407_v2, %v2105_v36  ;;  %v2106_v20 = vadd.f32 %v2098_v42, %v1977_v22  ;;  %v2768_v55 = vpop.f32.mrb[28].mxu0  ;;  %v2778_v3 = vpop.f32.mrb[28].mxu1  ;;  %v2149_v22 = vld [vmem:[%s3342_s23 + $0x28] sm:$0xff] }
 0x13b   : > { %v2163_v27 = vadd.f32 %v3413_v9, %v2135_v32  ;;  %v2136_v46 = vadd.f32 %v3420_v16, %v2108_v26  ;;  %v1974_v62 = vmul.f32 %v2768_v55, %v3398_v60  ;;  %v1952_v4 = vpop.f32.mrb[29].mxu0  ;;  %v2103_v57 = vmul.f32 %v2778_v3, %v3401_v61  ;;  %v2081_v2 = vpop.f32.mrb[29].mxu1  ;;  %v3656_v42 = vld [vmem:[#allocation10_spill] sm:$0xff]  ;;  %v3658_v55 = vld [vmem:[#allocation8_spill] sm:$0xff]  ;;  %v3661_v3 = vld [vmem:[#allocation9_spill] sm:$0xff] }
 0x13c   : > { %v2161_v23 = vadd.f32 %v3425_v31, %v2133_v39  ;;  %v2134_v30 = vadd.f32 %v3429_v41, %v2106_v20  ;;  %v1972_v58 = vmul.f32 %v3398_v60, %v1952_v4  ;;  %v2769_v33 = vpop.f32.mrb[30].mxu0  ;;  %v2101_v16 = vmul.f32 %v3401_v61, %v2081_v2  ;;  %v2779_v19 = vpop.f32.mrb[30].mxu1  ;;  %v2176_v20 = vld [vmem:[%s3378_s18 + $0x28] sm:$0xff]  ;;  %v3662_v4 = vld [vmem:[#allocation5_spill] sm:$0xff] }
 0x13d   : > { %v2190_v43 = vadd.f32 %v3445_v29, %v2163_v27  ;;  %v2164_v13 = vadd.f32 %v3434_v8, %v2136_v46  ;;  %v1982_v9 = vadd.f32 %v1974_v62, %v3440_v18  ;;  %v1955_v7 = vpop.f32.mrb[31].mxu0  ;;  %v1975_v8 = vmul.f32 %v2769_v33, %v3398_v60  ;;  %v2084_v18 = vpop.f32.mrb[31].mxu1  ;;  %v3659_v46 = vld [vmem:[#allocation15_spill] sm:$0xff] }
 0x13e   : > { %v2188_v31 = vadd.f32 %v3456_v48, %v2161_v23  ;;  %v2162_v41 = vadd.f32 %v3438_v53, %v2134_v30  ;;  %v1980_v29 = vadd.f32 %v1972_v58, %v3452_v54  ;;  %v2104_v11 = vmul.f32 %v2779_v19, %v3401_v61  ;;  %v3660_v62 = vld [vmem:[#allocation11_spill] sm:$0xff] }
 0x13f   : > { %v2198_v52 = vadd.f32 %v2190_v43, %v1597_v40  ;;  %v2191_v63 = vadd.f32 %v3468_v44, %v2164_v13  ;;  %v2111_v38 = vadd.f32 %v2103_v57, %v1982_v9  ;;  %v1983_v53 = vadd.f32 %v1975_v8, %v3465_v1  ;;  %v2178_v44 = vld [vmem:[%s3378_s18 + $0x38] sm:$0xff]  ;;  %v3664_v57 = vld [vmem:[#allocation14_spill] sm:$0xff]  ;;  %v3665_v13 = vld [vmem:[#allocation13_spill] sm:$0xff] }
 0x140   : > { %v2196_v34 = vadd.f32 %v2188_v31, %v1595_v10  ;;  %v2189_v49 = vadd.f32 %v3477_v25, %v2162_v41  ;;  %v2109_v48 = vadd.f32 %v2101_v16, %v1980_v29  ;;  %v1574_v54 = vadd.f32 %v3329_v0, %v1546_v24  ;;  %v3655_v0 = vld [vmem:[#allocation6_spill] sm:$0xff]  ;;  %v3657_v24 = vld [vmem:[#allocation12_spill] sm:$0xff] }
 0x141   : > { %2206 = vst.msk [vmem:[%s3551_s30 + $0x10] sm:$0xff] %vm1042_vm1, %v2198_v52  ;;  %v2199_v17 = vadd.f32 %v2191_v63, %v1598_v28  ;;  %v2139_v40 = vadd.f32 %v3480_v47, %v2111_v38  ;;  %v1973_v35 = vmul.f32 %v3398_v60, %v1955_v7  ;;  %v1572_v10 = vadd.f32 %v3654_v59, %v1544_v37  ;;  %v1583_v28 = vld [vmem:[%s3221_s2 + $0x28] sm:$0xff] }
 0x142   : > { %2204 = vst.msk [vmem:[%s3551_s30] sm:$0xff] %vm1042_vm1, %v2196_v34  ;;  %v2197_v25 = vadd.f32 %v2189_v49, %v1596_v5  ;;  %v2137_v36 = vadd.f32 %v3486_v12, %v2109_v48  ;;  %v2112_v1 = vadd.f32 %v2104_v11, %v1983_v53  ;;  %v1545_v32 = vadd.f32 %v3656_v42, %v3655_v0 }
 0x143   : > { %2207 = vst.msk [vmem:[%s3551_s30 + $0x18] sm:$0xff] %vm1042_vm1, %v2199_v17  ;;  %v2167_v47 = vadd.f32 %v3483_v6, %v2139_v40  ;;  %v1981_v60 = vadd.f32 %v1973_v35, %v3474_v21  ;;  %v2102_v26 = vmul.f32 %v3401_v61, %v2084_v18  ;;  %v1575_v37 = vadd.f32 %v3657_v24, %v1547_v50 }
 0x144   : > { %2205 = vst.msk [vmem:[%s3551_s30 + $0x8] sm:$0xff] %vm1042_vm1, %v2197_v25  ;;  %v2165_v12 = vadd.f32 %v3489_v51, %v2137_v36  ;;  %v2140_v5 = vadd.f32 %v3492_v56, %v2112_v1  ;;  %v2187_v39 = vmul.f32 %v3417_v15, %v2178_v44  ;;  %v1601_v27 = vadd.f32 %v3658_v55, %v1574_v54  ;;  %v3663_v56 = vld [vmem:[#allocation16_spill] sm:$0xff] }
 0x145   : > { %v2194_v6 = vadd.f32 %v3659_v46, %v2167_v47  ;;  %v2110_v21 = vadd.f32 %v2102_v26, %v1981_v60  ;;  %v2158_v61 = vmul.f32 %v3660_v62, %v2149_v22  ;;  %v1599_v50 = vadd.f32 %v3661_v3, %v1572_v10 }
 0x146   : > { %v1592_v23 = vmul.f32 %v3662_v4, %v1583_v28  ;;  %v2192_v51 = vadd.f32 %v3515_v14, %v2165_v12  ;;  %v2168_v30 = vadd.f32 %v3663_v56, %v2140_v5  ;;  %v1573_v58 = vadd.f32 %v3664_v57, %v1545_v32 }
 0x147   : > { %v2202_v2 = vadd.f32 %v2194_v6, %v1601_v27  ;;  %v2138_v33 = vadd.f32 %v3518_v45, %v2110_v21  ;;  %v2185_v43 = vmul.f32 %v3417_v15, %v2176_v20  ;;  %v1602_v9 = vadd.f32 %v3665_v13, %v1575_v37 }
 0x148   : > { %v2200_v16 = vadd.f32 %v2192_v51, %v1599_v50  ;;  %v2195_v19 = vadd.f32 %v2187_v39, %v2168_v30  ;;  %v1600_v31 = vadd.f32 %v1592_v23, %v1573_v58 }
 0x149   : > { %2210 = vst.msk [vmem:[%s3551_s30 + $0x30] sm:$0xff] %vm1042_vm1, %v2202_v2  ;;  %v2166_v7 = vadd.f32 %v2158_v61, %v2138_v33 }
 0x14a   : > { %2208 = vst.msk [vmem:[%s3551_s30 + $0x20] sm:$0xff] %vm1042_vm1, %v2200_v16  ;;  %v2203_v14 = vadd.f32 %v2195_v19, %v1602_v9 }
 0x14b   : > { %v2193_v41 = vadd.f32 %v2185_v43, %v2166_v7 }
 0x14c   : > { %2211 = vst.msk [vmem:[%s3551_s30 + $0x38] sm:$0xff] %vm1042_vm1, %v2203_v14 }
 0x14d   : > { %v2201_v29 = vadd.f32 %v2193_v41, %v1600_v31 }
 0x14f   : > { %2209 = vst.msk [vmem:[%s3551_s30 + $0x28] sm:$0xff] %vm1042_vm1, %v2201_v29 }
 0x150 PF: > { %s32_s28 = sadd.s32 1, %s2881_s28   ;;  %s3666_s26 = smov %s2877_s27 }
 0x151   : > { %p29_p10 = scmp.ge.s32.totalorder %s32_s28, 4   ;;  %s3667_s27 = smov %s3669_s8 }
 0x153   :  { %31 = sbr.rel (!%p29_p10) target bundleno = 24 (0x18), region = 156 }

// kernel: _lambda_.39
= control target key start
LH: loop header
LB: loop body
LE: loop exit
PB: predicated region body
PF: predicated region fallthrough
CT: control target
= control target key end

     0   :  { %s1362_s18 = smov 0   ;;  %s1364_s19 = smov 0   ;;  %s1517_s0 = inlined_call_operand.vmem [shape: bf16[3,128,8], index: 0, kind: input, shape index: {}]   ;;  %s1518_s1 = inlined_call_operand.vmem [shape: bf16[3,128,8], index: 1, kind: input, shape index: {}]   ;;  %s1519_s2 = inlined_call_operand.vmem [shape: bf16[3,8,8], index: 2, kind: input, shape index: {}]   ;;  %s1520_s3 = inlined_call_operand.vmem [shape: bf16[3,8,8], index: 3, kind: input, shape index: {}]   ;;  %s1521_s4 = inlined_call_operand.vmem [shape: bf16[3,128,8], index: 4, kind: output, shape index: {0}]   ;;  %s1522_s5 = inlined_call_operand.vmem [shape: bf16[3,128,8], index: 5, kind: output, shape index: {1}]  }
   0x1   :  { %s1366_s20 = smov 0  }
   0x2 LB: > { %s28_s21 = sadd.s32 1, %s1326_s19  ;;  %p1099_p0 = scmp.ge.s32.totalorder %s1330_s20, 1  ;;  %s1330_s20 = sphi %s1366_s20, %s16_s20   ;;  %s1326_s19 = sphi %s1364_s19, %s1524_s19   ;;  %s1322_s18 = sphi %s1362_s18, %s1523_s18  }
   0x3   : > { %p30_p1 = scmp.ge.s32.totalorder %s28_s21, 3  ;;  %p248_p2 = scmp.lt.s32.totalorder %s1330_s20, 4 }
   0x5   : > { %s1526_s21 = smov (%p30_p1, %s28_s21), 0  ;;  %p249_p3 = pnand %p1099_p0, %p248_p2 }
   0x6   : > { %p311_p4 = scmp.lt.s32.totalorder (!%p249_p3), %s1322_s18, 2  ;;  %vm441_vm0 = vcmask (!%p249_p3), 1043456   ;;  %vm416_vm1 = vcmask (!%p249_p3), 64512   ;;  %vm803_vm2 = vcmask (!%p249_p3), 60416  }
   0x7   : > { %252 = sbr.rel (%p249_p3) target bundleno = 268 (0x10c), region = 36 }
   0xe   : > { %s1528_s18 = smov (!%p311_p4, %s1322_s18), 2 }
   0xf   : > { %s1380_s22 = sshll.u32 %s1528_s18, 6  ;;  %s1104_s23 = sshll.u32 %s1528_s18, 2 }
  0x10   : > { %s1386_s26 = scalar_lea.vmem %s1517_s0, %s1380_s22  ;;  %s1392_s29 = scalar_lea.vmem %s1518_s1, %s1380_s22 }
  0x11   : > { %s333_s7 = scalar_lea.vmem %s1519_s2, %s1104_s23  ;;  %v1292_v0 = vld [vmem:[%s1386_s26] sm:$0xff]   ;;  %s337_s10 = scalar_lea.vmem %s1520_s3, %s1104_s23  ;;  %v1294_v6 = vld [vmem:[%s1386_s26 + $0x8] sm:$0xff]   ;;  %v1296_v8 = vld [vmem:[%s1386_s26 + $0x10] sm:$0xff]  }
  0x12   : > { %v375_v1 = vld [vmem:[%s333_s7] sm:$0xf]  ;;  %1232 = vmatprep.mubr.msk.bf16.mxu0 %vm416_vm1, %v1292_v0  ;;  %v1295_v7 = vld [vmem:[%s1392_s29 + $0x8] sm:$0xff]   ;;  %v1297_v9 = vld [vmem:[%s1392_s29 + $0x10] sm:$0xff]   ;;  %s1436_s13 = scalar_lea.vmem %s1521_s4, %s1380_s22  ;;  %s1442_s16 = scalar_lea.vmem %s1522_s5, %s1380_s22 }
  0x13   : > { %1266 = vmatprep.subr.msk.bf16.mxu0 %vm441_vm0, %v375_v1  ;;  %v558_v2 = vld [vmem:[%s337_s10] sm:$0xf]  ;;  %v443_v3 = vsel %vm441_vm0, %v375_v1, 0  ;;  %v1298_v10 = vld [vmem:[%s1386_s26 + $0x18] sm:$0xff]   ;;  %v1302_v14 = vld [vmem:[%s1386_s26 + $0x28] sm:$0xff]  }
  0x14   : > { %v1293_v4 = vld [vmem:[%s1392_s29] sm:$0xff]   ;;  %1267 = vmatprep.subr.msk.bf16.mxu1 %vm441_vm0, %v558_v2  ;;  %1231 = vmatpush3.bf16.msra.mxu0 %v443_v3  ;;  %v624_v5 = vsel %vm441_vm0, %v558_v2, 0  ;;  %v1299_v11 = vld [vmem:[%s1392_s29 + $0x18] sm:$0xff]   ;;  %v1303_v15 = vld [vmem:[%s1392_s29 + $0x28] sm:$0xff]  }
  0x15   : > { %1249 = vmatpush3.bf16.msra.mxu1 %v624_v5  ;;  %1250 = vmatprep.mubr.msk.bf16.mxu1 %vm416_vm1, %v1293_v4  ;;  %v1300_v12 = vld [vmem:[%s1386_s26 + $0x20] sm:$0xff]   ;;  %v1304_v16 = vld [vmem:[%s1386_s26 + $0x30] sm:$0xff]   ;;  %v1306_v18 = vld [vmem:[%s1386_s26 + $0x38] sm:$0xff]  }
  0x16   : > { %v1301_v13 = vld [vmem:[%s1392_s29 + $0x20] sm:$0xff]   ;;  %v1305_v17 = vld [vmem:[%s1392_s29 + $0x30] sm:$0xff]   ;;  %v1307_v19 = vld [vmem:[%s1392_s29 + $0x38] sm:$0xff]  }
  0x17   : > { %1233 = vmatmul.mubr.msk.bf16.vlgmr.msra.gmra.mrb[0].mxu0 %vm416_vm1, %v1294_v6 }
  0x18   : > { %1251 = vmatmul.mubr.msk.bf16.vlgmr.msra.gmra.mrb[0].mxu1 %vm416_vm1, %v1295_v7  ;;  %1236 = vmatprep.mubr.msk.bf16.mxu0 %vm416_vm1, %v1296_v8 }
  0x19   : > { %1254 = vmatprep.mubr.msk.bf16.mxu1 %vm416_vm1, %v1297_v9 }
  0x1f   : > { %1237 = vmatmul.mubr.msk.bf16.gmra.mrb[4].mxu0 %vm416_vm1, %v1298_v10 }
  0x20   : > { %1255 = vmatmul.mubr.msk.bf16.gmra.mrb[4].mxu1 %vm416_vm1, %v1299_v11  ;;  %1240 = vmatprep.mubr.msk.bf16.mxu0 %vm416_vm1, %v1300_v12 }
  0x21   : > { %1258 = vmatprep.mubr.msk.bf16.mxu1 %vm416_vm1, %v1301_v13 }
  0x27   : > { %1241 = vmatmul.mubr.msk.bf16.gmra.mrb[8].mxu0 %vm416_vm1, %v1302_v14 }
  0x28   : > { %1259 = vmatmul.mubr.msk.bf16.gmra.mrb[8].mxu1 %vm416_vm1, %v1303_v15  ;;  %1244 = vmatprep.mubr.msk.bf16.mxu0 %vm416_vm1, %v1304_v16 }
  0x29   : > { %1262 = vmatprep.mubr.msk.bf16.mxu1 %vm416_vm1, %v1305_v17 }
  0x2f   : > { %1245 = vmatmul.mubr.msk.bf16.gmra.mrb[12].mxu0 %vm416_vm1, %v1306_v18 }
  0x30   : > { %1263 = vmatmul.mubr.msk.bf16.gmra.mrb[12].mxu1 %vm416_vm1, %v1307_v19 }
  0xea   : > { %v1234_v20 = vpop.f32.mrb[0].mxu0 }
  0xeb   : > { %v725_v21 = vmax.f32 %v1234_v20, 0.0  ;;  %v1252_v22 = vpop.f32.mrb[0].mxu1  ;;  %v479_v23 = vpop.f32.mrb[1].mxu0 }
  0xec   : > { %v822_v24 = vmax.f32 %v1252_v22, 0.0  ;;  %v723_v25 = vmax.f32 %v479_v23, 0.0  ;;  %v660_v26 = vpop.f32.mrb[1].mxu1  ;;  %v1235_v27 = vpop.f32.mrb[2].mxu0 }
  0xed   : > { %v1182_v28 = vpack.c.bf16 %v725_v21, %v725_v21  ;;  %v820_v29 = vmax.f32 %v660_v26, 0.0  ;;  %v726_v30 = vmax.f32 %v1235_v27, 0.0  ;;  %v1253_v31 = vpop.f32.mrb[2].mxu1  ;;  %v482_v32 = vpop.f32.mrb[3].mxu0 }
  0xee   : > { %v1198_v33 = vpack.c.bf16 %v822_v24, %v822_v24  ;;  %v1180_v34 = vpack.c.bf16 %v723_v25, %v723_v25  ;;  %v823_v35 = vmax.f32 %v1253_v31, 0.0  ;;  %v724_v36 = vmax.f32 %v482_v32, 0.0  ;;  %v663_v37 = vpop.f32.mrb[3].mxu1 }
  0xef   : > { %806 = vst.msk [vmem:[%s1436_s13 + $0x8] sm:$0xf] %vm803_vm2, %v1182_v28  ;;  %v1196_v38 = vpack.c.bf16 %v820_v29, %v820_v29  ;;  %v1183_v39 = vpack.c.bf16 %v726_v30, %v726_v30  ;;  %v821_v40 = vmax.f32 %v663_v37, 0.0 }
  0xf0   : > { %902 = vst.msk [vmem:[%s1442_s16 + $0x8] sm:$0xf] %vm803_vm2, %v1198_v33  ;;  %804 = vst.msk [vmem:[%s1436_s13] sm:$0xf] %vm803_vm2, %v1180_v34  ;;  %v1199_v41 = vpack.c.bf16 %v823_v35, %v823_v35  ;;  %v1181_v42 = vpack.c.bf16 %v724_v36, %v724_v36 }
  0xf1   : > { %900 = vst.msk [vmem:[%s1442_s16] sm:$0xf] %vm803_vm2, %v1196_v38  ;;  %807 = vst.msk [vmem:[%s1436_s13 + $0xc] sm:$0xf] %vm803_vm2, %v1183_v39  ;;  %v1197_v43 = vpack.c.bf16 %v821_v40, %v821_v40 }
  0xf2   : > { %903 = vst.msk [vmem:[%s1442_s16 + $0xc] sm:$0xf] %vm803_vm2, %v1199_v41  ;;  %805 = vst.msk [vmem:[%s1436_s13 + $0x4] sm:$0xf] %vm803_vm2, %v1181_v42  ;;  %v1238_v44 = vpop.f32.mrb[4].mxu0 }
  0xf3   : > { %901 = vst.msk [vmem:[%s1442_s16 + $0x4] sm:$0xf] %vm803_vm2, %v1197_v43  ;;  %v729_v45 = vmax.f32 %v1238_v44, 0.0  ;;  %v1256_v46 = vpop.f32.mrb[4].mxu1  ;;  %v495_v47 = vpop.f32.mrb[5].mxu0 }
  0xf4   : > { %v826_v48 = vmax.f32 %v1256_v46, 0.0  ;;  %v727_v49 = vmax.f32 %v495_v47, 0.0  ;;  %v676_v50 = vpop.f32.mrb[5].mxu1  ;;  %v1239_v51 = vpop.f32.mrb[6].mxu0 }
  0xf5   : > { %v1186_v52 = vpack.c.bf16 %v729_v45, %v729_v45  ;;  %v824_v53 = vmax.f32 %v676_v50, 0.0  ;;  %v730_v54 = vmax.f32 %v1239_v51, 0.0  ;;  %v1257_v55 = vpop.f32.mrb[6].mxu1  ;;  %v498_v56 = vpop.f32.mrb[7].mxu0 }
  0xf6   : > { %v1202_v57 = vpack.c.bf16 %v826_v48, %v826_v48  ;;  %v1184_v58 = vpack.c.bf16 %v727_v49, %v727_v49  ;;  %v827_v59 = vmax.f32 %v1257_v55, 0.0  ;;  %v728_v60 = vmax.f32 %v498_v56, 0.0  ;;  %v679_v61 = vpop.f32.mrb[7].mxu1 }
  0xf7   : > { %810 = vst.msk [vmem:[%s1436_s13 + $0x18] sm:$0xf] %vm803_vm2, %v1186_v52  ;;  %v1200_v62 = vpack.c.bf16 %v824_v53, %v824_v53  ;;  %v1187_v63 = vpack.c.bf16 %v730_v54, %v730_v54  ;;  %v825_v0 = vmax.f32 %v679_v61, 0.0 }
  0xf8   : > { %906 = vst.msk [vmem:[%s1442_s16 + $0x18] sm:$0xf] %vm803_vm2, %v1202_v57  ;;  %808 = vst.msk [vmem:[%s1436_s13 + $0x10] sm:$0xf] %vm803_vm2, %v1184_v58  ;;  %v1203_v1 = vpack.c.bf16 %v827_v59, %v827_v59  ;;  %v1185_v2 = vpack.c.bf16 %v728_v60, %v728_v60 }
  0xf9   : > { %904 = vst.msk [vmem:[%s1442_s16 + $0x10] sm:$0xf] %vm803_vm2, %v1200_v62  ;;  %811 = vst.msk [vmem:[%s1436_s13 + $0x1c] sm:$0xf] %vm803_vm2, %v1187_v63  ;;  %v1201_v3 = vpack.c.bf16 %v825_v0, %v825_v0 }
  0xfa   : > { %907 = vst.msk [vmem:[%s1442_s16 + $0x1c] sm:$0xf] %vm803_vm2, %v1203_v1  ;;  %809 = vst.msk [vmem:[%s1436_s13 + $0x14] sm:$0xf] %vm803_vm2, %v1185_v2  ;;  %v1242_v4 = vpop.f32.mrb[8].mxu0 }
  0xfb   : > { %905 = vst.msk [vmem:[%s1442_s16 + $0x14] sm:$0xf] %vm803_vm2, %v1201_v3  ;;  %v733_v5 = vmax.f32 %v1242_v4, 0.0  ;;  %v1260_v6 = vpop.f32.mrb[8].mxu1  ;;  %v511_v7 = vpop.f32.mrb[9].mxu0 }
  0xfc   : > { %v830_v8 = vmax.f32 %v1260_v6, 0.0  ;;  %v731_v9 = vmax.f32 %v511_v7, 0.0  ;;  %v692_v10 = vpop.f32.mrb[9].mxu1  ;;  %v1243_v11 = vpop.f32.mrb[10].mxu0 }
  0xfd   : > { %v1190_v12 = vpack.c.bf16 %v733_v5, %v733_v5  ;;  %v828_v13 = vmax.f32 %v692_v10, 0.0  ;;  %v734_v14 = vmax.f32 %v1243_v11, 0.0  ;;  %v1261_v15 = vpop.f32.mrb[10].mxu1  ;;  %v514_v16 = vpop.f32.mrb[11].mxu0 }
  0xfe   : > { %v1206_v17 = vpack.c.bf16 %v830_v8, %v830_v8  ;;  %v1188_v18 = vpack.c.bf16 %v731_v9, %v731_v9  ;;  %v831_v19 = vmax.f32 %v1261_v15, 0.0  ;;  %v732_v20 = vmax.f32 %v514_v16, 0.0  ;;  %v695_v21 = vpop.f32.mrb[11].mxu1 }
  0xff   : > { %814 = vst.msk [vmem:[%s1436_s13 + $0x28] sm:$0xf] %vm803_vm2, %v1190_v12  ;;  %v1204_v22 = vpack.c.bf16 %v828_v13, %v828_v13  ;;  %v1191_v23 = vpack.c.bf16 %v734_v14, %v734_v14  ;;  %v829_v24 = vmax.f32 %v695_v21, 0.0 }
 0x100   : > { %910 = vst.msk [vmem:[%s1442_s16 + $0x28] sm:$0xf] %vm803_vm2, %v1206_v17  ;;  %812 = vst.msk [vmem:[%s1436_s13 + $0x20] sm:$0xf] %vm803_vm2, %v1188_v18  ;;  %v1207_v25 = vpack.c.bf16 %v831_v19, %v831_v19  ;;  %v1189_v26 = vpack.c.bf16 %v732_v20, %v732_v20 }
 0x101   : > { %908 = vst.msk [vmem:[%s1442_s16 + $0x20] sm:$0xf] %vm803_vm2, %v1204_v22  ;;  %815 = vst.msk [vmem:[%s1436_s13 + $0x2c] sm:$0xf] %vm803_vm2, %v1191_v23  ;;  %v1205_v27 = vpack.c.bf16 %v829_v24, %v829_v24 }
 0x102   : > { %911 = vst.msk [vmem:[%s1442_s16 + $0x2c] sm:$0xf] %vm803_vm2, %v1207_v25  ;;  %813 = vst.msk [vmem:[%s1436_s13 + $0x24] sm:$0xf] %vm803_vm2, %v1189_v26  ;;  %v1246_v28 = vpop.f32.mrb[12].mxu0 }
 0x103   : > { %909 = vst.msk [vmem:[%s1442_s16 + $0x24] sm:$0xf] %vm803_vm2, %v1205_v27  ;;  %v737_v29 = vmax.f32 %v1246_v28, 0.0  ;;  %v1264_v30 = vpop.f32.mrb[12].mxu1  ;;  %v527_v31 = vpop.f32.mrb[13].mxu0 }
 0x104   : > { %v834_v32 = vmax.f32 %v1264_v30, 0.0  ;;  %v735_v33 = vmax.f32 %v527_v31, 0.0  ;;  %v708_v34 = vpop.f32.mrb[13].mxu1  ;;  %v1247_v35 = vpop.f32.mrb[14].mxu0 }
 0x105   : > { %v1194_v36 = vpack.c.bf16 %v737_v29, %v737_v29  ;;  %v832_v37 = vmax.f32 %v708_v34, 0.0  ;;  %v738_v38 = vmax.f32 %v1247_v35, 0.0  ;;  %v1265_v39 = vpop.f32.mrb[14].mxu1  ;;  %v530_v40 = vpop.f32.mrb[15].mxu0 }
 0x106   : > { %v1210_v41 = vpack.c.bf16 %v834_v32, %v834_v32  ;;  %v1192_v42 = vpack.c.bf16 %v735_v33, %v735_v33  ;;  %v835_v43 = vmax.f32 %v1265_v39, 0.0  ;;  %v736_v44 = vmax.f32 %v530_v40, 0.0  ;;  %v711_v45 = vpop.f32.mrb[15].mxu1 }
 0x107   : > { %818 = vst.msk [vmem:[%s1436_s13 + $0x38] sm:$0xf] %vm803_vm2, %v1194_v36  ;;  %v1208_v46 = vpack.c.bf16 %v832_v37, %v832_v37  ;;  %v1195_v47 = vpack.c.bf16 %v738_v38, %v738_v38  ;;  %v833_v48 = vmax.f32 %v711_v45, 0.0 }
 0x108   : > { %914 = vst.msk [vmem:[%s1442_s16 + $0x38] sm:$0xf] %vm803_vm2, %v1210_v41  ;;  %816 = vst.msk [vmem:[%s1436_s13 + $0x30] sm:$0xf] %vm803_vm2, %v1192_v42  ;;  %v1211_v49 = vpack.c.bf16 %v835_v43, %v835_v43  ;;  %v1193_v50 = vpack.c.bf16 %v736_v44, %v736_v44 }
 0x109   : > { %912 = vst.msk [vmem:[%s1442_s16 + $0x30] sm:$0xf] %vm803_vm2, %v1208_v46  ;;  %819 = vst.msk [vmem:[%s1436_s13 + $0x3c] sm:$0xf] %vm803_vm2, %v1195_v47  ;;  %v1209_v51 = vpack.c.bf16 %v833_v48, %v833_v48 }
 0x10a   : > { %915 = vst.msk [vmem:[%s1442_s16 + $0x3c] sm:$0xf] %vm803_vm2, %v1211_v49  ;;  %817 = vst.msk [vmem:[%s1436_s13 + $0x34] sm:$0xf] %vm803_vm2, %v1193_v50 }
 0x10b   : > { %913 = vst.msk [vmem:[%s1442_s16 + $0x34] sm:$0xf] %vm803_vm2, %v1209_v51 }
 0x10c PF: > { %s16_s20 = sadd.s32 1, %s1330_s20   ;;  %s1523_s18 = smov %s1326_s19 }
 0x10d   : > { %p13_p5 = scmp.ge.s32.totalorder %s16_s20, 5   ;;  %s1524_s19 = smov %s1526_s21 }
 0x10f   :  { %15 = sbr.rel (!%p13_p5) target bundleno = 2 (0x2), region = 87 }

// kernel: _lambda_.45
= control target key start
LH: loop header
LB: loop body
LE: loop exit
PB: predicated region body
PF: predicated region fallthrough
CT: control target
= control target key end

     0   :  { %s901_s18 = smov 0   ;;  %s903_s19 = smov 0   ;;  %s960_s0 = inlined_call_operand.vmem [shape: bf16[2,32,16], index: 0, kind: input, shape index: {}]   ;;  %s961_s1 = inlined_call_operand.vmem [shape: bf16[2,32,16], index: 1, kind: input, shape index: {}]   ;;  %s962_s2 = inlined_call_operand.vmem [shape: bf16[2,16,16], index: 2, kind: input, shape index: {}]   ;;  %s963_s3 = inlined_call_operand.vmem [shape: bf16[2,16,16], index: 3, kind: input, shape index: {}]   ;;  %s964_s4 = inlined_call_operand.vmem [shape: bf16[2,32,16], index: 4, kind: output, shape index: {0}]   ;;  %s965_s5 = inlined_call_operand.vmem [shape: bf16[2,32,16], index: 5, kind: output, shape index: {1}]  }
   0x1   :  { %s905_s20 = smov 0  }
   0x2 LB: > { %s28_s21 = sadd.s32 1, %s865_s19  ;;  %p752_p0 = scmp.ge.s32.totalorder %s869_s20, 1  ;;  %s869_s20 = sphi %s905_s20, %s16_s20   ;;  %s865_s19 = sphi %s903_s19, %s967_s19   ;;  %s861_s18 = sphi %s901_s18, %s966_s18  }
   0x3   : > { %p30_p1 = scmp.ge.s32.totalorder %s28_s21, 2  ;;  %p250_p2 = scmp.lt.s32.totalorder %s869_s20, 3 }
   0x5   : > { %s969_s21 = smov (%p30_p1, %s28_s21), 0  ;;  %p251_p3 = pnand %p752_p0, %p250_p2 }
   0x6   : > { %p315_p4 = scmp.lt.s32.totalorder (!%p251_p3), %s861_s18, 1  ;;  %vm387_vm0 = vcmask (!%p251_p3), 130048   ;;  %vm540_vm1 = vcmask (!%p251_p3), 125952  }
   0x7   : > { %254 = sbr.rel (%p251_p3) target bundleno = 243 (0xf3), region = 36 }
   0xe   : > { %s971_s18 = smov (!%p315_p4, %s861_s18), 1 }
   0xf   : > { %s919_s22 = sshll.u32 %s971_s18, 4  ;;  %s787_s23 = sshll.u32 %s971_s18, 3 }
  0x10   : > { %s338_s26 = scalar_lea.vmem %s962_s2, %s787_s23  ;;  %s343_s29 = scalar_lea.vmem %s963_s3, %s787_s23 }
  0x11   : > { %v841_v0 = vld [vmem:[%s338_s26] sm:$0xff]   ;;  %s322_s7 = scalar_lea.vmem %s960_s0, %s919_s22  ;;  %s332_s10 = scalar_lea.vmem %s961_s1, %s919_s22 }
  0x12   : > { %v842_v1 = vld [vmem:[%s343_s29] sm:$0xff]   ;;  %805 = vmatprep.subr.bf16.mxu0 %v841_v0  ;;  %v845_v4 = vld [vmem:[%s322_s7 + $0x8] sm:$0xff]   ;;  %s352_s13 = scalar_lea.vmem %s964_s4, %s919_s22  ;;  %s362_s16 = scalar_lea.vmem %s965_s5, %s919_s22 }
  0x13   : > { %v843_v2 = vld [vmem:[%s322_s7] sm:$0xff]   ;;  %811 = vmatprep.subr.bf16.mxu1 %v842_v1  ;;  %806 = vmatpush3.bf16.msra.mxu0 %v841_v0  ;;  %v846_v5 = vld [vmem:[%s332_s10 + $0x8] sm:$0xff]  }
  0x14   : > { %v844_v3 = vld [vmem:[%s332_s10] sm:$0xff]   ;;  %812 = vmatpush3.bf16.msra.mxu1 %v842_v1  ;;  %807 = vmatprep.mubr.msk.bf16.mxu0 %vm387_vm0, %v843_v2 }
  0x15   : > { %813 = vmatprep.mubr.msk.bf16.mxu1 %vm387_vm0, %v844_v3 }
  0x16   : > { %808 = vmatmul.mubr.msk.bf16.vlgmr.msra.gmra.mrb[0].mxu0 %vm387_vm0, %v845_v4 }
  0x17   : > { %814 = vmatmul.mubr.msk.bf16.vlgmr.msra.gmra.mrb[0].mxu1 %vm387_vm0, %v846_v5 }
  0xe9   : > { %v809_v6 = vpop.f32.mrb[0].mxu0 }
  0xea   : > { %v522_v7 = vmax.f32 %v809_v6, 0.0  ;;  %v815_v8 = vpop.f32.mrb[0].mxu1  ;;  %v428_v9 = vpop.f32.mrb[1].mxu0 }
  0xeb   : > { %v547_v10 = vmax.f32 %v815_v8, 0.0  ;;  %v520_v11 = vmax.f32 %v428_v9, 0.0  ;;  %v505_v12 = vpop.f32.mrb[1].mxu1  ;;  %v810_v13 = vpop.f32.mrb[2].mxu0 }
  0xec   : > { %v793_v14 = vpack.c.bf16 %v522_v7, %v522_v7  ;;  %v545_v15 = vmax.f32 %v505_v12, 0.0  ;;  %v523_v16 = vmax.f32 %v810_v13, 0.0  ;;  %v816_v17 = vpop.f32.mrb[2].mxu1  ;;  %v431_v18 = vpop.f32.mrb[3].mxu0 }
  0xed   : > { %v797_v19 = vpack.c.bf16 %v547_v10, %v547_v10  ;;  %v791_v20 = vpack.c.bf16 %v520_v11, %v520_v11  ;;  %v548_v21 = vmax.f32 %v816_v17, 0.0  ;;  %v521_v22 = vmax.f32 %v431_v18, 0.0  ;;  %v508_v23 = vpop.f32.mrb[3].mxu1 }
  0xee   : > { %543 = vst.msk [vmem:[%s352_s13 + $0x8] sm:$0xf] %vm540_vm1, %v793_v14  ;;  %v795_v24 = vpack.c.bf16 %v545_v15, %v545_v15  ;;  %v794_v25 = vpack.c.bf16 %v523_v16, %v523_v16  ;;  %v546_v26 = vmax.f32 %v508_v23, 0.0 }
  0xef   : > { %567 = vst.msk [vmem:[%s362_s16 + $0x8] sm:$0xf] %vm540_vm1, %v797_v19  ;;  %541 = vst.msk [vmem:[%s352_s13] sm:$0xf] %vm540_vm1, %v791_v20  ;;  %v798_v27 = vpack.c.bf16 %v548_v21, %v548_v21  ;;  %v792_v28 = vpack.c.bf16 %v521_v22, %v521_v22 }
  0xf0   : > { %565 = vst.msk [vmem:[%s362_s16] sm:$0xf] %vm540_vm1, %v795_v24  ;;  %544 = vst.msk [vmem:[%s352_s13 + $0xc] sm:$0xf] %vm540_vm1, %v794_v25  ;;  %v796_v29 = vpack.c.bf16 %v546_v26, %v546_v26 }
  0xf1   : > { %568 = vst.msk [vmem:[%s362_s16 + $0xc] sm:$0xf] %vm540_vm1, %v798_v27  ;;  %542 = vst.msk [vmem:[%s352_s13 + $0x4] sm:$0xf] %vm540_vm1, %v792_v28 }
  0xf2   : > { %566 = vst.msk [vmem:[%s362_s16 + $0x4] sm:$0xf] %vm540_vm1, %v796_v29 }
  0xf3 PF: > { %s16_s20 = sadd.s32 1, %s869_s20   ;;  %s966_s18 = smov %s865_s19 }
  0xf4   : > { %p13_p5 = scmp.ge.s32.totalorder %s16_s20, 4   ;;  %s967_s19 = smov %s969_s21 }
  0xf6   :  { %15 = sbr.rel (!%p13_p5) target bundleno = 2 (0x2), region = 87 }

// kernel: _lambda_.42
= control target key start
LH: loop header
LB: loop body
LE: loop exit
PB: predicated region body
PF: predicated region fallthrough
CT: control target
= control target key end

     0   :  { %vm60_vm0 = vcmask 130048   ;;  %s379_s1 = inlined_call_operand.vmem [shape: bf16[16,16], index: 1, kind: input, shape index: {}]   ;;  %s380_s0 = inlined_call_operand.vmem [shape: f32[128,16], index: 0, kind: input, shape index: {}]   ;;  %s381_s2 = inlined_call_operand.vmem [shape: f32[128,16], index: 2, kind: output, shape index: {}]  }
   0x1   :  { %v240_v0 = vld [vmem:[%s379_s1] sm:$0xff]   ;;  %v13_v2 = vld [vmem:[%s380_s0 + $0x8] sm:$0xff]  ;;  %v14_v8 = vld [vmem:[%s380_s0 + $0x10] sm:$0xff] }
   0x2   :  { %v12_v1 = vld [vmem:[%s380_s0] sm:$0xff]  ;;  %220 = vmatprep.subr.bf16.mxu0 %v240_v0  ;;  %238 = vmatprep.subr.bf16.mxu1 %v240_v0  ;;  %v29_v5 = vmax.f32 %v13_v2, 0.0  ;;  %v21_v6 = vld [vmem:[%s380_s0 + $0x48] sm:$0xff]  ;;  %v15_v9 = vld [vmem:[%s380_s0 + $0x18] sm:$0xff]  ;;  %v30_v11 = vmax.f32 %v14_v8, 0.0 }
   0x3   :  { %v20_v3 = vld [vmem:[%s380_s0 + $0x40] sm:$0xff]  ;;  %v28_v4 = vmax.f32 %v12_v1, 0.0  ;;  %221 = vmatpush3.bf16.msra.mxu0 %v240_v0  ;;  %239 = vmatpush3.bf16.msra.mxu1 %v240_v0  ;;  %v37_v10 = vmax.f32 %v21_v6, 0.0  ;;  %v31_v12 = vmax.f32 %v15_v9, 0.0  ;;  %v22_v13 = vld [vmem:[%s380_s0 + $0x50] sm:$0xff]  ;;  %v23_v14 = vld [vmem:[%s380_s0 + $0x58] sm:$0xff] }
   0x4   :  { %v36_v7 = vmax.f32 %v20_v3, 0.0  ;;  %v16_v15 = vld [vmem:[%s380_s0 + $0x20] sm:$0xff]  ;;  %v38_v17 = vmax.f32 %v22_v13, 0.0  ;;  %v39_v18 = vmax.f32 %v23_v14, 0.0  ;;  %v17_v19 = vld [vmem:[%s380_s0 + $0x28] sm:$0xff]  ;;  %v18_v27 = vld [vmem:[%s380_s0 + $0x30] sm:$0xff] }
   0x5   :  { %v44_v16 = vpack.c.bf16 %v29_v5, %v28_v4  ;;  %v32_v20 = vmax.f32 %v16_v15, 0.0  ;;  %v24_v21 = vld [vmem:[%s380_s0 + $0x60] sm:$0xff]  ;;  %v25_v22 = vld [vmem:[%s380_s0 + $0x68] sm:$0xff]  ;;  %v45_v24 = vpack.c.bf16 %v31_v12, %v30_v11  ;;  %v33_v25 = vmax.f32 %v17_v19, 0.0  ;;  %v19_v28 = vld [vmem:[%s380_s0 + $0x38] sm:$0xff] }
   0x6   :  { %v48_v23 = vpack.c.bf16 %v37_v10, %v36_v7  ;;  %v40_v26 = vmax.f32 %v24_v21, 0.0  ;;  %v26_v29 = vld [vmem:[%s380_s0 + $0x70] sm:$0xff]  ;;  %v49_v30 = vpack.c.bf16 %v39_v18, %v38_v17  ;;  %v41_v31 = vmax.f32 %v25_v22, 0.0  ;;  %v27_v32 = vld [vmem:[%s380_s0 + $0x78] sm:$0xff] }
   0x7   :  { %222 = vmatprep.mubr.msk.bf16.mxu0 %vm60_vm0, %v44_v16  ;;  %v46_v33 = vpack.c.bf16 %v33_v25, %v32_v20  ;;  %v34_v34 = vmax.f32 %v18_v27, 0.0  ;;  %v35_v35 = vmax.f32 %v19_v28, 0.0  ;;  %v42_v37 = vmax.f32 %v26_v29, 0.0 }
   0x8   :  { %230 = vmatprep.mubr.msk.bf16.mxu1 %vm60_vm0, %v48_v23  ;;  %223 = vmatmul.mubr.msk.bf16.vlgmr.msra.gmra.mrb[0].mxu0 %vm60_vm0, %v45_v24  ;;  %v50_v36 = vpack.c.bf16 %v41_v31, %v40_v26  ;;  %v43_v38 = vmax.f32 %v27_v32, 0.0 }
   0x9   :  { %231 = vmatmul.mubr.msk.bf16.vlgmr.msra.gmra.mrb[0].mxu1 %vm60_vm0, %v49_v30  ;;  %226 = vmatprep.mubr.msk.bf16.mxu0 %vm60_vm0, %v46_v33  ;;  %v47_v39 = vpack.c.bf16 %v35_v35, %v34_v34 }
   0xa   :  { %234 = vmatprep.mubr.msk.bf16.mxu1 %vm60_vm0, %v50_v36  ;;  %v51_v40 = vpack.c.bf16 %v43_v38, %v42_v37 }
  0x10   :  { %227 = vmatmul.mubr.msk.bf16.gmra.mrb[4].mxu0 %vm60_vm0, %v47_v39 }
  0x11   :  { %235 = vmatmul.mubr.msk.bf16.gmra.mrb[4].mxu1 %vm60_vm0, %v51_v40 }
  0xdb   :  { %v224_v41 = vpop.f32.mrb[0].mxu0 }
  0xdc   :  { %184 = vst.msk [vmem:[%s381_s2 + $0x10] sm:$0xff] %vm60_vm0, %v224_v41  ;;  %v232_v42 = vpop.f32.mrb[0].mxu1  ;;  %v119_v43 = vpop.f32.mrb[1].mxu0 }
  0xdd   :  { %192 = vst.msk [vmem:[%s381_s2 + $0x50] sm:$0xff] %vm60_vm0, %v232_v42  ;;  %182 = vst.msk [vmem:[%s381_s2] sm:$0xff] %vm60_vm0, %v119_v43  ;;  %v151_v44 = vpop.f32.mrb[1].mxu1  ;;  %v225_v45 = vpop.f32.mrb[2].mxu0 }
  0xde   :  { %190 = vst.msk [vmem:[%s381_s2 + $0x40] sm:$0xff] %vm60_vm0, %v151_v44  ;;  %185 = vst.msk [vmem:[%s381_s2 + $0x18] sm:$0xff] %vm60_vm0, %v225_v45  ;;  %v233_v46 = vpop.f32.mrb[2].mxu1  ;;  %v122_v47 = vpop.f32.mrb[3].mxu0 }
  0xdf   :  { %193 = vst.msk [vmem:[%s381_s2 + $0x58] sm:$0xff] %vm60_vm0, %v233_v46  ;;  %183 = vst.msk [vmem:[%s381_s2 + $0x8] sm:$0xff] %vm60_vm0, %v122_v47  ;;  %v154_v48 = vpop.f32.mrb[3].mxu1 }
  0xe0   :  { %191 = vst.msk [vmem:[%s381_s2 + $0x48] sm:$0xff] %vm60_vm0, %v154_v48 }
  0xe3   :  { %v228_v49 = vpop.f32.mrb[4].mxu0 }
  0xe4   :  { %188 = vst.msk [vmem:[%s381_s2 + $0x30] sm:$0xff] %vm60_vm0, %v228_v49  ;;  %v236_v50 = vpop.f32.mrb[4].mxu1  ;;  %v135_v51 = vpop.f32.mrb[5].mxu0 }
  0xe5   :  { %196 = vst.msk [vmem:[%s381_s2 + $0x70] sm:$0xff] %vm60_vm0, %v236_v50  ;;  %186 = vst.msk [vmem:[%s381_s2 + $0x20] sm:$0xff] %vm60_vm0, %v135_v51  ;;  %v167_v52 = vpop.f32.mrb[5].mxu1  ;;  %v229_v53 = vpop.f32.mrb[6].mxu0 }
  0xe6   :  { %194 = vst.msk [vmem:[%s381_s2 + $0x60] sm:$0xff] %vm60_vm0, %v167_v52  ;;  %189 = vst.msk [vmem:[%s381_s2 + $0x38] sm:$0xff] %vm60_vm0, %v229_v53  ;;  %v237_v54 = vpop.f32.mrb[6].mxu1  ;;  %v138_v55 = vpop.f32.mrb[7].mxu0 }
  0xe7   :  { %197 = vst.msk [vmem:[%s381_s2 + $0x78] sm:$0xff] %vm60_vm0, %v237_v54  ;;  %187 = vst.msk [vmem:[%s381_s2 + $0x28] sm:$0xff] %vm60_vm0, %v138_v55  ;;  %v170_v56 = vpop.f32.mrb[7].mxu1 }
  0xe8   :  { %195 = vst.msk [vmem:[%s381_s2 + $0x68] sm:$0xff] %vm60_vm0, %v170_v56 }

// kernel: _lambda_.46
= control target key start
LH: loop header
LB: loop body
LE: loop exit
PB: predicated region body
PF: predicated region fallthrough
CT: control target
= control target key end

     0   :  { %s2466_s0 = inlined_call_operand.vmem [shape: f32[4,8], index: 0, kind: input, shape index: {}]   ;;  %s2467_s1 = inlined_call_operand.vmem [shape: bf16[2,4,16,16], index: 1, kind: input, shape index: {}]   ;;  %s2468_s2 = inlined_call_operand.vmem [shape: bf16[2,16,16], index: 2, kind: input, shape index: {}]   ;;  %s2469_s3 = inlined_call_operand.vmem [shape: bf16[2,16,16], index: 3, kind: input, shape index: {}]   ;;  %s2470_s4 = inlined_call_operand.vmem [shape: bf16[2,16,16], index: 4, kind: input, shape index: {}]   ;;  %s2471_s5 = inlined_call_operand.vmem [shape: bf16[2,16,16], index: 5, kind: input, shape index: {}]   ;;  %s2472_s6 = inlined_call_operand.vmem [shape: f32[2,16,16], index: 6, kind: input, shape index: {}]   ;;  %s2473_s7 = inlined_call_operand.vmem [shape: f32[2,16,16], index: 7, kind: input, shape index: {}]   ;;  %s2474_s8 = inlined_call_operand.vmem [shape: f32[2,16,16], index: 8, kind: input, shape index: {}]   ;;  %s2475_s9 = inlined_call_operand.vmem [shape: bf16[2,16,16], index: 9, kind: input, shape index: {}]   ;;  %s2476_s10 = inlined_call_operand.vmem [shape: bf16[2,16,16], index: 10, kind: input, shape index: {}]   ;;  %s2477_s11 = inlined_call_operand.vmem [shape: bf16[2,16,16], index: 11, kind: input, shape index: {}]   ;;  %s2478_s12 = inlined_call_operand.vmem [shape: bf16[2,16,16], index: 12, kind: input, shape index: {}]   ;;  %s2479_s13 = inlined_call_operand.vmem [shape: f32[2,16,16], index: 13, kind: input, shape index: {}]   ;;  %s2480_s14 = inlined_call_operand.vmem [shape: f32[2,16,16], index: 14, kind: input, shape index: {}]   ;;  %s2481_s15 = inlined_call_operand.vmem [shape: f32[2,16,16], index: 15, kind: input, shape index: {}]   ;;  %s2482_s16 = inlined_call_operand.vmem [shape: f32[2,16,16], index: 16, kind: output, shape index: {}]  }
   0x1   :  { %2483 = sst [smem:[#allocation6_spill]] %s2466_s0 }
   0x2   :  { %2484 = sst [smem:[#allocation7_spill]] %s2467_s1  ;;  %s2492_s23 = sld [smem:[#allocation6_spill]] }
   0x3   :  { %2485 = sst [smem:[#allocation8_spill]] %s2468_s2 }
   0x4   :  { %2486 = sst [smem:[#allocation9_spill]] %s2469_s3 }
   0x5   :  { %2487 = sst [smem:[#allocation10_spill]] %s2470_s4 }
   0x6   :  { %2488 = sst [smem:[#allocation11_spill]] %s2471_s5 }
   0x7   :  { %2489 = sst [smem:[#allocation12_spill]] %s2472_s6 }
   0x8   :  { %2490 = sst [smem:[#allocation13_spill]] %s2473_s7 }
   0x9   :  { %2491 = sst [smem:[#allocation14_spill]] %s2474_s8  ;;  %s21_s8 = sshll.u32 %s2492_s23, 4  ;;  %s22_s8 = int_to_ptr.vmem [resolvable:$true] %s21_s8 }
   0xa   :  { %s2129_s24 = scalar_lea.vmem %s22_s8, 64  ;;  %p2134_p1 = scmp.lt.s32.totalorder %s22_s8, %s22_s8 }
   0xb   :  { %p2130_p0 = scmp.ne.s32.totalorder %s22_s8, %s2129_s24  ;;  %p2135_p2 = scmp.lt.s32.totalorder %s2129_s24, %s2129_s24 }
   0xd   :  { %p2136_p3 = por %p2135_p2, %p2134_p1 }
   0xf   :  { %p2137_p4 = pnand %p2136_p3, %p2130_p0 }
  0x11   :  { %2140 = shalt.err (!%p2137_p4)  }
  0x12   :  { %s2167_s25 = smov [#allocation3]  }
  0x13   :  { %24 = dma.vmem_to_smem %s22_s8, 64, %s2167_s25, [#allocation2] }
  0x14   :  { %2153 = dma.done.wait [#allocation2], 64 }
  0x15   :  { %2154 = vsyncadd [#allocation2], 4294967232 }
  0x16   :  { %26 = sfence }
  0x17   :  { %s2258_s26 = smov 0   ;;  %s2260_s27 = smov 0  }
  0x18   :  { %s2262_s28 = smov 0  }
  0x19 LB: > { %s44_s8 = sadd.s32 1, %s2161_s27  ;;  %p1932_p5 = scmp.ge.s32.totalorder %s2165_s28, 1  ;;  %s2165_s28 = sphi %s2262_s28, %s32_s28   ;;  %s2161_s27 = sphi %s2260_s27, %s2504_s27   ;;  %s2157_s26 = sphi %s2258_s26, %s2503_s26  }
  0x1a   : > { %p46_p6 = scmp.ge.s32.totalorder %s44_s8, 2  ;;  %p686_p7 = scmp.lt.s32.totalorder %s2165_s28, 3 }
  0x1c   : > { %s2506_s8 = smov (%p46_p6, %s44_s8), 0  ;;  %p687_p8 = pnand %p1932_p5, %p686_p7 }
  0x1d   : > { %2493 = sst [smem:[#allocation5_spill]] %s2506_s8  ;;  %s2494_s1 = sld [smem:[#allocation7_spill]] (!%p687_p8)  ;;  %v2168_v1 = vmov (!%p687_p8), 0.0   ;;  %vm2169_vm0 = vmmov (!%p687_p8), 0   ;;  %vm1028_vm1 = vcmask (!%p687_p8), 130048  }
  0x1e   : > { %690 = sbr.rel (%p687_p8) target bundleno = 295 (0x127), region = 80  ;;  %2038 = vmatprep.subr.bf16.mxu0 (!%p687_p8), %v2168_v1  ;;  %2044 = vmatprep.subr.bf16.mxu1 (!%p687_p8), %v2168_v1  ;;  %p860_p9 = scmp.lt.s32.totalorder (!%p687_p8), %s2157_s26, 1 }
  0x1f   : > { %2040 = vmatprep.mubr.msk.bf16.mxu0 (!%p687_p8), %vm2169_vm0, %v2168_v1  ;;  %2046 = vmatprep.mubr.msk.bf16.mxu1 (!%p687_p8), %vm2169_vm0, %v2168_v1  ;;  %s2495_s2 = sld [smem:[#allocation8_spill]] (!%p687_p8)  ;;  %s2496_s3 = sld [smem:[#allocation9_spill]] (!%p687_p8) }
  0x20   : > { %s2497_s4 = sld [smem:[#allocation10_spill]] (!%p687_p8)  ;;  %s2498_s5 = sld [smem:[#allocation11_spill]] (!%p687_p8) }
  0x21   : > { %s2499_s7 = sld [smem:[#allocation13_spill]] (!%p687_p8)  ;;  %s2500_s6 = sld [smem:[#allocation12_spill]] (!%p687_p8) }
  0x23   : > { %v2113_v0 = vld [vmem:[%s2494_s1] sm:$0xff] (!%p687_p8)   ;;  %v2114_v2 = vld [vmem:[%s2494_s1 + $0x8] sm:$0xff] (!%p687_p8)   ;;  %v2117_v3 = vld [vmem:[%s2494_s1 + $0x10] sm:$0xff] (!%p687_p8)  }
  0x24   : > { %2039 = vmatpush3.bf16.msra.mxu0 (!%p687_p8), %v2113_v0  ;;  %2045 = vmatpush3.bf16.msra.mxu1 (!%p687_p8), %v2114_v2  ;;  %v2118_v4 = vld [vmem:[%s2494_s1 + $0x18] sm:$0xff] (!%p687_p8)   ;;  %v2121_v7 = vld [vmem:[%s2494_s1 + $0x20] sm:$0xff] (!%p687_p8)   ;;  %v2122_v10 = vld [vmem:[%s2494_s1 + $0x28] sm:$0xff] (!%p687_p8)  }
  0x25   : > { %2050 = vmatprep.subr.bf16.mxu0 %v2168_v1  ;;  %s2288_s18 = scalar_select %p860_p9, %s2157_s26, 1  ;;  %2056 = vmatprep.subr.bf16.mxu1 %v2168_v1  ;;  %v2125_v13 = vld [vmem:[%s2494_s1 + $0x30] sm:$0xff]   ;;  %v2126_v14 = vld [vmem:[%s2494_s1 + $0x38] sm:$0xff]  }
  0x27   : > { %s2291_s19 = sshll.u32 %s2288_s18, 3 }
  0x28   : > { %s867_s24 = scalar_lea.vmem %s2495_s2, %s2291_s19  ;;  %s877_s30 = scalar_lea.vmem %s2496_s3, %s2291_s19 }
  0x29   : > { %v2115_v5 = vld [vmem:[%s867_s24] sm:$0xff]   ;;  %s887_s8 = scalar_lea.vmem %s2497_s4, %s2291_s19  ;;  %s897_s2 = scalar_lea.vmem %s2498_s5, %s2291_s19 }
  0x2a   : > { %v2116_v6 = vld [vmem:[%s877_s30] sm:$0xff]   ;;  %2041 = vmatmul.mubr.msk.bf16.vlgmr.msra.gmra.mrb[0].mxu0 %vm1028_vm1, %v2115_v5  ;;  %s937_s0 = scalar_lea.vmem %s2475_s9, %s2291_s19  ;;  %s947_s17 = scalar_lea.vmem %s2476_s10, %s2291_s19 }
  0x2b   : > { %2047 = vmatmul.mubr.msk.bf16.vlgmr.msra.gmra.mrb[0].mxu1 %vm1028_vm1, %v2116_v6  ;;  %2051 = vmatpush3.bf16.msra.mxu0 %v2117_v3  ;;  %s957_s3 = scalar_lea.vmem %s2477_s11, %s2291_s19  ;;  %v2119_v8 = vld [vmem:[%s887_s8] sm:$0xff]   ;;  %s967_s4 = scalar_lea.vmem %s2478_s12, %s2291_s19 }
  0x2c   : > { %2057 = vmatpush3.bf16.msra.mxu1 %v2118_v4  ;;  %2052 = vmatprep.mubr.msk.bf16.mxu0 %vm2169_vm0, %v2168_v1  ;;  %v2120_v9 = vld [vmem:[%s897_s2] sm:$0xff]  }
  0x2d   : > { %2058 = vmatprep.mubr.msk.bf16.mxu1 %vm2169_vm0, %v2168_v1  ;;  %2062 = vmatprep.subr.bf16.mxu0 %v2168_v1  ;;  %v2123_v11 = vld [vmem:[%s937_s0] sm:$0xff]   ;;  %s2358_s0 = sshll.u32 %s2157_s26, 7 }
  0x2e   : > { %2068 = vmatprep.subr.bf16.mxu1 %v2168_v1  ;;  %v2124_v12 = vld [vmem:[%s947_s17] sm:$0xff]   ;;  %s1011_s17 = sadd.s32 4, %s2358_s0  ;;  %s1076_s21 = sadd.s32 5, %s2358_s0 }
  0x2f   : > { %v2127_v15 = vld [vmem:[%s957_s3] sm:$0xff]   ;;  %s1012_s22 = sld [smem:[#allocation3 + %s1011_s17]]  ;;  %s1143_s25 = sadd.s32 6, %s2358_s0 }
  0x30   : > { %v2128_v16 = vld [vmem:[%s967_s4] sm:$0xff]   ;;  %s1077_s23 = sld [smem:[#allocation3 + %s1076_s21]]  ;;  %s1210_s29 = sadd.s32 7, %s2358_s0 }
  0x31   : > { %s2364_s3 = sld [smem:[#allocation3 + %s1143_s25]]  ;;  %s2369_s26 = sadd.s32 256, %s2358_s0 }
  0x32   : > { %2053 = vmatmul.mubr.msk.bf16.vlgmr.msra.gmra.mrb[4].mxu0 %vm1028_vm1, %v2119_v8  ;;  %s2366_s4 = sld [smem:[#allocation3 + %s1210_s29]]  ;;  %s1308_s24 = sadd.s32 4, %s2369_s26 }
  0x33   : > { %2059 = vmatmul.mubr.msk.bf16.vlgmr.msra.gmra.mrb[4].mxu1 %vm1028_vm1, %v2120_v9  ;;  %2063 = vmatpush3.bf16.msra.mxu0 %v2121_v7  ;;  %s1373_s30 = sadd.s32 5, %s2369_s26  ;;  %s1277_s2 = sadd.s32 1, %s2358_s0 }
  0x34   : > { %2069 = vmatpush3.bf16.msra.mxu1 %v2122_v10  ;;  %2064 = vmatprep.mubr.msk.bf16.mxu0 %vm2169_vm0, %v2168_v1  ;;  %s2375_s8 = sld [smem:[#allocation3 + %s1308_s24]]  ;;  %s1287_s17 = sadd.s32 2, %s2358_s0 }
  0x35   : > { %2070 = vmatprep.mubr.msk.bf16.mxu1 %vm2169_vm0, %v2168_v1  ;;  %2074 = vmatprep.subr.bf16.mxu0 %v2168_v1  ;;  %v1073_v17 = vstv %s1012_s22  ;;  %s2378_s19 = sld [smem:[#allocation3 + %s1373_s30]]  ;;  %s1574_s21 = sadd.s32 1, %s2369_s26 }
  0x36   : > { %2080 = vmatprep.subr.bf16.mxu1 %v2168_v1  ;;  %v1138_v18 = vstv %s1077_s23  ;;  %s2380_s20 = sld [smem:[#allocation3 + %s1277_s2]]  ;;  %s1584_s22 = sadd.s32 2, %s2369_s26 }
  0x37   : > { %v1205_v33 = vstv %s2364_s3  ;;  %s2385_s23 = sld [smem:[#allocation3 + %s1287_s17]]  ;;  %s1440_s25 = sadd.s32 6, %s2369_s26 }
  0x38   : > { %v1272_v34 = vstv %s2366_s4  ;;  %s1507_s29 = sadd.s32 7, %s2369_s26  ;;  %s2389_s3 = sld [smem:[#allocation3 + %s1574_s21]] }
  0x39   : > { %s2391_s4 = sld [smem:[#allocation3 + %s1584_s22]]  ;;  %s2394_s24 = sshll.u32 %s2288_s18, 4 }
  0x3a   : > { %2065 = vmatmul.mubr.msk.bf16.vlgmr.msra.gmra.mrb[8].mxu0 %vm1028_vm1, %v2123_v11  ;;  %v1370_v50 = vstv %s2375_s8  ;;  %s2397_s30 = sld [smem:[#allocation3 + %s1440_s25]]  ;;  %s1297_s2 = sadd.s32 3, %s2358_s0 }
  0x3b   : > { %2071 = vmatmul.mubr.msk.bf16.vlgmr.msra.gmra.mrb[8].mxu1 %vm1028_vm1, %v2124_v12  ;;  %2075 = vmatpush3.bf16.msra.mxu0 %v2125_v13  ;;  %v1435_v52 = vstv %s2378_s19  ;;  %s2403_s17 = sld [smem:[#allocation3 + %s1507_s29]]  ;;  %s917_s22 = scalar_lea.vmem %s2499_s7, %s2394_s24 }
  0x3c   : > { %2081 = vmatpush3.bf16.msra.mxu1 %v2126_v14  ;;  %2076 = vmatprep.mubr.msk.bf16.mxu0 %vm2169_vm0, %v2168_v1  ;;  %s1279_s21 = smul.f32 0.999995, %s2380_s20  ;;  %s1594_s18 = sadd.s32 3, %s2369_s26  ;;  %v1280_v63 = vld [vmem:[%s917_s22] sm:$0xff]  ;;  %v1281_v4 = vld [vmem:[%s917_s22 + $0x8] sm:$0xff] }
  0x3d   : > { %2082 = vmatprep.mubr.msk.bf16.mxu1 %vm2169_vm0, %v2168_v1  ;;  %s2411_s8 = sld [smem:[#allocation3 + %s1297_s2]]  ;;  %s907_s20 = scalar_lea.vmem %s2500_s6, %s2394_s24 }
  0x3e   : > { %s1289_s25 = smul.f32 0.999995, %s2385_s23  ;;  %v1282_v0 = vstv %s1279_s21  ;;  %s2419_s5 = sld [smem:[#allocation3 + %s1594_s18]]  ;;  %v1290_v8 = vld [vmem:[%s907_s20] sm:$0xff] }
  0x3f   : > { %s1576_s1 = smul.f32 0.999995, %s2389_s3  ;;  %s987_s2 = scalar_lea.vmem %s2480_s14, %s2394_s24  ;;  %v1283_v7 = vmul.f32 %v1282_v0, %v1280_v63  ;;  %v1284_v14 = vmul.f32 %v1282_v0, %v1281_v4 }
  0x40   : > { %s1586_s0 = smul.f32 0.999995, %s2391_s4  ;;  %v1502_v6 = vstv %s2397_s30  ;;  %s977_s21 = scalar_lea.vmem %s2479_s13, %s2394_s24  ;;  %v1292_v9 = vstv %s1289_s25  ;;  %v1577_v12 = vld [vmem:[%s987_s2] sm:$0xff] }
  0x41   : > { %v1569_v10 = vstv %s2403_s17  ;;  %s2501_s6 = sld [smem:[#allocation14_spill]]  ;;  %v1579_v13 = vstv %s1576_s1  ;;  %s2442_s22 = scalar_lea.vmem %s2481_s15, %s2394_s24 }
  0x42   : > { %2077 = vmatmul.mubr.msk.bf16.vlgmr.msra.gmra.mrb[12].mxu0 %vm1028_vm1, %v2127_v15  ;;  %v1291_v15 = vld [vmem:[%s907_s20 + $0x8] sm:$0xff]  ;;  %s1007_s17 = scalar_lea.vmem %s2482_s16, %s2394_s24 }
  0x43   : > { %2083 = vmatmul.mubr.msk.bf16.vlgmr.msra.gmra.mrb[12].mxu1 %vm1028_vm1, %v2128_v16 }
  0x47   : > { %s2436_s7 = scalar_lea.vmem %s2501_s6, %s2394_s24 }
  0xfd   : > { %v1066_v19 = vpop.f32.mrb[0].mxu0 }
  0xfe   : > { %v1074_v20 = vmul.f32 %v1073_v17, %v1066_v19  ;;  %v1131_v21 = vpop.f32.mrb[0].mxu1  ;;  %v2042_v22 = vpop.f32.mrb[1].mxu0  ;;  %v1589_v19 = vstv %s1586_s0 }
  0xff   : > { %v1139_v23 = vmul.f32 %v1138_v18, %v1131_v21  ;;  %v2048_v24 = vpop.f32.mrb[1].mxu1  ;;  %v1069_v25 = vpop.f32.mrb[2].mxu0  ;;  %v1578_v21 = vld [vmem:[%s987_s2 + $0x8] sm:$0xff]  ;;  %v1293_v22 = vmul.f32 %v1292_v9, %v1290_v8 }
 0x100   : > { %v1075_v26 = vmul.f32 %v1073_v17, %v1069_v25  ;;  %v1134_v27 = vpop.f32.mrb[2].mxu1  ;;  %v2043_v28 = vpop.f32.mrb[3].mxu0 }
 0x101   : > { %v1141_v29 = vadd.f32 %v1139_v23, %v1074_v20  ;;  %v1140_v30 = vmul.f32 %v1138_v18, %v1134_v27  ;;  %v2049_v31 = vpop.f32.mrb[3].mxu1  ;;  %v1587_v18 = vld [vmem:[%s977_s21] sm:$0xff]  ;;  %v1301_v23 = vstv %s2411_s8 }
 0x102   : > { %v1299_v28 = vld [vmem:[%s2436_s7] sm:$0xff] }
 0x103   : > { %v1142_v32 = vadd.f32 %v1140_v30, %v1075_v26  ;;  %v1580_v30 = vmul.f32 %v1579_v13, %v1577_v12 }
 0x105   : > { %v1198_v35 = vpop.f32.mrb[4].mxu0 }
 0x106   : > { %v1206_v36 = vmul.f32 %v1205_v33, %v1198_v35  ;;  %v1265_v37 = vpop.f32.mrb[4].mxu1  ;;  %v2054_v38 = vpop.f32.mrb[5].mxu0  ;;  %v1294_v35 = vmul.f32 %v1292_v9, %v1291_v15 }
 0x107   : > { %v1273_v39 = vmul.f32 %v1272_v34, %v1265_v37  ;;  %v2060_v40 = vpop.f32.mrb[5].mxu1  ;;  %v1201_v41 = vpop.f32.mrb[6].mxu0  ;;  %v1596_v37 = vld [vmem:[%s2442_s22] sm:$0xff]  ;;  %v1598_v38 = vstv %s2419_s5 }
 0x108   : > { %v1208_v42 = vadd.f32 %v1206_v36, %v1141_v29  ;;  %v1207_v43 = vmul.f32 %v1205_v33, %v1201_v41  ;;  %v1268_v44 = vpop.f32.mrb[6].mxu1  ;;  %v2055_v45 = vpop.f32.mrb[7].mxu0  ;;  %v1588_v33 = vld [vmem:[%s977_s21 + $0x8] sm:$0xff]  ;;  %v1590_v36 = vmul.f32 %v1589_v19, %v1587_v18 }
 0x109   : > { %v2061_v46 = vpop.f32.mrb[7].mxu1  ;;  %v1274_v49 = vmul.f32 %v1272_v34, %v1268_v44 }
 0x10a   : > { %v1275_v47 = vadd.f32 %v1273_v39, %v1208_v42  ;;  %v1209_v48 = vadd.f32 %v1207_v43, %v1142_v32  ;;  %v1581_v39 = vmul.f32 %v1579_v13, %v1578_v21  ;;  %v1300_v42 = vld [vmem:[%s2436_s7 + $0x8] sm:$0xff]  ;;  %v1302_v46 = vmul.f32 %v1301_v23, %v1299_v28 }
 0x10c   : > { %v2400_v51 = vadd.f32 %v1274_v49, %v1209_v48  ;;  %v1285_v27 = vadd.f32 %v1283_v7, %v1275_v47  ;;  %v1591_v47 = vmul.f32 %v1589_v19, %v1588_v33  ;;  %v1597_v48 = vld [vmem:[%s2442_s22 + $0x8] sm:$0xff] }
 0x10d   : > { %v1363_v53 = vpop.f32.mrb[8].mxu0 }
 0x10e   : > { %v1371_v54 = vmul.f32 %v1370_v50, %v1363_v53  ;;  %v1428_v55 = vpop.f32.mrb[8].mxu1  ;;  %v2066_v56 = vpop.f32.mrb[9].mxu0  ;;  %v1286_v41 = vadd.f32 %v1284_v14, %v2400_v51  ;;  %v1295_v49 = vadd.f32 %v1293_v22, %v1285_v27 }
 0x10f   : > { %v1436_v57 = vmul.f32 %v1435_v52, %v1428_v55  ;;  %v2072_v58 = vpop.f32.mrb[9].mxu1  ;;  %v1366_v59 = vpop.f32.mrb[10].mxu0 }
 0x110   : > { %v1372_v60 = vmul.f32 %v1370_v50, %v1366_v59  ;;  %v1431_v61 = vpop.f32.mrb[10].mxu1  ;;  %v2067_v62 = vpop.f32.mrb[11].mxu0  ;;  %v1296_v55 = vadd.f32 %v1294_v35, %v1286_v41  ;;  %v1600_v58 = vmul.f32 %v1598_v38, %v1597_v48  ;;  %v1304_v59 = vadd.f32 %v1302_v46, %v1295_v49 }
 0x111   : > { %v1438_v1 = vadd.f32 %v1436_v57, %v1371_v54  ;;  %v1437_v2 = vmul.f32 %v1435_v52, %v1431_v61  ;;  %v2073_v3 = vpop.f32.mrb[11].mxu1  ;;  %v1599_v52 = vmul.f32 %v1598_v38, %v1596_v37  ;;  %v1303_v54 = vmul.f32 %v1301_v23, %v1300_v42 }
 0x113   : > { %v1439_v5 = vadd.f32 %v1437_v2, %v1372_v60  ;;  %v1305_v61 = vadd.f32 %v1303_v54, %v1296_v55 }
 0x115   : > { %v1495_v11 = vpop.f32.mrb[12].mxu0 }
 0x116   : > { %v1503_v16 = vmul.f32 %v1502_v6, %v1495_v11  ;;  %v1562_v17 = vpop.f32.mrb[12].mxu1  ;;  %v2078_v20 = vpop.f32.mrb[13].mxu0 }
 0x117   : > { %v1570_v24 = vmul.f32 %v1569_v10, %v1562_v17  ;;  %v2084_v25 = vpop.f32.mrb[13].mxu1  ;;  %v1498_v26 = vpop.f32.mrb[14].mxu0 }
 0x118   : > { %v1505_v29 = vadd.f32 %v1503_v16, %v1438_v1  ;;  %v1504_v31 = vmul.f32 %v1502_v6, %v1498_v26  ;;  %v1565_v32 = vpop.f32.mrb[14].mxu1  ;;  %v2079_v34 = vpop.f32.mrb[15].mxu0 }
 0x119   : > { %v2085_v40 = vpop.f32.mrb[15].mxu1  ;;  %v1571_v45 = vmul.f32 %v1569_v10, %v1565_v32 }
 0x11a   : > { %v1572_v43 = vadd.f32 %v1570_v24, %v1505_v29  ;;  %v1506_v44 = vadd.f32 %v1504_v31, %v1439_v5 }
 0x11c   : > { %v1582_v50 = vadd.f32 %v1580_v30, %v1572_v43  ;;  %v1573_v53 = vadd.f32 %v1571_v45, %v1506_v44 }
 0x11e   : > { %v1592_v56 = vadd.f32 %v1590_v36, %v1582_v50  ;;  %v1583_v57 = vadd.f32 %v1581_v39, %v1573_v53 }
 0x120   : > { %v1601_v60 = vadd.f32 %v1599_v52, %v1592_v56  ;;  %v1593_v51 = vadd.f32 %v1591_v47, %v1583_v57 }
 0x122   : > { %v1603_v62 = vadd.f32 %v1601_v60, %v1304_v59  ;;  %v1602_v63 = vadd.f32 %v1600_v58, %v1593_v51 }
 0x124   : > { %1605 = vst.msk [vmem:[%s1007_s17] sm:$0xff] %vm1028_vm1, %v1603_v62  ;;  %v1604_v0 = vadd.f32 %v1602_v63, %v1305_v61 }
 0x126   : > { %1606 = vst.msk [vmem:[%s1007_s17 + $0x8] sm:$0xff] %vm1028_vm1, %v1604_v0 }
 0x127 PF: > { %s32_s28 = sadd.s32 1, %s2165_s28   ;;  %s2502_s8 = sld [smem:[#allocation5_spill]] }
 0x128   : > { %p29_p10 = scmp.ge.s32.totalorder %s32_s28, 4   ;;  %s2503_s26 = smov %s2161_s27 }
 0x12a   :  { %31 = sbr.rel (!%p29_p10) target bundleno = 25 (0x19), region = 156 }
 0x12d   : > { %s2504_s27 = smov %s2502_s8 }

// kernel: _lambda_.40
= control target key start
LH: loop header
LB: loop body
LE: loop exit
PB: predicated region body
PF: predicated region fallthrough
CT: control target
= control target key end

     0   :  { %s5250_s0 = inlined_call_operand.vmem [shape: f32[6,8], index: 0, kind: input, shape index: {}]   ;;  %s5251_s1 = inlined_call_operand.vmem [shape: bf16[3,4,8,8], index: 1, kind: input, shape index: {}]   ;;  %s5252_s2 = inlined_call_operand.vmem [shape: bf16[2,64,8], index: 2, kind: input, shape index: {}]   ;;  %s5253_s3 = inlined_call_operand.vmem [shape: bf16[2,64,8], index: 3, kind: input, shape index: {}]   ;;  %s5254_s4 = inlined_call_operand.vmem [shape: bf16[2,64,8], index: 4, kind: input, shape index: {}]   ;;  %s5255_s5 = inlined_call_operand.vmem [shape: bf16[2,64,8], index: 5, kind: input, shape index: {}]   ;;  %s5256_s6 = inlined_call_operand.vmem [shape: f32[2,64,8], index: 6, kind: input, shape index: {}]   ;;  %s5257_s7 = inlined_call_operand.vmem [shape: f32[2,64,8], index: 7, kind: input, shape index: {}]   ;;  %s5258_s8 = inlined_call_operand.vmem [shape: f32[2,64,8], index: 8, kind: input, shape index: {}]   ;;  %s5259_s9 = inlined_call_operand.vmem [shape: bf16[2,64,8], index: 9, kind: input, shape index: {}]   ;;  %s5260_s10 = inlined_call_operand.vmem [shape: bf16[2,64,8], index: 10, kind: input, shape index: {}]   ;;  %s5261_s11 = inlined_call_operand.vmem [shape: bf16[2,64,8], index: 11, kind: input, shape index: {}]   ;;  %s5262_s12 = inlined_call_operand.vmem [shape: bf16[2,64,8], index: 12, kind: input, shape index: {}]   ;;  %s5263_s13 = inlined_call_operand.vmem [shape: f32[2,64,8], index: 13, kind: input, shape index: {}]   ;;  %s5264_s14 = inlined_call_operand.vmem [shape: f32[2,64,8], index: 14, kind: input, shape index: {}]   ;;  %s5265_s15 = inlined_call_operand.vmem [shape: f32[2,64,8], index: 15, kind: input, shape index: {}]   ;;  %s5266_s16 = inlined_call_operand.vmem [shape: bf16[2,64,8], index: 16, kind: input, shape index: {}]   ;;  %s5267_s17 = inlined_call_operand.vmem [shape: bf16[2,64,8], index: 17, kind: input, shape index: {}]   ;;  %s5268_s18 = inlined_call_operand.vmem [shape: bf16[2,64,8], index: 18, kind: input, shape index: {}]   ;;  %s5269_s19 = inlined_call_operand.vmem [shape: bf16[2,64,8], index: 19, kind: input, shape index: {}]   ;;  %s5270_s20 = inlined_call_operand.vmem [shape: f32[2,64,8], index: 20, kind: input, shape index: {}]   ;;  %s5271_s21 = inlined_call_operand.vmem [shape: f32[2,64,8], index: 21, kind: input, shape index: {}]   ;;  %s5272_s22 = inlined_call_operand.vmem [shape: f32[2,64,8], index: 22, kind: input, shape index: {}]   ;;  %s5273_s23 = inlined_call_operand.vmem [shape: f32[2,64,8], index: 23, kind: output, shape index: {}]  }
   0x1   :  { %5276 = sst [smem:[#allocation21_spill]] %s5250_s0 }
   0x2   :  { %5277 = sst [smem:[#allocation22_spill]] %s5251_s1  ;;  %s5287_s24 = sld [smem:[#allocation21_spill]] }
   0x3   :  { %5278 = sst [smem:[#allocation23_spill]] %s5252_s2 }
   0x4   :  { %5279 = sst [smem:[#allocation24_spill]] %s5253_s3 }
   0x5   :  { %5280 = sst [smem:[#allocation25_spill]] %s5254_s4 }
   0x6   :  { %5281 = sst [smem:[#allocation26_spill]] %s5255_s5 }
   0x7   :  { %5282 = sst [smem:[#allocation27_spill]] %s5256_s6 }
   0x8   :  { %5283 = sst [smem:[#allocation28_spill]] %s5257_s7 }
   0x9   :  { %5284 = sst [smem:[#allocation29_spill]] %s5259_s9 }
   0xa   :  { %5285 = sst [smem:[#allocation30_spill]] %s5260_s10 }
   0xb   :  { %5286 = sst [smem:[#allocation31_spill]] %s5265_s15  ;;  %s28_s15 = sshll.u32 %s5287_s24, 4  ;;  %s29_s15 = int_to_ptr.vmem [resolvable:$true] %s28_s15 }
   0xc   :  { %s4153_s25 = scalar_lea.vmem %s29_s15, 128  ;;  %p4158_p1 = scmp.lt.s32.totalorder %s29_s15, %s29_s15 }
   0xd   :  { %p4154_p0 = scmp.ne.s32.totalorder %s29_s15, %s4153_s25  ;;  %p4159_p2 = scmp.lt.s32.totalorder %s4153_s25, %s4153_s25 }
   0xf   :  { %p4160_p3 = por %p4159_p2, %p4158_p1 }
  0x11   :  { %p4161_p4 = pnand %p4160_p3, %p4154_p0 }
  0x13   :  { %4164 = shalt.err (!%p4161_p4)  }
  0x14   :  { %s4191_s5 = smov [#allocation3]  }
  0x15   :  { %31 = dma.vmem_to_smem %s29_s15, 128, %s4191_s5, [#allocation2] }
  0x16   :  { %4177 = dma.done.wait [#allocation2], 128 }
  0x17   :  { %4178 = vsyncadd [#allocation2], 4294967168 }
  0x18   :  { %33 = sfence }
  0x19   :  { %s4315_s1 = smov 0   ;;  %s4317_s26 = smov 0  }
  0x1a   :  { %s4319_s2 = smov 0  }
  0x1b LB: > { %s51_s15 = sadd.s32 1, %s4185_s26  ;;  %p3705_p5 = scmp.ge.s32.totalorder %s4189_s2, 1  ;;  %s4189_s2 = sphi %s4319_s2, %s39_s2   ;;  %s4185_s26 = sphi %s4317_s26, %s5331_s26   ;;  %s4181_s1 = sphi %s4315_s1, %s5330_s1  }
  0x1c   : > { %p53_p6 = scmp.ge.s32.totalorder %s51_s15, 2  ;;  %p980_p7 = scmp.lt.s32.totalorder %s4189_s2, 3 }
  0x1e   : > { %s5333_s15 = smov (%p53_p6, %s51_s15), 0  ;;  %p981_p8 = pnand %p3705_p5, %p980_p7 }
  0x1f   : > { %5288 = sst [smem:[#allocation5_spill]] %s5333_s15 }
  0x20   : > { %984 = sbr.rel (%p981_p8) target bundleno = 371 (0x173), region = 108 }
  0x27   : > { %s5289_s7 = sld [smem:[#allocation22_spill]]  ;;  %vm1496_vm0 = vcmask 1043456   ;;  %p1231_p9 = scmp.lt.s32.totalorder %s4181_s1, 1  ;;  %vm1483_vm1 = vcmask 64512  }
  0x28   : > { %s5290_s27 = sld [smem:[#allocation23_spill]]  ;;  %s5291_s0 = sld [smem:[#allocation24_spill]] }
  0x29   : > { %s4350_s4 = scalar_select %p1231_p9, %s4181_s1, 1 }
  0x2a   : > { %s5292_s3 = sld [smem:[#allocation25_spill]]  ;;  %s5293_s5 = sld [smem:[#allocation26_spill]] }
  0x2b   : > { %s4358_s25 = sshll.u32 %s4350_s4, 5  ;;  %s5294_s9 = sld [smem:[#allocation29_spill]] }
  0x2c   : > { %s5295_s10 = sld [smem:[#allocation30_spill]]  ;;  %s4430_s24 = scalar_lea.vmem %s5261_s11, %s4358_s25 }
  0x2d   : > { %v1462_v0 = vld [vmem:[%s5289_s7] sm:$0xf]  ;;  %v3759_v1 = vld [vmem:[%s5289_s7 + $0x4] sm:$0xf]  ;;  %v3768_v4 = vld [vmem:[%s5289_s7 + $0x8] sm:$0xf] }
  0x2e   : > { %4068 = vmatprep.subr.msk.bf16.mxu0 %vm1496_vm0, %v1462_v0  ;;  %v1498_v2 = vsel %vm1496_vm0, %v1462_v0, 0  ;;  %4069 = vmatprep.subr.msk.bf16.mxu1 %vm1496_vm0, %v3759_v1  ;;  %v1619_v3 = vsel %vm1496_vm0, %v3759_v1, 0  ;;  %v3777_v5 = vld [vmem:[%s5289_s7 + $0xc] sm:$0xf]  ;;  %s1238_s28 = scalar_lea.vmem %s5290_s27, %s4358_s25  ;;  %s1248_s15 = scalar_lea.vmem %s5291_s0, %s4358_s25  ;;  %v1748_v9 = vsel %vm1496_vm0, %v3768_v4, 0  ;;  %v4129_v42 = vld [vmem:[%s4430_s24] sm:$0xff]  }
  0x2f   : > { %3949 = vmatpush3.bf16.msra.mxu0 %v1498_v2  ;;  %3959 = vmatpush3.bf16.msra.mxu1 %v1619_v3  ;;  %v4105_v6 = vld [vmem:[%s1238_s28] sm:$0xff]   ;;  %v4107_v8 = vld [vmem:[%s1238_s28 + $0x8] sm:$0xff]   ;;  %v3787_v10 = vld [vmem:[%s5289_s7 + $0x10] sm:$0xf]  ;;  %v1877_v12 = vsel %vm1496_vm0, %v3777_v5, 0  ;;  %s4438_s27 = scalar_lea.vmem %s5262_s12, %s4358_s25 }
  0x30   : > { %4070 = vmatprep.subr.msk.bf16.mxu0 %vm1496_vm0, %v3768_v4  ;;  %4071 = vmatprep.subr.msk.bf16.mxu1 %vm1496_vm0, %v3777_v5  ;;  %v4106_v7 = vld [vmem:[%s1248_s15] sm:$0xff]   ;;  %v4108_v11 = vld [vmem:[%s1248_s15 + $0x8] sm:$0xff]   ;;  %v3796_v13 = vld [vmem:[%s5289_s7 + $0x14] sm:$0xf]  ;;  %s1258_s0 = scalar_lea.vmem %s5292_s3, %s4358_s25  ;;  %s4390_s6 = scalar_lea.vmem %s5293_s5, %s4358_s25  ;;  %v2091_v22 = vsel %vm1496_vm0, %v3787_v10, 0 }
  0x31   : > { %3950 = vmatprep.mubr.msk.bf16.mxu0 %vm1483_vm1, %v4105_v6  ;;  %3960 = vmatprep.mubr.msk.bf16.mxu1 %vm1483_vm1, %v4106_v7  ;;  %v4109_v14 = vld [vmem:[%s1238_s28 + $0x10] sm:$0xff]   ;;  %v4111_v16 = vld [vmem:[%s1238_s28 + $0x18] sm:$0xff]   ;;  %v4113_v18 = vld [vmem:[%s1258_s0] sm:$0xff]   ;;  %s4403_s29 = scalar_lea.vmem %s5294_s9, %s4358_s25  ;;  %v2212_v24 = vsel %vm1496_vm0, %v3796_v13, 0  ;;  %s4450_s3 = scalar_lea.vmem %s5266_s16, %s4358_s25 }
  0x32   : > { %3951 = vmatmul.mubr.msk.bf16.vlgmr.msra.gmra.mrb[0].mxu0 %vm1483_vm1, %v4107_v8  ;;  %3961 = vmatmul.mubr.msk.bf16.vlgmr.msra.gmra.mrb[0].mxu1 %vm1483_vm1, %v4108_v11  ;;  %v4110_v15 = vld [vmem:[%s1248_s15 + $0x10] sm:$0xff]   ;;  %v4112_v17 = vld [vmem:[%s1248_s15 + $0x18] sm:$0xff]   ;;  %v4114_v19 = vld [vmem:[%s4390_s6] sm:$0xff]   ;;  %s4409_s30 = scalar_lea.vmem %s5295_s10, %s4358_s25  ;;  %s4457_s28 = scalar_lea.vmem %s5267_s17, %s4358_s25 }
  0x33   : > { %3969 = vmatpush3.bf16.msra.mxu0 %v1748_v9  ;;  %3979 = vmatpush3.bf16.msra.mxu1 %v1877_v12  ;;  %v4115_v20 = vld [vmem:[%s1258_s0 + $0x8] sm:$0xff]   ;;  %v4117_v23 = vld [vmem:[%s1258_s0 + $0x10] sm:$0xff]   ;;  %v3805_v26 = vld [vmem:[%s5289_s7 + $0x18] sm:$0xf]  ;;  %s4480_s9 = scalar_lea.vmem %s5268_s18, %s4358_s25  ;;  %s4488_s10 = scalar_lea.vmem %s5269_s19, %s4358_s25 }
  0x34   : > { %3954 = vmatprep.mubr.msk.bf16.mxu0 %vm1483_vm1, %v4109_v14  ;;  %3964 = vmatprep.mubr.msk.bf16.mxu1 %vm1483_vm1, %v4110_v15  ;;  %v4116_v21 = vld [vmem:[%s4390_s6 + $0x8] sm:$0xff]   ;;  %v4118_v25 = vld [vmem:[%s4390_s6 + $0x10] sm:$0xff]   ;;  %v3814_v27 = vld [vmem:[%s5289_s7 + $0x1c] sm:$0xf]  ;;  %v2341_v34 = vsel %vm1496_vm0, %v3805_v26, 0 }
  0x35   : > { %4072 = vmatprep.subr.msk.bf16.mxu0 %vm1496_vm0, %v3787_v10  ;;  %4073 = vmatprep.subr.msk.bf16.mxu1 %vm1496_vm0, %v3796_v13  ;;  %v4119_v28 = vld [vmem:[%s1258_s0 + $0x18] sm:$0xff]   ;;  %v4121_v30 = vld [vmem:[%s4403_s29] sm:$0xff]   ;;  %v4123_v32 = vld [vmem:[%s4403_s29 + $0x8] sm:$0xff]   ;;  %v2470_v36 = vsel %vm1496_vm0, %v3814_v27, 0 }
  0x36   : > { %v4120_v29 = vld [vmem:[%s4390_s6 + $0x18] sm:$0xff]   ;;  %v4122_v31 = vld [vmem:[%s4409_s30] sm:$0xff]   ;;  %v4124_v33 = vld [vmem:[%s4409_s30 + $0x8] sm:$0xff]  }
  0x37   : > { %v4125_v35 = vld [vmem:[%s4403_s29 + $0x10] sm:$0xff]   ;;  %v3824_v38 = vld [vmem:[%s5289_s7 + $0x20] sm:$0xf]  ;;  %v3833_v39 = vld [vmem:[%s5289_s7 + $0x24] sm:$0xf] }
  0x38   : > { %v4126_v37 = vld [vmem:[%s4409_s30 + $0x10] sm:$0xff]   ;;  %v4127_v40 = vld [vmem:[%s4403_s29 + $0x18] sm:$0xff]   ;;  %v4130_v43 = vld [vmem:[%s4438_s27] sm:$0xff]   ;;  %v2692_v46 = vsel %vm1496_vm0, %v3824_v38, 0  ;;  %v2813_v48 = vsel %vm1496_vm0, %v3833_v39, 0 }
  0x39   : > { %v4128_v41 = vld [vmem:[%s4409_s30 + $0x18] sm:$0xff]   ;;  %v4131_v44 = vld [vmem:[%s4430_s24 + $0x8] sm:$0xff]   ;;  %v4133_v47 = vld [vmem:[%s4430_s24 + $0x10] sm:$0xff]  }
  0x3a   : > { %3955 = vmatmul.mubr.msk.bf16.gmra.mrb[4].mxu0 %vm1483_vm1, %v4111_v16  ;;  %3965 = vmatmul.mubr.msk.bf16.gmra.mrb[4].mxu1 %vm1483_vm1, %v4112_v17  ;;  %v4132_v45 = vld [vmem:[%s4438_s27 + $0x8] sm:$0xff]   ;;  %v4134_v49 = vld [vmem:[%s4438_s27 + $0x10] sm:$0xff]   ;;  %v4135_v52 = vld [vmem:[%s4430_s24 + $0x18] sm:$0xff]   ;;  %s4553_s24 = sshll.u32 %s4181_s1, 7 }
  0x3b   : > { %3970 = vmatprep.mubr.msk.bf16.mxu0 %vm1483_vm1, %v4113_v18  ;;  %3980 = vmatprep.mubr.msk.bf16.mxu1 %vm1483_vm1, %v4114_v19  ;;  %v3842_v50 = vld [vmem:[%s5289_s7 + $0x28] sm:$0xf]  ;;  %v3851_v51 = vld [vmem:[%s5289_s7 + $0x2c] sm:$0xf]  ;;  %v4136_v53 = vld [vmem:[%s4438_s27 + $0x18] sm:$0xff]   ;;  %s1452_s27 = sadd.s32 4, %s4553_s24 }
  0x3c   : > { %v4137_v54 = vld [vmem:[%s4450_s3] sm:$0xff]   ;;  %v4139_v56 = vld [vmem:[%s4450_s3 + $0x8] sm:$0xff]   ;;  %v2942_v58 = vsel %vm1496_vm0, %v3842_v50, 0  ;;  %v4141_v59 = vld [vmem:[%s4450_s3 + $0x10] sm:$0xff]   ;;  %v3071_v60 = vsel %vm1496_vm0, %v3851_v51, 0  ;;  %s1832_s1 = sadd.s32 7, %s4553_s24 }
  0x3d   : > { %v4138_v55 = vld [vmem:[%s4457_s28] sm:$0xff]   ;;  %v4140_v57 = vld [vmem:[%s4457_s28 + $0x8] sm:$0xff]   ;;  %v4142_v61 = vld [vmem:[%s4457_s28 + $0x10] sm:$0xff]   ;;  %s1989_s15 = sadd.s32 2, %s4553_s24  ;;  %s1833_s29 = sld [smem:[#allocation3 + %s1832_s1]] }
  0x3e   : > { %v4143_v62 = vld [vmem:[%s4450_s3 + $0x18] sm:$0xff]   ;;  %v4145_v0 = vld [vmem:[%s4480_s9] sm:$0xff]   ;;  %v4147_v2 = vld [vmem:[%s4480_s9 + $0x8] sm:$0xff]   ;;  %s1574_s3 = sadd.s32 5, %s4553_s24  ;;  %s4567_s30 = sld [smem:[#allocation3 + %s1989_s15]] }
  0x3f   : > { %v4144_v63 = vld [vmem:[%s4457_s28 + $0x18] sm:$0xff]   ;;  %v4146_v1 = vld [vmem:[%s4488_s10] sm:$0xff]   ;;  %v4148_v3 = vld [vmem:[%s4488_s10 + $0x8] sm:$0xff]   ;;  %s1453_s28 = sld [smem:[#allocation3 + %s1452_s27]]  ;;  %s2017_s0 = sadd.s32 3, %s4553_s24 }
  0x40   : > { %v4149_v4 = vld [vmem:[%s4480_s9 + $0x10] sm:$0xff]   ;;  %v4151_v6 = vld [vmem:[%s4480_s9 + $0x18] sm:$0xff]   ;;  %s1575_s6 = sld [smem:[#allocation3 + %s1574_s3]]  ;;  %s1703_s9 = sadd.s32 6, %s4553_s24 }
  0x41   : > { %v4150_v5 = vld [vmem:[%s4488_s10 + $0x10] sm:$0xff]   ;;  %v4152_v7 = vld [vmem:[%s4488_s10 + $0x18] sm:$0xff]   ;;  %s1961_s10 = sadd.s32 1, %s4553_s24  ;;  %s1704_s5 = sld [smem:[#allocation3 + %s1703_s9]] }
  0x42   : > { %3971 = vmatmul.mubr.msk.bf16.vlgmr.msra.gmra.mrb[8].mxu0 %vm1483_vm1, %v4115_v20  ;;  %3981 = vmatmul.mubr.msk.bf16.vlgmr.msra.gmra.mrb[8].mxu1 %vm1483_vm1, %v4116_v21  ;;  %s4563_s25 = sld [smem:[#allocation3 + %s1961_s10]]  ;;  %s4573_s27 = sshll.u32 %s4350_s4, 6 }
  0x43   : > { %3989 = vmatpush3.bf16.msra.mxu0 %v2091_v22  ;;  %3999 = vmatpush3.bf16.msra.mxu1 %v2212_v24  ;;  %s5296_s10 = sld [smem:[#allocation28_spill]]  ;;  %s4595_s4 = sadd.s32 256, %s4553_s24 }
  0x44   : > { %3974 = vmatprep.mubr.msk.bf16.mxu0 %vm1483_vm1, %v4117_v23  ;;  %3984 = vmatprep.mubr.msk.bf16.mxu1 %vm1483_vm1, %v4118_v25  ;;  %s1991_s15 = smul.f32 0.999995, %s4567_s30  ;;  %s2554_s30 = sadd.s32 1, %s4595_s4 }
  0x45   : > { %4074 = vmatprep.subr.msk.bf16.mxu0 %vm1496_vm0, %v3805_v26  ;;  %4075 = vmatprep.subr.msk.bf16.mxu1 %vm1496_vm0, %v3814_v27  ;;  %v1565_v8 = vstv %s1453_s28  ;;  %s4582_s28 = sld [smem:[#allocation3 + %s2017_s0]] }
  0x46   : > { %v1686_v9 = vstv %s1575_s6  ;;  %s5297_s0 = sld [smem:[#allocation27_spill]] }
  0x48   : > { %s1963_s3 = smul.f32 0.999995, %s4563_s25  ;;  %s4640_s25 = sld [smem:[#allocation3 + %s2554_s30]] }
  0x49   : > { %s4590_s1 = scalar_lea.vmem %s5296_s10, %s4573_s27  ;;  %s4616_s10 = scalar_lea.vmem %s5258_s8, %s4573_s27 }
  0x4a   : > { %3975 = vmatmul.mubr.msk.bf16.gmra.mrb[12].mxu0 %vm1483_vm1, %v4119_v28  ;;  %3985 = vmatmul.mubr.msk.bf16.gmra.mrb[12].mxu1 %vm1483_vm1, %v4120_v29 }
  0x4b   : > { %3990 = vmatprep.mubr.msk.bf16.mxu0 %vm1483_vm1, %v4121_v30  ;;  %4000 = vmatprep.mubr.msk.bf16.mxu1 %vm1483_vm1, %v4122_v31 }
  0x4c   : > { %s4603_s7 = scalar_lea.vmem %s5297_s0, %s4573_s27 }
  0x52   : > { %3991 = vmatmul.mubr.msk.bf16.vlgmr.msra.gmra.mrb[16].mxu0 %vm1483_vm1, %v4123_v32  ;;  %4001 = vmatmul.mubr.msk.bf16.vlgmr.msra.gmra.mrb[16].mxu1 %vm1483_vm1, %v4124_v33 }
  0x53   : > { %4009 = vmatpush3.bf16.msra.mxu0 %v2341_v34  ;;  %4019 = vmatpush3.bf16.msra.mxu1 %v2470_v36 }
  0x54   : > { %3994 = vmatprep.mubr.msk.bf16.mxu0 %vm1483_vm1, %v4125_v35  ;;  %4004 = vmatprep.mubr.msk.bf16.mxu1 %vm1483_vm1, %v4126_v37 }
  0x55   : > { %4076 = vmatprep.subr.msk.bf16.mxu0 %vm1496_vm0, %v3824_v38  ;;  %4077 = vmatprep.subr.msk.bf16.mxu1 %vm1496_vm0, %v3833_v39 }
  0x5a   : > { %3995 = vmatmul.mubr.msk.bf16.gmra.mrb[20].mxu0 %vm1483_vm1, %v4127_v40  ;;  %4005 = vmatmul.mubr.msk.bf16.gmra.mrb[20].mxu1 %vm1483_vm1, %v4128_v41 }
  0x5b   : > { %4010 = vmatprep.mubr.msk.bf16.mxu0 %vm1483_vm1, %v4129_v42  ;;  %4020 = vmatprep.mubr.msk.bf16.mxu1 %vm1483_vm1, %v4130_v43 }
  0x62   : > { %4011 = vmatmul.mubr.msk.bf16.vlgmr.msra.gmra.mrb[24].mxu0 %vm1483_vm1, %v4131_v44  ;;  %4021 = vmatmul.mubr.msk.bf16.vlgmr.msra.gmra.mrb[24].mxu1 %vm1483_vm1, %v4132_v45 }
  0x63   : > { %4029 = vmatpush3.bf16.msra.mxu0 %v2692_v46  ;;  %4039 = vmatpush3.bf16.msra.mxu1 %v2813_v48 }
  0x64   : > { %4014 = vmatprep.mubr.msk.bf16.mxu0 %vm1483_vm1, %v4133_v47  ;;  %4024 = vmatprep.mubr.msk.bf16.mxu1 %vm1483_vm1, %v4134_v49  ;;  %v4579_v49 = vstv %s1704_s5  ;;  %s2582_s5 = sadd.s32 2, %s4595_s4 }
  0x65   : > { %4078 = vmatprep.subr.msk.bf16.mxu0 %vm1496_vm0, %v3842_v50  ;;  %4079 = vmatprep.subr.msk.bf16.mxu1 %vm1496_vm0, %v3851_v51  ;;  %v4592_v51 = vstv %s1833_s29  ;;  %s2046_s29 = sadd.s32 4, %s4595_s4  ;;  %s4669_s30 = sld [smem:[#allocation3 + %s2582_s5]] }
  0x6a   : > { %4015 = vmatmul.mubr.msk.bf16.gmra.mrb[28].mxu0 %vm1483_vm1, %v4135_v52  ;;  %4025 = vmatmul.mubr.msk.bf16.gmra.mrb[28].mxu1 %vm1483_vm1, %v4136_v53 }
  0x6b   : > { %4030 = vmatprep.mubr.msk.bf16.mxu0 %vm1483_vm1, %v4137_v54  ;;  %4040 = vmatprep.mubr.msk.bf16.mxu1 %vm1483_vm1, %v4138_v55 }
  0x72   : > { %4031 = vmatmul.mubr.msk.bf16.vlgmr.msra.gmra.mrb[32].mxu0 %vm1483_vm1, %v4139_v56  ;;  %4041 = vmatmul.mubr.msk.bf16.vlgmr.msra.gmra.mrb[32].mxu1 %vm1483_vm1, %v4140_v57  ;;  %v1966_v57 = vld [vmem:[%s4590_s1 + $0x10] sm:$0xff] }
  0x73   : > { %4049 = vmatpush3.bf16.msra.mxu0 %v2942_v58  ;;  %4059 = vmatpush3.bf16.msra.mxu1 %v3071_v60  ;;  %v4607_v58 = vstv %s1963_s3  ;;  %s2167_s3 = sadd.s32 5, %s4595_s4 }
  0x74   : > { %4034 = vmatprep.mubr.msk.bf16.mxu0 %vm1483_vm1, %v4141_v59  ;;  %4044 = vmatprep.mubr.msk.bf16.mxu1 %vm1483_vm1, %v4142_v61  ;;  %s4652_s0 = sld [smem:[#allocation3 + %s2167_s3]]  ;;  %s2610_s3 = sadd.s32 3, %s4595_s4 }
  0x75   : > { %s4741_s5 = sld [smem:[#allocation3 + %s2610_s3]]  ;;  %s2584_s3 = smul.f32 0.999995, %s4669_s30 }
  0x7a   : > { %4035 = vmatmul.mubr.msk.bf16.gmra.mrb[36].mxu0 %vm1483_vm1, %v4143_v62  ;;  %4045 = vmatmul.mubr.msk.bf16.gmra.mrb[36].mxu1 %vm1483_vm1, %v4144_v63 }
  0x7b   : > { %4050 = vmatprep.mubr.msk.bf16.mxu0 %vm1483_vm1, %v4145_v0  ;;  %4060 = vmatprep.mubr.msk.bf16.mxu1 %vm1483_vm1, %v4146_v1 }
  0x82   : > { %4051 = vmatmul.mubr.msk.bf16.vlgmr.msra.gmra.mrb[40].mxu0 %vm1483_vm1, %v4147_v2  ;;  %4061 = vmatmul.mubr.msk.bf16.vlgmr.msra.gmra.mrb[40].mxu1 %vm1483_vm1, %v4148_v3  ;;  %v1994_v3 = vld [vmem:[%s4603_s7 + $0x10] sm:$0xff] }
  0x83   : > { %4054 = vmatprep.mubr.msk.bf16.mxu0 %vm1483_vm1, %v4149_v4  ;;  %4064 = vmatprep.mubr.msk.bf16.mxu1 %vm1483_vm1, %v4150_v5  ;;  %v4622_v4 = vstv %s1991_s15  ;;  %s4638_s15 = sld [smem:[#allocation3 + %s2046_s29]]  ;;  %s2296_s29 = sadd.s32 6, %s4595_s4 }
  0x84   : > { %s4696_s6 = sld [smem:[#allocation3 + %s2296_s29]] }
  0x85   : > { %s5299_s29 = sld [smem:[#allocation31_spill]] }
  0x8a   : > { %4055 = vmatmul.mubr.msk.bf16.gmra.mrb[44].mxu0 %vm1483_vm1, %v4151_v6  ;;  %4065 = vmatmul.mubr.msk.bf16.gmra.mrb[44].mxu1 %vm1483_vm1, %v4152_v7  ;;  %v1964_v6 = vld [vmem:[%s4590_s1] sm:$0xff]  ;;  %v1967_v7 = vld [vmem:[%s4590_s1 + $0x18] sm:$0xff] }
  0x8b   : > { %s4788_s30 = scalar_lea.vmem %s5299_s29, %s4573_s27 }
 0x105   : > { %v3952_v10 = vpop.f32.mrb[0].mxu0  ;;  %v3962_v12 = vpop.f32.mrb[0].mxu1 }
 0x106   : > { %v1568_v11 = vmul.f32 %v3952_v10, %v1565_v8  ;;  %v1534_v13 = vpop.f32.mrb[1].mxu0  ;;  %v1689_v14 = vmul.f32 %v3962_v12, %v1686_v9  ;;  %v1655_v16 = vpop.f32.mrb[1].mxu1  ;;  %v1992_v12 = vld [vmem:[%s4603_s7] sm:$0xff] }
 0x107   : > { %v1566_v15 = vmul.f32 %v1565_v8, %v1534_v13  ;;  %v3953_v17 = vpop.f32.mrb[2].mxu0  ;;  %v1687_v18 = vmul.f32 %v1686_v9, %v1655_v16  ;;  %v3963_v20 = vpop.f32.mrb[2].mxu1  ;;  %v1965_v16 = vld [vmem:[%s4590_s1 + $0x8] sm:$0xff] }
 0x108   : > { %v1569_v19 = vmul.f32 %v3953_v17, %v1565_v8  ;;  %v1537_v21 = vpop.f32.mrb[3].mxu0  ;;  %v1697_v22 = vadd.f32 %v1689_v14, %v1568_v11  ;;  %v1690_v23 = vmul.f32 %v3963_v20, %v1686_v9  ;;  %v1658_v25 = vpop.f32.mrb[3].mxu1  ;;  %v4631_v11 = vmul.f32 %v4607_v58, %v1966_v57  ;;  %v2021_v17 = vld [vmem:[%s4616_s10 + $0x10] sm:$0xff]  ;;  %v2019_v20 = vld [vmem:[%s4616_s10] sm:$0xff] }
 0x109   : > { %v1567_v24 = vmul.f32 %v1565_v8, %v1537_v21  ;;  %v1695_v26 = vadd.f32 %v1687_v18, %v1566_v15  ;;  %v1688_v27 = vmul.f32 %v1686_v9, %v1658_v25  ;;  %v1995_v15 = vld [vmem:[%s4603_s7 + $0x18] sm:$0xff]  ;;  %v4644_v18 = vstv %s4582_s28  ;;  %s2425_s28 = sadd.s32 7, %s4595_s4  ;;  %s2556_s4 = smul.f32 0.999995, %s4640_s25 }
 0x10a   : > { %v4561_v28 = vadd.f32 %v1690_v23, %v1569_v19  ;;  %v1993_v23 = vld [vmem:[%s4603_s7 + $0x8] sm:$0xff]  ;;  %v4659_v25 = vmul.f32 %v4607_v58, %v1964_v6  ;;  %s4708_s9 = sld [smem:[#allocation3 + %s2425_s28]]  ;;  %s4755_s28 = scalar_lea.vmem %s5264_s14, %s4573_s27 }
 0x10b   : > { %v4565_v29 = vadd.f32 %v1688_v27, %v1567_v24  ;;  %v4656_v24 = vmul.f32 %v4622_v4, %v1994_v3  ;;  %v4664_v27 = vmul.f32 %v4607_v58, %v1967_v7  ;;  %v1969_v7 = vld [vmem:[%s4590_s1 + $0x28] sm:$0xff] }
 0x10d   : > { %v3956_v30 = vpop.f32.mrb[4].mxu0  ;;  %v3966_v32 = vpop.f32.mrb[4].mxu1 }
 0x10e   : > { %v1572_v31 = vmul.f32 %v3956_v30, %v1565_v8  ;;  %v1550_v33 = vpop.f32.mrb[5].mxu0  ;;  %v1693_v34 = vmul.f32 %v3966_v32, %v1686_v9  ;;  %v1671_v36 = vpop.f32.mrb[5].mxu1  ;;  %v4672_v30 = vmul.f32 %v4622_v4, %v1992_v12  ;;  %v2023_v12 = vld [vmem:[%s4616_s10 + $0x20] sm:$0xff] }
 0x10f   : > { %v1570_v35 = vmul.f32 %v1565_v8, %v1550_v33  ;;  %v3957_v37 = vpop.f32.mrb[6].mxu0  ;;  %v1691_v38 = vmul.f32 %v1686_v9, %v1671_v36  ;;  %v3967_v40 = vpop.f32.mrb[6].mxu1  ;;  %v4680_v33 = vmul.f32 %v4607_v58, %v1965_v16  ;;  %v1968_v36 = vld [vmem:[%s4590_s1 + $0x20] sm:$0xff] }
 0x110   : > { %v1573_v39 = vmul.f32 %v3957_v37, %v1565_v8  ;;  %v1553_v41 = vpop.f32.mrb[7].mxu0  ;;  %v4570_v42 = vadd.f32 %v1693_v34, %v1572_v31  ;;  %v1694_v43 = vmul.f32 %v3967_v40, %v1686_v9  ;;  %v1674_v45 = vpop.f32.mrb[7].mxu1  ;;  %v4675_v31 = vmul.f32 %v4622_v4, %v1995_v15  ;;  %v1997_v15 = vld [vmem:[%s4603_s7 + $0x28] sm:$0xff] }
 0x111   : > { %v1571_v44 = vmul.f32 %v1565_v8, %v1553_v41  ;;  %v4575_v46 = vadd.f32 %v1691_v38, %v1570_v35  ;;  %v1692_v47 = vmul.f32 %v1686_v9, %v1674_v45  ;;  %v1970_v35 = vld [vmem:[%s4590_s1 + $0x30] sm:$0xff]  ;;  %v4685_v37 = vmul.f32 %v4644_v18, %v2021_v17  ;;  %v1996_v45 = vld [vmem:[%s4603_s7 + $0x20] sm:$0xff] }
 0x112   : > { %v4577_v48 = vadd.f32 %v1694_v43, %v1573_v39  ;;  %v4688_v38 = vmul.f32 %v4644_v18, %v2019_v20  ;;  %v4691_v39 = vmul.f32 %v4622_v4, %v1993_v23  ;;  %v1998_v43 = vld [vmem:[%s4603_s7 + $0x30] sm:$0xff] }
 0x113   : > { %v4584_v50 = vadd.f32 %v1692_v47, %v1571_v44 }
 0x115   : > { %v3972_v52 = vpop.f32.mrb[8].mxu0  ;;  %v3982_v54 = vpop.f32.mrb[8].mxu1 }
 0x116   : > { %v1818_v53 = vmul.f32 %v3972_v52, %v4579_v49  ;;  %v1784_v55 = vpop.f32.mrb[9].mxu0  ;;  %v1947_v56 = vmul.f32 %v3982_v54, %v4592_v51  ;;  %v1913_v60 = vpop.f32.mrb[9].mxu1  ;;  %v2025_v54 = vld [vmem:[%s4616_s10 + $0x30] sm:$0xff] }
 0x117   : > { %v1816_v59 = vmul.f32 %v4579_v49, %v1784_v55  ;;  %v3973_v61 = vpop.f32.mrb[10].mxu0  ;;  %v1945_v63 = vmul.f32 %v4592_v51, %v1913_v60  ;;  %v3983_v1 = vpop.f32.mrb[10].mxu1 }
 0x118   : > { %v1826_v62 = vadd.f32 %v1818_v53, %v1697_v22  ;;  %v1819_v0 = vmul.f32 %v3973_v61, %v4579_v49  ;;  %v1787_v2 = vpop.f32.mrb[11].mxu0  ;;  %v1916_v9 = vpop.f32.mrb[11].mxu1  ;;  %v1948_v14 = vmul.f32 %v3983_v1, %v4592_v51  ;;  %v4713_v61 = vmul.f32 %v4607_v58, %v1970_v35 }
 0x119   : > { %v1824_v5 = vadd.f32 %v1816_v59, %v1695_v26  ;;  %v1817_v8 = vmul.f32 %v4579_v49, %v1787_v2  ;;  %v1946_v22 = vmul.f32 %v4592_v51, %v1916_v9  ;;  %v1971_v59 = vld [vmem:[%s4590_s1 + $0x38] sm:$0xff]  ;;  %v4720_v2 = vmul.f32 %v4622_v4, %v1998_v43 }
 0x11a   : > { %v4628_v10 = vadd.f32 %v1947_v56, %v1826_v62  ;;  %v1827_v13 = vadd.f32 %v1819_v0, %v4561_v28  ;;  %v2022_v28 = vld [vmem:[%s4616_s10 + $0x18] sm:$0xff]  ;;  %v4731_v9 = vmul.f32 %v4644_v18, %v2025_v54 }
 0x11b   : > { %v4646_v19 = vadd.f32 %v1945_v63, %v1824_v5  ;;  %v1825_v21 = vadd.f32 %v1817_v8, %v4565_v29  ;;  %v2020_v29 = vld [vmem:[%s4616_s10 + $0x8] sm:$0xff]  ;;  %v4699_v47 = vmul.f32 %v4644_v18, %v2022_v28  ;;  %v4717_v63 = vmul.f32 %v4607_v58, %v1968_v36 }
 0x11c   : > { %v4661_v26 = vadd.f32 %v1948_v14, %v1827_v13  ;;  %v4702_v52 = vmul.f32 %v4644_v18, %v2020_v29  ;;  %v4735_v13 = vmul.f32 %v4607_v58, %v1971_v59  ;;  %v4760_v28 = vmul.f32 %v4607_v58, %v1969_v7 }
 0x11d   : > { %v4677_v32 = vadd.f32 %v1946_v22, %v1825_v21  ;;  %v3976_v34 = vpop.f32.mrb[12].mxu0  ;;  %v3986_v41 = vpop.f32.mrb[12].mxu1  ;;  %v2026_v21 = vld [vmem:[%s4616_s10 + $0x38] sm:$0xff]  ;;  %v4749_v22 = vstv %s4638_s15  ;;  %s4769_s15 = scalar_lea.vmem %s5263_s13, %s4573_s27  ;;  %v4773_v29 = vmul.f32 %v4644_v18, %v2023_v12  ;;  %v4781_v58 = vmul.f32 %v4622_v4, %v1997_v15  ;;  %v2614_v12 = vld [vmem:[%s4788_s30 + $0x10] sm:$0xff] }
 0x11e   : > { %v1822_v40 = vmul.f32 %v3976_v34, %v4579_v49  ;;  %v1800_v44 = vpop.f32.mrb[13].mxu0  ;;  %v1951_v53 = vmul.f32 %v3986_v41, %v4592_v51  ;;  %v1929_v56 = vpop.f32.mrb[13].mxu1  ;;  %v2024_v34 = vld [vmem:[%s4616_s10 + $0x28] sm:$0xff]  ;;  %v4791_v36 = vmul.f32 %v4644_v18, %v2026_v21  ;;  %s4801_s10 = sadd.s32 512, %s4553_s24  ;;  %v4806_v59 = vstv %s4696_s6 }
 0x11f   : > { %v1820_v55 = vmul.f32 %v4579_v49, %v1800_v44  ;;  %v3977_v57 = vpop.f32.mrb[14].mxu0  ;;  %v1949_v62 = vmul.f32 %v4592_v51, %v1929_v56  ;;  %v3987_v0 = vpop.f32.mrb[14].mxu1  ;;  %5298 = vst [vmem:[#allocation6_spill] sm:$0xff] %v4781_v58  ;;  %v2559_v44 = vld [vmem:[%s4755_s28 + $0x10] sm:$0xff]  ;;  %v4817_v7 = vstv %s2584_s3  ;;  %s2647_s24 = sadd.s32 4, %s4801_s10  ;;  %s2768_s6 = sadd.s32 5, %s4801_s10  ;;  %v1983_v58 = vadd.f32 %v4631_v11, %v4628_v10 }
 0x120   : > { %v1830_v60 = vadd.f32 %v1822_v40, %v4570_v42  ;;  %v1803_v1 = vpop.f32.mrb[15].mxu0  ;;  %v4724_v42 = vmul.f32 %v4622_v4, %v1996_v45  ;;  %v1823_v5 = vmul.f32 %v3977_v57, %v4579_v49  ;;  %v1932_v6 = vpop.f32.mrb[15].mxu1  ;;  %v1952_v20 = vmul.f32 %v3987_v0, %v4592_v51  ;;  %5300 = vst [vmem:[#allocation7_spill] sm:$0xff] %v4791_v36  ;;  %v2592_v11 = vld [vmem:[%s4769_s15 + $0x38] sm:$0xff]  ;;  %s3026_s3 = sadd.s32 7, %s4801_s10 }
 0x121   : > { %v1828_v3 = vadd.f32 %v1820_v55, %v4575_v46  ;;  %v1999_v46 = vld [vmem:[%s4603_s7 + $0x38] sm:$0xff]  ;;  %v1821_v14 = vmul.f32 %v4579_v49, %v1803_v1  ;;  %v1950_v23 = vmul.f32 %v4592_v51, %v1932_v6  ;;  %v4797_v45 = vstv %s2556_s4  ;;  %s4874_s4 = sld [smem:[#allocation3 + %s2768_s6]] }
 0x122   : > { %v4728_v8 = vadd.f32 %v1951_v53, %v1830_v60  ;;  %v1831_v17 = vadd.f32 %v1823_v5, %v4577_v48  ;;  %v4763_v48 = vstv %s4652_s0  ;;  %v4778_v51 = vmul.f32 %v4622_v4, %v1999_v46  ;;  %v2557_v53 = vld [vmem:[%s4755_s28] sm:$0xff]  ;;  %s3211_s0 = sadd.s32 3, %s4801_s10  ;;  %s5078_s29 = sld [smem:[#allocation3 + %s3026_s3]] }
 0x123   : > { %v4743_v16 = vadd.f32 %v1949_v62, %v1828_v3  ;;  %v1829_v49 = vadd.f32 %v1821_v14, %v4584_v50  ;;  %v4809_v60 = vstv %s4708_s9  ;;  %v2587_v62 = vld [vmem:[%s4769_s15 + $0x10] sm:$0xff]  ;;  %v4813_v0 = vmul.f32 %v4644_v18, %v2024_v34  ;;  %v2585_v46 = vld [vmem:[%s4769_s15] sm:$0xff]  ;;  %v2560_v14 = vld [vmem:[%s4755_s28 + $0x18] sm:$0xff]  ;;  %s4872_s9 = sld [smem:[#allocation3 + %s2647_s24]]  ;;  %s5117_s3 = scalar_lea.vmem %s5272_s22, %s4573_s27 }
 0x124   : > { %v4775_v50 = vadd.f32 %v1952_v20, %v1831_v17  ;;  %v4826_v20 = vmul.f32 %v4797_v45, %v2559_v44  ;;  %v4829_v21 = vmul.f32 %v4797_v45, %v2557_v53  ;;  %v2586_v34 = vld [vmem:[%s4769_s15 + $0x8] sm:$0xff]  ;;  %v2612_v44 = vld [vmem:[%s4788_s30] sm:$0xff]  ;;  %v2615_v53 = vld [vmem:[%s4788_s30 + $0x18] sm:$0xff] }
 0x125   : > { %v3992_v35 = vpop.f32.mrb[16].mxu0  ;;  %v4793_v40 = vadd.f32 %v1950_v23, %v1829_v49  ;;  %v4002_v43 = vpop.f32.mrb[16].mxu1  ;;  %5301 = vst [vmem:[#allocation8_spill] sm:$0xff] %v4813_v0  ;;  %v2588_v49 = vld [vmem:[%s4769_s15 + $0x18] sm:$0xff]  ;;  %v2558_v23 = vld [vmem:[%s4755_s28 + $0x8] sm:$0xff] }
 0x126   : > { %v2161_v41 = vmul.f32 %v3992_v35, %v4749_v22  ;;  %v2127_v4 = vpop.f32.mrb[17].mxu0  ;;  %v2282_v54 = vmul.f32 %v4002_v43, %v4763_v48  ;;  %v2248_v56 = vpop.f32.mrb[17].mxu1  ;;  %v4862_v0 = vmul.f32 %v4817_v7, %v2588_v49 }
 0x127   : > { %v2159_v55 = vmul.f32 %v4749_v22, %v2127_v4  ;;  %v3993_v57 = vpop.f32.mrb[18].mxu0  ;;  %v2280_v1 = vmul.f32 %v4763_v48, %v2248_v56  ;;  %v4003_v5 = vpop.f32.mrb[18].mxu1  ;;  %v4841_v4 = vstv %s4741_s5  ;;  %s3155_s5 = sadd.s32 1, %s4801_s10 }
 0x128   : > { %v2162_v3 = vmul.f32 %v3993_v57, %v4749_v22  ;;  %v2130_v6 = vpop.f32.mrb[19].mxu0  ;;  %v4822_v15 = vadd.f32 %v2282_v54, %v2161_v41  ;;  %v2283_v18 = vmul.f32 %v4003_v5, %v4763_v48  ;;  %v2251_v17 = vpop.f32.mrb[19].mxu1  ;;  %v2613_v54 = vld [vmem:[%s4788_s30 + $0x8] sm:$0xff]  ;;  %v4849_v57 = vmul.f32 %v4817_v7, %v2587_v62  ;;  %5302 = vst [vmem:[#allocation9_spill] sm:$0xff] %v4862_v0  ;;  %s5038_s7 = sld [smem:[#allocation3 + %s3155_s5]] }
 0x129   : > { %v4836_v35 = vadd.f32 %v2280_v1, %v2159_v55  ;;  %v2160_v41 = vmul.f32 %v4749_v22, %v2130_v6  ;;  %v2281_v43 = vmul.f32 %v4763_v48, %v2251_v17  ;;  %v4852_v5 = vmul.f32 %v4817_v7, %v2585_v46  ;;  %v2563_v1 = vld [vmem:[%s4755_s28 + $0x30] sm:$0xff]  ;;  %v2561_v6 = vld [vmem:[%s4755_s28 + $0x20] sm:$0xff] }
 0x12a   : > { %v4846_v56 = vadd.f32 %v2283_v18, %v2162_v3  ;;  %v4855_v55 = vmul.f32 %v4797_v45, %v2560_v14  ;;  %v4865_v3 = vmul.f32 %v4797_v45, %v2558_v23  ;;  %v4868_v62 = vmul.f32 %v4817_v7, %v2586_v34  ;;  %v2591_v46 = vld [vmem:[%s4769_s15 + $0x30] sm:$0xff]  ;;  %v2564_v18 = vld [vmem:[%s4755_s28 + $0x38] sm:$0xff] }
 0x12b   : > { %v4859_v17 = vadd.f32 %v2281_v43, %v2160_v41  ;;  %v4877_v36 = vmul.f32 %v4841_v4, %v2614_v12  ;;  %v4880_v41 = vmul.f32 %v4841_v4, %v2612_v44  ;;  %v4883_v49 = vmul.f32 %v4841_v4, %v2615_v53  ;;  %v2618_v34 = vld [vmem:[%s4788_s30 + $0x30] sm:$0xff]  ;;  %v2589_v43 = vld [vmem:[%s4769_s15 + $0x20] sm:$0xff] }
 0x12c   : > { %5303 = vst [vmem:[#allocation10_spill] sm:$0xff] %v4868_v62  ;;  %v4886_v23 = vmul.f32 %v4841_v4, %v2613_v54  ;;  %v4894_v44 = vmul.f32 %v4797_v45, %v2563_v1  ;;  %v4897_v53 = vmul.f32 %v4797_v45, %v2561_v6  ;;  %v4905_v10 = vmul.f32 %v4797_v45, %v2564_v18 }
 0x12d   : > { %v3996_v14 = vpop.f32.mrb[20].mxu0  ;;  %5304 = vst [vmem:[#allocation11_spill] sm:$0xff] %v4877_v36  ;;  %5305 = vst [vmem:[#allocation12_spill] sm:$0xff] %v4880_v41  ;;  %v4006_v0 = vpop.f32.mrb[20].mxu1  ;;  %v4902_v36 = vmul.f32 %v4817_v7, %v2591_v46  ;;  %v2562_v46 = vld [vmem:[%s4755_s28 + $0x28] sm:$0xff]  ;;  %v1981_v18 = vadd.f32 %v4659_v25, %v4646_v19  ;;  %v2619_v19 = vld [vmem:[%s4788_s30 + $0x38] sm:$0xff]  ;;  %v1984_v25 = vadd.f32 %v4664_v27, %v4661_v26 }
 0x12e   : > { %5306 = vst [vmem:[#allocation13_spill] sm:$0xff] %v4883_v49  ;;  %5307 = vst [vmem:[#allocation14_spill] sm:$0xff] %v4886_v23  ;;  %v2165_v62 = vmul.f32 %v3996_v14, %v4749_v22  ;;  %v2143_v12 = vpop.f32.mrb[21].mxu0  ;;  %v2286_v49 = vmul.f32 %v4006_v0, %v4763_v48  ;;  %v2264_v23 = vpop.f32.mrb[21].mxu1  ;;  %v4911_v0 = vmul.f32 %v4841_v4, %v2618_v34  ;;  %s3183_s28 = sadd.s32 2, %s4801_s10 }
 0x12f   : > { %5308 = vst [vmem:[#allocation15_spill] sm:$0xff] %v4894_v44  ;;  %5309 = vst [vmem:[#allocation16_spill] sm:$0xff] %v4897_v53  ;;  %v2163_v54 = vmul.f32 %v4749_v22, %v2143_v12  ;;  %v3997_v41 = vpop.f32.mrb[22].mxu0  ;;  %v2284_v1 = vmul.f32 %v4763_v48, %v2264_v23  ;;  %v4007_v6 = vpop.f32.mrb[22].mxu1  ;;  %v4914_v12 = vmul.f32 %v4817_v7, %v2589_v43  ;;  %s5044_s25 = sld [smem:[#allocation3 + %s3183_s28]] }
 0x130   : > { %5310 = vst [vmem:[#allocation17_spill] sm:$0xff] %v4902_v36  ;;  %5311 = vst [vmem:[#allocation18_spill] sm:$0xff] %v4905_v10  ;;  %v2166_v14 = vmul.f32 %v3997_v41, %v4749_v22  ;;  %v2146_v53 = vpop.f32.mrb[23].mxu0  ;;  %v4919_v10 = vadd.f32 %v2286_v49, %v2165_v62  ;;  %v2287_v23 = vmul.f32 %v4007_v6, %v4763_v48  ;;  %v2267_v36 = vpop.f32.mrb[23].mxu1 }
 0x131   : > { %5312 = vst [vmem:[#allocation19_spill] sm:$0xff] %v4911_v0  ;;  %5313 = vst [vmem:[#allocation20_spill] sm:$0xff] %v4914_v12  ;;  %v2164_v41 = vmul.f32 %v4749_v22, %v2146_v53  ;;  %v2011_v34 = vadd.f32 %v4656_v24, %v1983_v58  ;;  %v4924_v0 = vadd.f32 %v2284_v1, %v2163_v54  ;;  %v2616_v12 = vld [vmem:[%s4788_s30 + $0x20] sm:$0xff]  ;;  %v2590_v24 = vld [vmem:[%s4769_s15 + $0x28] sm:$0xff]  ;;  %v4948_v53 = vstv %s4872_s9  ;;  %s2897_s15 = sadd.s32 6, %s4801_s10  ;;  %s5094_s9 = scalar_lea.vmem %s5271_s21, %s4573_s27 }
 0x132   : > { %v2285_v43 = vmul.f32 %v4763_v48, %v2267_v36  ;;  %v4929_v44 = vmul.f32 %v4817_v7, %v2592_v11  ;;  %v1982_v22 = vadd.f32 %v4680_v33, %v4677_v32  ;;  %v4936_v62 = vadd.f32 %v2287_v23, %v2166_v14  ;;  %v2617_v58 = vld [vmem:[%s4788_s30 + $0x28] sm:$0xff]  ;;  %s5075_s1 = sld [smem:[#allocation3 + %s2897_s15]]  ;;  %s3157_s10 = smul.f32 0.999995, %s5038_s7 }
 0x133   : > { %v4939_v49 = vmul.f32 %v4797_v45, %v2562_v46  ;;  %v1987_v48 = vadd.f32 %v4713_v61, %v4728_v8  ;;  %v4951_v54 = vstv %s4874_s4  ;;  %v2009_v26 = vadd.f32 %v4672_v30, %v1981_v18  ;;  %s5080_s30 = sld [smem:[#allocation3 + %s3211_s0]]  ;;  %s5103_s7 = scalar_lea.vmem %s5270_s20, %s4573_s27 }
 0x134   : > { %v4945_v36 = vadd.f32 %v2285_v43, %v2164_v41  ;;  %v1985_v27 = vadd.f32 %v4717_v63, %v4743_v16  ;;  %v4957_v33 = vmul.f32 %v4841_v4, %v2616_v12  ;;  %v4960_v45 = vmul.f32 %v4841_v4, %v2619_v19 }
 0x135   : > { %v4012_v32 = vpop.f32.mrb[24].mxu0  ;;  %v4963_v61 = vadd.f32 %v4685_v37, %v2011_v34  ;;  %v4022_v11 = vpop.f32.mrb[24].mxu1  ;;  %v4967_v14 = vmul.f32 %v4817_v7, %v2590_v24  ;;  %v4970_v30 = vmul.f32 %v4841_v4, %v2617_v58  ;;  %v2012_v63 = vadd.f32 %v4675_v31, %v1984_v25  ;;  %s3185_s4 = smul.f32 0.999995, %s5044_s25 }
 0x136   : > { %v2411_v8 = vmul.f32 %v4012_v32, %v4806_v59  ;;  %v2377_v1 = vpop.f32.mrb[25].mxu0  ;;  %v2010_v16 = vadd.f32 %v4691_v39, %v1982_v22  ;;  %v2540_v6 = vmul.f32 %v4022_v11, %v4809_v60  ;;  %v2506_v37 = vpop.f32.mrb[25].mxu1  ;;  %v2015_v18 = vadd.f32 %v4720_v2, %v1987_v48 }
 0x137   : > { %v2409_v12 = vmul.f32 %v4806_v59, %v2377_v1  ;;  %v4013_v46 = vpop.f32.mrb[26].mxu0  ;;  %v2538_v7 = vmul.f32 %v4809_v60, %v2506_v37  ;;  %v4023_v4 = vpop.f32.mrb[26].mxu1  ;;  %v2036_v31 = vadd.f32 %v4688_v38, %v2009_v26  ;;  %v2013_v39 = vadd.f32 %v4724_v42, %v1985_v27 }
 0x138   : > { %v2419_v23 = vadd.f32 %v2411_v8, %v4822_v15  ;;  %v2412_v41 = vmul.f32 %v4013_v46, %v4806_v59  ;;  %v2380_v34 = vpop.f32.mrb[27].mxu0  ;;  %v2509_v25 = vpop.f32.mrb[27].mxu1  ;;  %v1988_v2 = vadd.f32 %v4735_v13, %v4775_v50  ;;  %v2541_v24 = vmul.f32 %v4023_v4, %v4809_v60 }
 0x139   : > { %v2417_v43 = vadd.f32 %v2409_v12, %v4836_v35  ;;  %v2410_v19 = vmul.f32 %v4806_v59, %v2380_v34  ;;  %v2039_v58 = vadd.f32 %v4699_v47, %v2012_v63  ;;  %v2539_v42 = vmul.f32 %v4809_v60, %v2509_v25 }
 0x13a   : > { %v2548_v22 = vadd.f32 %v2540_v6, %v2419_v23  ;;  %v2420_v15 = vadd.f32 %v2412_v41, %v4846_v56  ;;  %v2037_v35 = vadd.f32 %v4702_v52, %v2010_v16  ;;  %v4993_v26 = vadd.f32 %v4731_v9, %v2015_v18  ;;  %v5314_v6 = vld [vmem:[#allocation11_spill] sm:$0xff]  ;;  %v5316_v18 = vld [vmem:[#allocation12_spill] sm:$0xff]  ;;  %v5317_v23 = vld [vmem:[#allocation10_spill] sm:$0xff] }
 0x13b   : > { %v2546_v48 = vadd.f32 %v2538_v7, %v2417_v43  ;;  %v2418_v38 = vadd.f32 %v2410_v19, %v4859_v17  ;;  %v4997_v50 = vadd.f32 %v4773_v29, %v2013_v39  ;;  %v1986_v56 = vadd.f32 %v4760_v28, %v4793_v40  ;;  %v5318_v43 = vld [vmem:[#allocation13_spill] sm:$0xff] }
 0x13c   : > { %v2576_v27 = vadd.f32 %v4826_v20, %v2548_v22  ;;  %v2549_v13 = vadd.f32 %v2541_v24, %v2420_v15  ;;  %v2016_v8 = vadd.f32 %v4778_v51, %v1988_v2  ;;  %v5319_v22 = vld [vmem:[#allocation14_spill] sm:$0xff] }
 0x13d   : > { %v2574_v47 = vadd.f32 %v4829_v21, %v2546_v48  ;;  %v2547_v32 = vadd.f32 %v2539_v42, %v2418_v38  ;;  %v4016_v17 = vpop.f32.mrb[28].mxu0  ;;  %v4026_v20 = vpop.f32.mrb[28].mxu1 }
 0x13e   : > { %v2604_v52 = vadd.f32 %v4849_v57, %v2576_v27  ;;  %v2577_v9 = vadd.f32 %v4855_v55, %v2549_v13  ;;  %v2415_v11 = vmul.f32 %v4016_v17, %v4806_v59  ;;  %v2393_v1 = vpop.f32.mrb[29].mxu0  ;;  %v2544_v28 = vmul.f32 %v4026_v20, %v4809_v60  ;;  %v2522_v21 = vpop.f32.mrb[29].mxu1  ;;  %v5315_v57 = vld [vmem:[#allocation9_spill] sm:$0xff] }
 0x13f   : > { %v2602_v29 = vadd.f32 %v4852_v5, %v2574_v47  ;;  %v2575_v63 = vadd.f32 %v4865_v3, %v2547_v32  ;;  %v2413_v40 = vmul.f32 %v4806_v59, %v2393_v1  ;;  %v4017_v16 = vpop.f32.mrb[30].mxu0  ;;  %v2542_v37 = vmul.f32 %v4809_v60, %v2522_v21  ;;  %v4027_v46 = vpop.f32.mrb[30].mxu1  ;;  %v5322_v47 = vld [vmem:[#allocation7_spill] sm:$0xff] }
 0x140   : > { %v2631_v51 = vadd.f32 %v5314_v6, %v2604_v52  ;;  %v2605_v12 = vadd.f32 %v5315_v57, %v2577_v9  ;;  %v2423_v55 = vadd.f32 %v2415_v11, %v4919_v10  ;;  %v2396_v5 = vpop.f32.mrb[31].mxu0  ;;  %v2416_v4 = vmul.f32 %v4017_v16, %v4806_v59  ;;  %v2525_v34 = vpop.f32.mrb[31].mxu1 }
 0x141   : > { %v2629_v3 = vadd.f32 %v5316_v18, %v2602_v29  ;;  %v2603_v7 = vadd.f32 %v5317_v23, %v2575_v63  ;;  %v2421_v41 = vadd.f32 %v2413_v40, %v4924_v0  ;;  %v2545_v25 = vmul.f32 %v4027_v46, %v4809_v60  ;;  %v5320_v0 = vld [vmem:[#allocation6_spill] sm:$0xff] }
 0x142   : > { %v5019_v39 = vadd.f32 %v2631_v51, %v4963_v61  ;;  %v2632_v19 = vadd.f32 %v5318_v43, %v2605_v12  ;;  %v2552_v10 = vadd.f32 %v2544_v28, %v2423_v55  ;;  %v2424_v48 = vadd.f32 %v2416_v4, %v4936_v62  ;;  %v5321_v61 = vld [vmem:[#allocation15_spill] sm:$0xff]  ;;  %v5324_v62 = vld [vmem:[#allocation17_spill] sm:$0xff]  ;;  %v5326_v63 = vld [vmem:[#allocation18_spill] sm:$0xff] }
 0x143   : > { %v5024_v2 = vadd.f32 %v2629_v3, %v2036_v31  ;;  %v2630_v15 = vadd.f32 %v5319_v22, %v2603_v7  ;;  %v2550_v24 = vadd.f32 %v2542_v37, %v2421_v41  ;;  %v2014_v38 = vadd.f32 %v5320_v0, %v1986_v56  ;;  %v5323_v31 = vld [vmem:[#allocation16_spill] sm:$0xff] }
 0x144   : > { %v5030_v42 = vadd.f32 %v2632_v19, %v2039_v58  ;;  %v2580_v27 = vadd.f32 %v5321_v61, %v2552_v10  ;;  %v2414_v13 = vmul.f32 %v4806_v59, %v2396_v5  ;;  %v2043_v32 = vadd.f32 %v5322_v47, %v2016_v8  ;;  %v5328_v10 = vld [vmem:[#allocation8_spill] sm:$0xff] }
 0x145   : > { %v5035_v17 = vadd.f32 %v2630_v15, %v2037_v35  ;;  %v2578_v52 = vadd.f32 %v5323_v31, %v2550_v24  ;;  %v2553_v9 = vadd.f32 %v2545_v25, %v2424_v48  ;;  %v4032_v11 = vpop.f32.mrb[32].mxu0  ;;  %v2543_v58 = vmul.f32 %v4809_v60, %v2525_v34  ;;  %v4042_v59 = vpop.f32.mrb[32].mxu1  ;;  %v5325_v35 = vld [vmem:[#allocation20_spill] sm:$0xff]  ;;  %v5327_v60 = vld [vmem:[#allocation19_spill] sm:$0xff] }
 0x146   : > { %v2608_v20 = vadd.f32 %v5324_v62, %v2580_v27  ;;  %v2422_v56 = vadd.f32 %v2414_v13, %v4945_v36  ;;  %v2762_v1 = vmul.f32 %v4032_v11, %v4948_v53  ;;  %v2728_v29 = vpop.f32.mrb[33].mxu0  ;;  %v2883_v40 = vmul.f32 %v4042_v59, %v4951_v54  ;;  %v2849_v36 = vpop.f32.mrb[33].mxu1  ;;  %v3160_v62 = vld [vmem:[%s5094_s9 + $0x10] sm:$0xff] }
 0x147   : > { %v2606_v8 = vadd.f32 %v5325_v35, %v2578_v52  ;;  %v2581_v28 = vadd.f32 %v5326_v63, %v2553_v9  ;;  %v2760_v21 = vmul.f32 %v4948_v53, %v2728_v29  ;;  %v4033_v16 = vpop.f32.mrb[34].mxu0  ;;  %v2881_v57 = vmul.f32 %v4951_v54, %v2849_v36  ;;  %v4043_v55 = vpop.f32.mrb[34].mxu1  ;;  %v3161_v63 = vld [vmem:[%s5094_s9 + $0x18] sm:$0xff] }
 0x148   : > { %v2635_v6 = vadd.f32 %v5327_v60, %v2608_v20  ;;  %v2551_v51 = vadd.f32 %v2543_v58, %v2422_v56  ;;  %v2763_v12 = vmul.f32 %v4033_v16, %v4948_v53  ;;  %v2731_v37 = vpop.f32.mrb[35].mxu0  ;;  %v5056_v18 = vadd.f32 %v2883_v40, %v2762_v1  ;;  %v2852_v23 = vpop.f32.mrb[35].mxu1  ;;  %v3188_v1 = vld [vmem:[%s5103_s7 + $0x10] sm:$0xff]  ;;  %v3189_v16 = vld [vmem:[%s5103_s7 + $0x18] sm:$0xff] }
 0x149   : > { %v2633_v46 = vadd.f32 %v4957_v33, %v2606_v8  ;;  %v2609_v5 = vadd.f32 %v4929_v44, %v2581_v28  ;;  %v2884_v3 = vmul.f32 %v4043_v55, %v4951_v54  ;;  %v5065_v4 = vadd.f32 %v2881_v57, %v2760_v21  ;;  %v3186_v8 = vld [vmem:[%s5103_s7] sm:$0xff]  ;;  %v3159_v28 = vld [vmem:[%s5094_s9 + $0x8] sm:$0xff] }
 0x14a   : > { %v5062_v7 = vadd.f32 %v2635_v6, %v4993_v26  ;;  %v2579_v41 = vadd.f32 %v4939_v49, %v2551_v51  ;;  %v2761_v34 = vmul.f32 %v4948_v53, %v2731_v37  ;;  %v2882_v19 = vmul.f32 %v4951_v54, %v2852_v23  ;;  %v3216_v23 = vld [vmem:[%s5117_s3 + $0x18] sm:$0xff] }
 0x14b   : > { %v5069_v33 = vadd.f32 %v2633_v46, %v4997_v50  ;;  %v2636_v44 = vadd.f32 %v4960_v45, %v2609_v5  ;;  %v5072_v43 = vadd.f32 %v2884_v3, %v2763_v12  ;;  %v2041_v25 = vadd.f32 %v5328_v10, %v2014_v38  ;;  %v3213_v12 = vld [vmem:[%s5117_s3] sm:$0xff] }
 0x14c   : > { %v2607_v26 = vadd.f32 %v4967_v14, %v2579_v41  ;;  %v5084_v50 = vadd.f32 %v2882_v19, %v2761_v34  ;;  %v5123_v58 = vstv %s3157_s10  ;;  %v5126_v59 = vstv %s3185_s4  ;;  %v3187_v34 = vld [vmem:[%s5103_s7 + $0x8] sm:$0xff] }
 0x14d   : > { %v5082_v49 = vadd.f32 %v2636_v44, %v2043_v32  ;;  %v4036_v45 = vpop.f32.mrb[36].mxu0  ;;  %v4046_v24 = vpop.f32.mrb[36].mxu1  ;;  %v5132_v35 = vstv %s5075_s1  ;;  %v5140_v21 = vstv %s5078_s29  ;;  %v5144_v36 = vstv %s5080_s30  ;;  %s5196_s29 = scalar_lea.vmem %s5273_s23, %s4573_s27 }
 0x14e   : > { %v2634_v22 = vadd.f32 %v4970_v30, %v2607_v26  ;;  %v2766_v15 = vmul.f32 %v4036_v45, %v4948_v53  ;;  %v2744_v48 = vpop.f32.mrb[37].mxu0  ;;  %v2887_v14 = vmul.f32 %v4046_v24, %v4951_v54  ;;  %v2865_v61 = vpop.f32.mrb[37].mxu1  ;;  %v3169_v6 = vmul.f32 %v5123_v58, %v3160_v62 }
 0x14f   : > { %v2764_v0 = vmul.f32 %v4948_v53, %v2744_v48  ;;  %v4037_v38 = vpop.f32.mrb[38].mxu0  ;;  %v2885_v27 = vmul.f32 %v4951_v54, %v2865_v61  ;;  %v4047_v47 = vpop.f32.mrb[38].mxu1  ;;  %v3197_v51 = vmul.f32 %v5126_v59, %v3188_v1  ;;  %v3195_v5 = vmul.f32 %v5126_v59, %v3186_v8  ;;  %v3165_v8 = vld [vmem:[%s5094_s9 + $0x38] sm:$0xff] }
 0x150   : > { %v5105_v30 = vadd.f32 %v2634_v22, %v2041_v25  ;;  %v2767_v13 = vmul.f32 %v4037_v38, %v4948_v53  ;;  %v2747_v32 = vpop.f32.mrb[39].mxu0  ;;  %v5109_v31 = vadd.f32 %v2887_v14, %v2766_v15  ;;  %v2888_v52 = vmul.f32 %v4047_v47, %v4951_v54  ;;  %v2868_v11 = vpop.f32.mrb[39].mxu1  ;;  %v3214_v22 = vld [vmem:[%s5117_s3 + $0x8] sm:$0xff]  ;;  %v3164_v38 = vld [vmem:[%s5094_s9 + $0x30] sm:$0xff] }
 0x151   : > { %v2765_v9 = vmul.f32 %v4948_v53, %v2747_v32  ;;  %v5120_v20 = vadd.f32 %v2885_v27, %v2764_v0  ;;  %v2886_v56 = vmul.f32 %v4951_v54, %v2868_v11  ;;  %v3158_v53 = vld [vmem:[%s5094_s9] sm:$0xff]  ;;  %v3215_v54 = vld [vmem:[%s5117_s3 + $0x10] sm:$0xff]  ;;  %v3170_v3 = vmul.f32 %v5123_v58, %v3161_v63 }
 0x152   : > { %v5129_v29 = vadd.f32 %v2888_v52, %v2767_v13  ;;  %v3167_v57 = vmul.f32 %v5123_v58, %v3158_v53  ;;  %v3168_v41 = vmul.f32 %v5123_v58, %v3159_v28  ;;  %v3224_v19 = vmul.f32 %v5144_v36, %v3215_v54  ;;  %v3192_v52 = vld [vmem:[%s5103_s7 + $0x30] sm:$0xff] }
 0x153   : > { %v5137_v40 = vadd.f32 %v2886_v56, %v2765_v9  ;;  %v3198_v25 = vmul.f32 %v5126_v59, %v3189_v16  ;;  %v3222_v48 = vmul.f32 %v5144_v36, %v3213_v12  ;;  %v3225_v13 = vmul.f32 %v5144_v36, %v3216_v23  ;;  %v3162_v9 = vld [vmem:[%s5094_s9 + $0x20] sm:$0xff]  ;;  %v3219_v53 = vld [vmem:[%s5117_s3 + $0x30] sm:$0xff] }
 0x154   : > { %v3223_v1 = vmul.f32 %v5144_v36, %v3214_v22  ;;  %v3173_v54 = vmul.f32 %v5123_v58, %v3164_v38  ;;  %v3190_v16 = vld [vmem:[%s5103_s7 + $0x20] sm:$0xff] }
 0x155   : > { %v4052_v60 = vpop.f32.mrb[40].mxu0  ;;  %v4062_v37 = vpop.f32.mrb[40].mxu1 }
 0x156   : > { %v3012_v55 = vmul.f32 %v4052_v60, %v5132_v35  ;;  %v2978_v46 = vpop.f32.mrb[41].mxu0  ;;  %v3141_v44 = vmul.f32 %v4062_v37, %v5140_v21  ;;  %v3107_v45 = vpop.f32.mrb[41].mxu1 }
 0x157   : > { %v3010_v26 = vmul.f32 %v5132_v35, %v2978_v46  ;;  %v4053_v10 = vpop.f32.mrb[42].mxu0  ;;  %v3139_v24 = vmul.f32 %v5140_v21, %v3107_v45  ;;  %v4063_v0 = vpop.f32.mrb[42].mxu1 }
 0x158   : > { %v3020_v15 = vadd.f32 %v3012_v55, %v5056_v18  ;;  %v3013_v14 = vmul.f32 %v4053_v10, %v5132_v35  ;;  %v2981_v61 = vpop.f32.mrb[43].mxu0  ;;  %v3110_v32 = vpop.f32.mrb[43].mxu1  ;;  %v3196_v18 = vmul.f32 %v5126_v59, %v3187_v34  ;;  %v3142_v56 = vmul.f32 %v4063_v0, %v5140_v21 }
 0x159   : > { %v3018_v27 = vadd.f32 %v3010_v26, %v5065_v4  ;;  %v3011_v47 = vmul.f32 %v5132_v35, %v2981_v61  ;;  %v3140_v28 = vmul.f32 %v5140_v21, %v3110_v32  ;;  %v3201_v55 = vmul.f32 %v5126_v59, %v3192_v52 }
 0x15a   : > { %v3149_v11 = vadd.f32 %v3141_v44, %v3020_v15  ;;  %v3021_v62 = vadd.f32 %v3013_v14, %v5072_v43  ;;  %v3171_v43 = vmul.f32 %v5123_v58, %v3162_v9  ;;  %v3228_v34 = vmul.f32 %v5144_v36, %v3219_v53 }
 0x15b   : > { %v3147_v4 = vadd.f32 %v3139_v24, %v3018_v27  ;;  %v3019_v63 = vadd.f32 %v3011_v47, %v5084_v50  ;;  %v3174_v44 = vmul.f32 %v5123_v58, %v3165_v8 }
 0x15c   : > { %v3177_v60 = vadd.f32 %v3169_v6, %v3149_v11  ;;  %v3150_v12 = vadd.f32 %v3142_v56, %v3021_v62  ;;  %v3199_v6 = vmul.f32 %v5126_v59, %v3190_v16  ;;  %v3217_v56 = vld [vmem:[%s5117_s3 + $0x20] sm:$0xff] }
 0x15d   : > { %v3175_v37 = vadd.f32 %v3167_v57, %v3147_v4  ;;  %v3148_v46 = vadd.f32 %v3140_v28, %v3019_v63  ;;  %v4056_v23 = vpop.f32.mrb[44].mxu0  ;;  %v4066_v10 = vpop.f32.mrb[44].mxu1  ;;  %v3163_v4 = vld [vmem:[%s5094_s9 + $0x28] sm:$0xff]  ;;  %v3220_v28 = vld [vmem:[%s5117_s3 + $0x38] sm:$0xff] }
 0x15e   : > { %v3205_v26 = vadd.f32 %v3197_v51, %v3177_v60  ;;  %v3178_v50 = vadd.f32 %v3170_v3, %v3150_v12  ;;  %v3016_v45 = vmul.f32 %v4056_v23, %v5132_v35  ;;  %v2994_v22 = vpop.f32.mrb[45].mxu0  ;;  %v3145_v57 = vmul.f32 %v4066_v10, %v5140_v21  ;;  %v3123_v0 = vpop.f32.mrb[45].mxu1  ;;  %v3191_v12 = vld [vmem:[%s5103_s7 + $0x28] sm:$0xff] }
 0x15f   : > { %v3203_v15 = vadd.f32 %v3195_v5, %v3175_v37  ;;  %v3176_v24 = vadd.f32 %v3168_v41, %v3148_v46  ;;  %v3014_v14 = vmul.f32 %v5132_v35, %v2994_v22  ;;  %v4057_v61 = vpop.f32.mrb[46].mxu0  ;;  %v3143_v27 = vmul.f32 %v5140_v21, %v3123_v0  ;;  %v4067_v47 = vpop.f32.mrb[46].mxu1  ;;  %v3218_v23 = vld [vmem:[%s5117_s3 + $0x28] sm:$0xff] }
 0x160   : > { %v3232_v38 = vadd.f32 %v3224_v19, %v3205_v26  ;;  %v3206_v51 = vadd.f32 %v3198_v25, %v3178_v50  ;;  %v3024_v3 = vadd.f32 %v3016_v45, %v5109_v31  ;;  %v2997_v32 = vpop.f32.mrb[47].mxu0  ;;  %v3017_v19 = vmul.f32 %v4057_v61, %v5132_v35  ;;  %v3193_v25 = vld [vmem:[%s5103_s7 + $0x38] sm:$0xff]  ;;  %v3126_v31 = vpop.f32.mrb[47].mxu1 }
 0x161   : > { %v3230_v5 = vadd.f32 %v3222_v48, %v3203_v15  ;;  %v3204_v41 = vadd.f32 %v3196_v18, %v3176_v24  ;;  %v3022_v52 = vadd.f32 %v3014_v14, %v5120_v20  ;;  %v3146_v53 = vmul.f32 %v4067_v47, %v5140_v21 }
 0x162   : > { %v3240_v9 = vadd.f32 %v3232_v38, %v5019_v39  ;;  %v3233_v11 = vadd.f32 %v3225_v13, %v3206_v51  ;;  %v3153_v62 = vadd.f32 %v3145_v57, %v3024_v3  ;;  %v3025_v20 = vadd.f32 %v3017_v19, %v5129_v29 }
 0x163   : > { %v3238_v8 = vadd.f32 %v3230_v5, %v5024_v2  ;;  %v3231_v48 = vadd.f32 %v3223_v1, %v3204_v41  ;;  %v3151_v18 = vadd.f32 %v3143_v27, %v3022_v52  ;;  %v3202_v13 = vmul.f32 %v5126_v59, %v3193_v25 }
 0x164   : > { %3248 = vst.msk [vmem:[%s5196_s29 + $0x10] sm:$0xff] %vm1483_vm1, %v3240_v9  ;;  %v3241_v63 = vadd.f32 %v3233_v11, %v5030_v42  ;;  %v3181_v39 = vadd.f32 %v3173_v54, %v3153_v62  ;;  %v3015_v16 = vmul.f32 %v5132_v35, %v2997_v32  ;;  %v3226_v29 = vmul.f32 %v5144_v36, %v3217_v56 }
 0x165   : > { %3246 = vst.msk [vmem:[%s5196_s29] sm:$0xff] %vm1483_vm1, %v3238_v8  ;;  %v3239_v2 = vadd.f32 %v3231_v48, %v5035_v17  ;;  %v3179_v1 = vadd.f32 %v3171_v43, %v3151_v18  ;;  %v3154_v60 = vadd.f32 %v3146_v53, %v3025_v20  ;;  %v3144_v37 = vmul.f32 %v5140_v21, %v3126_v31 }
 0x166   : > { %3249 = vst.msk [vmem:[%s5196_s29 + $0x18] sm:$0xff] %vm1483_vm1, %v3241_v63  ;;  %v3209_v42 = vadd.f32 %v3201_v55, %v3181_v39  ;;  %v3023_v54 = vadd.f32 %v3015_v16, %v5137_v40  ;;  %v3172_v46 = vmul.f32 %v5123_v58, %v3163_v4  ;;  %v3229_v43 = vmul.f32 %v5144_v36, %v3220_v28 }
 0x167   : > { %3247 = vst.msk [vmem:[%s5196_s29 + $0x8] sm:$0xff] %vm1483_vm1, %v3239_v2  ;;  %v3207_v35 = vadd.f32 %v3199_v6, %v3179_v1  ;;  %v3182_v17 = vadd.f32 %v3174_v44, %v3154_v60  ;;  %v3200_v55 = vmul.f32 %v5126_v59, %v3191_v12  ;;  %v3227_v10 = vmul.f32 %v5144_v36, %v3218_v23 }
 0x168   : > { %v3236_v26 = vadd.f32 %v3228_v34, %v3209_v42  ;;  %v3152_v50 = vadd.f32 %v3144_v37, %v3023_v54 }
 0x169   : > { %v3234_v40 = vadd.f32 %v3226_v29, %v3207_v35  ;;  %v3210_v45 = vadd.f32 %v3202_v13, %v3182_v17 }
 0x16a   : > { %v3244_v21 = vadd.f32 %v3236_v26, %v5062_v7  ;;  %v3180_v58 = vadd.f32 %v3172_v46, %v3152_v50 }
 0x16b   : > { %v3242_v22 = vadd.f32 %v3234_v40, %v5069_v33  ;;  %v3237_v6 = vadd.f32 %v3229_v43, %v3210_v45 }
 0x16c   : > { %3252 = vst.msk [vmem:[%s5196_s29 + $0x30] sm:$0xff] %vm1483_vm1, %v3244_v21  ;;  %v3208_v44 = vadd.f32 %v3200_v55, %v3180_v58 }
 0x16d   : > { %3250 = vst.msk [vmem:[%s5196_s29 + $0x20] sm:$0xff] %vm1483_vm1, %v3242_v22  ;;  %v3245_v34 = vadd.f32 %v3237_v6, %v5082_v49 }
 0x16e   : > { %v3235_v15 = vadd.f32 %v3227_v10, %v3208_v44 }
 0x16f   : > { %3253 = vst.msk [vmem:[%s5196_s29 + $0x38] sm:$0xff] %vm1483_vm1, %v3245_v34 }
 0x170   : > { %v3243_v59 = vadd.f32 %v3235_v15, %v5105_v30 }
 0x172   : > { %3251 = vst.msk [vmem:[%s5196_s29 + $0x28] sm:$0xff] %vm1483_vm1, %v3243_v59 }
 0x173 PF: > { %s39_s2 = sadd.s32 1, %s4189_s2   ;;  %s5329_s27 = sld [smem:[#allocation5_spill]] }
 0x174   : > { %p36_p10 = scmp.ge.s32.totalorder %s39_s2, 4   ;;  %s5330_s1 = smov %s4185_s26 }
 0x176   :  { %38 = sbr.rel (!%p36_p10) target bundleno = 27 (0x1b), region = 209 }
 0x179   : > { %s5331_s26 = smov %s5329_s27 }

// kernel: _lambda_.49
= control target key start
LH: loop header
LB: loop body
LE: loop exit
PB: predicated region body
PF: predicated region fallthrough
CT: control target
= control target key end

     0   :  { %s901_s18 = smov 0   ;;  %s903_s19 = smov 0   ;;  %s960_s0 = inlined_call_operand.vmem [shape: bf16[3,32,16], index: 0, kind: input, shape index: {}]   ;;  %s961_s1 = inlined_call_operand.vmem [shape: bf16[3,32,16], index: 1, kind: input, shape index: {}]   ;;  %s962_s2 = inlined_call_operand.vmem [shape: bf16[3,16,16], index: 2, kind: input, shape index: {}]   ;;  %s963_s3 = inlined_call_operand.vmem [shape: bf16[3,16,16], index: 3, kind: input, shape index: {}]   ;;  %s964_s4 = inlined_call_operand.vmem [shape: bf16[3,32,16], index: 4, kind: output, shape index: {0}]   ;;  %s965_s5 = inlined_call_operand.vmem [shape: bf16[3,32,16], index: 5, kind: output, shape index: {1}]  }
   0x1   :  { %s905_s20 = smov 0  }
   0x2 LB: > { %s28_s21 = sadd.s32 1, %s865_s19  ;;  %p752_p0 = scmp.ge.s32.totalorder %s869_s20, 1  ;;  %s869_s20 = sphi %s905_s20, %s16_s20   ;;  %s865_s19 = sphi %s903_s19, %s967_s19   ;;  %s861_s18 = sphi %s901_s18, %s966_s18  }
   0x3   : > { %p30_p1 = scmp.ge.s32.totalorder %s28_s21, 3  ;;  %p250_p2 = scmp.lt.s32.totalorder %s869_s20, 4 }
   0x5   : > { %s969_s21 = smov (%p30_p1, %s28_s21), 0  ;;  %p251_p3 = pnand %p752_p0, %p250_p2 }
   0x6   : > { %p315_p4 = scmp.lt.s32.totalorder (!%p251_p3), %s861_s18, 2  ;;  %vm387_vm0 = vcmask (!%p251_p3), 130048   ;;  %vm540_vm1 = vcmask (!%p251_p3), 125952  }
   0x7   : > { %254 = sbr.rel (%p251_p3) target bundleno = 243 (0xf3), region = 36 }
   0xe   : > { %s971_s18 = smov (!%p315_p4, %s861_s18), 2 }
   0xf   : > { %s919_s22 = sshll.u32 %s971_s18, 4  ;;  %s787_s23 = sshll.u32 %s971_s18, 3 }
  0x10   : > { %s338_s26 = scalar_lea.vmem %s962_s2, %s787_s23  ;;  %s343_s29 = scalar_lea.vmem %s963_s3, %s787_s23 }
  0x11   : > { %v841_v0 = vld [vmem:[%s338_s26] sm:$0xff]   ;;  %s322_s7 = scalar_lea.vmem %s960_s0, %s919_s22  ;;  %s332_s10 = scalar_lea.vmem %s961_s1, %s919_s22 }
  0x12   : > { %v842_v1 = vld [vmem:[%s343_s29] sm:$0xff]   ;;  %805 = vmatprep.subr.bf16.mxu0 %v841_v0  ;;  %v845_v4 = vld [vmem:[%s322_s7 + $0x8] sm:$0xff]   ;;  %s352_s13 = scalar_lea.vmem %s964_s4, %s919_s22  ;;  %s362_s16 = scalar_lea.vmem %s965_s5, %s919_s22 }
  0x13   : > { %v843_v2 = vld [vmem:[%s322_s7] sm:$0xff]   ;;  %811 = vmatprep.subr.bf16.mxu1 %v842_v1  ;;  %806 = vmatpush3.bf16.msra.mxu0 %v841_v0  ;;  %v846_v5 = vld [vmem:[%s332_s10 + $0x8] sm:$0xff]  }
  0x14   : > { %v844_v3 = vld [vmem:[%s332_s10] sm:$0xff]   ;;  %812 = vmatpush3.bf16.msra.mxu1 %v842_v1  ;;  %807 = vmatprep.mubr.msk.bf16.mxu0 %vm387_vm0, %v843_v2 }
  0x15   : > { %813 = vmatprep.mubr.msk.bf16.mxu1 %vm387_vm0, %v844_v3 }
  0x16   : > { %808 = vmatmul.mubr.msk.bf16.vlgmr.msra.gmra.mrb[0].mxu0 %vm387_vm0, %v845_v4 }
  0x17   : > { %814 = vmatmul.mubr.msk.bf16.vlgmr.msra.gmra.mrb[0].mxu1 %vm387_vm0, %v846_v5 }
  0xe9   : > { %v809_v6 = vpop.f32.mrb[0].mxu0 }
  0xea   : > { %v522_v7 = vmax.f32 %v809_v6, 0.0  ;;  %v815_v8 = vpop.f32.mrb[0].mxu1  ;;  %v428_v9 = vpop.f32.mrb[1].mxu0 }
  0xeb   : > { %v547_v10 = vmax.f32 %v815_v8, 0.0  ;;  %v520_v11 = vmax.f32 %v428_v9, 0.0  ;;  %v505_v12 = vpop.f32.mrb[1].mxu1  ;;  %v810_v13 = vpop.f32.mrb[2].mxu0 }
  0xec   : > { %v793_v14 = vpack.c.bf16 %v522_v7, %v522_v7  ;;  %v545_v15 = vmax.f32 %v505_v12, 0.0  ;;  %v523_v16 = vmax.f32 %v810_v13, 0.0  ;;  %v816_v17 = vpop.f32.mrb[2].mxu1  ;;  %v431_v18 = vpop.f32.mrb[3].mxu0 }
  0xed   : > { %v797_v19 = vpack.c.bf16 %v547_v10, %v547_v10  ;;  %v791_v20 = vpack.c.bf16 %v520_v11, %v520_v11  ;;  %v548_v21 = vmax.f32 %v816_v17, 0.0  ;;  %v521_v22 = vmax.f32 %v431_v18, 0.0  ;;  %v508_v23 = vpop.f32.mrb[3].mxu1 }
  0xee   : > { %543 = vst.msk [vmem:[%s352_s13 + $0x8] sm:$0xf] %vm540_vm1, %v793_v14  ;;  %v795_v24 = vpack.c.bf16 %v545_v15, %v545_v15  ;;  %v794_v25 = vpack.c.bf16 %v523_v16, %v523_v16  ;;  %v546_v26 = vmax.f32 %v508_v23, 0.0 }
  0xef   : > { %567 = vst.msk [vmem:[%s362_s16 + $0x8] sm:$0xf] %vm540_vm1, %v797_v19  ;;  %541 = vst.msk [vmem:[%s352_s13] sm:$0xf] %vm540_vm1, %v791_v20  ;;  %v798_v27 = vpack.c.bf16 %v548_v21, %v548_v21  ;;  %v792_v28 = vpack.c.bf16 %v521_v22, %v521_v22 }
  0xf0   : > { %565 = vst.msk [vmem:[%s362_s16] sm:$0xf] %vm540_vm1, %v795_v24  ;;  %544 = vst.msk [vmem:[%s352_s13 + $0xc] sm:$0xf] %vm540_vm1, %v794_v25  ;;  %v796_v29 = vpack.c.bf16 %v546_v26, %v546_v26 }
  0xf1   : > { %568 = vst.msk [vmem:[%s362_s16 + $0xc] sm:$0xf] %vm540_vm1, %v798_v27  ;;  %542 = vst.msk [vmem:[%s352_s13 + $0x4] sm:$0xf] %vm540_vm1, %v792_v28 }
  0xf2   : > { %566 = vst.msk [vmem:[%s362_s16 + $0x4] sm:$0xf] %vm540_vm1, %v796_v29 }
  0xf3 PF: > { %s16_s20 = sadd.s32 1, %s869_s20   ;;  %s966_s18 = smov %s865_s19 }
  0xf4   : > { %p13_p5 = scmp.ge.s32.totalorder %s16_s20, 5   ;;  %s967_s19 = smov %s969_s21 }
  0xf6   :  { %15 = sbr.rel (!%p13_p5) target bundleno = 2 (0x2), region = 87 }

// kernel: _lambda_.51
= control target key start
LH: loop header
LB: loop body
LE: loop exit
PB: predicated region body
PF: predicated region fallthrough
CT: control target
= control target key end

     0   :  { %vm19_vm0 = vcmask 254976   ;;  %v210_v3 = vmov 0.0|0.0   ;;  %v211_v6 = vmov 0.0   ;;  %vm26_vm1 = vcmask 261120   ;;  %s280_s0 = inlined_call_operand.vmem [shape: f32[2,16,32], index: 0, kind: input, shape index: {}]   ;;  %s281_s1 = inlined_call_operand.vmem [shape: f32[32,10], index: 1, kind: input, shape index: {}]   ;;  %s282_s2 = inlined_call_operand.vmem [shape: f32[1,10], index: 2, kind: input, shape index: {}]   ;;  %s283_s3 = inlined_call_operand.hbm [shape: f32[2,10], index: 3, kind: output, shape index: {}]  }
   0x1   :  { %v58_v0 = vld [vmem:[%s281_s1] sm:$0xff]  ;;  %v59_v1 = vld [vmem:[%s281_s1 + $0x8] sm:$0xff]  ;;  %v60_v2 = vld [vmem:[%s281_s1 + $0x10] sm:$0xff]  ;;  %176 = vmatprep.subr.bf16.mxu0 %v210_v3  ;;  %20 = vst.msk [vmem:[#allocation2] sm:$0x3] %vm19_vm0, %v211_v6  ;;  %vm212_vm2 = vmmov 0  }
   0x2   :  { %v177_v4 = vpack.c.bf16 %v59_v1, %v58_v0  ;;  %v61_v5 = vld [vmem:[%s281_s1 + $0x18] sm:$0xff]  ;;  %v22_v7 = vld [vmem:[%s280_s0] sm:$0xff]  ;;  %v23_v8 = vld [vmem:[%s280_s0 + $0x8] sm:$0xff]  ;;  %173 = vmatprep.mubr.msk.f32.mxu0 %vm212_vm2, %v211_v6 }
   0x3   :  { %v24_v9 = vld [vmem:[%s280_s0 + $0x10] sm:$0xff]  ;;  %v25_v10 = vld [vmem:[%s280_s0 + $0x18] sm:$0xff]  ;;  %v27_v11 = vsel %vm26_vm1, %v22_v7, 0.0  ;;  %v28_v12 = vsel %vm26_vm1, %v23_v8, 0.0  ;;  %v180_v13 = vpack.c.bf16 %v61_v5, %v60_v2 }
   0x4   :  { %178 = vmatpush3.bf16.msra.mxu0 %v177_v4  ;;  %v29_v14 = vadd.f32 %v28_v12, %v27_v11  ;;  %v36_v15 = vsel %vm26_vm1, %v24_v9, 0.0  ;;  %v37_v16 = vsel %vm26_vm1, %v25_v10, 0.0 }
   0x5   :  { %8 = vsyncpa [#allocation4], 0  ;;  %179 = vmatprep.subr.bf16.mxu0 %v210_v3  ;;  %v38_v17 = vadd.f32 %v37_v16, %v36_v15  ;;  %vm47_vm3 = vcmask 1041409   ;;  %v158_v35 = vld [vmem:[%s282_s2] ss:$0 sm:$0xff]  ;;  %s213_s28 = smov [#allocation3]  }
   0x6   :  { %v30_v18 = vrot.slane %v29_v14, 4  ;;  %s150_s29 = sshll.u32 %s213_s28, 4  ;;  %vm142_vm4 = vcmask 74752   ;;  %s151_s29 = int_to_ptr.vmem [resolvable:$true] %s150_s29 }
   0x7   :  { %v39_v19 = vrot.slane %v38_v17, 4  ;;  %s186_s30 = scalar_lea.vmem %s151_s29, 32  ;;  %p191_p1 = scmp.lt.s32.totalorder %s151_s29, %s151_s29 }
   0x8   :  { %181 = vmatpush3.bf16.msra.mxu0 %v180_v13  ;;  %v31_v20 = vadd.f32 %v30_v18, %v29_v14  ;;  %v21_v29 = vld [vmem:[#allocation2] sm:$0x3]  ;;  %p187_p0 = scmp.ne.s32.totalorder %s151_s29, %s186_s30  ;;  %p192_p2 = scmp.lt.s32.totalorder %s186_s30, %s186_s30 }
   0x9   :  { %v40_v21 = vadd.f32 %v39_v19, %v38_v17 }
   0xa   :  { %v32_v22 = vrot.slane %v31_v20, 2  ;;  %p193_p3 = por %p192_p2, %p191_p1 }
   0xb   :  { %v41_v23 = vrot.slane %v40_v21, 2 }
   0xc   :  { %v33_v24 = vadd.f32 %v32_v22, %v31_v20  ;;  %p194_p4 = pnand %p193_p3, %p187_p0 }
   0xd   :  { %v42_v25 = vadd.f32 %v41_v23, %v40_v21 }
   0xe   :  { %v34_v26 = vrot.slane %v33_v24, 1 }
   0xf   :  { %v43_v27 = vrot.slane %v42_v25, 1 }
  0x10   :  { %v35_v28 = vadd.f32 %v34_v26, %v33_v24 }
  0x11   :  { %v44_v30 = vadd.f32 %v43_v27, %v42_v25 }
  0x13   :  { %v48_v31 = vsel %vm47_vm3, %v44_v30, %v35_v28 }
  0x14   :  { %v50_v32 = vadd.f32 %v48_v31, %v21_v29 }
  0x16   :  { %52 = vst.msk [vmem:[#allocation2] sm:$0x3] %vm19_vm0, %v50_v32 }
  0x1d   :  { %v56_v33 = vld [vmem:[#allocation2] sm:$0x3] }
  0x1e   :  { %v57_v34 = vmul.f32 0.0625, %v56_v33 }
  0x20   :  { %174 = vmatmul.mubr.msk.f32.vlgmr.msra.gmra.mrb[0].mxu0 %vm26_vm1, %v57_v34 }
  0xf3   :  { %v138_v36 = vpop.f32.mrb[0].mxu0 }
  0xf4   :  { %v139_v37 = vadd.f32 %v158_v35, %v138_v36  ;;  %v175_v38 = vpop.f32.mrb[1].mxu0 }
  0xf6   :  { %143 = vst.msk [vmem:[#allocation3] sm:$0x3] %vm142_vm4, %v139_v37 }
  0xf7   :  { %197 = shalt.err (!%p194_p4)
}
  0xf8   :  { %s198_s6 = scalar_lea.hbm %s283_s3, 32 }
  0xf9   :  { %p199_p5 = scmp.ne.s32.totalorder %s283_s3, %s198_s6  ;;  %p202_p6 = scmp.lt.u32.totalorder %s198_s6, %s283_s3 }
  0xfb   :  { %p204_p7 = pnand %p202_p6, %p199_p5 }
  0xfd   :  { %207 = shalt.err (!%p204_p7)
}
  0xfe   :  { %153 = dma.vmem_to_hbm [thread:$0]  %s151_s29, 32, %s283_s3, [#allocation4]  }
  0xff   :  { %208 = dma.done.wait [#allocation4], 32  }
 0x100   :  { %209 = vsyncadd [#allocation4], 4294967264 }
 0x101   :  { %157 = vsyncpa [#allocation4], 1 }

// kernel: _lambda_.50
= control target key start
LH: loop header
LB: loop body
LE: loop exit
PB: predicated region body
PF: predicated region fallthrough
CT: control target
= control target key end

     0   :  { %s3587_s0 = inlined_call_operand.vmem [shape: f32[6,8], index: 0, kind: input, shape index: {}]   ;;  %s3588_s1 = inlined_call_operand.vmem [shape: bf16[3,4,16,16], index: 1, kind: input, shape index: {}]   ;;  %s3589_s2 = inlined_call_operand.vmem [shape: bf16[2,16,16], index: 2, kind: input, shape index: {}]   ;;  %s3590_s3 = inlined_call_operand.vmem [shape: bf16[2,16,16], index: 3, kind: input, shape index: {}]   ;;  %s3591_s4 = inlined_call_operand.vmem [shape: bf16[2,16,16], index: 4, kind: input, shape index: {}]   ;;  %s3592_s5 = inlined_call_operand.vmem [shape: bf16[2,16,16], index: 5, kind: input, shape index: {}]   ;;  %s3593_s6 = inlined_call_operand.vmem [shape: f32[2,16,16], index: 6, kind: input, shape index: {}]   ;;  %s3594_s7 = inlined_call_operand.vmem [shape: f32[2,16,16], index: 7, kind: input, shape index: {}]   ;;  %s3595_s8 = inlined_call_operand.vmem [shape: f32[2,16,16], index: 8, kind: input, shape index: {}]   ;;  %s3596_s9 = inlined_call_operand.vmem [shape: bf16[2,16,16], index: 9, kind: input, shape index: {}]   ;;  %s3597_s10 = inlined_call_operand.vmem [shape: bf16[2,16,16], index: 10, kind: input, shape index: {}]   ;;  %s3598_s11 = inlined_call_operand.vmem [shape: bf16[2,16,16], index: 11, kind: input, shape index: {}]   ;;  %s3599_s12 = inlined_call_operand.vmem [shape: bf16[2,16,16], index: 12, kind: input, shape index: {}]   ;;  %s3600_s13 = inlined_call_operand.vmem [shape: f32[2,16,16], index: 13, kind: input, shape index: {}]   ;;  %s3601_s14 = inlined_call_operand.vmem [shape: f32[2,16,16], index: 14, kind: input, shape index: {}]   ;;  %s3602_s15 = inlined_call_operand.vmem [shape: f32[2,16,16], index: 15, kind: input, shape index: {}]   ;;  %s3603_s16 = inlined_call_operand.vmem [shape: bf16[2,16,16], index: 16, kind: input, shape index: {}]   ;;  %s3604_s17 = inlined_call_operand.vmem [shape: bf16[2,16,16], index: 17, kind: input, shape index: {}]   ;;  %s3605_s18 = inlined_call_operand.vmem [shape: bf16[2,16,16], index: 18, kind: input, shape index: {}]   ;;  %s3606_s19 = inlined_call_operand.vmem [shape: bf16[2,16,16], index: 19, kind: input, shape index: {}]   ;;  %s3607_s20 = inlined_call_operand.vmem [shape: f32[2,16,16], index: 20, kind: input, shape index: {}]   ;;  %s3608_s21 = inlined_call_operand.vmem [shape: f32[2,16,16], index: 21, kind: input, shape index: {}]   ;;  %s3609_s22 = inlined_call_operand.vmem [shape: f32[2,16,16], index: 22, kind: input, shape index: {}]   ;;  %s3610_s23 = inlined_call_operand.vmem [shape: f32[2,16,16], index: 23, kind: output, shape index: {}]  }
   0x1   :  { %3615 = sst [smem:[#allocation8_spill]] %s3587_s0 }
   0x2   :  { %3616 = sst [smem:[#allocation9_spill]] %s3588_s1  ;;  %s3631_s24 = sld [smem:[#allocation8_spill]] }
   0x3   :  { %3617 = sst [smem:[#allocation10_spill]] %s3589_s2 }
   0x4   :  { %3618 = sst [smem:[#allocation11_spill]] %s3590_s3 }
   0x5   :  { %3619 = sst [smem:[#allocation12_spill]] %s3591_s4 }
   0x6   :  { %3620 = sst [smem:[#allocation13_spill]] %s3592_s5 }
   0x7   :  { %3621 = sst [smem:[#allocation14_spill]] %s3593_s6 }
   0x8   :  { %3622 = sst [smem:[#allocation15_spill]] %s3594_s7 }
   0x9   :  { %3623 = sst [smem:[#allocation16_spill]] %s3596_s9 }
   0xa   :  { %3624 = sst [smem:[#allocation17_spill]] %s3597_s10 }
   0xb   :  { %3625 = sst [smem:[#allocation18_spill]] %s3598_s11 }
   0xc   :  { %3626 = sst [smem:[#allocation19_spill]] %s3599_s12 }
   0xd   :  { %3627 = sst [smem:[#allocation20_spill]] %s3602_s15  ;;  %s28_s15 = sshll.u32 %s3631_s24, 4  ;;  %s29_s15 = int_to_ptr.vmem [resolvable:$true] %s28_s15 }
   0xe   :  { %3628 = sst [smem:[#allocation21_spill]] %s3607_s20  ;;  %s3079_s25 = scalar_lea.vmem %s29_s15, 128 }
   0xf   :  { %3629 = sst [smem:[#allocation22_spill]] %s3609_s22  ;;  %p3080_p0 = scmp.ne.s32.totalorder %s29_s15, %s3079_s25 }
  0x10   :  { %3630 = sst [smem:[#allocation23_spill]] %s3610_s23  ;;  %p3084_p1 = scmp.lt.s32.totalorder %s29_s15, %s29_s15 }
  0x11   :  { %p3085_p2 = scmp.lt.s32.totalorder %s3079_s25, %s3079_s25 }
  0x13   :  { %p3086_p3 = por %p3085_p2, %p3084_p1 }
  0x15   :  { %p3087_p4 = pnand %p3086_p3, %p3080_p0 }
  0x17   :  { %3090 = shalt.err (!%p3087_p4)  }
  0x18   :  { %s3117_s5 = smov [#allocation3]  }
  0x19   :  { %31 = dma.vmem_to_smem %s29_s15, 128, %s3117_s5, [#allocation2] }
  0x1a   :  { %3103 = dma.done.wait [#allocation2], 128 }
  0x1b   :  { %3104 = vsyncadd [#allocation2], 4294967168 }
  0x1c   :  { %33 = sfence }
  0x1d   :  { %s3243_s1 = smov 0   ;;  %s3245_s26 = smov 0  }
  0x1e   :  { %s3247_s2 = smov 0  }
  0x1f LB: > { %3632 = sst [smem:[#allocation5_spill]] %s3111_s26  ;;  %s51_s15 = sadd.s32 1, %s3111_s26  ;;  %s3115_s2 = sphi %s3247_s2, %s39_s2   ;;  %s3111_s26 = sphi %s3245_s26, %s3654_s26   ;;  %s3107_s1 = sphi %s3243_s1, %s3653_s1  }
  0x20   : > { %3633 = sst [smem:[#allocation6_spill]] %s3115_s2  ;;  %p2798_p5 = scmp.ge.s32.totalorder %s3115_s2, 1 }
  0x21   : > { %p53_p6 = scmp.ge.s32.totalorder %s51_s15, 2  ;;  %p980_p7 = scmp.lt.s32.totalorder %s3115_s2, 3 }
  0x23   : > { %s3656_s15 = smov (%p53_p6, %s51_s15), 0  ;;  %p981_p8 = pnand %p2798_p5, %p980_p7 }
  0x24   : > { %3634 = sst [smem:[#allocation7_spill]] %s3656_s15  ;;  %s3635_s7 = sld [smem:[#allocation9_spill]] (!%p981_p8)  ;;  %v3118_v1 = vmov (!%p981_p8), 0.0   ;;  %vm3119_vm0 = vmmov (!%p981_p8), 0   ;;  %vm1469_vm1 = vcmask (!%p981_p8), 130048  }
  0x25   : > { %984 = sbr.rel (%p981_p8) target bundleno = 318 (0x13e), region = 108  ;;  %2956 = vmatprep.subr.bf16.mxu0 (!%p981_p8), %v3118_v1  ;;  %2962 = vmatprep.subr.bf16.mxu1 (!%p981_p8), %v3118_v1  ;;  %p1231_p9 = scmp.lt.s32.totalorder (!%p981_p8), %s3107_s1, 1 }
  0x26   : > { %2958 = vmatprep.mubr.msk.bf16.mxu0 (!%p981_p8), %vm3119_vm0, %v3118_v1  ;;  %2964 = vmatprep.mubr.msk.bf16.mxu1 (!%p981_p8), %vm3119_vm0, %v3118_v1  ;;  %s3636_s5 = sld [smem:[#allocation10_spill]] (!%p981_p8)  ;;  %s3637_s29 = sld [smem:[#allocation11_spill]] (!%p981_p8) }
  0x27   : > { %s3638_s23 = sld [smem:[#allocation12_spill]] (!%p981_p8)  ;;  %s3640_s9 = sld [smem:[#allocation16_spill]] (!%p981_p8) }
  0x28   : > { %s3641_s10 = sld [smem:[#allocation17_spill]] (!%p981_p8)  ;;  %s3642_s11 = sld [smem:[#allocation18_spill]] (!%p981_p8) }
  0x29   : > { %s3643_s12 = sld [smem:[#allocation19_spill]] (!%p981_p8) }
  0x2a   : > { %v3055_v0 = vld [vmem:[%s3635_s7] sm:$0xff] (!%p981_p8)   ;;  %v3056_v2 = vld [vmem:[%s3635_s7 + $0x8] sm:$0xff] (!%p981_p8)   ;;  %v3059_v3 = vld [vmem:[%s3635_s7 + $0x10] sm:$0xff] (!%p981_p8)  }
  0x2b   : > { %2957 = vmatpush3.bf16.msra.mxu0 (!%p981_p8), %v3055_v0  ;;  %2963 = vmatpush3.bf16.msra.mxu1 (!%p981_p8), %v3056_v2  ;;  %v3060_v4 = vld [vmem:[%s3635_s7 + $0x18] sm:$0xff] (!%p981_p8)   ;;  %v3063_v7 = vld [vmem:[%s3635_s7 + $0x20] sm:$0xff] (!%p981_p8)   ;;  %v3064_v10 = vld [vmem:[%s3635_s7 + $0x28] sm:$0xff] (!%p981_p8)  }
  0x2c   : > { %2968 = vmatprep.subr.bf16.mxu0 %v3118_v1  ;;  %s3278_s3 = scalar_select %p1231_p9, %s3107_s1, 1  ;;  %2974 = vmatprep.subr.bf16.mxu1 %v3118_v1  ;;  %v3067_v11 = vld [vmem:[%s3635_s7 + $0x30] sm:$0xff]   ;;  %v3068_v14 = vld [vmem:[%s3635_s7 + $0x38] sm:$0xff]   ;;  %v3071_v17 = vld [vmem:[%s3635_s7 + $0x40] sm:$0xff]  }
  0x2d   : > { %v3072_v18 = vld [vmem:[%s3635_s7 + $0x48] sm:$0xff]   ;;  %v3075_v21 = vld [vmem:[%s3635_s7 + $0x50] sm:$0xff]   ;;  %v3076_v22 = vld [vmem:[%s3635_s7 + $0x58] sm:$0xff]  }
  0x2e   : > { %s3282_s0 = sshll.u32 %s3278_s3, 3 }
  0x2f   : > { %s1238_s6 = scalar_lea.vmem %s3636_s5, %s3282_s0  ;;  %s1248_s15 = scalar_lea.vmem %s3637_s29, %s3282_s0 }
  0x30   : > { %v3057_v5 = vld [vmem:[%s1238_s6] sm:$0xff]   ;;  %s1258_s22 = scalar_lea.vmem %s3638_s23, %s3282_s0  ;;  %s3639_s5 = sld [smem:[#allocation13_spill]] }
  0x31   : > { %v3058_v6 = vld [vmem:[%s1248_s15] sm:$0xff]   ;;  %2959 = vmatmul.mubr.msk.bf16.vlgmr.msra.gmra.mrb[0].mxu0 %vm1469_vm1, %v3057_v5  ;;  %s1308_s15 = scalar_lea.vmem %s3640_s9, %s3282_s0  ;;  %s1318_s27 = scalar_lea.vmem %s3641_s10, %s3282_s0 }
  0x32   : > { %2965 = vmatmul.mubr.msk.bf16.vlgmr.msra.gmra.mrb[0].mxu1 %vm1469_vm1, %v3058_v6  ;;  %2969 = vmatpush3.bf16.msra.mxu0 %v3059_v3  ;;  %s1328_s24 = scalar_lea.vmem %s3642_s11, %s3282_s0  ;;  %v3061_v8 = vld [vmem:[%s1258_s22] sm:$0xff]   ;;  %s1338_s26 = scalar_lea.vmem %s3643_s12, %s3282_s0 }
  0x33   : > { %2975 = vmatpush3.bf16.msra.mxu1 %v3060_v4  ;;  %2970 = vmatprep.mubr.msk.bf16.mxu0 %vm3119_vm0, %v3118_v1  ;;  %s1378_s29 = scalar_lea.vmem %s3603_s16, %s3282_s0  ;;  %s1398_s23 = scalar_lea.vmem %s3605_s18, %s3282_s0  ;;  %v3065_v12 = vld [vmem:[%s1308_s15] sm:$0xff]  }
  0x34   : > { %2976 = vmatprep.mubr.msk.bf16.mxu1 %vm3119_vm0, %v3118_v1  ;;  %2980 = vmatprep.subr.bf16.mxu0 %v3118_v1  ;;  %s1408_s4 = scalar_lea.vmem %s3606_s19, %s3282_s0  ;;  %v3066_v13 = vld [vmem:[%s1318_s27] sm:$0xff]   ;;  %s3644_s2 = scalar_lea.vmem %s3604_s17, %s3282_s0 }
  0x35   : > { %2986 = vmatprep.subr.bf16.mxu1 %v3118_v1  ;;  %v3069_v15 = vld [vmem:[%s1328_s24] sm:$0xff]   ;;  %s3423_s24 = sshll.u32 %s3107_s1, 7  ;;  %s3645_s9 = sld [smem:[#allocation14_spill]] }
  0x36   : > { %s1268_s20 = scalar_lea.vmem %s3639_s5, %s3282_s0  ;;  %v3070_v16 = vld [vmem:[%s1338_s26] sm:$0xff]   ;;  %s1452_s26 = sadd.s32 4, %s3423_s24 }
  0x37   : > { %v3062_v9 = vld [vmem:[%s1268_s20] sm:$0xff]   ;;  %s1517_s25 = sadd.s32 5, %s3423_s24  ;;  %s1453_s5 = sld [smem:[#allocation3 + %s1452_s26]] }
  0x38   : > { %v3073_v19 = vld [vmem:[%s1378_s29] sm:$0xff]   ;;  %s1651_s6 = sadd.s32 7, %s3423_s24  ;;  %s3434_s1 = sadd.s32 256, %s3423_s24 }
  0x39   : > { %2971 = vmatmul.mubr.msk.bf16.vlgmr.msra.gmra.mrb[4].mxu0 %vm1469_vm1, %v3061_v8  ;;  %v3074_v20 = vld [vmem:[%s3644_s2] sm:$0xff]   ;;  %s1584_s2 = sadd.s32 6, %s3423_s24  ;;  %s1718_s28 = sadd.s32 1, %s3423_s24 }
  0x3a   : > { %2977 = vmatmul.mubr.msk.bf16.vlgmr.msra.gmra.mrb[4].mxu1 %vm1469_vm1, %v3062_v9  ;;  %2981 = vmatpush3.bf16.msra.mxu0 %v3063_v7  ;;  %v3077_v23 = vld [vmem:[%s1398_s23] sm:$0xff]   ;;  %s1518_s23 = sld [smem:[#allocation3 + %s1517_s25]]  ;;  %s1749_s22 = sadd.s32 4, %s3434_s1 }
  0x3b   : > { %2987 = vmatpush3.bf16.msra.mxu1 %v3064_v10  ;;  %2982 = vmatprep.mubr.msk.bf16.mxu0 %vm3119_vm0, %v3118_v1  ;;  %v3078_v24 = vld [vmem:[%s1408_s4] sm:$0xff]   ;;  %s3429_s0 = sld [smem:[#allocation3 + %s1584_s2]]  ;;  %s1814_s15 = sadd.s32 5, %s3434_s1 }
  0x3c   : > { %2988 = vmatprep.mubr.msk.bf16.mxu1 %vm3119_vm0, %v3118_v1  ;;  %2992 = vmatprep.subr.bf16.mxu0 %v3118_v1  ;;  %s3431_s4 = sld [smem:[#allocation3 + %s1651_s6]]  ;;  %s1728_s27 = sadd.s32 2, %s3423_s24 }
  0x3d   : > { %2998 = vmatprep.subr.bf16.mxu1 %v3118_v1  ;;  %v1514_v25 = vstv %s1453_s5  ;;  %s3439_s29 = sld [smem:[#allocation3 + %s1718_s28]]  ;;  %s2015_s26 = sadd.s32 1, %s3434_s1 }
  0x3e   : > { %s3443_s30 = sld [smem:[#allocation3 + %s1749_s22]]  ;;  %s2025_s5 = sadd.s32 2, %s3434_s1 }
  0x3f   : > { %s3446_s20 = sld [smem:[#allocation3 + %s1814_s15]]  ;;  %s1738_s6 = sadd.s32 3, %s3423_s24 }
  0x40   : > { %v1579_v26 = vstv %s1518_s23  ;;  %s3449_s25 = sld [smem:[#allocation3 + %s1728_s27]]  ;;  %s1881_s23 = sadd.s32 6, %s3434_s1 }
  0x41   : > { %2983 = vmatmul.mubr.msk.bf16.vlgmr.msra.gmra.mrb[8].mxu0 %vm1469_vm1, %v3065_v12  ;;  %v1646_v41 = vstv %s3429_s0  ;;  %s3453_s2 = sld [smem:[#allocation3 + %s2015_s26]]  ;;  %s1948_s0 = sadd.s32 7, %s3434_s1 }
  0x42   : > { %2989 = vmatmul.mubr.msk.bf16.vlgmr.msra.gmra.mrb[8].mxu1 %vm1469_vm1, %v3066_v13  ;;  %2993 = vmatpush3.bf16.msra.mxu0 %v3067_v11  ;;  %v1713_v42 = vstv %s3431_s4  ;;  %s3458_s4 = sshll.u32 %s3278_s3, 4  ;;  %s3462_s28 = sld [smem:[#allocation3 + %s2025_s5]] }
  0x43   : > { %2999 = vmatpush3.bf16.msra.mxu1 %v3068_v14  ;;  %2994 = vmatprep.mubr.msk.bf16.mxu0 %vm3119_vm0, %v3118_v1  ;;  %s1720_s22 = smul.f32 0.999995, %s3439_s29  ;;  %s3466_s15 = sld [smem:[#allocation3 + %s1881_s23]] }
  0x44   : > { %3000 = vmatprep.mubr.msk.bf16.mxu1 %vm3119_vm0, %v3118_v1  ;;  %3004 = vmatprep.subr.bf16.mxu0 %v3118_v1  ;;  %v1811_v58 = vstv %s3443_s30  ;;  %s3471_s27 = sld [smem:[#allocation3 + %s1948_s0]]  ;;  %s3474_s3 = sadd.s32 512, %s3423_s24 }
  0x45   : > { %3010 = vmatprep.subr.bf16.mxu1 %v3118_v1  ;;  %v1876_v60 = vstv %s3446_s20  ;;  %s3480_s10 = scalar_lea.vmem %s3645_s9, %s3458_s4  ;;  %s2035_s5 = sadd.s32 3, %s3434_s1  ;;  %v1723_v8 = vstv %s1720_s22 }
  0x46   : > { %s3646_s23 = sld [smem:[#allocation15_spill]]  ;;  %s2048_s9 = sadd.s32 4, %s3474_s3  ;;  %v1731_v12 = vld [vmem:[%s3480_s10] sm:$0xff] }
  0x47   : > { %s3488_s24 = sld [smem:[#allocation3 + %s1738_s6]]  ;;  %s2017_s7 = smul.f32 0.999995, %s3453_s2 }
  0x48   : > { %s3492_s1 = sld [smem:[#allocation3 + %s2035_s5]]  ;;  %s1358_s0 = scalar_lea.vmem %s3601_s14, %s3458_s4 }
  0x49   : > { %2995 = vmatmul.mubr.msk.bf16.vlgmr.msra.gmra.mrb[12].mxu0 %vm1469_vm1, %v3069_v15  ;;  %s2113_s26 = sadd.s32 5, %s3474_s3  ;;  %s2027_s29 = smul.f32 0.999995, %s3462_s28  ;;  %v1943_v15 = vstv %s3466_s15 }
  0x4a   : > { %3001 = vmatmul.mubr.msk.bf16.vlgmr.msra.gmra.mrb[12].mxu1 %vm1469_vm1, %v3070_v16  ;;  %3005 = vmatpush3.bf16.msra.mxu0 %v3071_v17  ;;  %s3506_s22 = scalar_lea.vmem %s3600_s13, %s3458_s4  ;;  %s3508_s30 = sld [smem:[#allocation3 + %s2048_s9]] }
  0x4b   : > { %3011 = vmatpush3.bf16.msra.mxu1 %v3072_v18  ;;  %3006 = vmatprep.mubr.msk.bf16.mxu0 %vm3119_vm0, %v3118_v1  ;;  %s3514_s20 = scalar_lea.vmem %s3595_s8, %s3458_s4  ;;  %s3647_s28 = smul.f32 0.999995, %s3449_s25  ;;  %v2010_v18 = vstv %s3471_s27 }
  0x4c   : > { %3012 = vmatprep.mubr.msk.bf16.mxu1 %vm3119_vm0, %v3118_v1  ;;  %3016 = vmatprep.subr.bf16.mxu0 %v3118_v1  ;;  %s1288_s11 = scalar_lea.vmem %s3646_s23, %s3458_s4  ;;  %s3648_s6 = sld [smem:[#allocation20_spill]] }
  0x4d   : > { %3022 = vmatprep.subr.bf16.mxu1 %v3118_v1  ;;  %v1721_v7 = vld [vmem:[%s1288_s11] sm:$0xff]  ;;  %v1722_v13 = vld [vmem:[%s1288_s11 + $0x8] sm:$0xff]  ;;  %v1733_v17 = vstv %s3647_s28  ;;  %s3519_s11 = sld [smem:[#allocation3 + %s2113_s26]]  ;;  %s2314_s12 = sadd.s32 1, %s3474_s3 }
  0x4e   : > { %v1724_v16 = vmul.f32 %v1723_v8, %v1721_v7  ;;  %s2324_s25 = sadd.s32 2, %s3474_s3  ;;  %s2247_s27 = sadd.s32 7, %s3474_s3 }
  0x4f   : > { %s2334_s26 = sadd.s32 3, %s3474_s3 }
  0x51   : > { %3007 = vmatmul.mubr.msk.bf16.vlgmr.msra.gmra.mrb[16].mxu0 %vm1469_vm1, %v3073_v19  ;;  %v2018_v19 = vld [vmem:[%s1358_s0] sm:$0xff] }
  0x52   : > { %3013 = vmatmul.mubr.msk.bf16.vlgmr.msra.gmra.mrb[16].mxu1 %vm1469_vm1, %v3074_v20  ;;  %3017 = vmatpush3.bf16.msra.mxu0 %v3075_v21  ;;  %v2020_v20 = vstv %s2017_s7  ;;  %s3525_s2 = scalar_lea.vmem %s3648_s6, %s3458_s4 }
  0x53   : > { %3023 = vmatpush3.bf16.msra.mxu1 %v3076_v22  ;;  %3018 = vmatprep.mubr.msk.bf16.mxu0 %vm3119_vm0, %v3118_v1  ;;  %v1725_v22 = vmul.f32 %v1723_v8, %v1722_v13 }
  0x54   : > { %3024 = vmatprep.mubr.msk.bf16.mxu1 %vm3119_vm0, %v3118_v1 }
  0x59   : > { %3019 = vmatmul.mubr.msk.bf16.vlgmr.msra.gmra.mrb[20].mxu0 %vm1469_vm1, %v3077_v23  ;;  %v1732_v23 = vld [vmem:[%s3480_s10 + $0x8] sm:$0xff]  ;;  %s2180_s10 = sadd.s32 6, %s3474_s3  ;;  %s3554_s3 = sld [smem:[#allocation3 + %s2334_s26]] }
  0x5a   : > { %3025 = vmatmul.mubr.msk.bf16.vlgmr.msra.gmra.mrb[20].mxu1 %vm1469_vm1, %v3078_v24  ;;  %s3545_s7 = sld [smem:[#allocation3 + %s2180_s10]] }
 0x104   : > { %v1507_v27 = vpop.f32.mrb[0].mxu0 }
 0x105   : > { %v1515_v28 = vmul.f32 %v1514_v25, %v1507_v27  ;;  %v1572_v29 = vpop.f32.mrb[0].mxu1  ;;  %v2960_v30 = vpop.f32.mrb[1].mxu0  ;;  %v2030_v27 = vstv %s2027_s29 }
 0x106   : > { %v1580_v31 = vmul.f32 %v1579_v26, %v1572_v29  ;;  %v2966_v32 = vpop.f32.mrb[1].mxu1  ;;  %v1510_v33 = vpop.f32.mrb[2].mxu0  ;;  %v2019_v29 = vld [vmem:[%s1358_s0 + $0x8] sm:$0xff]  ;;  %v1734_v30 = vmul.f32 %v1733_v17, %v1731_v12  ;;  %s3550_s0 = sld [smem:[#allocation3 + %s2247_s27]] }
 0x107   : > { %v1516_v34 = vmul.f32 %v1514_v25, %v1510_v33  ;;  %v1575_v35 = vpop.f32.mrb[2].mxu1  ;;  %v2961_v36 = vpop.f32.mrb[3].mxu0  ;;  %v1742_v32 = vstv %s3488_s24  ;;  %s3539_s24 = sld [smem:[#allocation3 + %s2314_s12]] }
 0x108   : > { %v1582_v37 = vadd.f32 %v1580_v31, %v1515_v28  ;;  %v1581_v38 = vmul.f32 %v1579_v26, %v1575_v35  ;;  %v2967_v39 = vpop.f32.mrb[3].mxu1  ;;  %v2028_v26 = vld [vmem:[%s3506_s22] sm:$0xff]  ;;  %s3651_s27 = sld [smem:[#allocation23_spill]] }
 0x109   : > { %v1740_v31 = vld [vmem:[%s3514_s20] sm:$0xff] }
 0x10a   : > { %v1583_v40 = vadd.f32 %v1581_v38, %v1516_v34  ;;  %v2021_v34 = vmul.f32 %v2020_v20, %v2018_v19  ;;  %v2037_v39 = vld [vmem:[%s3525_s2] sm:$0xff] }
 0x10c   : > { %v1639_v43 = vpop.f32.mrb[4].mxu0 }
 0x10d   : > { %v1647_v44 = vmul.f32 %v1646_v41, %v1639_v43  ;;  %v1706_v45 = vpop.f32.mrb[4].mxu1  ;;  %v2972_v46 = vpop.f32.mrb[5].mxu0  ;;  %v2029_v43 = vld [vmem:[%s3506_s22 + $0x8] sm:$0xff]  ;;  %s2316_s29 = smul.f32 0.999995, %s3539_s24 }
 0x10e   : > { %v1714_v47 = vmul.f32 %v1713_v42, %v1706_v45  ;;  %v2978_v48 = vpop.f32.mrb[5].mxu1  ;;  %v1642_v49 = vpop.f32.mrb[6].mxu0  ;;  %v1735_v45 = vmul.f32 %v1733_v17, %v1732_v23  ;;  %v2031_v46 = vmul.f32 %v2030_v27, %v2028_v26  ;;  %v2309_v26 = vstv %s3550_s0  ;;  %s1448_s24 = scalar_lea.vmem %s3651_s27, %s3458_s4 }
 0x10f   : > { %v1649_v50 = vadd.f32 %v1647_v44, %v1582_v37  ;;  %v1648_v51 = vmul.f32 %v1646_v41, %v1642_v49  ;;  %v1709_v52 = vpop.f32.mrb[6].mxu1  ;;  %v2973_v53 = vpop.f32.mrb[7].mxu0 }
 0x110   : > { %v2979_v54 = vpop.f32.mrb[7].mxu1  ;;  %v1715_v57 = vmul.f32 %v1713_v42, %v1709_v52 }
 0x111   : > { %v3460_v55 = vadd.f32 %v1714_v47, %v1649_v50  ;;  %v1650_v56 = vadd.f32 %v1648_v51, %v1583_v40  ;;  %v2039_v40 = vstv %s3492_s1  ;;  %v2022_v47 = vmul.f32 %v2020_v20, %v2019_v29  ;;  %v1741_v50 = vld [vmem:[%s3514_s20 + $0x8] sm:$0xff]  ;;  %s3547_s1 = sld [smem:[#allocation3 + %s2324_s25]] }
 0x112   : > { %v2038_v54 = vld [vmem:[%s3525_s2 + $0x8] sm:$0xff]  ;;  %v2319_v29 = vstv %s2316_s29  ;;  %s3650_s2 = sld [smem:[#allocation22_spill]] }
 0x113   : > { %v3468_v59 = vadd.f32 %v1715_v57, %v1650_v56  ;;  %v1726_v37 = vadd.f32 %v1724_v16, %v3460_v55  ;;  %v1743_v55 = vmul.f32 %v1742_v32, %v1740_v31  ;;  %v2040_v56 = vmul.f32 %v2039_v40, %v2037_v39 }
 0x114   : > { %v1804_v61 = vpop.f32.mrb[8].mxu0  ;;  %v2032_v57 = vmul.f32 %v2030_v27, %v2029_v43 }
 0x115   : > { %v1812_v62 = vmul.f32 %v1811_v58, %v1804_v61  ;;  %v1869_v63 = vpop.f32.mrb[8].mxu1  ;;  %v2984_v0 = vpop.f32.mrb[9].mxu0  ;;  %v1727_v49 = vadd.f32 %v1725_v22, %v3468_v59  ;;  %v1744_v59 = vmul.f32 %v1742_v32, %v1741_v50 }
 0x116   : > { %v1877_v1 = vmul.f32 %v1876_v60, %v1869_v63  ;;  %v2990_v2 = vpop.f32.mrb[9].mxu1  ;;  %v1807_v3 = vpop.f32.mrb[10].mxu0  ;;  %v2175_v63 = vstv %s3519_s11  ;;  %v2041_v0 = vmul.f32 %v2039_v40, %v2038_v54  ;;  %s3649_s11 = sld [smem:[#allocation21_spill]] }
 0x117   : > { %v1813_v4 = vmul.f32 %v1811_v58, %v1807_v3  ;;  %v1872_v5 = vpop.f32.mrb[10].mxu1  ;;  %v2985_v6 = vpop.f32.mrb[11].mxu0  ;;  %v2110_v58 = vstv %s3508_s30  ;;  %v1737_v2 = vadd.f32 %v1735_v45, %v1727_v49  ;;  %s1428_s30 = scalar_lea.vmem %s3608_s21, %s3458_s4  ;;  %s2326_s23 = smul.f32 0.999995, %s3547_s1  ;;  %v2338_v45 = vstv %s3554_s3 }
 0x118   : > { %v1879_v9 = vadd.f32 %v1877_v1, %v1812_v62  ;;  %v1878_v10 = vmul.f32 %v1876_v60, %v1872_v5  ;;  %v2991_v11 = vpop.f32.mrb[11].mxu1  ;;  %v1736_v60 = vadd.f32 %v1734_v30, %v1726_v37  ;;  %s1438_s12 = scalar_lea.vmem %s3650_s2, %s3458_s4 }
 0x119   : > { %v1746_v20 = vadd.f32 %v1744_v59, %v1737_v2 }
 0x11a   : > { %v1880_v14 = vadd.f32 %v1878_v10, %v1813_v4  ;;  %v1745_v11 = vadd.f32 %v1743_v55, %v1736_v60 }
 0x11c   : > { %v1936_v21 = vpop.f32.mrb[12].mxu0  ;;  %s1418_s15 = scalar_lea.vmem %s3649_s11, %s3458_s4 }
 0x11d   : > { %v1944_v24 = vmul.f32 %v1943_v15, %v1936_v21  ;;  %v2003_v25 = vpop.f32.mrb[12].mxu1  ;;  %v2996_v28 = vpop.f32.mrb[13].mxu0 }
 0x11e   : > { %v2011_v33 = vmul.f32 %v2010_v18, %v2003_v25  ;;  %v3002_v35 = vpop.f32.mrb[13].mxu1  ;;  %v1939_v36 = vpop.f32.mrb[14].mxu0  ;;  %v2317_v28 = vld [vmem:[%s1428_s30] sm:$0xff] }
 0x11f   : > { %v1946_v38 = vadd.f32 %v1944_v24, %v1879_v9  ;;  %v1945_v41 = vmul.f32 %v1943_v15, %v1939_v36  ;;  %v2006_v42 = vpop.f32.mrb[14].mxu1  ;;  %v2997_v44 = vpop.f32.mrb[15].mxu0  ;;  %v2242_v24 = vstv %s3545_s7  ;;  %v2327_v35 = vld [vmem:[%s1418_s15] sm:$0xff]  ;;  %v2329_v36 = vstv %s2326_s23 }
 0x120   : > { %v3003_v48 = vpop.f32.mrb[15].mxu1  ;;  %v2012_v53 = vmul.f32 %v2010_v18, %v2006_v42  ;;  %v2320_v40 = vmul.f32 %v2319_v29, %v2317_v28  ;;  %v2336_v44 = vld [vmem:[%s1438_s12] sm:$0xff]  ;;  %v2330_v50 = vmul.f32 %v2329_v36, %v2327_v35 }
 0x121   : > { %v2013_v51 = vadd.f32 %v2011_v33, %v1946_v38  ;;  %v1947_v52 = vadd.f32 %v1945_v41, %v1880_v14  ;;  %v2318_v33 = vld [vmem:[%s1428_s30 + $0x8] sm:$0xff]  ;;  %v2339_v55 = vmul.f32 %v2338_v45, %v2336_v44 }
 0x123   : > { %v2023_v61 = vadd.f32 %v2021_v34, %v2013_v51  ;;  %v2014_v62 = vadd.f32 %v2012_v53, %v1947_v52  ;;  %v2337_v53 = vld [vmem:[%s1438_s12 + $0x8] sm:$0xff] }
 0x124   : > { %v2103_v1 = vpop.f32.mrb[16].mxu0 }
 0x125   : > { %v2033_v3 = vadd.f32 %v2031_v46, %v2023_v61  ;;  %v2024_v4 = vadd.f32 %v2022_v47, %v2014_v62  ;;  %v2111_v5 = vmul.f32 %v2110_v58, %v2103_v1  ;;  %v2168_v6 = vpop.f32.mrb[16].mxu1  ;;  %v3008_v7 = vpop.f32.mrb[17].mxu0  ;;  %v2321_v46 = vmul.f32 %v2319_v29, %v2318_v33  ;;  %v2328_v47 = vld [vmem:[%s1418_s15 + $0x8] sm:$0xff] }
 0x126   : > { %v2176_v8 = vmul.f32 %v2175_v63, %v2168_v6  ;;  %v3014_v9 = vpop.f32.mrb[17].mxu1  ;;  %v2106_v10 = vpop.f32.mrb[18].mxu0  ;;  %v2340_v61 = vmul.f32 %v2338_v45, %v2337_v53 }
 0x127   : > { %v2042_v12 = vadd.f32 %v2040_v56, %v2033_v3  ;;  %v2034_v13 = vadd.f32 %v2032_v57, %v2024_v4  ;;  %v2112_v14 = vmul.f32 %v2110_v58, %v2106_v10  ;;  %v2171_v15 = vpop.f32.mrb[18].mxu1  ;;  %v3009_v16 = vpop.f32.mrb[19].mxu0  ;;  %v2331_v57 = vmul.f32 %v2329_v36, %v2328_v47 }
 0x128   : > { %v2178_v17 = vadd.f32 %v2176_v8, %v2111_v5  ;;  %v2177_v18 = vmul.f32 %v2175_v63, %v2171_v15  ;;  %v3015_v19 = vpop.f32.mrb[19].mxu1 }
 0x129   : > { %v2044_v21 = vadd.f32 %v2042_v12, %v1745_v11  ;;  %v2043_v22 = vadd.f32 %v2041_v0, %v2034_v13 }
 0x12a   : > { %v2179_v23 = vadd.f32 %v2177_v18, %v2112_v14 }
 0x12b   : > { %v2045_v25 = vadd.f32 %v2043_v22, %v1746_v20 }
 0x12c   : > { %v2235_v27 = vpop.f32.mrb[20].mxu0 }
 0x12d   : > { %v2243_v30 = vmul.f32 %v2242_v24, %v2235_v27  ;;  %v2302_v31 = vpop.f32.mrb[20].mxu1  ;;  %v3020_v32 = vpop.f32.mrb[21].mxu0 }
 0x12e   : > { %v2310_v34 = vmul.f32 %v2309_v26, %v2302_v31  ;;  %v3026_v37 = vpop.f32.mrb[21].mxu1  ;;  %v2238_v38 = vpop.f32.mrb[22].mxu0 }
 0x12f   : > { %v2245_v39 = vadd.f32 %v2243_v30, %v2178_v17  ;;  %v2244_v41 = vmul.f32 %v2242_v24, %v2238_v38  ;;  %v2305_v42 = vpop.f32.mrb[22].mxu1  ;;  %v3021_v43 = vpop.f32.mrb[23].mxu0 }
 0x130   : > { %v3027_v48 = vpop.f32.mrb[23].mxu1  ;;  %v2311_v52 = vmul.f32 %v2309_v26, %v2305_v42 }
 0x131   : > { %v2312_v49 = vadd.f32 %v2310_v34, %v2245_v39  ;;  %v2246_v51 = vadd.f32 %v2244_v41, %v2179_v23 }
 0x133   : > { %v2322_v54 = vadd.f32 %v2320_v40, %v2312_v49  ;;  %v2313_v56 = vadd.f32 %v2311_v52, %v2246_v51 }
 0x135   : > { %v2332_v58 = vadd.f32 %v2330_v50, %v2322_v54  ;;  %v2323_v60 = vadd.f32 %v2321_v46, %v2313_v56 }
 0x137   : > { %v2341_v62 = vadd.f32 %v2339_v55, %v2332_v58  ;;  %v2333_v63 = vadd.f32 %v2331_v57, %v2323_v60 }
 0x139   : > { %v2343_v59 = vadd.f32 %v2341_v62, %v2044_v21  ;;  %v2342_v0 = vadd.f32 %v2340_v61, %v2333_v63 }
 0x13b   : > { %2345 = vst.msk [vmem:[%s1448_s24] sm:$0xff] %vm1469_vm1, %v2343_v59  ;;  %v2344_v1 = vadd.f32 %v2342_v0, %v2045_v25 }
 0x13d   : > { %2346 = vst.msk [vmem:[%s1448_s24 + $0x8] sm:$0xff] %vm1469_vm1, %v2344_v1 }
 0x13e PF: > { %s3652_s7 = sld [smem:[#allocation6_spill]]  ;;  %s3653_s1 = sld [smem:[#allocation5_spill]] }
 0x13f   : > { %s3654_s26 = sld [smem:[#allocation7_spill]] }
 0x144   : > { %s39_s2 = sadd.s32 1, %s3652_s7  }
 0x145   : > { %p36_p10 = scmp.ge.s32.totalorder %s39_s2, 4  }
 0x147   :  { %38 = sbr.rel (!%p36_p10) target bundleno = 31 (0x1f), region = 209 }

</bundles_post_ra>
